<compile_context>
chip_gen: v6e
topology: v6e:2x2x1
jax: 0.10.0
libtpu: 0.0.40
codegen_flags: <defaults>
</compile_context>

<pallas_src>
import functools
import math

import jax
import jax.numpy as jnp
from jax.experimental import pallas as pl
from jax.experimental.pallas import tpu as pltpu

NEG_SLOPE = 0.2
_COMPUTE_DTYPE = jnp.bfloat16


# ----------------------------------------------------------------------------
# Generation-aware VMEM limit (v7x has only 64 MiB physical per TensorCore).
# ----------------------------------------------------------------------------
_VMEM_LIMIT = None


def _vmem_limit_bytes():
    global _VMEM_LIMIT
    if _VMEM_LIMIT is None:
        cap = 64 * 1024 * 1024  # conservative fallback (v7x physical)
        try:
            cap = int(getattr(pltpu.get_tpu_info(), "vmem_capacity_bytes", cap))
        except Exception:
            pass
        # 60% of physical, capped at 64 MiB, never below the 32 MiB default.
        _VMEM_LIMIT = max(32 * 1024 * 1024, min((cap * 3) // 5, 64 * 1024 * 1024))
    return _VMEM_LIMIT


def _pick_tile(dim, candidates):
    """Largest candidate that exactly divides `dim`, else the full dim."""
    for c in candidates:
        if c <= dim and dim % c == 0:
            return c
    return dim


# ----------------------------------------------------------------------------
# Pallas kernel: K-tiled matmul + bias + (optional) LeakyReLU + (optional) skip
# ----------------------------------------------------------------------------
def _matmul_bias_act_kernel(a_ref, b_ref, bias_ref, *rest,
                            neg_slope, apply_act, has_skip):
    if has_skip:
        skip_ref, o_ref, acc_ref = rest
    else:
        o_ref, acc_ref = rest

    k = pl.program_id(2)

    @pl.when(k == 0)
    def _():
        acc_ref[...] = jnp.zeros_like(acc_ref)

    # bf16 x bf16 -> f32 accumulate on the MXU.
    acc_ref[...] += jnp.dot(a_ref[...], b_ref[...],
                            preferred_element_type=jnp.float32)

    @pl.when(k == pl.num_programs(2) - 1)
    def _():
        out = acc_ref[...] + bias_ref[...]
        if has_skip:
            out = out + skip_ref[...].astype(jnp.float32)
        if apply_act:
            out = jnp.where(out >= 0.0, out, out * neg_slope)
        o_ref[...] = out.astype(o_ref.dtype)


def matmul_bias_act(a, b, bias, *, apply_act, skip=None,
                    neg_slope=NEG_SLOPE, out_dtype=_COMPUTE_DTYPE):
    """(M, K) @ (K, N) + bias [+ skip], optional LeakyReLU.  Hot path of every conv.

    a, b (and skip) are bf16; accumulation is f32 in a VMEM scratch; output is bf16.
    Tiles are exact divisors of M/N/K so no padding / unpad copies are needed.
    """
    M, K = a.shape
    Kb, N = b.shape
    assert K == Kb
    if skip is not None:
        assert skip.shape == (M, N)

    tm = _pick_tile(M, (256, 128, 64, 32, 16, 8))
    tn = _pick_tile(N, (256, 128, 512))            # prefer 2+ N tiles for megacore
    tk = _pick_tile(K, (2304, 1152, 1024, 512, 256, 128))

    bias2d = bias.reshape(1, N).astype(jnp.float32)

    kernel = functools.partial(
        _matmul_bias_act_kernel,
        neg_slope=neg_slope, apply_act=apply_act, has_skip=skip is not None)

    in_specs = [
        pl.BlockSpec((tm, tk), lambda i, j, k: (i, k)),
        pl.BlockSpec((tk, tn), lambda i, j, k: (k, j)),
        pl.BlockSpec((1, tn), lambda i, j, k: (0, j)),
    ]
    args = [a.astype(_COMPUTE_DTYPE), b.astype(_COMPUTE_DTYPE), bias2d]
    if skip is not None:
        in_specs.append(pl.BlockSpec((tm, tn), lambda i, j, k: (i, j)))
        args.append(skip.astype(_COMPUTE_DTYPE))

    out = pl.pallas_call(
        kernel,
        out_shape=jax.ShapeDtypeStruct((M, N), out_dtype),
        grid=(M // tm, N // tn, K // tk),
        in_specs=in_specs,
        out_specs=pl.BlockSpec((tm, tn), lambda i, j, k: (i, j)),
        scratch_shapes=[pltpu.VMEM((tm, tn), jnp.float32)],
        compiler_params=pltpu.CompilerParams(
            dimension_semantics=("parallel", "parallel", "arbitrary"),
            vmem_limit_bytes=_vmem_limit_bytes(),
        ),
    )(*args)
    return out


# ----------------------------------------------------------------------------
# Conv wrappers (bf16 im2col glue in plain JAX, matmul+epilogue in Pallas)
# ----------------------------------------------------------------------------
def conv2d_3x3(x, w, b, *, stride, apply_act, skip=None):
    """x: (N, H, W, Cin) NHWC bf16, w: (3, 3, Cin, Cout) HWIO, b: (Cout,). pad=1."""
    N, H, W, Cin = x.shape
    Cout = w.shape[-1]
    xp = jnp.pad(x, ((0, 0), (1, 1), (1, 1), (0, 0)))
    Ho = (H + 2 - 3) // stride + 1
    Wo = (W + 2 - 3) // stride + 1
    taps = []
    for kh in range(3):
        for kw in range(3):
            taps.append(
                xp[:, kh:kh + stride * (Ho - 1) + 1:stride,
                     kw:kw + stride * (Wo - 1) + 1:stride, :]
            )
    patches = jnp.concatenate(taps, axis=-1)            # (N, Ho, Wo, 9*Cin) bf16
    a = patches.reshape(N * Ho * Wo, 9 * Cin)
    wmat = w.reshape(9 * Cin, Cout)
    skip2d = None if skip is None else skip.reshape(N * Ho * Wo, Cout)
    y = matmul_bias_act(a, wmat, b, apply_act=apply_act, skip=skip2d)
    return y.reshape(N, Ho, Wo, Cout)


def conv2d_1x1(x, w, b, *, apply_act):
    """x: (N, H, W, Cin) bf16, w: (Cin, Cout), b: (Cout,)."""
    N, H, W, Cin = x.shape
    Cout = w.shape[-1]
    a = x.reshape(N * H * W, Cin)
    y = matmul_bias_act(a, w, b, apply_act=apply_act)
    return y.reshape(N, H, W, Cout)


# ----------------------------------------------------------------------------
# Deterministic parameter initialization (with baked-in spectral norm)
# ----------------------------------------------------------------------------
def _power_iteration_sigma(w2d, iters=10):
    v = jnp.ones((w2d.shape[1],), jnp.float32) / math.sqrt(w2d.shape[1])
    u = jnp.ones((w2d.shape[0],), jnp.float32) / math.sqrt(w2d.shape[0])
    for _ in range(iters):
        u = w2d @ v
        u = u / (jnp.linalg.norm(u) + 1e-12)
        v = w2d.T @ u
        v = v / (jnp.linalg.norm(v) + 1e-12)
    return jnp.dot(u, w2d @ v)


def _init_conv(key, kh, kw, cin, cout):
    kw_, kb_ = jax.random.split(key)
    w = jax.random.normal(kw_, (kh, kw, cin, cout), jnp.float32) / math.sqrt(kh * kw * cin)
    b = jax.random.normal(kb_, (cout,), jnp.float32) * 0.01
    sigma = _power_iteration_sigma(w.reshape(-1, cout))  # sigma(W) == sigma(W^T)
    w = (w / sigma).astype(_COMPUTE_DTYPE)               # weights stored in bf16
    return w, b                                          # bias stays f32


# ----------------------------------------------------------------------------
# Forward (functional, jitted)
# ----------------------------------------------------------------------------
def _apply(params, x_nchw, *, names):
    x = jnp.transpose(x_nchw, (0, 2, 3, 1)).astype(_COMPUTE_DTYPE)
    noise = []
    for idx, name in enumerate(names):
        w, b = params[name]
        stride = 1 if idx == 0 else 2
        x = conv2d_3x3(x, w, b, stride=stride, apply_act=True)
        noise.append(x)

    # ecdf = conv3x3 + LeakyReLU + SynResBlock(out, out)
    w, b = params['ecdf_conv']
    y = conv2d_3x3(x, w, b, stride=1, apply_act=True)
    w1, b1 = params['res_conv1']
    w2, b2 = params['res_conv2']
    ws, bs = params['res_skip']
    h = conv2d_3x3(y, w1, b1, stride=1, apply_act=True)
    s = conv2d_1x1(y, ws.reshape(ws.shape[2], ws.shape[3]), bs, apply_act=False)
    # conv2 with the 1x1-skip result fused into the epilogue (no residual kernel).
    out = conv2d_3x3(h, w2, b2, stride=1, apply_act=False, skip=s)
    noise.append(out)

    noise = noise[::-1]
    return [jnp.transpose(t, (0, 3, 1, 2)).astype(jnp.float32) for t in noise]


class SynNetEncoderPallas:
    def __init__(self, size, channel_multiplier=1, key=None):
        if key is None:
            key = jax.random.PRNGKey(0)
        cm = channel_multiplier
        channels = {4: 512, 8: 512, 16: 512, 32: 512, 64: 256 * cm, 128: 128 * cm,
                    256: 64 * cm, 512: 32 * cm, 1024: 16 * cm}
        self.log_size = int(math.log(size, 2))
        self.names = ['ecd%d' % i for i in range(self.log_size - 1)]

        keys = iter(jax.random.split(key, 64))
        params = {}
        params['ecd0'] = _init_conv(next(keys), 3, 3, 3, channels[size])
        in_channel = channels[size]
        out_channel = in_channel
        for i in range(self.log_size, 2, -1):
            out_channel = channels[2 ** (i - 1)]
            params[self.names[self.log_size - i + 1]] = _init_conv(
                next(keys), 3, 3, in_channel, out_channel)
            in_channel = out_channel
        params['ecdf_conv'] = _init_conv(next(keys), 3, 3, out_channel, out_channel)
        params['res_conv1'] = _init_conv(next(keys), 3, 3, out_channel, out_channel)
        params['res_conv2'] = _init_conv(next(keys), 3, 3, out_channel, out_channel)
        params['res_skip'] = _init_conv(next(keys), 1, 1, out_channel, out_channel)
        self.params = params
        self._jit_apply = jax.jit(functools.partial(_apply, names=tuple(self.names)))

    def __call__(self, x_nchw):
        return self._jit_apply(self.params, x_nchw)


# ----------------------------------------------------------------------------
if __name__ == "__main__":
    size = 8  # smallest supported size: log_size=3 -> ecd0 (s=1), ecd1 (s=2), ecdf
    enc = SynNetEncoderPallas(size=size, channel_multiplier=1,
                              key=jax.random.PRNGKey(0))

    x = jax.random.normal(jax.random.PRNGKey(0), (2, 3, size, size), jnp.float32)
    outs = enc(x)
    for o in outs:
        jax.block_until_ready(o)

    expected = [(2, 512, 4, 4), (2, 512, 4, 4), (2, 512, 8, 8)]
    assert [tuple(o.shape) for o in outs] == expected, [o.shape for o in outs]
    assert all(bool(jnp.all(jnp.isfinite(o))) for o in outs)
    print("KERNEL_OK")
</pallas_src>

<mosaic_0001>
module attributes {stable_mosaic.version = 11 : i64} {
  func.func @_matmul_bias_act_kernel(%arg0: i32, %arg1: i32, %arg2: i32, %arg3: memref<128x27xbf16, #tpu.memory_space<vmem>>, %arg4: memref<27x256xbf16, #tpu.memory_space<vmem>>, %arg5: memref<1x256xf32, #tpu.memory_space<vmem>>, %arg6: memref<128x256xbf16, #tpu.memory_space<vmem>>, %arg7: memref<128x256xf32, #tpu.memory_space<vmem>>) attributes {dimension_semantics = [#tpu.dimension_semantics<parallel>, #tpu.dimension_semantics<parallel>, #tpu.dimension_semantics<arbitrary>], iteration_bounds = array<i64: 1, 2, 1>, scalar_prefetch = 0 : i64, scratch_operands = 1 : i64, tpu.core_type = #tpu.core_type<tc>, window_params = [{transform_indices = @transform_0, window_bounds = array<i64: 128, 27>}, {transform_indices = @transform_1, window_bounds = array<i64: 27, 256>}, {transform_indices = @transform_2, window_bounds = array<i64: 1, 256>}, {transform_indices = @transform_3, window_bounds = array<i64: 128, 256>}]} {
    %c0_i32 = arith.constant 0 : i32
    %0 = arith.cmpi eq, %arg2, %c0_i32 : i32
    %1 = arith.extui %0 : i1 to i32
    %c0_i32_0 = arith.constant 0 : i32
    %2 = arith.cmpi ne, %1, %c0_i32_0 : i32
    scf.if %2 {
      %cst_10 = arith.constant 0.000000e+00 : f32
      %12 = vector.broadcast %cst_10 : f32 to vector<128x256xf32>
      %c0_11 = arith.constant 0 : index
      %c0_12 = arith.constant 0 : index
      %13 = vector.load %arg7[%c0_11, %c0_12] : memref<128x256xf32, #tpu.memory_space<vmem>>, vector<128x256xf32>
      tpu.vector_store %arg7[%c0_11, %c0_12], %12 {strides = array<i32>} : memref<128x256xf32, #tpu.memory_space<vmem>>, vector<128x256xf32>,
    } else {
    }
    %c0 = arith.constant 0 : index
    %c0_1 = arith.constant 0 : index
    %3 = vector.load %arg7[%c0, %c0_1] : memref<128x256xf32, #tpu.memory_space<vmem>>, vector<128x256xf32>
    %c0_2 = arith.constant 0 : index
    %c0_3 = arith.constant 0 : index
    %4 = vector.load %arg3[%c0_2, %c0_3] : memref<128x27xbf16, #tpu.memory_space<vmem>>, vector<128x27xbf16>
    %c0_4 = arith.constant 0 : index
    %c0_5 = arith.constant 0 : index
    %5 = vector.load %arg4[%c0_4, %c0_5] : memref<27x256xbf16, #tpu.memory_space<vmem>>, vector<27x256xbf16>
    %cst = arith.constant dense<0.000000e+00> : vector<128x256xf32>
    %6 = tpu.matmul %4, %5, %cst {dimension_numbers = #tpu.dot_dimension_numbers<[1], [0], [0], [1], [0, 0, 1, 1], [], []>} : vector<128x27xbf16>, vector<27x256xbf16>, vector<128x256xf32> -> vector<128x256xf32>
    %7 = arith.addf %3, %6 : vector<128x256xf32>
    %c0_6 = arith.constant 0 : index
    %c0_7 = arith.constant 0 : index
    %8 = vector.load %arg7[%c0_6, %c0_7] : memref<128x256xf32, #tpu.memory_space<vmem>>, vector<128x256xf32>
    tpu.vector_store %arg7[%c0_6, %c0_7], %7 {strides = array<i32>} : memref<128x256xf32, #tpu.memory_space<vmem>>, vector<128x256xf32>,
    %c0_i32_8 = arith.constant 0 : i32
    %9 = arith.cmpi eq, %arg2, %c0_i32_8 : i32
    %10 = arith.extui %9 : i1 to i32
    %c0_i32_9 = arith.constant 0 : i32
    %11 = arith.cmpi ne, %10, %c0_i32_9 : i32
    scf.if %11 {
      %c0_10 = arith.constant 0 : index
      %c0_11 = arith.constant 0 : index
      %12 = vector.load %arg7[%c0_10, %c0_11] : memref<128x256xf32, #tpu.memory_space<vmem>>, vector<128x256xf32>
      %c0_12 = arith.constant 0 : index
      %c0_13 = arith.constant 0 : index
      %13 = vector.load %arg5[%c0_12, %c0_13] : memref<1x256xf32, #tpu.memory_space<vmem>>, vector<1x256xf32>
      %14 = vector.broadcast %13 : vector<1x256xf32> to vector<128x256xf32>
      %15 = arith.addf %12, %14 : vector<128x256xf32>
      %cst_14 = arith.constant 0.000000e+00 : f32
      %16 = vector.broadcast %cst_14 : f32 to vector<128x256xf32>
      %17 = arith.cmpf oge, %15, %16 : vector<128x256xf32>
      %cst_15 = arith.constant 2.000000e-01 : f32
      %18 = vector.broadcast %cst_15 : f32 to vector<128x256xf32>
      %19 = arith.mulf %15, %18 : vector<128x256xf32>
      %20 = arith.select %17, %15, %19 : vector<128x256xi1>, vector<128x256xf32>
      %21 = arith.truncf %20 : vector<128x256xf32> to vector<128x256xbf16>
      %c0_16 = arith.constant 0 : index
      %c0_17 = arith.constant 0 : index
      %22 = vector.load %arg6[%c0_16, %c0_17] : memref<128x256xbf16, #tpu.memory_space<vmem>>, vector<128x256xbf16>
      tpu.vector_store %arg6[%c0_16, %c0_17], %21 {strides = array<i32>} : memref<128x256xbf16, #tpu.memory_space<vmem>>, vector<128x256xbf16>,
    } else {
    }
    return
  }
  func.func @transform_0(%arg0: i32, %arg1: i32, %arg2: i32) -> (i32, i32) {
    %c0_i32 = arith.constant 0 : i32
    return %arg0, %arg2 : i32, i32
  }
  func.func @transform_1(%arg0: i32, %arg1: i32, %arg2: i32) -> (i32, i32) {
    %c0_i32 = arith.constant 0 : i32
    return %arg2, %arg1 : i32, i32
  }
  func.func @transform_2(%arg0: i32, %arg1: i32, %arg2: i32) -> (i32, i32) {
    %c0_i32 = arith.constant 0 : i32
    %c0_i32_0 = arith.constant 0 : i32
    return %c0_i32, %arg1 : i32, i32
  }
  func.func @transform_3(%arg0: i32, %arg1: i32, %arg2: i32) -> (i32, i32) {
    %c0_i32 = arith.constant 0 : i32
    return %arg0, %arg1 : i32, i32
  }
}

module attributes {stable_mosaic.version = 11 : i64} {
  func.func @_matmul_bias_act_kernel(%arg0: i32, %arg1: i32, %arg2: i32, %arg3: memref<32x2304xbf16, #tpu.memory_space<vmem>>, %arg4: memref<2304x256xbf16, #tpu.memory_space<vmem>>, %arg5: memref<1x256xf32, #tpu.memory_space<vmem>>, %arg6: memref<32x256xbf16, #tpu.memory_space<vmem>>, %arg7: memref<32x256xf32, #tpu.memory_space<vmem>>) attributes {dimension_semantics = [#tpu.dimension_semantics<parallel>, #tpu.dimension_semantics<parallel>, #tpu.dimension_semantics<arbitrary>], iteration_bounds = array<i64: 1, 2, 2>, scalar_prefetch = 0 : i64, scratch_operands = 1 : i64, tpu.core_type = #tpu.core_type<tc>, window_params = [{transform_indices = @transform_0, window_bounds = array<i64: 32, 2304>}, {transform_indices = @transform_1, window_bounds = array<i64: 2304, 256>}, {transform_indices = @transform_2, window_bounds = array<i64: 1, 256>}, {transform_indices = @transform_3, window_bounds = array<i64: 32, 256>}]} {
    %c0_i32 = arith.constant 0 : i32
    %0 = arith.cmpi eq, %arg2, %c0_i32 : i32
    %1 = arith.extui %0 : i1 to i32
    %c0_i32_0 = arith.constant 0 : i32
    %2 = arith.cmpi ne, %1, %c0_i32_0 : i32
    scf.if %2 {
      %cst_9 = arith.constant 0.000000e+00 : f32
      %12 = vector.broadcast %cst_9 : f32 to vector<32x256xf32>
      %c0_10 = arith.constant 0 : index
      %c0_11 = arith.constant 0 : index
      %13 = vector.load %arg7[%c0_10, %c0_11] : memref<32x256xf32, #tpu.memory_space<vmem>>, vector<32x256xf32>
      tpu.vector_store %arg7[%c0_10, %c0_11], %12 {strides = array<i32>} : memref<32x256xf32, #tpu.memory_space<vmem>>, vector<32x256xf32>,
    } else {
    }
    %c0 = arith.constant 0 : index
    %c0_1 = arith.constant 0 : index
    %3 = vector.load %arg7[%c0, %c0_1] : memref<32x256xf32, #tpu.memory_space<vmem>>, vector<32x256xf32>
    %c0_2 = arith.constant 0 : index
    %c0_3 = arith.constant 0 : index
    %4 = vector.load %arg3[%c0_2, %c0_3] : memref<32x2304xbf16, #tpu.memory_space<vmem>>, vector<32x2304xbf16>
    %c0_4 = arith.constant 0 : index
    %c0_5 = arith.constant 0 : index
    %5 = vector.load %arg4[%c0_4, %c0_5] : memref<2304x256xbf16, #tpu.memory_space<vmem>>, vector<2304x256xbf16>
    %cst = arith.constant dense<0.000000e+00> : vector<32x256xf32>
    %6 = tpu.matmul %4, %5, %cst {dimension_numbers = #tpu.dot_dimension_numbers<[1], [0], [0], [1], [0, 0, 1, 1], [], []>} : vector<32x2304xbf16>, vector<2304x256xbf16>, vector<32x256xf32> -> vector<32x256xf32>
    %7 = arith.addf %3, %6 : vector<32x256xf32>
    %c0_6 = arith.constant 0 : index
    %c0_7 = arith.constant 0 : index
    %8 = vector.load %arg7[%c0_6, %c0_7] : memref<32x256xf32, #tpu.memory_space<vmem>>, vector<32x256xf32>
    tpu.vector_store %arg7[%c0_6, %c0_7], %7 {strides = array<i32>} : memref<32x256xf32, #tpu.memory_space<vmem>>, vector<32x256xf32>,
    %c1_i32 = arith.constant 1 : i32
    %9 = arith.cmpi eq, %arg2, %c1_i32 : i32
    %10 = arith.extui %9 : i1 to i32
    %c0_i32_8 = arith.constant 0 : i32
    %11 = arith.cmpi ne, %10, %c0_i32_8 : i32
    scf.if %11 {
      %c0_9 = arith.constant 0 : index
      %c0_10 = arith.constant 0 : index
      %12 = vector.load %arg7[%c0_9, %c0_10] : memref<32x256xf32, #tpu.memory_space<vmem>>, vector<32x256xf32>
      %c0_11 = arith.constant 0 : index
      %c0_12 = arith.constant 0 : index
      %13 = vector.load %arg5[%c0_11, %c0_12] : memref<1x256xf32, #tpu.memory_space<vmem>>, vector<1x256xf32>
      %14 = vector.broadcast %13 : vector<1x256xf32> to vector<32x256xf32>
      %15 = arith.addf %12, %14 : vector<32x256xf32>
      %cst_13 = arith.constant 0.000000e+00 : f32
      %16 = vector.broadcast %cst_13 : f32 to vector<32x256xf32>
      %17 = arith.cmpf oge, %15, %16 : vector<32x256xf32>
      %cst_14 = arith.constant 2.000000e-01 : f32
      %18 = vector.broadcast %cst_14 : f32 to vector<32x256xf32>
      %19 = arith.mulf %15, %18 : vector<32x256xf32>
      %20 = arith.select %17, %15, %19 : vector<32x256xi1>, vector<32x256xf32>
      %21 = arith.truncf %20 : vector<32x256xf32> to vector<32x256xbf16>
      %c0_15 = arith.constant 0 : index
      %c0_16 = arith.constant 0 : index
      %22 = vector.load %arg6[%c0_15, %c0_16] : memref<32x256xbf16, #tpu.memory_space<vmem>>, vector<32x256xbf16>
      tpu.vector_store %arg6[%c0_15, %c0_16], %21 {strides = array<i32>} : memref<32x256xbf16, #tpu.memory_space<vmem>>, vector<32x256xbf16>,
    } else {
    }
    return
  }
  func.func @transform_0(%arg0: i32, %arg1: i32, %arg2: i32) -> (i32, i32) {
    %c0_i32 = arith.constant 0 : i32
    return %arg0, %arg2 : i32, i32
  }
  func.func @transform_1(%arg0: i32, %arg1: i32, %arg2: i32) -> (i32, i32) {
    %c0_i32 = arith.constant 0 : i32
    return %arg2, %arg1 : i32, i32
  }
  func.func @transform_2(%arg0: i32, %arg1: i32, %arg2: i32) -> (i32, i32) {
    %c0_i32 = arith.constant 0 : i32
    %c0_i32_0 = arith.constant 0 : i32
    return %c0_i32, %arg1 : i32, i32
  }
  func.func @transform_3(%arg0: i32, %arg1: i32, %arg2: i32) -> (i32, i32) {
    %c0_i32 = arith.constant 0 : i32
    return %arg0, %arg1 : i32, i32
  }
}

module attributes {stable_mosaic.version = 11 : i64} {
  func.func @_matmul_bias_act_kernel(%arg0: i32, %arg1: i32, %arg2: i32, %arg3: memref<32x512xbf16, #tpu.memory_space<vmem>>, %arg4: memref<512x256xbf16, #tpu.memory_space<vmem>>, %arg5: memref<1x256xf32, #tpu.memory_space<vmem>>, %arg6: memref<32x256xbf16, #tpu.memory_space<vmem>>, %arg7: memref<32x256xf32, #tpu.memory_space<vmem>>) attributes {dimension_semantics = [#tpu.dimension_semantics<parallel>, #tpu.dimension_semantics<parallel>, #tpu.dimension_semantics<arbitrary>], iteration_bounds = array<i64: 1, 2, 1>, scalar_prefetch = 0 : i64, scratch_operands = 1 : i64, tpu.core_type = #tpu.core_type<tc>, window_params = [{transform_indices = @transform_0, window_bounds = array<i64: 32, 512>}, {transform_indices = @transform_1, window_bounds = array<i64: 512, 256>}, {transform_indices = @transform_2, window_bounds = array<i64: 1, 256>}, {transform_indices = @transform_3, window_bounds = array<i64: 32, 256>}]} {
    %c0_i32 = arith.constant 0 : i32
    %0 = arith.cmpi eq, %arg2, %c0_i32 : i32
    %1 = arith.extui %0 : i1 to i32
    %c0_i32_0 = arith.constant 0 : i32
    %2 = arith.cmpi ne, %1, %c0_i32_0 : i32
    scf.if %2 {
      %cst_10 = arith.constant 0.000000e+00 : f32
      %12 = vector.broadcast %cst_10 : f32 to vector<32x256xf32>
      %c0_11 = arith.constant 0 : index
      %c0_12 = arith.constant 0 : index
      %13 = vector.load %arg7[%c0_11, %c0_12] : memref<32x256xf32, #tpu.memory_space<vmem>>, vector<32x256xf32>
      tpu.vector_store %arg7[%c0_11, %c0_12], %12 {strides = array<i32>} : memref<32x256xf32, #tpu.memory_space<vmem>>, vector<32x256xf32>,
    } else {
    }
    %c0 = arith.constant 0 : index
    %c0_1 = arith.constant 0 : index
    %3 = vector.load %arg7[%c0, %c0_1] : memref<32x256xf32, #tpu.memory_space<vmem>>, vector<32x256xf32>
    %c0_2 = arith.constant 0 : index
    %c0_3 = arith.constant 0 : index
    %4 = vector.load %arg3[%c0_2, %c0_3] : memref<32x512xbf16, #tpu.memory_space<vmem>>, vector<32x512xbf16>
    %c0_4 = arith.constant 0 : index
    %c0_5 = arith.constant 0 : index
    %5 = vector.load %arg4[%c0_4, %c0_5] : memref<512x256xbf16, #tpu.memory_space<vmem>>, vector<512x256xbf16>
    %cst = arith.constant dense<0.000000e+00> : vector<32x256xf32>
    %6 = tpu.matmul %4, %5, %cst {dimension_numbers = #tpu.dot_dimension_numbers<[1], [0], [0], [1], [0, 0, 1, 1], [], []>} : vector<32x512xbf16>, vector<512x256xbf16>, vector<32x256xf32> -> vector<32x256xf32>
    %7 = arith.addf %3, %6 : vector<32x256xf32>
    %c0_6 = arith.constant 0 : index
    %c0_7 = arith.constant 0 : index
    %8 = vector.load %arg7[%c0_6, %c0_7] : memref<32x256xf32, #tpu.memory_space<vmem>>, vector<32x256xf32>
    tpu.vector_store %arg7[%c0_6, %c0_7], %7 {strides = array<i32>} : memref<32x256xf32, #tpu.memory_space<vmem>>, vector<32x256xf32>,
    %c0_i32_8 = arith.constant 0 : i32
    %9 = arith.cmpi eq, %arg2, %c0_i32_8 : i32
    %10 = arith.extui %9 : i1 to i32
    %c0_i32_9 = arith.constant 0 : i32
    %11 = arith.cmpi ne, %10, %c0_i32_9 : i32
    scf.if %11 {
      %c0_10 = arith.constant 0 : index
      %c0_11 = arith.constant 0 : index
      %12 = vector.load %arg7[%c0_10, %c0_11] : memref<32x256xf32, #tpu.memory_space<vmem>>, vector<32x256xf32>
      %c0_12 = arith.constant 0 : index
      %c0_13 = arith.constant 0 : index
      %13 = vector.load %arg5[%c0_12, %c0_13] : memref<1x256xf32, #tpu.memory_space<vmem>>, vector<1x256xf32>
      %14 = vector.broadcast %13 : vector<1x256xf32> to vector<32x256xf32>
      %15 = arith.addf %12, %14 : vector<32x256xf32>
      %16 = arith.truncf %15 : vector<32x256xf32> to vector<32x256xbf16>
      %c0_14 = arith.constant 0 : index
      %c0_15 = arith.constant 0 : index
      %17 = vector.load %arg6[%c0_14, %c0_15] : memref<32x256xbf16, #tpu.memory_space<vmem>>, vector<32x256xbf16>
      tpu.vector_store %arg6[%c0_14, %c0_15], %16 {strides = array<i32>} : memref<32x256xbf16, #tpu.memory_space<vmem>>, vector<32x256xbf16>,
    } else {
    }
    return
  }
  func.func @transform_0(%arg0: i32, %arg1: i32, %arg2: i32) -> (i32, i32) {
    %c0_i32 = arith.constant 0 : i32
    return %arg0, %arg2 : i32, i32
  }
  func.func @transform_1(%arg0: i32, %arg1: i32, %arg2: i32) -> (i32, i32) {
    %c0_i32 = arith.constant 0 : i32
    return %arg2, %arg1 : i32, i32
  }
  func.func @transform_2(%arg0: i32, %arg1: i32, %arg2: i32) -> (i32, i32) {
    %c0_i32 = arith.constant 0 : i32
    %c0_i32_0 = arith.constant 0 : i32
    return %c0_i32, %arg1 : i32, i32
  }
  func.func @transform_3(%arg0: i32, %arg1: i32, %arg2: i32) -> (i32, i32) {
    %c0_i32 = arith.constant 0 : i32
    return %arg0, %arg1 : i32, i32
  }
}

module attributes {stable_mosaic.version = 11 : i64} {
  func.func @_matmul_bias_act_kernel(%arg0: i32, %arg1: i32, %arg2: i32, %arg3: memref<32x2304xbf16, #tpu.memory_space<vmem>>, %arg4: memref<2304x256xbf16, #tpu.memory_space<vmem>>, %arg5: memref<1x256xf32, #tpu.memory_space<vmem>>, %arg6: memref<32x256xbf16, #tpu.memory_space<vmem>>, %arg7: memref<32x256xf32, #tpu.memory_space<vmem>>) attributes {dimension_semantics = [#tpu.dimension_semantics<parallel>, #tpu.dimension_semantics<parallel>, #tpu.dimension_semantics<arbitrary>], iteration_bounds = array<i64: 1, 2, 2>, scalar_prefetch = 0 : i64, scratch_operands = 1 : i64, tpu.core_type = #tpu.core_type<tc>, window_params = [{transform_indices = @transform_0, window_bounds = array<i64: 32, 2304>}, {transform_indices = @transform_1, window_bounds = array<i64: 2304, 256>}, {transform_indices = @transform_2, window_bounds = array<i64: 1, 256>}, {transform_indices = @transform_3, window_bounds = array<i64: 32, 256>}]} {
    %c0_i32 = arith.constant 0 : i32
    %0 = arith.cmpi eq, %arg2, %c0_i32 : i32
    %1 = arith.extui %0 : i1 to i32
    %c0_i32_0 = arith.constant 0 : i32
    %2 = arith.cmpi ne, %1, %c0_i32_0 : i32
    scf.if %2 {
      %cst_9 = arith.constant 0.000000e+00 : f32
      %12 = vector.broadcast %cst_9 : f32 to vector<32x256xf32>
      %c0_10 = arith.constant 0 : index
      %c0_11 = arith.constant 0 : index
      %13 = vector.load %arg7[%c0_10, %c0_11] : memref<32x256xf32, #tpu.memory_space<vmem>>, vector<32x256xf32>
      tpu.vector_store %arg7[%c0_10, %c0_11], %12 {strides = array<i32>} : memref<32x256xf32, #tpu.memory_space<vmem>>, vector<32x256xf32>,
    } else {
    }
    %c0 = arith.constant 0 : index
    %c0_1 = arith.constant 0 : index
    %3 = vector.load %arg7[%c0, %c0_1] : memref<32x256xf32, #tpu.memory_space<vmem>>, vector<32x256xf32>
    %c0_2 = arith.constant 0 : index
    %c0_3 = arith.constant 0 : index
    %4 = vector.load %arg3[%c0_2, %c0_3] : memref<32x2304xbf16, #tpu.memory_space<vmem>>, vector<32x2304xbf16>
    %c0_4 = arith.constant 0 : index
    %c0_5 = arith.constant 0 : index
    %5 = vector.load %arg4[%c0_4, %c0_5] : memref<2304x256xbf16, #tpu.memory_space<vmem>>, vector<2304x256xbf16>
    %cst = arith.constant dense<0.000000e+00> : vector<32x256xf32>
    %6 = tpu.matmul %4, %5, %cst {dimension_numbers = #tpu.dot_dimension_numbers<[1], [0], [0], [1], [0, 0, 1, 1], [], []>} : vector<32x2304xbf16>, vector<2304x256xbf16>, vector<32x256xf32> -> vector<32x256xf32>
    %7 = arith.addf %3, %6 : vector<32x256xf32>
    %c0_6 = arith.constant 0 : index
    %c0_7 = arith.constant 0 : index
    %8 = vector.load %arg7[%c0_6, %c0_7] : memref<32x256xf32, #tpu.memory_space<vmem>>, vector<32x256xf32>
    tpu.vector_store %arg7[%c0_6, %c0_7], %7 {strides = array<i32>} : memref<32x256xf32, #tpu.memory_space<vmem>>, vector<32x256xf32>,
    %c1_i32 = arith.constant 1 : i32
    %9 = arith.cmpi eq, %arg2, %c1_i32 : i32
    %10 = arith.extui %9 : i1 to i32
    %c0_i32_8 = arith.constant 0 : i32
    %11 = arith.cmpi ne, %10, %c0_i32_8 : i32
    scf.if %11 {
      %c0_9 = arith.constant 0 : index
      %c0_10 = arith.constant 0 : index
      %12 = vector.load %arg7[%c0_9, %c0_10] : memref<32x256xf32, #tpu.memory_space<vmem>>, vector<32x256xf32>
      %c0_11 = arith.constant 0 : index
      %c0_12 = arith.constant 0 : index
      %13 = vector.load %arg5[%c0_11, %c0_12] : memref<1x256xf32, #tpu.memory_space<vmem>>, vector<1x256xf32>
      %14 = vector.broadcast %13 : vector<1x256xf32> to vector<32x256xf32>
      %15 = arith.addf %12, %14 : vector<32x256xf32>
      %cst_13 = arith.constant 0.000000e+00 : f32
      %16 = vector.broadcast %cst_13 : f32 to vector<32x256xf32>
      %17 = arith.cmpf oge, %15, %16 : vector<32x256xf32>
      %cst_14 = arith.constant 2.000000e-01 : f32
      %18 = vector.broadcast %cst_14 : f32 to vector<32x256xf32>
      %19 = arith.mulf %15, %18 : vector<32x256xf32>
      %20 = arith.select %17, %15, %19 : vector<32x256xi1>, vector<32x256xf32>
      %21 = arith.truncf %20 : vector<32x256xf32> to vector<32x256xbf16>
      %c0_15 = arith.constant 0 : index
      %c0_16 = arith.constant 0 : index
      %22 = vector.load %arg6[%c0_15, %c0_16] : memref<32x256xbf16, #tpu.memory_space<vmem>>, vector<32x256xbf16>
      tpu.vector_store %arg6[%c0_15, %c0_16], %21 {strides = array<i32>} : memref<32x256xbf16, #tpu.memory_space<vmem>>, vector<32x256xbf16>,
    } else {
    }
    return
  }
  func.func @transform_0(%arg0: i32, %arg1: i32, %arg2: i32) -> (i32, i32) {
    %c0_i32 = arith.constant 0 : i32
    return %arg0, %arg2 : i32, i32
  }
  func.func @transform_1(%arg0: i32, %arg1: i32, %arg2: i32) -> (i32, i32) {
    %c0_i32 = arith.constant 0 : i32
    return %arg2, %arg1 : i32, i32
  }
  func.func @transform_2(%arg0: i32, %arg1: i32, %arg2: i32) -> (i32, i32) {
    %c0_i32 = arith.constant 0 : i32
    %c0_i32_0 = arith.constant 0 : i32
    return %c0_i32, %arg1 : i32, i32
  }
  func.func @transform_3(%arg0: i32, %arg1: i32, %arg2: i32) -> (i32, i32) {
    %c0_i32 = arith.constant 0 : i32
    return %arg0, %arg1 : i32, i32
  }
}

module attributes {stable_mosaic.version = 11 : i64} {
  func.func @_matmul_bias_act_kernel(%arg0: i32, %arg1: i32, %arg2: i32, %arg3: memref<32x2304xbf16, #tpu.memory_space<vmem>>, %arg4: memref<2304x256xbf16, #tpu.memory_space<vmem>>, %arg5: memref<1x256xf32, #tpu.memory_space<vmem>>, %arg6: memref<32x256xbf16, #tpu.memory_space<vmem>>, %arg7: memref<32x256xbf16, #tpu.memory_space<vmem>>, %arg8: memref<32x256xf32, #tpu.memory_space<vmem>>) attributes {dimension_semantics = [#tpu.dimension_semantics<parallel>, #tpu.dimension_semantics<parallel>, #tpu.dimension_semantics<arbitrary>], iteration_bounds = array<i64: 1, 2, 2>, scalar_prefetch = 0 : i64, scratch_operands = 1 : i64, tpu.core_type = #tpu.core_type<tc>, window_params = [{transform_indices = @transform_0, window_bounds = array<i64: 32, 2304>}, {transform_indices = @transform_1, window_bounds = array<i64: 2304, 256>}, {transform_indices = @transform_2, window_bounds = array<i64: 1, 256>}, {transform_indices = @transform_3, window_bounds = array<i64: 32, 256>}, {transform_indices = @transform_4, window_bounds = array<i64: 32, 256>}]} {
    %c0_i32 = arith.constant 0 : i32
    %0 = arith.cmpi eq, %arg2, %c0_i32 : i32
    %1 = arith.extui %0 : i1 to i32
    %c0_i32_0 = arith.constant 0 : i32
    %2 = arith.cmpi ne, %1, %c0_i32_0 : i32
    scf.if %2 {
      %cst_9 = arith.constant 0.000000e+00 : f32
      %12 = vector.broadcast %cst_9 : f32 to vector<32x256xf32>
      %c0_10 = arith.constant 0 : index
      %c0_11 = arith.constant 0 : index
      %13 = vector.load %arg8[%c0_10, %c0_11] : memref<32x256xf32, #tpu.memory_space<vmem>>, vector<32x256xf32>
      tpu.vector_store %arg8[%c0_10, %c0_11], %12 {strides = array<i32>} : memref<32x256xf32, #tpu.memory_space<vmem>>, vector<32x256xf32>,
    } else {
    }
    %c0 = arith.constant 0 : index
    %c0_1 = arith.constant 0 : index
    %3 = vector.load %arg8[%c0, %c0_1] : memref<32x256xf32, #tpu.memory_space<vmem>>, vector<32x256xf32>
    %c0_2 = arith.constant 0 : index
    %c0_3 = arith.constant 0 : index
    %4 = vector.load %arg3[%c0_2, %c0_3] : memref<32x2304xbf16, #tpu.memory_space<vmem>>, vector<32x2304xbf16>
    %c0_4 = arith.constant 0 : index
    %c0_5 = arith.constant 0 : index
    %5 = vector.load %arg4[%c0_4, %c0_5] : memref<2304x256xbf16, #tpu.memory_space<vmem>>, vector<2304x256xbf16>
    %cst = arith.constant dense<0.000000e+00> : vector<32x256xf32>
    %6 = tpu.matmul %4, %5, %cst {dimension_numbers = #tpu.dot_dimension_numbers<[1], [0], [0], [1], [0, 0, 1, 1], [], []>} : vector<32x2304xbf16>, vector<2304x256xbf16>, vector<32x256xf32> -> vector<32x256xf32>
    %7 = arith.addf %3, %6 : vector<32x256xf32>
    %c0_6 = arith.constant 0 : index
    %c0_7 = arith.constant 0 : index
    %8 = vector.load %arg8[%c0_6, %c0_7] : memref<32x256xf32, #tpu.memory_space<vmem>>, vector<32x256xf32>
    tpu.vector_store %arg8[%c0_6, %c0_7], %7 {strides = array<i32>} : memref<32x256xf32, #tpu.memory_space<vmem>>, vector<32x256xf32>,
    %c1_i32 = arith.constant 1 : i32
    %9 = arith.cmpi eq, %arg2, %c1_i32 : i32
    %10 = arith.extui %9 : i1 to i32
    %c0_i32_8 = arith.constant 0 : i32
    %11 = arith.cmpi ne, %10, %c0_i32_8 : i32
    scf.if %11 {
      %c0_9 = arith.constant 0 : index
      %c0_10 = arith.constant 0 : index
      %12 = vector.load %arg8[%c0_9, %c0_10] : memref<32x256xf32, #tpu.memory_space<vmem>>, vector<32x256xf32>
      %c0_11 = arith.constant 0 : index
      %c0_12 = arith.constant 0 : index
      %13 = vector.load %arg5[%c0_11, %c0_12] : memref<1x256xf32, #tpu.memory_space<vmem>>, vector<1x256xf32>
      %14 = vector.broadcast %13 : vector<1x256xf32> to vector<32x256xf32>
      %15 = arith.addf %12, %14 : vector<32x256xf32>
      %c0_13 = arith.constant 0 : index
      %c0_14 = arith.constant 0 : index
      %16 = vector.load %arg6[%c0_13, %c0_14] : memref<32x256xbf16, #tpu.memory_space<vmem>>, vector<32x256xbf16>
      %17 = arith.extf %16 : vector<32x256xbf16> to vector<32x256xf32>
      %18 = arith.addf %15, %17 : vector<32x256xf32>
      %19 = arith.truncf %18 : vector<32x256xf32> to vector<32x256xbf16>
      %c0_15 = arith.constant 0 : index
      %c0_16 = arith.constant 0 : index
      %20 = vector.load %arg7[%c0_15, %c0_16] : memref<32x256xbf16, #tpu.memory_space<vmem>>, vector<32x256xbf16>
      tpu.vector_store %arg7[%c0_15, %c0_16], %19 {strides = array<i32>} : memref<32x256xbf16, #tpu.memory_space<vmem>>, vector<32x256xbf16>,
    } else {
    }
    return
  }
  func.func @transform_0(%arg0: i32, %arg1: i32, %arg2: i32) -> (i32, i32) {
    %c0_i32 = arith.constant 0 : i32
    return %arg0, %arg2 : i32, i32
  }
  func.func @transform_1(%arg0: i32, %arg1: i32, %arg2: i32) -> (i32, i32) {
    %c0_i32 = arith.constant 0 : i32
    return %arg2, %arg1 : i32, i32
  }
  func.func @transform_2(%arg0: i32, %arg1: i32, %arg2: i32) -> (i32, i32) {
    %c0_i32 = arith.constant 0 : i32
    %c0_i32_0 = arith.constant 0 : i32
    return %c0_i32, %arg1 : i32, i32
  }
  func.func @transform_3(%arg0: i32, %arg1: i32, %arg2: i32) -> (i32, i32) {
    %c0_i32 = arith.constant 0 : i32
    return %arg0, %arg1 : i32, i32
  }
  func.func @transform_4(%arg0: i32, %arg1: i32, %arg2: i32) -> (i32, i32) {
    %c0_i32 = arith.constant 0 : i32
    return %arg0, %arg1 : i32, i32
  }
}

</mosaic_0001>

<bundles_post_ra>
// kernel: _apply.6
= control target key start
LH: loop header
LB: loop body
LE: loop exit
PB: predicated region body
PF: predicated region fallthrough
CT: control target
= control target key end

     0   :  { %8 = vsyncpa [#allocation5], 0  ;;  %s1643_s0 = inlined_call_operand.vmem [shape: bf16[128,27], index: 0, kind: input, shape index: {}]   ;;  %s1644_s1 = inlined_call_operand.vmem [shape: bf16[27,512], index: 1, kind: input, shape index: {}]   ;;  %s1645_s2 = inlined_call_operand.hbm [shape: f32[1,512], index: 2, kind: input, shape index: {}]   ;;  %s1646_s3 = inlined_call_operand.vmem [shape: bf16[128,512], index: 3, kind: output, shape index: {}]  }
   0x1   :  { %10 = vsyncpa [#allocation5 + $0x1], 0  ;;  %s1428_s12 = smov 0   ;;  %s1430_s13 = smov 0  }
   0x2   :  { %s1432_s14 = smov 0   ;;  %s1434_s15 = smov 0  }
   0x3   :  { %s1436_s16 = smov 0   ;;  %s1438_s17 = smov 0  }
   0x4 LB: > { %s1182_s18 = sadd.s32 4294967295, %s1403_s17   ;;  %s31_s19 = sadd.s32 1, %s1399_s16  ;;  %s1403_s17 = sphi %s1438_s17, %s16_s17   ;;  %s1399_s16 = sphi %s1436_s16, %s1654_s16   ;;  %s1395_s15 = sphi %s1434_s15, %s1653_s15   ;;  %s1391_s14 = sphi %s1432_s14, %s1652_s14   ;;  %s1387_s13 = sphi %s1430_s13, %s1651_s13   ;;  %s1383_s12 = sphi %s1428_s12, %s1650_s12  }
   0x5   : > { %p33_p0 = scmp.ge.s32.totalorder %s31_s19, 2  ;;  %s72_s20 = sadd.s32 1, %s1391_s14 }
   0x6   : > { %p79_p1 = scmp.ne.s32.totalorder %s1391_s14, %s1387_s13  ;;  %p80_p2 = scmp.eq.s32.totalorder %s1403_s17, 0 }
   0x7   : > { %s1656_s19 = smov (%p33_p0, %s31_s19), 0  ;;  %p111_p4 = scmp.ne.s32.totalorder %s1387_s13, %s1383_s12 }
   0x8   : > { %p1464_p3 = por %p80_p2, %p79_p1  ;;  %s68_s22 = ssub.s32 %s1399_s16, %s1656_s19 }
   0x9   : > { %p112_p5 = scmp.eq.s32.totalorder %s1182_s18, 0  ;;  %p70_p6 = scmp.eq.s32.totalorder %s68_s22, 0 }
   0xa   : > { %p137_p7 = scmp.eq.s32.totalorder %s1182_s18, 1  ;;  %p1186_p10 = scmp.ge.s32.totalorder %s1403_s17, 2 }
   0xb   : > { %p1471_p8 = por %p112_p5, %p111_p4 }
   0xc   : > { %s1476_s24 = scalar_select %p70_p6, %s1391_s14, %s72_s20  }
   0xd   : > { %p1478_p9 = por %p137_p7, %p79_p1  ;;  %171 = sbr.rel (%p1186_p10) target bundleno = 39 (0x27), region = 20 }
  0x12   : > { %174 = sbr.rel (!%p1464_p3) target bundleno = 24 (0x18), region = 24  ;;  %s176_s26 = sand.u32 (%p1464_p3), 1, %s1391_s14  }
  0x13   : > { %s1238_s27 = sshll.u32 (%p1464_p3), %s1399_s16, 3  ;;  %s1187_s28 = sshll.u32 (%p1464_p3), %s176_s26, 5 }
  0x14   : > { %s184_s4 = scalar_lea.vmem (%p1464_p3), %s1644_s1, %s1238_s27  ;;  %s178_s5 = scalar_lea.vmem (%p1464_p3), [#allocation3], %s1187_s28 }
  0x15   : > { %v219_v0 = vld [vmem:[%s184_s4] sm:$0xff] (%p1464_p3)  ;;  %v221_v1 = vld [vmem:[%s184_s4 + $0x10] sm:$0xff] (%p1464_p3) }
  0x16   : > { %v223_v2 = vld [vmem:[%s184_s4 + $0x20] sm:$0xff] (%p1464_p3)  ;;  %220 = vst [vmem:[%s178_s5] sm:$0xff] (%p1464_p3), %v219_v0  ;;  %222 = vst [vmem:[%s178_s5 + $0x8] sm:$0xff] (%p1464_p3), %v221_v1  ;;  %v225_v3 = vld [vmem:[%s184_s4 + $0x30] sm:$0xff] (%p1464_p3) }
  0x17   : > { %224 = vst [vmem:[%s178_s5 + $0x10] sm:$0xff] %v223_v2  ;;  %226 = vst [vmem:[%s178_s5 + $0x18] sm:$0xff] %v225_v3 }
  0x18 PF: > { %s233_s6 = sand.u32 1, %s1391_s14   ;;  %s1239_s7 = sshll.u32 %s1399_s16, 5 }
  0x19   : > { %s1190_s8 = sshll.u32 %s233_s6, 1  ;;  %s243_s11 = scalar_lea.hbm %s1645_s2, %s1239_s7 }
  0x1a   : > { %s237_s12 = scalar_lea.vmem [#allocation4], %s1190_s8  ;;  %s234_s20 = scalar_lea.sflag [#allocation5], %s233_s6 }
  0x1b   : > { %s245_s18 = sshll.u32 %s237_s12, 4  ;;  %s1405_s26 = smov [#allocation4]   ;;  %s246_s18 = int_to_ptr.vmem [resolvable:$true] %s245_s18 }
  0x1c   : > { %s1339_s22 = scalar_lea.vmem %s246_s18, 32  ;;  %s1343_s27 = sshll.u32 %s1405_s26, 4  ;;  %s1344_s27 = int_to_ptr.vmem [resolvable:$false] %s1343_s27 }
  0x1d   : > { %p1340_p11 = scmp.ne.s32.totalorder %s246_s18, %s1339_s22  ;;  %s1345_s28 = scalar_lea.vmem %s1344_s27, 64 }
  0x1e   : > { %p1346_p0 = scmp.lt.s32.totalorder %s246_s18, %s1344_s27  ;;  %p1347_p1 = scmp.lt.s32.totalorder %s1345_s28, %s1339_s22 }
  0x1f   : > { %p1341_p12 = pnand %p1340_p11, %p1464_p3 }
  0x20   : > { %p1348_p2 = por %p1347_p1, %p1346_p0 }
  0x21   : > { %p1342_p13 = pneg %p1341_p12 }
  0x23   : > { %p1349_p4 = pnand %p1348_p2, %p1342_p13 }
  0x25   : > { %1352 = shalt.err (!%p1349_p4)
}
  0x26   : > { %1261 = dma.hbm_to_vmem [thread:$0]  (%p1464_p3), %s243_s11, 32, %s246_s18, %s234_s20  }
  0x27 PF: > { %p1193_p5 = scmp.ge.s32.totalorder %s1403_s17, 1  ;;  %p250_p6 = scmp.lt.s32.totalorder %s1403_s17, 3 }
  0x29   : > { %p251_p7 = pnand %p1193_p5, %p250_p6 }
  0x2a   : > { %s1502_s29 = sand.u32 (!%p251_p7), 1, %s1387_s13  }
  0x2b   : > { %254 = sbr.rel (%p251_p7) target bundleno = 306 (0x132), region = 66  ;;  %s1194_s30 = sshll.u32 (!%p251_p7), %s1502_s29, 5 }
  0x2c   : > { %s1195_s4 = sshll.u32 (!%p251_p7), %s1502_s29, 1  ;;  %s259_s5 = scalar_lea.vmem (!%p251_p7), [#allocation3], %s1194_s30 }
  0x2d   : > { %s264_s6 = scalar_lea.sflag (!%p251_p7), [#allocation5], %s1502_s29  ;;  %s1507_s21 = scalar_lea.vmem (!%p251_p7), [#allocation4], %s1195_s4 }
  0x30   : > { %1378 = dma.done.wait (%p1471_p8), %s264_s6, 32  }
  0x31   : > { %1380 = vsyncadd (%p1471_p8), %s264_s6, 4294967264  ;;  %vm487_vm0 = vcmask 1044480   ;;  %v1406_v4 = vmov 0   ;;  %vm488_vm1 = vcmask 1045504   ;;  %v1407_v5 = vmov 65535   ;;  %v1319_v14 = vld [vmem:[%s1643_s0] sm:$0xff]  }
  0x32   : > { %529 = vmatprep.mubr.bf16.mxu0 %v1406_v4  ;;  %569 = vmatprep.mubr.bf16.mxu1 %v1406_v4  ;;  %v489_v6 = vsel %vm487_vm0, 4294967295, %v1407_v5  ;;  %v1313_v8 = vld [vmem:[%s259_s5 + $0x14] ss:$8 sps:$4 sm:$0x3f]   ;;  %v1316_v11 = vld [vmem:[%s259_s5 + $0x4] ss:$8 sps:$4 sm:$0xff]   ;;  %v711_v22 = vlaneseq }
  0x33   : > { %v490_v7 = vsel %vm488_vm1, %v489_v6, 0  ;;  %v1315_v9 = vld [vmem:[%s259_s5 + $0x10] ss:$8 sps:$4 sm:$0x3f]   ;;  %v1318_v13 = vld [vmem:[%s259_s5] ss:$8 sps:$4 sm:$0xff]  }
  0x34   : > { %v495_v10 = vand.u32 %v1313_v8, %v490_v7  ;;  %v492_v12 = vand.u32 %v1315_v9, %v490_v7  ;;  %v1320_v15 = vld [vmem:[%s1643_s0 + $0x20] sm:$0xff]   ;;  %vm462_vm2 = vcmask 220160   ;;  %v1321_v16 = vld [vmem:[%s1643_s0 + $0x8] sm:$0xff]   ;;  %v1323_v18 = vld [vmem:[%s1643_s0 + $0x10] sm:$0xff]   ;;  %v712_v23 = vshrl.u32 %v711_v22, 7  ;;  %s1196_s6 = sshll.u32 %s1502_s29, 7 }
  0x35   : > { %v1322_v17 = vld [vmem:[%s1643_s0 + $0x28] sm:$0xff]   ;;  %v1324_v19 = vld [vmem:[%s1643_s0 + $0x30] sm:$0xff]   ;;  %v1325_v20 = vld [vmem:[%s1643_s0 + $0x18] sm:$0xff]   ;;  %s1559_s29 = scalar_lea.vmem [#allocation6], %s1196_s6 }
  0x36   : > { %509 = vmatprep.subr.bf16.mxu0 %v495_v10  ;;  %1257 = vmatprep.subr.bf16.mxu1 %v495_v10  ;;  %v1326_v21 = vld [vmem:[%s1643_s0 + $0x38] sm:$0xff]   ;;  %v713_v24 = vsub.s32 0, %v712_v23  ;;  %v709_v25 = vld [vmem:[%s1507_s21] sm:$0x3]  ;;  %v717_v26 = vsub.s32 1, %v712_v23  ;;  %s1256_s21 = sshll.u32 (%p1478_p9), %s1395_s15, 3 }
  0x37   : > { %510 = vmatpush1.bf16.msra.mxu0 %v492_v12  ;;  %1259 = vmatpush1.bf16.msra.mxu1 %v492_v12  ;;  %s973_s8 = scalar_lea.vmem (%p1478_p9), %s1646_s3, %s1256_s21 }
  0x38   : > { %511 = vmatprep.subr.bf16.mxu0 %v1316_v11  ;;  %1258 = vmatprep.subr.bf16.mxu1 %v1316_v11  ;;  %v1546_v27 = vrot.slane %v709_v25, %v713_v24  ;;  %v1548_v30 = vrot.slane %v709_v25, %v717_v26 }
  0x3b   : > { %512 = vmatpush1.bf16.msra.mxu0 %v1318_v13  ;;  %1260 = vmatpush1.bf16.msra.mxu1 %v1318_v13 }
  0x3e   : > { %1209 = vmatmul.mubr.msk.bf16.vlgmr.msra.gmra.mxu0 %vm462_vm2, %v1319_v14  ;;  %1213 = vmatmul.mubr.msk.bf16.vlgmr.msra.gmra.mxu1 %vm462_vm2, %v1320_v15 }
  0x3f   : > { %539 = vmatprep.mubr.bf16.mxu0 %v1406_v4  ;;  %579 = vmatprep.mubr.bf16.mxu1 %v1406_v4 }
  0x46   : > { %1210 = vmatmul.mubr.msk.bf16.gmra.mxu0 %vm462_vm2, %v1321_v16  ;;  %1214 = vmatmul.mubr.msk.bf16.gmra.mxu1 %vm462_vm2, %v1322_v17 }
  0x47   : > { %549 = vmatprep.mubr.bf16.mxu0 %v1406_v4  ;;  %589 = vmatprep.mubr.bf16.mxu1 %v1406_v4 }
  0x4e   : > { %1211 = vmatmul.mubr.msk.bf16.gmra.mxu0 %vm462_vm2, %v1323_v18  ;;  %1215 = vmatmul.mubr.msk.bf16.gmra.mxu1 %vm462_vm2, %v1324_v19 }
  0x4f   : > { %559 = vmatprep.mubr.bf16.mxu0 %v1406_v4  ;;  %599 = vmatprep.mubr.bf16.mxu1 %v1406_v4 }
  0x56   : > { %1212 = vmatmul.mubr.msk.bf16.gmra.mxu0 %vm462_vm2, %v1325_v20  ;;  %1216 = vmatmul.mubr.msk.bf16.gmra.mxu1 %vm462_vm2, %v1326_v21 }
  0xfe   : > { %v531_v28 = vpop.f32.mrf.mxu0  ;;  %v571_v29 = vpop.f32.mrf.mxu1 }
  0xff   : > { %v721_v31 = vadd.f32 %v1546_v27, %v531_v28  ;;  %v737_v32 = vadd.f32 %v1546_v27, %v571_v29 }
 0x100   : > { %v533_v33 = vpop.f32.mrf.mxu0  ;;  %v573_v34 = vpop.f32.mrf.mxu1 }
 0x101   : > { %v785_v35 = vmul.f32 0.2, %v721_v31  ;;  %v801_v36 = vmul.f32 0.2, %v737_v32  ;;  %vm753_vm3 = vcmp.ge.f32.partialorder %v721_v31, 0.0  ;;  %vm769_vm4 = vcmp.ge.f32.partialorder %v737_v32, 0.0 }
 0x102   : > { %v722_v37 = vadd.f32 %v1548_v30, %v533_v33  ;;  %v738_v38 = vadd.f32 %v1548_v30, %v573_v34  ;;  %v535_v39 = vpop.f32.mrf.mxu0  ;;  %v575_v40 = vpop.f32.mrf.mxu1 }
 0x103   : > { %v723_v41 = vadd.f32 %v1546_v27, %v535_v39  ;;  %v739_v42 = vadd.f32 %v1546_v27, %v575_v40  ;;  %v817_v47 = vsel %vm753_vm3, %v721_v31, %v785_v35  ;;  %v833_v48 = vsel %vm769_vm4, %v737_v32, %v801_v36 }
 0x104   : > { %vm754_vm5 = vcmp.ge.f32.partialorder %v722_v37, 0.0  ;;  %v786_v43 = vmul.f32 0.2, %v722_v37  ;;  %vm770_vm6 = vcmp.ge.f32.partialorder %v738_v38, 0.0  ;;  %v802_v44 = vmul.f32 0.2, %v738_v38  ;;  %v537_v45 = vpop.f32.mrf.mxu0  ;;  %v577_v46 = vpop.f32.mrf.mxu1 }
 0x105   : > { %v787_v49 = vmul.f32 0.2, %v723_v41  ;;  %v803_v50 = vmul.f32 0.2, %v739_v42  ;;  %v724_v53 = vadd.f32 %v1548_v30, %v537_v45  ;;  %v740_v54 = vadd.f32 %v1548_v30, %v577_v46 }
 0x106   : > { %v818_v51 = vsel %vm754_vm5, %v722_v37, %v786_v43  ;;  %v834_v52 = vsel %vm770_vm6, %v738_v38, %v802_v44  ;;  %v541_v55 = vpop.f32.mrf.mxu0  ;;  %v581_v56 = vpop.f32.mrf.mxu1  ;;  %vm755_vm7 = vcmp.ge.f32.partialorder %v723_v41, 0.0  ;;  %vm771_vm8 = vcmp.ge.f32.partialorder %v739_v42, 0.0 }
 0x107   : > { %v1240_v57 = vpack.c.bf16 %v818_v51, %v817_v47  ;;  %v1248_v58 = vpack.c.bf16 %v834_v52, %v833_v48  ;;  %vm756_vm9 = vcmp.ge.f32.partialorder %v724_v53, 0.0  ;;  %v788_v59 = vmul.f32 0.2, %v724_v53 }
 0x108   : > { %vm772_vm10 = vcmp.ge.f32.partialorder %v740_v54, 0.0  ;;  %v804_v60 = vmul.f32 0.2, %v740_v54  ;;  %v543_v61 = vpop.f32.mrf.mxu0  ;;  %v583_v62 = vpop.f32.mrf.mxu1  ;;  %v725_v63 = vadd.f32 %v1546_v27, %v541_v55  ;;  %v741_v0 = vadd.f32 %v1546_v27, %v581_v56 }
 0x109   : > { %945 = vst [vmem:[%s1559_s29] sm:$0xff] %v1240_v57  ;;  %953 = vst [vmem:[%s1559_s29 + $0x40] sm:$0xff] %v1248_v58  ;;  %v726_v1 = vadd.f32 %v1548_v30, %v543_v61  ;;  %v742_v2 = vadd.f32 %v1548_v30, %v583_v62  ;;  %v819_v3 = vsel %vm755_vm7, %v723_v41, %v787_v49 }
 0x10a   : > { %v835_v4 = vsel %vm771_vm8, %v739_v42, %v803_v50  ;;  %v820_v5 = vsel %vm756_vm9, %v724_v53, %v788_v59  ;;  %v836_v6 = vsel %vm772_vm10, %v740_v54, %v804_v60  ;;  %v545_v7 = vpop.f32.mrf.mxu0  ;;  %v585_v8 = vpop.f32.mrf.mxu1  ;;  %vm757_vm11 = vcmp.ge.f32.partialorder %v725_v63, 0.0 }
 0x10b   : > { %v1241_v9 = vpack.c.bf16 %v820_v5, %v819_v3  ;;  %v1249_v10 = vpack.c.bf16 %v836_v6, %v835_v4  ;;  %v789_v11 = vmul.f32 0.2, %v725_v63  ;;  %vm773_vm12 = vcmp.ge.f32.partialorder %v741_v0, 0.0 }
 0x10c   : > { %v805_v12 = vmul.f32 0.2, %v741_v0  ;;  %vm758_vm13 = vcmp.ge.f32.partialorder %v726_v1, 0.0  ;;  %v790_v13 = vmul.f32 0.2, %v726_v1  ;;  %v547_v14 = vpop.f32.mrf.mxu0  ;;  %v587_v15 = vpop.f32.mrf.mxu1  ;;  %vm774_vm14 = vcmp.ge.f32.partialorder %v742_v2, 0.0 }
 0x10d   : > { %946 = vst [vmem:[%s1559_s29 + $0x8] sm:$0xff] %v1241_v9  ;;  %954 = vst [vmem:[%s1559_s29 + $0x48] sm:$0xff] %v1249_v10  ;;  %v821_v16 = vsel %vm757_vm11, %v725_v63, %v789_v11  ;;  %v806_v17 = vmul.f32 0.2, %v742_v2  ;;  %v727_v18 = vadd.f32 %v1546_v27, %v545_v7  ;;  %v743_v21 = vadd.f32 %v1546_v27, %v585_v8 }
 0x10e   : > { %v837_v19 = vsel %vm773_vm12, %v741_v0, %v805_v12  ;;  %v822_v20 = vsel %vm758_vm13, %v726_v1, %v790_v13  ;;  %v728_v22 = vadd.f32 %v1548_v30, %v547_v14  ;;  %v551_v23 = vpop.f32.mrf.mxu0  ;;  %v591_v24 = vpop.f32.mrf.mxu1  ;;  %v744_v36 = vadd.f32 %v1548_v30, %v587_v15 }
 0x10f   : > { %v1242_v25 = vpack.c.bf16 %v822_v20, %v821_v16  ;;  %v838_v26 = vsel %vm774_vm14, %v742_v2, %v806_v17  ;;  %vm759_vm15 = vcmp.ge.f32.partialorder %v727_v18, 0.0  ;;  %v791_v28 = vmul.f32 0.2, %v727_v18 }
 0x110   : > { %v1250_v29 = vpack.c.bf16 %v838_v26, %v837_v19  ;;  %vm775_vm0 = vcmp.ge.f32.partialorder %v743_v21, 0.0  ;;  %v807_v31 = vmul.f32 0.2, %v743_v21  ;;  %vm760_vm1 = vcmp.ge.f32.partialorder %v728_v22, 0.0  ;;  %v553_v32 = vpop.f32.mrf.mxu0  ;;  %v593_v33 = vpop.f32.mrf.mxu1 }
 0x111   : > { %947 = vst [vmem:[%s1559_s29 + $0x10] sm:$0xff] %v1242_v25  ;;  %v823_v34 = vsel %vm759_vm15, %v727_v18, %v791_v28  ;;  %v792_v35 = vmul.f32 0.2, %v728_v22  ;;  %v729_v37 = vadd.f32 %v1546_v27, %v551_v23  ;;  %v745_v39 = vadd.f32 %v1546_v27, %v591_v24 }
 0x112   : > { %955 = vst [vmem:[%s1559_s29 + $0x50] sm:$0xff] %v1250_v29  ;;  %v839_v38 = vsel %vm775_vm0, %v743_v21, %v807_v31  ;;  %v730_v40 = vadd.f32 %v1548_v30, %v553_v32  ;;  %v746_v41 = vadd.f32 %v1548_v30, %v593_v33  ;;  %v555_v42 = vpop.f32.mrf.mxu0  ;;  %v595_v43 = vpop.f32.mrf.mxu1  ;;  %vm776_vm2 = vcmp.ge.f32.partialorder %v744_v36, 0.0 }
 0x113   : > { %v824_v44 = vsel %vm760_vm1, %v728_v22, %v792_v35  ;;  %v808_v45 = vmul.f32 0.2, %v744_v36  ;;  %vm761_vm3 = vcmp.ge.f32.partialorder %v729_v37, 0.0  ;;  %v793_v47 = vmul.f32 0.2, %v729_v37 }
 0x114   : > { %v1243_v46 = vpack.c.bf16 %v824_v44, %v823_v34  ;;  %vm777_vm4 = vcmp.ge.f32.partialorder %v745_v39, 0.0  ;;  %v809_v48 = vmul.f32 0.2, %v745_v39  ;;  %v557_v49 = vpop.f32.mrf.mxu0  ;;  %v597_v50 = vpop.f32.mrf.mxu1  ;;  %vm762_vm5 = vcmp.ge.f32.partialorder %v730_v40, 0.0 }
 0x115   : > { %v840_v51 = vsel %vm776_vm2, %v744_v36, %v808_v45  ;;  %v794_v52 = vmul.f32 0.2, %v730_v40  ;;  %vm778_vm6 = vcmp.ge.f32.partialorder %v746_v41, 0.0  ;;  %v825_v54 = vsel %vm761_vm3, %v729_v37, %v793_v47  ;;  %v1032_v47 = vld [vmem:[%s1559_s29] sm:$0xff] (%p1478_p9) }
 0x116   : > { %948 = vst [vmem:[%s1559_s29 + $0x18] sm:$0xff] %v1243_v46  ;;  %v1251_v53 = vpack.c.bf16 %v840_v51, %v839_v38  ;;  %v841_v55 = vsel %vm777_vm4, %v745_v39, %v809_v48  ;;  %v810_v56 = vmul.f32 0.2, %v746_v41  ;;  %v561_v57 = vpop.f32.mrf.mxu0  ;;  %v601_v58 = vpop.f32.mrf.mxu1  ;;  %v731_v60 = vadd.f32 %v1546_v27, %v555_v42  ;;  %v1034_v48 = vld [vmem:[%s1559_s29 + $0x8] sm:$0xff] (%p1478_p9)  ;;  %1033 = vst [vmem:[%s973_s8] sm:$0xff] (%p1478_p9), %v1032_v47 }
 0x117   : > { %v826_v59 = vsel %vm762_vm5, %v730_v40, %v794_v52  ;;  %v747_v61 = vadd.f32 %v1546_v27, %v595_v43  ;;  %v732_v62 = vadd.f32 %v1548_v30, %v557_v49  ;;  %v748_v1 = vadd.f32 %v1548_v30, %v597_v50  ;;  %1035 = vst [vmem:[%s973_s8 + $0x10] sm:$0xff] (%p1478_p9), %v1034_v48 }
 0x118   : > { %956 = vst [vmem:[%s1559_s29 + $0x58] sm:$0xff] %v1251_v53  ;;  %v1244_v63 = vpack.c.bf16 %v826_v59, %v825_v54  ;;  %v842_v0 = vsel %vm778_vm6, %v746_v41, %v810_v56  ;;  %v733_v2 = vadd.f32 %v1546_v27, %v561_v57  ;;  %v563_v3 = vpop.f32.mrf.mxu0  ;;  %v603_v4 = vpop.f32.mrf.mxu1  ;;  %vm763_vm7 = vcmp.ge.f32.partialorder %v731_v60, 0.0  ;;  %v1036_v49 = vld [vmem:[%s1559_s29 + $0x10] sm:$0xff] (%p1478_p9)  ;;  %v1050_v56 = vld [vmem:[%s1559_s29 + $0x48] sm:$0xff] (%p1478_p9) }
 0x119   : > { %v1252_v5 = vpack.c.bf16 %v842_v0, %v841_v55  ;;  %v795_v6 = vmul.f32 0.2, %v731_v60  ;;  %vm779_vm8 = vcmp.ge.f32.partialorder %v747_v61, 0.0  ;;  %v811_v7 = vmul.f32 0.2, %v747_v61  ;;  %1037 = vst [vmem:[%s973_s8 + $0x20] sm:$0xff] (%p1478_p9), %v1036_v49 }
 0x11a   : > { %949 = vst [vmem:[%s1559_s29 + $0x20] sm:$0xff] %v1244_v63  ;;  %vm764_vm9 = vcmp.ge.f32.partialorder %v732_v62, 0.0  ;;  %v796_v8 = vmul.f32 0.2, %v732_v62  ;;  %vm780_vm10 = vcmp.ge.f32.partialorder %v748_v1, 0.0  ;;  %v565_v9 = vpop.f32.mrf.mxu0  ;;  %v605_v10 = vpop.f32.mrf.mxu1  ;;  %vm765_vm11 = vcmp.ge.f32.partialorder %v733_v2, 0.0 }
 0x11b   : > { %957 = vst [vmem:[%s1559_s29 + $0x60] sm:$0xff] %v1252_v5  ;;  %v827_v11 = vsel %vm763_vm7, %v731_v60, %v795_v6  ;;  %v812_v12 = vmul.f32 0.2, %v748_v1  ;;  %v797_v14 = vmul.f32 0.2, %v733_v2  ;;  %v749_v15 = vadd.f32 %v1546_v27, %v601_v58  ;;  %v1048_v55 = vld [vmem:[%s1559_s29 + $0x40] sm:$0xff] (%p1478_p9) }
 0x11c   : > { %v828_v13 = vsel %vm764_vm9, %v732_v62, %v796_v8  ;;  %v734_v16 = vadd.f32 %v1548_v30, %v563_v3  ;;  %v843_v17 = vsel %vm779_vm8, %v747_v61, %v811_v7  ;;  %v750_v20 = vadd.f32 %v1548_v30, %v603_v4  ;;  %v567_v21 = vpop.f32.mrf.mxu0  ;;  %v607_v22 = vpop.f32.mrf.mxu1  ;;  %1049 = vst [vmem:[%s973_s8 + $0x80] sm:$0xff] (%p1478_p9), %v1048_v55  ;;  %v1052_v57 = vld [vmem:[%s1559_s29 + $0x50] sm:$0xff] (%p1478_p9) }
 0x11d   : > { %v1245_v18 = vpack.c.bf16 %v828_v13, %v827_v11  ;;  %v844_v19 = vsel %vm780_vm10, %v748_v1, %v812_v12  ;;  %vm781_vm12 = vcmp.ge.f32.partialorder %v749_v15, 0.0  ;;  %v813_v24 = vmul.f32 0.2, %v749_v15  ;;  %v1038_v50 = vld [vmem:[%s1559_s29 + $0x18] sm:$0xff] (%p1478_p9)  ;;  %1051 = vst [vmem:[%s973_s8 + $0x90] sm:$0xff] (%p1478_p9), %v1050_v56  ;;  %1053 = vst [vmem:[%s973_s8 + $0xa0] sm:$0xff] (%p1478_p9), %v1052_v57 }
 0x11e   : > { %v1253_v23 = vpack.c.bf16 %v844_v19, %v843_v17  ;;  %vm766_vm13 = vcmp.ge.f32.partialorder %v734_v16, 0.0  ;;  %v798_v25 = vmul.f32 0.2, %v734_v16  ;;  %vm782_vm14 = vcmp.ge.f32.partialorder %v750_v20, 0.0  ;;  %1039 = vst [vmem:[%s973_s8 + $0x30] sm:$0xff] (%p1478_p9), %v1038_v50 }
 0x11f   : > { %950 = vst [vmem:[%s1559_s29 + $0x28] sm:$0xff] %v1245_v18  ;;  %v814_v26 = vmul.f32 0.2, %v750_v20  ;;  %v735_v28 = vadd.f32 %v1546_v27, %v565_v9  ;;  %v829_v29 = vsel %vm765_vm11, %v733_v2, %v797_v14  ;;  %v751_v31 = vadd.f32 %v1546_v27, %v605_v10  ;;  %v1054_v58 = vld [vmem:[%s1559_s29 + $0x58] sm:$0xff] (%p1478_p9) }
 0x120   : > { %958 = vst [vmem:[%s1559_s29 + $0x68] sm:$0xff] %v1253_v23  ;;  %v736_v32 = vadd.f32 %v1548_v30, %v567_v21  ;;  %v752_v33 = vadd.f32 %v1548_v30, %v607_v22  ;;  %v845_v34 = vsel %vm781_vm12, %v749_v15, %v813_v24  ;;  %v830_v35 = vsel %vm766_vm13, %v734_v16, %v798_v25 }
 0x121   : > { %v846_v36 = vsel %vm782_vm14, %v750_v20, %v814_v26  ;;  %v799_v37 = vmul.f32 0.2, %v735_v28  ;;  %v1246_v38 = vpack.c.bf16 %v830_v35, %v829_v29  ;;  %vm767_vm15 = vcmp.ge.f32.partialorder %v735_v28, 0.0  ;;  %v1040_v51 = vld [vmem:[%s1559_s29 + $0x20] sm:$0xff] (%p1478_p9)  ;;  %1055 = vst [vmem:[%s973_s8 + $0xb0] sm:$0xff] (%p1478_p9), %v1054_v58 }
 0x122   : > { %v1254_v39 = vpack.c.bf16 %v846_v36, %v845_v34  ;;  %v815_v40 = vmul.f32 0.2, %v751_v31  ;;  %vm783_vm0 = vcmp.ge.f32.partialorder %v751_v31, 0.0  ;;  %vm768_vm1 = vcmp.ge.f32.partialorder %v736_v32, 0.0  ;;  %1041 = vst [vmem:[%s973_s8 + $0x40] sm:$0xff] (%p1478_p9), %v1040_v51  ;;  %v1056_v59 = vld [vmem:[%s1559_s29 + $0x60] sm:$0xff] (%p1478_p9) }
 0x123   : > { %v800_v41 = vmul.f32 0.2, %v736_v32  ;;  %vm784_vm2 = vcmp.ge.f32.partialorder %v752_v33, 0.0  ;;  %951 = vst [vmem:[%s1559_s29 + $0x30] sm:$0xff] %v1246_v38  ;;  %v816_v27 = vmul.f32 0.2, %v752_v33  ;;  %v831_v42 = vsel %vm767_vm15, %v735_v28, %v799_v37 }
 0x124   : > { %959 = vst [vmem:[%s1559_s29 + $0x70] sm:$0xff] %v1254_v39  ;;  %v847_v30 = vsel %vm783_vm0, %v751_v31, %v815_v40  ;;  %967 = sbr.rel (!%p1478_p9) target bundleno = 306 (0x132), region = 86  ;;  %1057 = vst [vmem:[%s973_s8 + $0xc0] sm:$0xff] (%p1478_p9), %v1056_v59 }
 0x125   : > { %v832_v43 = vsel %vm768_vm1, %v736_v32, %v800_v41  ;;  %v848_v45 = vsel %vm784_vm2, %v752_v33, %v816_v27 }
 0x126   : > { %v1247_v44 = vpack.c.bf16 %v832_v43, %v831_v42  ;;  %v1255_v46 = vpack.c.bf16 %v848_v45, %v847_v30  ;;  %v1042_v52 = vld [vmem:[%s1559_s29 + $0x28] sm:$0xff] (%p1478_p9) }
 0x127   : > { %1043 = vst [vmem:[%s973_s8 + $0x50] sm:$0xff] (%p1478_p9), %v1042_v52  ;;  %v1058_v60 = vld [vmem:[%s1559_s29 + $0x68] sm:$0xff] (%p1478_p9) }
 0x128   : > { %952 = vst [vmem:[%s1559_s29 + $0x38] sm:$0xff] %v1247_v44  ;;  %960 = vst [vmem:[%s1559_s29 + $0x78] sm:$0xff] %v1255_v46 }
 0x129   : > { %1059 = vst [vmem:[%s973_s8 + $0xd0] sm:$0xff] %v1058_v60 }
 0x12a   : > { %v1044_v53 = vld [vmem:[%s1559_s29 + $0x30] sm:$0xff] }
 0x12b   : > { %1045 = vst [vmem:[%s973_s8 + $0x60] sm:$0xff] %v1044_v53  ;;  %v1060_v61 = vld [vmem:[%s1559_s29 + $0x70] sm:$0xff] }
 0x12c   : > { %1061 = vst [vmem:[%s973_s8 + $0xe0] sm:$0xff] %v1060_v61 }
 0x12f   : > { %v1046_v54 = vld [vmem:[%s1559_s29 + $0x38] sm:$0xff] }
 0x130   : > { %1047 = vst [vmem:[%s973_s8 + $0x70] sm:$0xff] %v1046_v54  ;;  %v1062_v62 = vld [vmem:[%s1559_s29 + $0x78] sm:$0xff] }
 0x131   : > { %1063 = vst [vmem:[%s973_s8 + $0xf0] sm:$0xff] %v1062_v62 }
 0x132 PF: > { %s16_s17 = sadd.s32 1, %s1403_s17   ;;  %s1650_s12 = smov %s1387_s13 }
 0x133   : > { %p13_p3 = scmp.ge.s32.totalorder %s16_s17, 4   ;;  %s1651_s13 = smov %s1391_s14 }
 0x134   : > { %s1652_s14 = smov %s1476_s24  ;;  %s1653_s15 = smov %s1399_s16 }
 0x135   : > { %s1654_s16 = smov %s1656_s19  ;;  %15 = sbr.rel (!%p13_p3) target bundleno = 4 (0x4), region = 167 }
 0x13a   :  { %1079 = vsyncpa [#allocation5], 1 }
 0x13b   :  { %1081 = vsyncpa [#allocation5 + $0x1], 1 }

// kernel: _apply.10
= control target key start
LH: loop header
LB: loop body
LE: loop exit
PB: predicated region body
PF: predicated region fallthrough
CT: control target
= control target key end

     0   :  { %s1645_s12 = smov 0   ;;  %s1647_s13 = smov 0   ;;  %s1957_s0 = inlined_call_operand.vmem [shape: bf16[32,512], index: 0, kind: input, shape index: {}]   ;;  %s1958_s1 = inlined_call_operand.vmem [shape: bf16[512,512], index: 1, kind: input, shape index: {}]   ;;  %s1959_s2 = inlined_call_operand.vmem [shape: f32[1,512], index: 2, kind: input, shape index: {}]   ;;  %s1960_s3 = inlined_call_operand.vmem [shape: bf16[32,512], index: 3, kind: output, shape index: {}]  }
   0x1   :  { %s1649_s14 = smov 0   ;;  %s1651_s15 = smov 0  }
   0x2   :  { %s1653_s16 = smov 0  }
   0x3 LB: > { %s28_s17 = sadd.s32 1, %s1619_s15  ;;  %s1338_s18 = sadd.s32 4294967295, %s1623_s16   ;;  %s1623_s16 = sphi %s1653_s16, %s13_s16   ;;  %s1619_s15 = sphi %s1651_s15, %s1965_s15   ;;  %s1615_s14 = sphi %s1649_s14, %s1964_s14   ;;  %s1611_s13 = sphi %s1647_s13, %s1963_s13   ;;  %s1607_s12 = sphi %s1645_s12, %s1962_s12  }
   0x4   : > { %p30_p0 = scmp.ge.s32.totalorder %s28_s17, 2  ;;  %p76_p1 = scmp.ne.s32.totalorder %s1611_s13, %s1607_s12 }
   0x5   : > { %p77_p2 = scmp.eq.s32.totalorder %s1623_s16, 0  ;;  %p134_p4 = scmp.eq.s32.totalorder %s1338_s18, 1 }
   0x6   : > { %s1967_s17 = smov (%p30_p0, %s28_s17), 0  ;;  %s69_s20 = sadd.s32 1, %s1611_s13 }
   0x7   : > { %p78_p3 = por %p77_p2, %p76_p1  ;;  %s65_s19 = ssub.s32 %s1619_s15, %s1967_s17 }
   0x8   : > { %p67_p5 = scmp.eq.s32.totalorder %s65_s19, 0  ;;  %p1680_p6 = por %p134_p4, %p76_p1 }
   0x9   : > { %p1342_p7 = scmp.ge.s32.totalorder %s1623_s16, 2 }
   0xa   : > { %s1685_s22 = scalar_select %p67_p5, %s1611_s13, %s69_s20  }
   0xb   : > { %171 = sbr.rel (%p1342_p7) target bundleno = 52 (0x34), region = 20 }
  0x10   : > { %174 = sbr.rel (!%p78_p3) target bundleno = 52 (0x34), region = 24  ;;  %s176_s23 = sand.u32 (%p78_p3), 1, %s1611_s13  }
  0x11   : > { %s1431_s24 = sshll.u32 (%p78_p3), %s1619_s15, 3  ;;  %s1343_s25 = sshll.u32 (%p78_p3), %s176_s23, 9 }
  0x12   : > { %s1693_s28 = scalar_lea.vmem (%p78_p3), %s1958_s1, %s1431_s24  ;;  %s1698_s29 = scalar_lea.vmem (%p78_p3), [#allocation3], %s1343_s25 }
  0x13   : > { %v339_v0 = vld [vmem:[%s1693_s28] sm:$0xff] (%p78_p3)  ;;  %v341_v1 = vld [vmem:[%s1693_s28 + $0x10] sm:$0xff] (%p78_p3) }
  0x14   : > { %v343_v2 = vld [vmem:[%s1693_s28 + $0x20] sm:$0xff] (%p78_p3)  ;;  %340 = vst [vmem:[%s1698_s29] sm:$0xff] (%p78_p3), %v339_v0  ;;  %342 = vst [vmem:[%s1698_s29 + $0x8] sm:$0xff] (%p78_p3), %v341_v1  ;;  %v345_v3 = vld [vmem:[%s1693_s28 + $0x30] sm:$0xff] (%p78_p3) }
  0x15   : > { %344 = vst [vmem:[%s1698_s29 + $0x10] sm:$0xff] %v343_v2  ;;  %v347_v4 = vld [vmem:[%s1693_s28 + $0x40] sm:$0xff]  ;;  %v349_v5 = vld [vmem:[%s1693_s28 + $0x50] sm:$0xff]  ;;  %346 = vst [vmem:[%s1698_s29 + $0x18] sm:$0xff] %v345_v3 }
  0x16   : > { %348 = vst [vmem:[%s1698_s29 + $0x20] sm:$0xff] %v347_v4  ;;  %350 = vst [vmem:[%s1698_s29 + $0x28] sm:$0xff] %v349_v5  ;;  %v351_v6 = vld [vmem:[%s1693_s28 + $0x60] sm:$0xff]  ;;  %v353_v7 = vld [vmem:[%s1693_s28 + $0x70] sm:$0xff] }
  0x17   : > { %v355_v8 = vld [vmem:[%s1693_s28 + $0x80] sm:$0xff]  ;;  %352 = vst [vmem:[%s1698_s29 + $0x30] sm:$0xff] %v351_v6  ;;  %354 = vst [vmem:[%s1698_s29 + $0x38] sm:$0xff] %v353_v7  ;;  %v357_v9 = vld [vmem:[%s1693_s28 + $0x90] sm:$0xff] }
  0x18   : > { %356 = vst [vmem:[%s1698_s29 + $0x40] sm:$0xff] %v355_v8  ;;  %v359_v10 = vld [vmem:[%s1693_s28 + $0xa0] sm:$0xff]  ;;  %v361_v11 = vld [vmem:[%s1693_s28 + $0xb0] sm:$0xff]  ;;  %358 = vst [vmem:[%s1698_s29 + $0x48] sm:$0xff] %v357_v9 }
  0x19   : > { %360 = vst [vmem:[%s1698_s29 + $0x50] sm:$0xff] %v359_v10  ;;  %362 = vst [vmem:[%s1698_s29 + $0x58] sm:$0xff] %v361_v11  ;;  %v363_v12 = vld [vmem:[%s1693_s28 + $0xc0] sm:$0xff]  ;;  %v365_v13 = vld [vmem:[%s1693_s28 + $0xd0] sm:$0xff] }
  0x1a   : > { %v367_v14 = vld [vmem:[%s1693_s28 + $0xe0] sm:$0xff]  ;;  %364 = vst [vmem:[%s1698_s29 + $0x60] sm:$0xff] %v363_v12  ;;  %366 = vst [vmem:[%s1698_s29 + $0x68] sm:$0xff] %v365_v13  ;;  %v369_v15 = vld [vmem:[%s1693_s28 + $0xf0] sm:$0xff] }
  0x1b   : > { %368 = vst [vmem:[%s1698_s29 + $0x70] sm:$0xff] %v367_v14  ;;  %v371_v16 = vld [vmem:[%s1693_s28 + $0x100] sm:$0xff]  ;;  %v373_v17 = vld [vmem:[%s1693_s28 + $0x110] sm:$0xff]  ;;  %370 = vst [vmem:[%s1698_s29 + $0x78] sm:$0xff] %v369_v15 }
  0x1c   : > { %372 = vst [vmem:[%s1698_s29 + $0x80] sm:$0xff] %v371_v16  ;;  %374 = vst [vmem:[%s1698_s29 + $0x88] sm:$0xff] %v373_v17  ;;  %v375_v18 = vld [vmem:[%s1693_s28 + $0x120] sm:$0xff]  ;;  %v377_v19 = vld [vmem:[%s1693_s28 + $0x130] sm:$0xff] }
  0x1d   : > { %v379_v20 = vld [vmem:[%s1693_s28 + $0x140] sm:$0xff]  ;;  %376 = vst [vmem:[%s1698_s29 + $0x90] sm:$0xff] %v375_v18  ;;  %378 = vst [vmem:[%s1698_s29 + $0x98] sm:$0xff] %v377_v19  ;;  %v381_v21 = vld [vmem:[%s1693_s28 + $0x150] sm:$0xff] }
  0x1e   : > { %380 = vst [vmem:[%s1698_s29 + $0xa0] sm:$0xff] %v379_v20  ;;  %v383_v22 = vld [vmem:[%s1693_s28 + $0x160] sm:$0xff]  ;;  %v385_v23 = vld [vmem:[%s1693_s28 + $0x170] sm:$0xff]  ;;  %382 = vst [vmem:[%s1698_s29 + $0xa8] sm:$0xff] %v381_v21 }
  0x1f   : > { %384 = vst [vmem:[%s1698_s29 + $0xb0] sm:$0xff] %v383_v22  ;;  %386 = vst [vmem:[%s1698_s29 + $0xb8] sm:$0xff] %v385_v23  ;;  %v387_v24 = vld [vmem:[%s1693_s28 + $0x180] sm:$0xff]  ;;  %v389_v25 = vld [vmem:[%s1693_s28 + $0x190] sm:$0xff] }
  0x20   : > { %v391_v26 = vld [vmem:[%s1693_s28 + $0x1a0] sm:$0xff]  ;;  %388 = vst [vmem:[%s1698_s29 + $0xc0] sm:$0xff] %v387_v24  ;;  %390 = vst [vmem:[%s1698_s29 + $0xc8] sm:$0xff] %v389_v25  ;;  %v393_v27 = vld [vmem:[%s1693_s28 + $0x1b0] sm:$0xff] }
  0x21   : > { %392 = vst [vmem:[%s1698_s29 + $0xd0] sm:$0xff] %v391_v26  ;;  %v395_v28 = vld [vmem:[%s1693_s28 + $0x1c0] sm:$0xff]  ;;  %v397_v29 = vld [vmem:[%s1693_s28 + $0x1d0] sm:$0xff]  ;;  %394 = vst [vmem:[%s1698_s29 + $0xd8] sm:$0xff] %v393_v27 }
  0x22   : > { %396 = vst [vmem:[%s1698_s29 + $0xe0] sm:$0xff] %v395_v28  ;;  %398 = vst [vmem:[%s1698_s29 + $0xe8] sm:$0xff] %v397_v29  ;;  %v399_v30 = vld [vmem:[%s1693_s28 + $0x1e0] sm:$0xff]  ;;  %v401_v31 = vld [vmem:[%s1693_s28 + $0x1f0] sm:$0xff] }
  0x23   : > { %v403_v32 = vld [vmem:[%s1693_s28 + $0x200] sm:$0xff]  ;;  %400 = vst [vmem:[%s1698_s29 + $0xf0] sm:$0xff] %v399_v30  ;;  %402 = vst [vmem:[%s1698_s29 + $0xf8] sm:$0xff] %v401_v31  ;;  %v405_v33 = vld [vmem:[%s1693_s28 + $0x210] sm:$0xff] }
  0x24   : > { %404 = vst [vmem:[%s1698_s29 + $0x100] sm:$0xff] %v403_v32  ;;  %v407_v34 = vld [vmem:[%s1693_s28 + $0x220] sm:$0xff]  ;;  %v409_v35 = vld [vmem:[%s1693_s28 + $0x230] sm:$0xff]  ;;  %406 = vst [vmem:[%s1698_s29 + $0x108] sm:$0xff] %v405_v33 }
  0x25   : > { %408 = vst [vmem:[%s1698_s29 + $0x110] sm:$0xff] %v407_v34  ;;  %410 = vst [vmem:[%s1698_s29 + $0x118] sm:$0xff] %v409_v35  ;;  %v411_v36 = vld [vmem:[%s1693_s28 + $0x240] sm:$0xff]  ;;  %v413_v37 = vld [vmem:[%s1693_s28 + $0x250] sm:$0xff] }
  0x26   : > { %v415_v38 = vld [vmem:[%s1693_s28 + $0x260] sm:$0xff]  ;;  %412 = vst [vmem:[%s1698_s29 + $0x120] sm:$0xff] %v411_v36  ;;  %414 = vst [vmem:[%s1698_s29 + $0x128] sm:$0xff] %v413_v37  ;;  %v417_v39 = vld [vmem:[%s1693_s28 + $0x270] sm:$0xff] }
  0x27   : > { %416 = vst [vmem:[%s1698_s29 + $0x130] sm:$0xff] %v415_v38  ;;  %v419_v40 = vld [vmem:[%s1693_s28 + $0x280] sm:$0xff]  ;;  %v421_v41 = vld [vmem:[%s1693_s28 + $0x290] sm:$0xff]  ;;  %418 = vst [vmem:[%s1698_s29 + $0x138] sm:$0xff] %v417_v39 }
  0x28   : > { %420 = vst [vmem:[%s1698_s29 + $0x140] sm:$0xff] %v419_v40  ;;  %422 = vst [vmem:[%s1698_s29 + $0x148] sm:$0xff] %v421_v41  ;;  %v423_v42 = vld [vmem:[%s1693_s28 + $0x2a0] sm:$0xff]  ;;  %v425_v43 = vld [vmem:[%s1693_s28 + $0x2b0] sm:$0xff] }
  0x29   : > { %v427_v44 = vld [vmem:[%s1693_s28 + $0x2c0] sm:$0xff]  ;;  %424 = vst [vmem:[%s1698_s29 + $0x150] sm:$0xff] %v423_v42  ;;  %426 = vst [vmem:[%s1698_s29 + $0x158] sm:$0xff] %v425_v43  ;;  %v429_v45 = vld [vmem:[%s1693_s28 + $0x2d0] sm:$0xff] }
  0x2a   : > { %428 = vst [vmem:[%s1698_s29 + $0x160] sm:$0xff] %v427_v44  ;;  %v431_v46 = vld [vmem:[%s1693_s28 + $0x2e0] sm:$0xff]  ;;  %v433_v47 = vld [vmem:[%s1693_s28 + $0x2f0] sm:$0xff]  ;;  %430 = vst [vmem:[%s1698_s29 + $0x168] sm:$0xff] %v429_v45 }
  0x2b   : > { %432 = vst [vmem:[%s1698_s29 + $0x170] sm:$0xff] %v431_v46  ;;  %434 = vst [vmem:[%s1698_s29 + $0x178] sm:$0xff] %v433_v47  ;;  %v435_v48 = vld [vmem:[%s1693_s28 + $0x300] sm:$0xff]  ;;  %v437_v49 = vld [vmem:[%s1693_s28 + $0x310] sm:$0xff] }
  0x2c   : > { %v439_v50 = vld [vmem:[%s1693_s28 + $0x320] sm:$0xff]  ;;  %436 = vst [vmem:[%s1698_s29 + $0x180] sm:$0xff] %v435_v48  ;;  %438 = vst [vmem:[%s1698_s29 + $0x188] sm:$0xff] %v437_v49  ;;  %v441_v51 = vld [vmem:[%s1693_s28 + $0x330] sm:$0xff] }
  0x2d   : > { %440 = vst [vmem:[%s1698_s29 + $0x190] sm:$0xff] %v439_v50  ;;  %v443_v52 = vld [vmem:[%s1693_s28 + $0x340] sm:$0xff]  ;;  %v445_v53 = vld [vmem:[%s1693_s28 + $0x350] sm:$0xff]  ;;  %442 = vst [vmem:[%s1698_s29 + $0x198] sm:$0xff] %v441_v51 }
  0x2e   : > { %444 = vst [vmem:[%s1698_s29 + $0x1a0] sm:$0xff] %v443_v52  ;;  %446 = vst [vmem:[%s1698_s29 + $0x1a8] sm:$0xff] %v445_v53  ;;  %v447_v54 = vld [vmem:[%s1693_s28 + $0x360] sm:$0xff]  ;;  %v449_v55 = vld [vmem:[%s1693_s28 + $0x370] sm:$0xff] }
  0x2f   : > { %v451_v56 = vld [vmem:[%s1693_s28 + $0x380] sm:$0xff]  ;;  %448 = vst [vmem:[%s1698_s29 + $0x1b0] sm:$0xff] %v447_v54  ;;  %450 = vst [vmem:[%s1698_s29 + $0x1b8] sm:$0xff] %v449_v55  ;;  %v453_v57 = vld [vmem:[%s1693_s28 + $0x390] sm:$0xff] }
  0x30   : > { %452 = vst [vmem:[%s1698_s29 + $0x1c0] sm:$0xff] %v451_v56  ;;  %v455_v58 = vld [vmem:[%s1693_s28 + $0x3a0] sm:$0xff]  ;;  %v457_v59 = vld [vmem:[%s1693_s28 + $0x3b0] sm:$0xff]  ;;  %454 = vst [vmem:[%s1698_s29 + $0x1c8] sm:$0xff] %v453_v57 }
  0x31   : > { %456 = vst [vmem:[%s1698_s29 + $0x1d0] sm:$0xff] %v455_v58  ;;  %458 = vst [vmem:[%s1698_s29 + $0x1d8] sm:$0xff] %v457_v59  ;;  %v459_v60 = vld [vmem:[%s1693_s28 + $0x3c0] sm:$0xff]  ;;  %v461_v61 = vld [vmem:[%s1693_s28 + $0x3d0] sm:$0xff] }
  0x32   : > { %v463_v62 = vld [vmem:[%s1693_s28 + $0x3e0] sm:$0xff]  ;;  %460 = vst [vmem:[%s1698_s29 + $0x1e0] sm:$0xff] %v459_v60  ;;  %462 = vst [vmem:[%s1698_s29 + $0x1e8] sm:$0xff] %v461_v61  ;;  %v465_v63 = vld [vmem:[%s1693_s28 + $0x3f0] sm:$0xff] }
  0x33   : > { %464 = vst [vmem:[%s1698_s29 + $0x1f0] sm:$0xff] %v463_v62  ;;  %466 = vst [vmem:[%s1698_s29 + $0x1f8] sm:$0xff] %v465_v63 }
  0x34 PF: > { %p1346_p8 = scmp.ge.s32.totalorder %s1623_s16, 1  ;;  %p479_p9 = scmp.lt.s32.totalorder %s1623_s16, 3 }
  0x36   : > { %p480_p10 = pnand %p1346_p8, %p479_p9 }
  0x37   : > { %s486_s30 = sand.u32 (!%p480_p10), 1, %s1607_s12  }
  0x38   : > { %483 = sbr.rel (%p480_p10) target bundleno = 350 (0x15e), region = 66  ;;  %s1347_s4 = sshll.u32 (!%p480_p10), %s486_s30, 9 }
  0x39   : > { %s1836_s9 = scalar_lea.vmem (!%p480_p10), [#allocation3], %s1347_s4  ;;  %s1349_s4 = sshll.u32 (!%p480_p10), %s1615_s14, 1 }
  0x3a   : > { %p537_p11 = scmp.lt.s32.totalorder (!%p480_p10), %s1349_s4, 3  ;;  %s1348_s8 = sshll.u32 (!%p480_p10), %s486_s30, 5 }
  0x3d   : > { %v1575_v0 = vld [vmem:[%s1957_s0 + $0x4] ss:$16 sps:$4 sm:$0xff]   ;;  %v1578_v1 = vld [vmem:[%s1957_s0 + $0xc] ss:$16 sps:$4 sm:$0xff]   ;;  %v1481_v4 = vld [vmem:[%s1836_s9 + $0x70] ss:$8 sps:$4 sm:$0xff]  }
  0x3e   : > { %v1477_v2 = vld [vmem:[%s1836_s9 + $0x74] ss:$8 sps:$4 sm:$0xff]   ;;  %1027 = vmatprep.mubr.bf16.mxu0 %v1575_v0  ;;  %1080 = vmatprep.mubr.bf16.mxu1 %v1578_v1  ;;  %v1482_v5 = vld [vmem:[%s1836_s9 + $0x170] ss:$8 sps:$4 sm:$0xff]   ;;  %v1483_v6 = vld [vmem:[%s1836_s9 + $0x64] ss:$8 sps:$4 sm:$0xff]  }
  0x3f   : > { %v1479_v3 = vld [vmem:[%s1836_s9 + $0x174] ss:$8 sps:$4 sm:$0xff]   ;;  %995 = vmatprep.subr.bf16.mxu0 %v1477_v2  ;;  %v1485_v7 = vld [vmem:[%s1836_s9 + $0x164] ss:$8 sps:$4 sm:$0xff]   ;;  %v1487_v8 = vld [vmem:[%s1836_s9 + $0x60] ss:$8 sps:$4 sm:$0xff]  }
  0x40   : > { %1048 = vmatprep.subr.bf16.mxu1 %v1479_v3  ;;  %996 = vmatpush1.bf16.msra.mxu0 %v1481_v4  ;;  %v1488_v9 = vld [vmem:[%s1836_s9 + $0x160] ss:$8 sps:$4 sm:$0xff]   ;;  %v1489_v10 = vld [vmem:[%s1836_s9 + $0x54] ss:$8 sps:$4 sm:$0xff]   ;;  %v1493_v12 = vld [vmem:[%s1836_s9 + $0x50] ss:$8 sps:$4 sm:$0xff]  }
  0x41   : > { %1049 = vmatpush1.bf16.msra.mxu1 %v1482_v5  ;;  %997 = vmatprep.subr.bf16.mxu0 %v1483_v6  ;;  %v1491_v11 = vld [vmem:[%s1836_s9 + $0x154] ss:$8 sps:$4 sm:$0xff]   ;;  %v1494_v13 = vld [vmem:[%s1836_s9 + $0x150] ss:$8 sps:$4 sm:$0xff]   ;;  %v1495_v14 = vld [vmem:[%s1836_s9 + $0x44] ss:$8 sps:$4 sm:$0xff]  }
  0x42   : > { %1050 = vmatprep.subr.bf16.mxu1 %v1485_v7  ;;  %v1497_v15 = vld [vmem:[%s1836_s9 + $0x144] ss:$8 sps:$4 sm:$0xff]   ;;  %v1499_v16 = vld [vmem:[%s1836_s9 + $0x40] ss:$8 sps:$4 sm:$0xff]   ;;  %v1501_v18 = vld [vmem:[%s1836_s9 + $0x34] ss:$8 sps:$4 sm:$0xff]  }
  0x43   : > { %v1500_v17 = vld [vmem:[%s1836_s9 + $0x140] ss:$8 sps:$4 sm:$0xff]   ;;  %v1503_v19 = vld [vmem:[%s1836_s9 + $0x134] ss:$8 sps:$4 sm:$0xff]   ;;  %v1505_v20 = vld [vmem:[%s1836_s9 + $0x30] ss:$8 sps:$4 sm:$0xff]  }
  0x44   : > { %998 = vmatpush1.bf16.msra.mxu0 %v1487_v8  ;;  %v1506_v21 = vld [vmem:[%s1836_s9 + $0x130] ss:$8 sps:$4 sm:$0xff]   ;;  %v1507_v22 = vld [vmem:[%s1836_s9 + $0x24] ss:$8 sps:$4 sm:$0xff]   ;;  %v1511_v24 = vld [vmem:[%s1836_s9 + $0x20] ss:$8 sps:$4 sm:$0xff]   ;;  %v1130_v8 = vlaneseq }
  0x45   : > { %1051 = vmatpush1.bf16.msra.mxu1 %v1488_v9  ;;  %999 = vmatprep.subr.bf16.mxu0 %v1489_v10  ;;  %v1509_v23 = vld [vmem:[%s1836_s9 + $0x124] ss:$8 sps:$4 sm:$0xff]   ;;  %v1512_v25 = vld [vmem:[%s1836_s9 + $0x120] ss:$8 sps:$4 sm:$0xff]   ;;  %v1513_v26 = vld [vmem:[%s1836_s9 + $0x14] ss:$8 sps:$4 sm:$0xff]  }
  0x46   : > { %1052 = vmatprep.subr.bf16.mxu1 %v1491_v11  ;;  %v1515_v27 = vld [vmem:[%s1836_s9 + $0x114] ss:$8 sps:$4 sm:$0xff]   ;;  %v1517_v28 = vld [vmem:[%s1836_s9 + $0x10] ss:$8 sps:$4 sm:$0xff]   ;;  %v1519_v30 = vld [vmem:[%s1836_s9 + $0x4] ss:$8 sps:$4 sm:$0xff]  }
  0x47   : > { %v1518_v29 = vld [vmem:[%s1836_s9 + $0x110] ss:$8 sps:$4 sm:$0xff]   ;;  %v1521_v31 = vld [vmem:[%s1836_s9 + $0x104] ss:$8 sps:$4 sm:$0xff]   ;;  %v1523_v32 = vld [vmem:[%s1836_s9] ss:$8 sps:$4 sm:$0xff]  }
  0x48   : > { %1000 = vmatpush1.bf16.msra.mxu0 %v1493_v12  ;;  %v1524_v33 = vld [vmem:[%s1836_s9 + $0x100] ss:$8 sps:$4 sm:$0xff]   ;;  %v1525_v34 = vld [vmem:[%s1836_s9 + $0xf4] ss:$8 sps:$4 sm:$0xff]   ;;  %v1529_v36 = vld [vmem:[%s1836_s9 + $0xf0] ss:$8 sps:$4 sm:$0xff]  }
  0x49   : > { %1053 = vmatpush1.bf16.msra.mxu1 %v1494_v13  ;;  %1001 = vmatprep.subr.bf16.mxu0 %v1495_v14  ;;  %v1527_v35 = vld [vmem:[%s1836_s9 + $0x1f4] ss:$8 sps:$4 sm:$0xff]   ;;  %v1530_v37 = vld [vmem:[%s1836_s9 + $0x1f0] ss:$8 sps:$4 sm:$0xff]   ;;  %v1531_v38 = vld [vmem:[%s1836_s9 + $0xe4] ss:$8 sps:$4 sm:$0xff]  }
  0x4a   : > { %1054 = vmatprep.subr.bf16.mxu1 %v1497_v15  ;;  %v1533_v39 = vld [vmem:[%s1836_s9 + $0x1e4] ss:$8 sps:$4 sm:$0xff]   ;;  %v1535_v40 = vld [vmem:[%s1836_s9 + $0xe0] ss:$8 sps:$4 sm:$0xff]   ;;  %v1537_v42 = vld [vmem:[%s1836_s9 + $0xd4] ss:$8 sps:$4 sm:$0xff]  }
  0x4b   : > { %v1536_v41 = vld [vmem:[%s1836_s9 + $0x1e0] ss:$8 sps:$4 sm:$0xff]   ;;  %v1539_v43 = vld [vmem:[%s1836_s9 + $0x1d4] ss:$8 sps:$4 sm:$0xff]   ;;  %v1541_v44 = vld [vmem:[%s1836_s9 + $0xd0] ss:$8 sps:$4 sm:$0xff]  }
  0x4c   : > { %1002 = vmatpush1.bf16.msra.mxu0 %v1499_v16  ;;  %v1542_v45 = vld [vmem:[%s1836_s9 + $0x1d0] ss:$8 sps:$4 sm:$0xff]   ;;  %v1543_v46 = vld [vmem:[%s1836_s9 + $0xc4] ss:$8 sps:$4 sm:$0xff]   ;;  %v1547_v48 = vld [vmem:[%s1836_s9 + $0xc0] ss:$8 sps:$4 sm:$0xff]  }
  0x4d   : > { %1055 = vmatpush1.bf16.msra.mxu1 %v1500_v17  ;;  %1003 = vmatprep.subr.bf16.mxu0 %v1501_v18  ;;  %v1545_v47 = vld [vmem:[%s1836_s9 + $0x1c4] ss:$8 sps:$4 sm:$0xff]   ;;  %v1548_v49 = vld [vmem:[%s1836_s9 + $0x1c0] ss:$8 sps:$4 sm:$0xff]   ;;  %v1549_v50 = vld [vmem:[%s1836_s9 + $0xb4] ss:$8 sps:$4 sm:$0xff]  }
  0x4e   : > { %1056 = vmatprep.subr.bf16.mxu1 %v1503_v19  ;;  %v1551_v51 = vld [vmem:[%s1836_s9 + $0x1b4] ss:$8 sps:$4 sm:$0xff]   ;;  %v1553_v52 = vld [vmem:[%s1836_s9 + $0xb0] ss:$8 sps:$4 sm:$0xff]   ;;  %v1555_v54 = vld [vmem:[%s1836_s9 + $0xa4] ss:$8 sps:$4 sm:$0xff]  }
  0x4f   : > { %v1554_v53 = vld [vmem:[%s1836_s9 + $0x1b0] ss:$8 sps:$4 sm:$0xff]   ;;  %v1557_v55 = vld [vmem:[%s1836_s9 + $0x1a4] ss:$8 sps:$4 sm:$0xff]   ;;  %v1559_v56 = vld [vmem:[%s1836_s9 + $0xa0] ss:$8 sps:$4 sm:$0xff]  }
  0x50   : > { %1004 = vmatpush1.bf16.msra.mxu0 %v1505_v20  ;;  %v1560_v57 = vld [vmem:[%s1836_s9 + $0x1a0] ss:$8 sps:$4 sm:$0xff]   ;;  %v1561_v58 = vld [vmem:[%s1836_s9 + $0x94] ss:$8 sps:$4 sm:$0xff]   ;;  %v1565_v60 = vld [vmem:[%s1836_s9 + $0x90] ss:$8 sps:$4 sm:$0xff]  }
  0x51   : > { %1057 = vmatpush1.bf16.msra.mxu1 %v1506_v21  ;;  %1005 = vmatprep.subr.bf16.mxu0 %v1507_v22  ;;  %v1563_v59 = vld [vmem:[%s1836_s9 + $0x194] ss:$8 sps:$4 sm:$0xff]   ;;  %v1566_v61 = vld [vmem:[%s1836_s9 + $0x190] ss:$8 sps:$4 sm:$0xff]   ;;  %v1567_v62 = vld [vmem:[%s1836_s9 + $0x84] ss:$8 sps:$4 sm:$0xff]  }
  0x52   : > { %1058 = vmatprep.subr.bf16.mxu1 %v1509_v23  ;;  %v1569_v63 = vld [vmem:[%s1836_s9 + $0x184] ss:$8 sps:$4 sm:$0xff]   ;;  %v1571_v0 = vld [vmem:[%s1836_s9 + $0x80] ss:$8 sps:$4 sm:$0xff]   ;;  %s1969_s4 = smov (!%p537_p11, %s1349_s4), 3  ;;  %v1131_v9 = vshrl.u32 %v1130_v8, 7 }
  0x53   : > { %v1572_v1 = vld [vmem:[%s1836_s9 + $0x180] ss:$8 sps:$4 sm:$0xff]   ;;  %v1579_v4 = vld [vmem:[%s1957_s0 + $0x24] ss:$16 sps:$4 sm:$0xff]   ;;  %v1581_v5 = vld [vmem:[%s1957_s0 + $0x2c] ss:$16 sps:$4 sm:$0xff]   ;;  %s539_s7 = scalar_lea.vmem %s1959_s2, %s1969_s4 }
  0x54   : > { %1006 = vmatpush1.bf16.msra.mxu0 %v1511_v24  ;;  %v1573_v2 = vld [vmem:[%s1957_s0] ss:$16 sps:$4 sm:$0xff]   ;;  %v1576_v3 = vld [vmem:[%s1957_s0 + $0x8] ss:$16 sps:$4 sm:$0xff]   ;;  %v1132_v10 = vsub.s32 0, %v1131_v9  ;;  %v1136_v11 = vsub.s32 1, %v1131_v9 }
  0x55   : > { %1059 = vmatpush1.bf16.msra.mxu1 %v1512_v25  ;;  %1007 = vmatprep.subr.bf16.mxu0 %v1513_v26  ;;  %v1583_v6 = vld [vmem:[%s1957_s0 + $0x20] ss:$16 sps:$4 sm:$0xff]   ;;  %v1584_v7 = vld [vmem:[%s1957_s0 + $0x28] ss:$16 sps:$4 sm:$0xff]   ;;  %s1926_s9 = scalar_lea.vmem [#allocation4], %s1348_s8  ;;  %s1436_s12 = sshll.u32 (%p1680_p6), %s1615_s14, 3 }
  0x56   : > { %1060 = vmatprep.subr.bf16.mxu1 %v1515_v27  ;;  %v1128_v12 = vld [vmem:[%s539_s7] sm:$0x3]  ;;  %s1188_s11 = scalar_lea.vmem (%p1680_p6), %s1960_s3, %s1436_s12 }
  0x57   : > { %v1133_v16 = vrot.slane %v1128_v12, %v1132_v10  ;;  %v1137_v17 = vrot.slane %v1128_v12, %v1136_v11 }
  0x58   : > { %1008 = vmatpush1.bf16.msra.mxu0 %v1517_v28 }
  0x59   : > { %1061 = vmatpush1.bf16.msra.mxu1 %v1518_v29  ;;  %1009 = vmatprep.subr.bf16.mxu0 %v1519_v30 }
  0x5a   : > { %1062 = vmatprep.subr.bf16.mxu1 %v1521_v31 }
  0x5c   : > { %1010 = vmatpush1.bf16.msra.mxu0 %v1523_v32 }
  0x5d   : > { %1063 = vmatpush1.bf16.msra.mxu1 %v1524_v33  ;;  %1011 = vmatprep.subr.bf16.mxu0 %v1525_v34 }
  0x5e   : > { %1064 = vmatprep.subr.bf16.mxu1 %v1527_v35 }
  0x60   : > { %1012 = vmatpush2.bf16.msra.mxu0 %v1529_v36 }
  0x61   : > { %1065 = vmatpush2.bf16.msra.mxu1 %v1530_v37  ;;  %1013 = vmatprep.subr.bf16.mxu0 %v1531_v38 }
  0x62   : > { %1066 = vmatprep.subr.bf16.mxu1 %v1533_v39 }
  0x64   : > { %1014 = vmatpush2.bf16.msra.mxu0 %v1535_v40 }
  0x65   : > { %1067 = vmatpush2.bf16.msra.mxu1 %v1536_v41  ;;  %1015 = vmatprep.subr.bf16.mxu0 %v1537_v42 }
  0x66   : > { %1068 = vmatprep.subr.bf16.mxu1 %v1539_v43 }
  0x68   : > { %1016 = vmatpush2.bf16.msra.mxu0 %v1541_v44 }
  0x69   : > { %1069 = vmatpush2.bf16.msra.mxu1 %v1542_v45  ;;  %1017 = vmatprep.subr.bf16.mxu0 %v1543_v46 }
  0x6a   : > { %1070 = vmatprep.subr.bf16.mxu1 %v1545_v47 }
  0x6c   : > { %1018 = vmatpush2.bf16.msra.mxu0 %v1547_v48 }
  0x6d   : > { %1071 = vmatpush2.bf16.msra.mxu1 %v1548_v49  ;;  %1019 = vmatprep.subr.bf16.mxu0 %v1549_v50 }
  0x6e   : > { %1072 = vmatprep.subr.bf16.mxu1 %v1551_v51 }
  0x70   : > { %1020 = vmatpush2.bf16.msra.mxu0 %v1553_v52 }
  0x71   : > { %1073 = vmatpush2.bf16.msra.mxu1 %v1554_v53  ;;  %1021 = vmatprep.subr.bf16.mxu0 %v1555_v54 }
  0x72   : > { %1074 = vmatprep.subr.bf16.mxu1 %v1557_v55 }
  0x74   : > { %1022 = vmatpush2.bf16.msra.mxu0 %v1559_v56 }
  0x75   : > { %1075 = vmatpush2.bf16.msra.mxu1 %v1560_v57  ;;  %1023 = vmatprep.subr.bf16.mxu0 %v1561_v58 }
  0x76   : > { %1076 = vmatprep.subr.bf16.mxu1 %v1563_v59 }
  0x78   : > { %1024 = vmatpush2.bf16.msra.mxu0 %v1565_v60 }
  0x79   : > { %1077 = vmatpush2.bf16.msra.mxu1 %v1566_v61  ;;  %1025 = vmatprep.subr.bf16.mxu0 %v1567_v62 }
  0x7a   : > { %1078 = vmatprep.subr.bf16.mxu1 %v1569_v63 }
  0x7c   : > { %1026 = vmatpush2.bf16.msra.mxu0 %v1571_v0 }
  0x7d   : > { %1079 = vmatpush2.bf16.msra.mxu1 %v1572_v1 }
  0x7f   : > { %1028 = vmatmul.mubr.bf16.vlgmr.msra.gmra.mxu0 %v1573_v2 }
  0x80   : > { %1081 = vmatmul.mubr.bf16.vlgmr.msra.gmra.mxu1 %v1576_v3  ;;  %1037 = vmatprep.mubr.bf16.mxu0 %v1579_v4 }
  0x81   : > { %1090 = vmatprep.mubr.bf16.mxu1 %v1581_v5 }
  0x87   : > { %1038 = vmatmul.mubr.bf16.gmra.mxu0 %v1583_v6 }
  0x88   : > { %1091 = vmatmul.mubr.bf16.gmra.mxu1 %v1584_v7 }
 0x13f   : > { %v1029_v13 = vpop.f32.mrf.mxu0 }
 0x140   : > { %v1082_v14 = vpop.f32.mrf.mxu1 }
 0x141   : > { %v1083_v15 = vadd.f32 %v1082_v14, %v1029_v13  ;;  %v1031_v18 = vpop.f32.mrf.mxu0 }
 0x142   : > { %v1084_v19 = vpop.f32.mrf.mxu1 }
 0x143   : > { %v1085_v20 = vadd.f32 %v1084_v19, %v1031_v18  ;;  %v1033_v21 = vpop.f32.mrf.mxu0  ;;  %v1140_v23 = vadd.f32 %v1133_v16, %v1083_v15 }
 0x144   : > { %v1086_v22 = vpop.f32.mrf.mxu1 }
 0x145   : > { %v1141_v24 = vadd.f32 %v1137_v17, %v1085_v20  ;;  %v1087_v25 = vadd.f32 %v1086_v22, %v1033_v21  ;;  %v1035_v26 = vpop.f32.mrf.mxu0 }
 0x146   : > { %v1088_v27 = vpop.f32.mrf.mxu1 }
 0x147   : > { %v1432_v28 = vpack.c.bf16 %v1141_v24, %v1140_v23  ;;  %v1089_v29 = vadd.f32 %v1088_v27, %v1035_v26  ;;  %v1039_v30 = vpop.f32.mrf.mxu0  ;;  %v1142_v32 = vadd.f32 %v1133_v16, %v1087_v25 }
 0x148   : > { %v1092_v31 = vpop.f32.mrf.mxu1 }
 0x149   : > { %1172 = vst [vmem:[%s1926_s9] sm:$0xff] %v1432_v28  ;;  %v1143_v33 = vadd.f32 %v1137_v17, %v1089_v29  ;;  %v1093_v34 = vadd.f32 %v1092_v31, %v1039_v30  ;;  %v1041_v35 = vpop.f32.mrf.mxu0 }
 0x14a   : > { %v1094_v36 = vpop.f32.mrf.mxu1 }
 0x14b   : > { %v1433_v37 = vpack.c.bf16 %v1143_v33, %v1142_v32  ;;  %v1095_v38 = vadd.f32 %v1094_v36, %v1041_v35  ;;  %v1043_v39 = vpop.f32.mrf.mxu0  ;;  %v1144_v41 = vadd.f32 %v1133_v16, %v1093_v34 }
 0x14c   : > { %v1096_v40 = vpop.f32.mrf.mxu1 }
 0x14d   : > { %1173 = vst [vmem:[%s1926_s9 + $0x8] sm:$0xff] %v1433_v37  ;;  %v1145_v42 = vadd.f32 %v1137_v17, %v1095_v38  ;;  %v1097_v43 = vadd.f32 %v1096_v40, %v1043_v39  ;;  %v1045_v44 = vpop.f32.mrf.mxu0 }
 0x14e   : > { %v1098_v45 = vpop.f32.mrf.mxu1 }
 0x14f   : > { %v1434_v46 = vpack.c.bf16 %v1145_v42, %v1144_v41  ;;  %v1099_v47 = vadd.f32 %v1098_v45, %v1045_v44  ;;  %v1146_v48 = vadd.f32 %v1133_v16, %v1097_v43 }
 0x150   : > { %v1223_v51 = vld [vmem:[%s1926_s9] sm:$0xff] (%p1680_p6) }
 0x151   : > { %1174 = vst [vmem:[%s1926_s9 + $0x10] sm:$0xff] %v1434_v46  ;;  %v1147_v49 = vadd.f32 %v1137_v17, %v1099_v47  ;;  %1182 = sbr.rel (!%p1680_p6) target bundleno = 350 (0x15e), region = 82  ;;  %1224 = vst [vmem:[%s1188_s11] sm:$0xff] (%p1680_p6), %v1223_v51 }
 0x153   : > { %v1435_v50 = vpack.c.bf16 %v1147_v49, %v1146_v48 }
 0x154   : > { %v1225_v52 = vld [vmem:[%s1926_s9 + $0x8] sm:$0xff] (%p1680_p6) }
 0x155   : > { %1175 = vst [vmem:[%s1926_s9 + $0x18] sm:$0xff] %v1435_v50  ;;  %1226 = vst [vmem:[%s1188_s11 + $0x10] sm:$0xff] (%p1680_p6), %v1225_v52 }
 0x158   : > { %v1227_v53 = vld [vmem:[%s1926_s9 + $0x10] sm:$0xff] }
 0x159   : > { %1228 = vst [vmem:[%s1188_s11 + $0x20] sm:$0xff] %v1227_v53 }
 0x15c   : > { %v1229_v54 = vld [vmem:[%s1926_s9 + $0x18] sm:$0xff] }
 0x15d   : > { %1230 = vst [vmem:[%s1188_s11 + $0x30] sm:$0xff] %v1229_v54 }
 0x15e PF: > { %s13_s16 = sadd.s32 1, %s1623_s16   ;;  %s1962_s12 = smov %s1611_s13 }
 0x15f   : > { %p10_p12 = scmp.ge.s32.totalorder %s13_s16, 4   ;;  %s1963_s13 = smov %s1685_s22 }
 0x160   : > { %s1964_s14 = smov %s1619_s15  ;;  %s1965_s15 = smov %s1967_s17 }
 0x161   :  { %12 = sbr.rel (!%p10_p12) target bundleno = 3 (0x3), region = 157 }

// kernel: _apply.7
= control target key start
LH: loop header
LB: loop body
LE: loop exit
PB: predicated region body
PF: predicated region fallthrough
CT: control target
= control target key end

     0   :  { %s4933_s0 = inlined_call_operand.vmem [shape: bf16[32,4608], index: 0, kind: input, shape index: {}]   ;;  %s4934_s1 = inlined_call_operand.hbm [shape: bf16[4608,512], index: 1, kind: input, shape index: {}]   ;;  %s4935_s2 = inlined_call_operand.hbm [shape: f32[1,512], index: 2, kind: input, shape index: {}]   ;;  %s4936_s3 = inlined_call_operand.vmem [shape: bf16[32,512], index: 3, kind: output, shape index: {}]  }
   0x1   :  { %4942 = sst [smem:[#allocation24_spill]] %s4933_s0 }
   0x2   :  { %4943 = sst [smem:[#allocation25_spill]] %s4934_s1 }
   0x3   :  { %4944 = sst [smem:[#allocation26_spill]] %s4936_s3 }
   0x4   :  { %8 = vsyncpa [#allocation5], 0 }
   0x5   :  { %10 = vsyncpa [#allocation5 + $0x1], 0 }
   0x6   :  { %11 = vsyncpa [#allocation7], 0 }
   0x7   :  { %13 = vsyncpa [#allocation7 + $0x1], 0  ;;  %s4277_s12 = smov 0   ;;  %s4279_s13 = smov 0  }
   0x8   :  { %s4281_s14 = smov 0   ;;  %s4283_s15 = smov 0  }
   0x9   :  { %s4285_s16 = smov 0   ;;  %s4287_s17 = smov 0  }
   0xa   :  { %s4289_s18 = smov 0   ;;  %s4291_s19 = smov 0  }
   0xb   :  { %s4293_s20 = smov 0   ;;  %s4295_s21 = smov 0  }
   0xc   :  { %s4297_s22 = smov 0   ;;  %s4299_s23 = smov 0  }
   0xd   :  { %s4301_s24 = smov 0  }
   0xe LB: > { %4945 = sst [smem:[#allocation11_spill]] %s4221_s17  ;;  %s3096_s25 = sadd.s32 4294967295, %s4249_s24   ;;  %s4249_s24 = sphi %s4301_s24, %s19_s24   ;;  %s4245_s23 = sphi %s4299_s23, %s4987_s23   ;;  %s4241_s22 = sphi %s4297_s22, %s4979_s22   ;;  %s4237_s21 = sphi %s4295_s21, %s4986_s21   ;;  %s4233_s20 = sphi %s4293_s20, %s4978_s20   ;;  %s4229_s19 = sphi %s4291_s19, %s4977_s19   ;;  %s4225_s18 = sphi %s4289_s18, %s4976_s18   ;;  %s4221_s17 = sphi %s4287_s17, %s4975_s17   ;;  %s4217_s16 = sphi %s4285_s16, %s4985_s16   ;;  %s4213_s15 = sphi %s4283_s15, %s4984_s15   ;;  %s4209_s14 = sphi %s4281_s14, %s4983_s14   ;;  %s4205_s13 = sphi %s4279_s13, %s4982_s13   ;;  %s4201_s12 = sphi %s4277_s12, %s4981_s12  }
   0xf   : > { %4946 = sst [smem:[#allocation12_spill]] %s4229_s19  ;;  %s31_s26 = sadd.s32 1, %s4241_s22 }
  0x10   : > { %4947 = sst [smem:[#allocation13_spill]] %s4237_s21  ;;  %p32_p0 = scmp.ge.s32.totalorder %s31_s26, 2 }
  0x11   : > { %4948 = sst [smem:[#allocation14_spill]] %s4241_s22  ;;  %s34_s27 = sadd.s32 1, %s4245_s23 }
  0x12   : > { %s47_s28 = sadd.s32 1, %s4229_s19  ;;  %p54_p1 = scmp.ne.s32.totalorder %s4229_s19, %s4225_s18 }
  0x13   : > { %s4989_s26 = smov (%p32_p0, %s31_s26), 0  ;;  %s4991_s27 = smov (!%p32_p0, %s34_s27), %s4245_s23 }
  0x14   : > { %4949 = sst [smem:[#allocation15_spill]] %s4989_s26  ;;  %s43_s29 = ssub.s32 %s4241_s22, %s4989_s26 }
  0x15   : > { %p55_p2 = scmp.eq.s32.totalorder %s4249_s24, 0  ;;  %p36_p3 = scmp.ge.s32.totalorder %s4991_s27, 2 }
  0x16   : > { %p45_p4 = scmp.eq.s32.totalorder %s43_s29, 0  ;;  %s75_s4 = sadd.s32 1, %s4221_s17 }
  0x17   : > { %p4356_p5 = por %p55_p2, %p54_p1  ;;  %s4993_s27 = smov (%p36_p3, %s4991_s27), 0 }
  0x18   : > { %4951 = sst [smem:[#allocation16_spill]] %s4993_s27  ;;  %s71_s6 = ssub.s32 %s4245_s23, %s4993_s27 }
  0x19   : > { %s4364_s5 = scalar_select %p45_p4, %s4229_s19, %s47_s28  }
  0x1a   : > { %p82_p6 = scmp.ne.s32.totalorder %s4221_s17, %s4217_s16  ;;  %s72_s7 = sor.u32 %s71_s6, %s43_s29 }
  0x1b   : > { %4952 = sst [smem:[#allocation17_spill]] %s4364_s5  ;;  %p88_p7 = scmp.ne.s32.totalorder %s4217_s16, %s4213_s15 }
  0x1c   : > { %p73_p8 = scmp.eq.s32.totalorder %s72_s7, 0  ;;  %p4374_p9 = por %p82_p6, %p55_p2 }
  0x1d   : > { %p89_p10 = scmp.eq.s32.totalorder %s3096_s25, 0  ;;  %p99_p11 = scmp.eq.s32.totalorder %s71_s6, 0 }
  0x1e   : > { %s4381_s9 = scalar_select %p73_p8, %s4221_s17, %s75_s4  }
  0x1f   : > { %p4383_p12 = por %p89_p10, %p88_p7  ;;  %s101_s11 = sadd.s32 1, %s4209_s14 }
  0x20   : > { %4954 = sst [smem:[#allocation18_spill]] %s4381_s9  ;;  %p108_p13 = scmp.ne.s32.totalorder %s4209_s14, %s4205_s13 }
  0x21   : > { %s4389_s28 = scalar_select %p99_p11, %s4209_s14, %s101_s11  }
  0x22   : > { %p114_p0 = scmp.ne.s32.totalorder %s4205_s13, %s4201_s12  ;;  %p140_p1 = scmp.eq.s32.totalorder %s3096_s25, 3 }
  0x23   : > { %4956 = sst [smem:[#allocation19_spill]] %s4389_s28  ;;  %p4399_p3 = por %p108_p13, %p55_p2 }
  0x24   : > { %p4403_p4 = por %p114_p0, %p89_p10  ;;  %p4407_p6 = por %p140_p1, %p108_p13 }
  0x25   : > { %p3099_p7 = scmp.ge.s32.totalorder %s4249_s24, 4 }
  0x27   : > { %162 = sbr.rel (%p3099_p7) target bundleno = 104 (0x68), region = 16 }
  0x2c   : > { %165 = sbr.rel (!%p4356_p5) target bundleno = 71 (0x47), region = 20  ;;  %s167_s12 = sand.u32 (%p4356_p5), 1, %s4229_s19  }
  0x2d   : > { %s3445_s25 = smul.u32 (%p4356_p5), 72, %s4241_s22  ;;  %s4960_s0 = sld [smem:[#allocation24_spill]] (%p4356_p5) }
  0x2e   : > { %s3485_s6 = smul.u32 (%p4356_p5), 288, %s167_s12 }
  0x30   : > { %s4424_s30 = scalar_lea.vmem (%p4356_p5), [#allocation3], %s3485_s6 }
  0x33   : > { %s4419_s27 = scalar_lea.vmem %s4960_s0, %s3445_s25 }
  0x34   : > { %v188_v0 = vld [vmem:[%s4419_s27] sm:$0xff]  ;;  %v190_v1 = vld [vmem:[%s4419_s27 + $0x8] sm:$0xff]  ;;  %v192_v2 = vld [vmem:[%s4419_s27 + $0x10] sm:$0xff] }
  0x35   : > { %189 = vst [vmem:[%s4424_s30] sm:$0xff] %v188_v0  ;;  %191 = vst [vmem:[%s4424_s30 + $0x8] sm:$0xff] %v190_v1  ;;  %v194_v3 = vld [vmem:[%s4419_s27 + $0x18] sm:$0xff]  ;;  %v196_v4 = vld [vmem:[%s4419_s27 + $0x20] sm:$0xff] }
  0x36   : > { %193 = vst [vmem:[%s4424_s30 + $0x10] sm:$0xff] %v192_v2  ;;  %v198_v5 = vld [vmem:[%s4419_s27 + $0x28] sm:$0xff]  ;;  %195 = vst [vmem:[%s4424_s30 + $0x18] sm:$0xff] %v194_v3  ;;  %v200_v6 = vld [vmem:[%s4419_s27 + $0x30] sm:$0xff] }
  0x37   : > { %197 = vst [vmem:[%s4424_s30 + $0x20] sm:$0xff] %v196_v4  ;;  %199 = vst [vmem:[%s4424_s30 + $0x28] sm:$0xff] %v198_v5  ;;  %v202_v7 = vld [vmem:[%s4419_s27 + $0x38] sm:$0xff]  ;;  %v204_v8 = vld [vmem:[%s4419_s27 + $0x40] sm:$0xff] }
  0x38   : > { %201 = vst [vmem:[%s4424_s30 + $0x30] sm:$0xff] %v200_v6  ;;  %203 = vst [vmem:[%s4424_s30 + $0x38] sm:$0xff] %v202_v7  ;;  %v206_v9 = vld [vmem:[%s4419_s27 + $0x90] sm:$0xff]  ;;  %v208_v10 = vld [vmem:[%s4419_s27 + $0x98] sm:$0xff] }
  0x39   : > { %205 = vst [vmem:[%s4424_s30 + $0x40] sm:$0xff] %v204_v8  ;;  %v210_v11 = vld [vmem:[%s4419_s27 + $0xa0] sm:$0xff]  ;;  %207 = vst [vmem:[%s4424_s30 + $0x48] sm:$0xff] %v206_v9  ;;  %v212_v12 = vld [vmem:[%s4419_s27 + $0xa8] sm:$0xff] }
  0x3a   : > { %209 = vst [vmem:[%s4424_s30 + $0x50] sm:$0xff] %v208_v10  ;;  %211 = vst [vmem:[%s4424_s30 + $0x58] sm:$0xff] %v210_v11  ;;  %v214_v13 = vld [vmem:[%s4419_s27 + $0xb0] sm:$0xff]  ;;  %v216_v14 = vld [vmem:[%s4419_s27 + $0xb8] sm:$0xff] }
  0x3b   : > { %213 = vst [vmem:[%s4424_s30 + $0x60] sm:$0xff] %v212_v12  ;;  %215 = vst [vmem:[%s4424_s30 + $0x68] sm:$0xff] %v214_v13  ;;  %v218_v15 = vld [vmem:[%s4419_s27 + $0xc0] sm:$0xff]  ;;  %v220_v16 = vld [vmem:[%s4419_s27 + $0xc8] sm:$0xff] }
  0x3c   : > { %217 = vst [vmem:[%s4424_s30 + $0x70] sm:$0xff] %v216_v14  ;;  %v222_v17 = vld [vmem:[%s4419_s27 + $0xd0] sm:$0xff]  ;;  %219 = vst [vmem:[%s4424_s30 + $0x78] sm:$0xff] %v218_v15  ;;  %v224_v18 = vld [vmem:[%s4419_s27 + $0x120] sm:$0xff] }
  0x3d   : > { %221 = vst [vmem:[%s4424_s30 + $0x80] sm:$0xff] %v220_v16  ;;  %223 = vst [vmem:[%s4424_s30 + $0x88] sm:$0xff] %v222_v17  ;;  %v226_v19 = vld [vmem:[%s4419_s27 + $0x128] sm:$0xff]  ;;  %v228_v20 = vld [vmem:[%s4419_s27 + $0x130] sm:$0xff] }
  0x3e   : > { %225 = vst [vmem:[%s4424_s30 + $0x90] sm:$0xff] %v224_v18  ;;  %227 = vst [vmem:[%s4424_s30 + $0x98] sm:$0xff] %v226_v19  ;;  %v230_v21 = vld [vmem:[%s4419_s27 + $0x138] sm:$0xff]  ;;  %v232_v22 = vld [vmem:[%s4419_s27 + $0x140] sm:$0xff] }
  0x3f   : > { %229 = vst [vmem:[%s4424_s30 + $0xa0] sm:$0xff] %v228_v20  ;;  %v234_v23 = vld [vmem:[%s4419_s27 + $0x148] sm:$0xff]  ;;  %231 = vst [vmem:[%s4424_s30 + $0xa8] sm:$0xff] %v230_v21  ;;  %v236_v24 = vld [vmem:[%s4419_s27 + $0x150] sm:$0xff] }
  0x40   : > { %233 = vst [vmem:[%s4424_s30 + $0xb0] sm:$0xff] %v232_v22  ;;  %235 = vst [vmem:[%s4424_s30 + $0xb8] sm:$0xff] %v234_v23  ;;  %v238_v25 = vld [vmem:[%s4419_s27 + $0x158] sm:$0xff]  ;;  %v240_v26 = vld [vmem:[%s4419_s27 + $0x160] sm:$0xff] }
  0x41   : > { %237 = vst [vmem:[%s4424_s30 + $0xc0] sm:$0xff] %v236_v24  ;;  %239 = vst [vmem:[%s4424_s30 + $0xc8] sm:$0xff] %v238_v25  ;;  %v242_v27 = vld [vmem:[%s4419_s27 + $0x1b0] sm:$0xff]  ;;  %v244_v28 = vld [vmem:[%s4419_s27 + $0x1b8] sm:$0xff] }
  0x42   : > { %241 = vst [vmem:[%s4424_s30 + $0xd0] sm:$0xff] %v240_v26  ;;  %v246_v29 = vld [vmem:[%s4419_s27 + $0x1c0] sm:$0xff]  ;;  %243 = vst [vmem:[%s4424_s30 + $0xd8] sm:$0xff] %v242_v27  ;;  %v248_v30 = vld [vmem:[%s4419_s27 + $0x1c8] sm:$0xff] }
  0x43   : > { %245 = vst [vmem:[%s4424_s30 + $0xe0] sm:$0xff] %v244_v28  ;;  %247 = vst [vmem:[%s4424_s30 + $0xe8] sm:$0xff] %v246_v29  ;;  %v250_v31 = vld [vmem:[%s4419_s27 + $0x1d0] sm:$0xff]  ;;  %v252_v32 = vld [vmem:[%s4419_s27 + $0x1d8] sm:$0xff] }
  0x44   : > { %249 = vst [vmem:[%s4424_s30 + $0xf0] sm:$0xff] %v248_v30  ;;  %251 = vst [vmem:[%s4424_s30 + $0xf8] sm:$0xff] %v250_v31  ;;  %v254_v33 = vld [vmem:[%s4419_s27 + $0x1e0] sm:$0xff]  ;;  %v256_v34 = vld [vmem:[%s4419_s27 + $0x1e8] sm:$0xff] }
  0x45   : > { %253 = vst [vmem:[%s4424_s30 + $0x100] sm:$0xff] %v252_v32  ;;  %v258_v35 = vld [vmem:[%s4419_s27 + $0x1f0] sm:$0xff]  ;;  %255 = vst [vmem:[%s4424_s30 + $0x108] sm:$0xff] %v254_v33 }
  0x46   : > { %257 = vst [vmem:[%s4424_s30 + $0x110] sm:$0xff] %v256_v34  ;;  %259 = vst [vmem:[%s4424_s30 + $0x118] sm:$0xff] %v258_v35 }
  0x47 PF: > { %s266_s12 = sand.u32 1, %s4221_s17   ;;  %s3101_s25 = sshll.u32 %s4245_s23, 1 }
  0x48   : > { %s3486_s6 = smul.u32 2304, %s266_s12  ;;  %s4961_s1 = sld [smem:[#allocation25_spill]] }
  0x49   : > { %s3446_s7 = smul.u32 1152, %s4241_s22  ;;  %s267_s28 = scalar_lea.sflag [#allocation5], %s266_s12 }
  0x4a   : > { %s270_s0 = scalar_lea.vmem [#allocation4], %s3486_s6  ;;  %s4251_s3 = smov [#allocation4]  }
  0x4b   : > { %s277_s11 = sadd.s32 %s3446_s7, %s3101_s25  ;;  %s280_s26 = sshll.u32 %s270_s0, 4  ;;  %s281_s26 = int_to_ptr.vmem [resolvable:$true] %s280_s26 }
  0x4c   : > { %s3103_s5 = sshll.u32 %s277_s11, 6  ;;  %s4099_s30 = scalar_lea.vmem %s281_s26, 36864 }
  0x4d   : > { %p4100_p2 = scmp.ne.s32.totalorder %s281_s26, %s4099_s30  ;;  %s4103_s17 = sshll.u32 %s4251_s3, 4  ;;  %s4104_s17 = int_to_ptr.vmem [resolvable:$false] %s4103_s17 }
  0x4e   : > { %s279_s27 = scalar_lea.hbm %s4961_s1, %s3103_s5  ;;  %s4105_s21 = scalar_lea.vmem %s4104_s17, 73728 }
  0x4f   : > { %p4101_p5 = pnand %p4100_p2, %p4374_p9  ;;  %p4106_p10 = scmp.lt.s32.totalorder %s281_s26, %s4104_s17 }
  0x50   : > { %p4107_p11 = scmp.lt.s32.totalorder %s4105_s21, %s4099_s30 }
  0x51   : > { %p4102_p8 = pneg %p4101_p5 }
  0x52   : > { %p4108_p13 = por %p4107_p11, %p4106_p10 }
  0x54   : > { %p4109_p0 = pnand %p4108_p13, %p4102_p8 }
  0x56   : > { %4112 = shalt.err (!%p4109_p0)
}
  0x57   : > { %s4252_s0 = smov 256   ;;  %s4253_s19 = smov 128  }
  0x58   : > { %s4254_s5 = smov 8   ;;  %s290_s9 = sand.u32 1, %s4209_s14  }
  0x59   : > { %3489 = dma.hbm_to_vmem [thread:$0]  (%p4374_p9), %s279_s27, 36864, %s281_s26, %s267_s28, %s4252_s0, %s4253_s19, %s4254_s5  }
  0x5a   : > { %s3447_s12 = sshll.u32 %s4245_s23, 5  ;;  %s3104_s25 = sshll.u32 %s290_s9, 1 }
  0x5b   : > { %s300_s17 = scalar_lea.hbm %s4935_s2, %s3447_s12  ;;  %s294_s21 = scalar_lea.vmem [#allocation6], %s3104_s25 }
  0x5c   : > { %s302_s7 = sshll.u32 %s294_s21, 4  ;;  %s291_s11 = scalar_lea.sflag [#allocation7], %s290_s9  ;;  %s303_s7 = int_to_ptr.vmem [resolvable:$true] %s302_s7 }
  0x5d   : > { %s4125_s30 = scalar_lea.vmem %s303_s7, 32  ;;  %s4255_s1 = smov [#allocation6]  }
  0x5e   : > { %p4126_p1 = scmp.ne.s32.totalorder %s303_s7, %s4125_s30  ;;  %s4129_s22 = sshll.u32 %s4255_s1, 4  ;;  %s4130_s22 = int_to_ptr.vmem [resolvable:$false] %s4129_s22 }
  0x5f   : > { %s4131_s26 = scalar_lea.vmem %s4130_s22, 64  ;;  %p4132_p9 = scmp.lt.s32.totalorder %s303_s7, %s4130_s22 }
  0x60   : > { %p4127_p7 = pnand %p4126_p1, %p4399_p3  ;;  %p4133_p5 = scmp.lt.s32.totalorder %s4131_s26, %s4125_s30 }
  0x62   : > { %p4128_p2 = pneg %p4127_p7  ;;  %p4134_p8 = por %p4133_p5, %p4132_p9 }
  0x64   : > { %p4135_p10 = pnand %p4134_p8, %p4128_p2 }
  0x66   : > { %4138 = shalt.err (!%p4135_p10)
}
  0x67   : > { %3490 = dma.hbm_to_vmem [thread:$0]  (%p4399_p3), %s300_s17, 32, %s303_s7, %s291_s11  }
  0x68 PF: > { %p3107_p11 = scmp.ge.s32.totalorder %s4249_s24, 1  ;;  %p307_p13 = scmp.lt.s32.totalorder %s4249_s24, 5 }
  0x6a   : > { %p308_p0 = pnand %p3107_p11, %p307_p13 }
  0x6c   : > { %311 = sbr.rel (%p308_p0) target bundleno = 692 (0x2b4), region = 51 }
  0x71   : > { %s314_s1 = sand.u32 1, %s4225_s18   ;;  %s320_s8 = sand.u32 1, %s4217_s16  }
  0x72   : > { %s3487_s22 = smul.u32 288, %s314_s1  ;;  %s321_s0 = scalar_lea.sflag [#allocation5], %s320_s8 }
  0x73   : > { %s3488_s28 = smul.u32 2304, %s320_s8 }
  0x74   : > { %s4518_s27 = scalar_lea.vmem [#allocation3], %s3487_s22 }
  0x75   : > { %s4520_s19 = scalar_lea.vmem [#allocation4], %s3488_s28 }
  0x76   : > { %4192 = dma.done.wait (%p4383_p12), %s321_s0, 36864  }
  0x77   : > { %4194 = vsyncadd (%p4383_p12), %s321_s0, 4294930432  ;;  %s329_s15 = sand.u32 1, %s4205_s13  }
  0x78   : > { %s3108_s5 = sshll.u32 %s329_s15, 1  ;;  %s330_s9 = scalar_lea.sflag [#allocation7], %s329_s15 }
  0x79   : > { %s4527_s12 = scalar_lea.vmem [#allocation6], %s3108_s5 }
  0x7a   : > { %4196 = dma.done.wait (%p4403_p4), %s330_s9, 32  }
  0x7b   : > { %4198 = vsyncadd (%p4403_p4), %s330_s9, 4294967264  ;;  %s3109_s18 = sshll.u32 %s329_s15, 5  ;;  %p3110_p3 = scmp.ne.s32.totalorder %s4233_s20, 0 }
  0x7c   : > { %s4533_s25 = scalar_lea.vmem [#allocation8], %s3109_s18 }
  0x7d   : > { %374 = sbr.rel (%p3110_p3) target bundleno = 135 (0x87), region = 67 }
  0x82   : > { %v4256_v36 = vmov 0.0  }
  0x83   : > { %375 = vst [vmem:[#allocation2 + $0x30] sm:$0xff] %v4256_v36  ;;  %376 = vst [vmem:[#allocation2] sm:$0xff] %v4256_v36 }
  0x84   : > { %377 = vst [vmem:[#allocation2 + $0x18] sm:$0xff] %v4256_v36  ;;  %378 = vst [vmem:[#allocation2 + $0x10] sm:$0xff] %v4256_v36 }
  0x85   : > { %379 = vst [vmem:[#allocation2 + $0x8] sm:$0xff] %v4256_v36  ;;  %380 = vst [vmem:[#allocation2 + $0x20] sm:$0xff] %v4256_v36 }
  0x86   : > { %381 = vst [vmem:[#allocation2 + $0x28] sm:$0xff] %v4256_v36  ;;  %382 = vst [vmem:[#allocation2 + $0x38] sm:$0xff] %v4256_v36 }
  0x87 PF: > { %v3601_v37 = vld [vmem:[%s4520_s19 + $0x74] ss:$8 sps:$4 sm:$0xff]   ;;  %v3605_v39 = vld [vmem:[%s4520_s19 + $0x70] ss:$8 sps:$4 sm:$0xff]   ;;  %v3607_v41 = vld [vmem:[%s4520_s19 + $0x64] ss:$8 sps:$4 sm:$0xff]  }
  0x88   : > { %v3603_v38 = vld [vmem:[%s4520_s19 + $0x174] ss:$8 sps:$4 sm:$0xff]   ;;  %2335 = vmatprep.subr.bf16.mxu0 %v3601_v37  ;;  %v3606_v40 = vld [vmem:[%s4520_s19 + $0x170] ss:$8 sps:$4 sm:$0xff]   ;;  %v3609_v42 = vld [vmem:[%s4520_s19 + $0x164] ss:$8 sps:$4 sm:$0xff]  }
  0x89   : > { %2388 = vmatprep.subr.bf16.mxu1 %v3603_v38  ;;  %2336 = vmatpush1.bf16.msra.mxu0 %v3605_v39  ;;  %v3611_v43 = vld [vmem:[%s4520_s19 + $0x60] ss:$8 sps:$4 sm:$0xff]   ;;  %v3613_v45 = vld [vmem:[%s4520_s19 + $0x54] ss:$8 sps:$4 sm:$0xff]   ;;  %v3617_v47 = vld [vmem:[%s4520_s19 + $0x50] ss:$8 sps:$4 sm:$0xff]  }
  0x8a   : > { %2389 = vmatpush1.bf16.msra.mxu1 %v3606_v40  ;;  %2337 = vmatprep.subr.bf16.mxu0 %v3607_v41  ;;  %v3612_v44 = vld [vmem:[%s4520_s19 + $0x160] ss:$8 sps:$4 sm:$0xff]   ;;  %v3615_v46 = vld [vmem:[%s4520_s19 + $0x154] ss:$8 sps:$4 sm:$0xff]   ;;  %v3618_v48 = vld [vmem:[%s4520_s19 + $0x150] ss:$8 sps:$4 sm:$0xff]  }
  0x8b   : > { %2390 = vmatprep.subr.bf16.mxu1 %v3609_v42  ;;  %v3619_v49 = vld [vmem:[%s4520_s19 + $0x44] ss:$8 sps:$4 sm:$0xff]   ;;  %v3623_v51 = vld [vmem:[%s4520_s19 + $0x40] ss:$8 sps:$4 sm:$0xff]   ;;  %v3625_v53 = vld [vmem:[%s4520_s19 + $0x34] ss:$8 sps:$4 sm:$0xff]  }
  0x8c   : > { %v3621_v50 = vld [vmem:[%s4520_s19 + $0x144] ss:$8 sps:$4 sm:$0xff]   ;;  %v3624_v52 = vld [vmem:[%s4520_s19 + $0x140] ss:$8 sps:$4 sm:$0xff]   ;;  %v3627_v54 = vld [vmem:[%s4520_s19 + $0x134] ss:$8 sps:$4 sm:$0xff]  }
  0x8d   : > { %2338 = vmatpush1.bf16.msra.mxu0 %v3611_v43  ;;  %v3629_v55 = vld [vmem:[%s4520_s19 + $0x30] ss:$8 sps:$4 sm:$0xff]   ;;  %v3631_v57 = vld [vmem:[%s4520_s19 + $0x24] ss:$8 sps:$4 sm:$0xff]   ;;  %v3635_v59 = vld [vmem:[%s4520_s19 + $0x20] ss:$8 sps:$4 sm:$0xff]  }
  0x8e   : > { %2391 = vmatpush1.bf16.msra.mxu1 %v3612_v44  ;;  %2339 = vmatprep.subr.bf16.mxu0 %v3613_v45  ;;  %v3630_v56 = vld [vmem:[%s4520_s19 + $0x130] ss:$8 sps:$4 sm:$0xff]   ;;  %v3633_v58 = vld [vmem:[%s4520_s19 + $0x124] ss:$8 sps:$4 sm:$0xff]   ;;  %v3636_v60 = vld [vmem:[%s4520_s19 + $0x120] ss:$8 sps:$4 sm:$0xff]  }
  0x8f   : > { %2392 = vmatprep.subr.bf16.mxu1 %v3615_v46  ;;  %v3637_v61 = vld [vmem:[%s4520_s19 + $0x14] ss:$8 sps:$4 sm:$0xff]   ;;  %v3641_v63 = vld [vmem:[%s4520_s19 + $0x10] ss:$8 sps:$4 sm:$0xff]   ;;  %v3643_v1 = vld [vmem:[%s4520_s19 + $0x4] ss:$8 sps:$4 sm:$0xff]  }
  0x90   : > { %v3639_v62 = vld [vmem:[%s4520_s19 + $0x114] ss:$8 sps:$4 sm:$0xff]   ;;  %v3642_v0 = vld [vmem:[%s4520_s19 + $0x110] ss:$8 sps:$4 sm:$0xff]   ;;  %v3645_v2 = vld [vmem:[%s4520_s19 + $0x104] ss:$8 sps:$4 sm:$0xff]  }
  0x91   : > { %2340 = vmatpush1.bf16.msra.mxu0 %v3617_v47  ;;  %v3647_v3 = vld [vmem:[%s4520_s19] ss:$8 sps:$4 sm:$0xff]   ;;  %v3649_v5 = vld [vmem:[%s4520_s19 + $0xf4] ss:$8 sps:$4 sm:$0xff]   ;;  %v3653_v7 = vld [vmem:[%s4520_s19 + $0xf0] ss:$8 sps:$4 sm:$0xff]  }
  0x92   : > { %2393 = vmatpush1.bf16.msra.mxu1 %v3618_v48  ;;  %2341 = vmatprep.subr.bf16.mxu0 %v3619_v49  ;;  %v3648_v4 = vld [vmem:[%s4520_s19 + $0x100] ss:$8 sps:$4 sm:$0xff]   ;;  %v3651_v6 = vld [vmem:[%s4520_s19 + $0x1f4] ss:$8 sps:$4 sm:$0xff]   ;;  %v3654_v8 = vld [vmem:[%s4520_s19 + $0x1f0] ss:$8 sps:$4 sm:$0xff]  }
  0x93   : > { %2394 = vmatprep.subr.bf16.mxu1 %v3621_v50  ;;  %v3655_v9 = vld [vmem:[%s4520_s19 + $0xe4] ss:$8 sps:$4 sm:$0xff]   ;;  %v3659_v11 = vld [vmem:[%s4520_s19 + $0xe0] ss:$8 sps:$4 sm:$0xff]   ;;  %v3661_v13 = vld [vmem:[%s4520_s19 + $0xd4] ss:$8 sps:$4 sm:$0xff]  }
  0x94   : > { %v3657_v10 = vld [vmem:[%s4520_s19 + $0x1e4] ss:$8 sps:$4 sm:$0xff]   ;;  %v3660_v12 = vld [vmem:[%s4520_s19 + $0x1e0] ss:$8 sps:$4 sm:$0xff]   ;;  %v3663_v14 = vld [vmem:[%s4520_s19 + $0x1d4] ss:$8 sps:$4 sm:$0xff]  }
  0x95   : > { %2342 = vmatpush1.bf16.msra.mxu0 %v3623_v51  ;;  %v3665_v15 = vld [vmem:[%s4520_s19 + $0xd0] ss:$8 sps:$4 sm:$0xff]   ;;  %v3667_v17 = vld [vmem:[%s4520_s19 + $0xc4] ss:$8 sps:$4 sm:$0xff]   ;;  %v3671_v19 = vld [vmem:[%s4520_s19 + $0xc0] ss:$8 sps:$4 sm:$0xff]  }
  0x96   : > { %2395 = vmatpush1.bf16.msra.mxu1 %v3624_v52  ;;  %2343 = vmatprep.subr.bf16.mxu0 %v3625_v53  ;;  %v3666_v16 = vld [vmem:[%s4520_s19 + $0x1d0] ss:$8 sps:$4 sm:$0xff]   ;;  %v3669_v18 = vld [vmem:[%s4520_s19 + $0x1c4] ss:$8 sps:$4 sm:$0xff]   ;;  %v3672_v20 = vld [vmem:[%s4520_s19 + $0x1c0] ss:$8 sps:$4 sm:$0xff]  }
  0x97   : > { %2396 = vmatprep.subr.bf16.mxu1 %v3627_v54  ;;  %v3673_v21 = vld [vmem:[%s4520_s19 + $0xb4] ss:$8 sps:$4 sm:$0xff]   ;;  %v3699_v22 = vld [vmem:[%s4518_s27 + $0x4] ss:$72 sps:$4 sm:$0xff]   ;;  %v3677_v25 = vld [vmem:[%s4520_s19 + $0xb0] ss:$8 sps:$4 sm:$0xff]  }
  0x98   : > { %v3675_v23 = vld [vmem:[%s4520_s19 + $0x1b4] ss:$8 sps:$4 sm:$0xff]   ;;  %2367 = vmatprep.mubr.bf16.mxu0 %v3699_v22  ;;  %v3678_v26 = vld [vmem:[%s4520_s19 + $0x1b0] ss:$8 sps:$4 sm:$0xff]   ;;  %v3679_v27 = vld [vmem:[%s4520_s19 + $0xa4] ss:$8 sps:$4 sm:$0xff]  }
  0x99   : > { %2344 = vmatpush1.bf16.msra.mxu0 %v3629_v55  ;;  %v3702_v24 = vld [vmem:[%s4518_s27 + $0xc] ss:$72 sps:$4 sm:$0xff]   ;;  %v3683_v29 = vld [vmem:[%s4520_s19 + $0xa0] ss:$8 sps:$4 sm:$0xff]   ;;  %v3689_v33 = vld [vmem:[%s4520_s19 + $0x90] ss:$8 sps:$4 sm:$0xff]  }
  0x9a   : > { %2397 = vmatpush1.bf16.msra.mxu1 %v3630_v56  ;;  %2345 = vmatprep.subr.bf16.mxu0 %v3631_v57  ;;  %v3681_v28 = vld [vmem:[%s4520_s19 + $0x1a4] ss:$8 sps:$4 sm:$0xff]   ;;  %v3684_v30 = vld [vmem:[%s4520_s19 + $0x1a0] ss:$8 sps:$4 sm:$0xff]   ;;  %v3685_v31 = vld [vmem:[%s4520_s19 + $0x94] ss:$8 sps:$4 sm:$0xff]  }
  0x9b   : > { %2398 = vmatprep.subr.bf16.mxu1 %v3633_v58  ;;  %2420 = vmatprep.mubr.bf16.mxu1 %v3702_v24  ;;  %v3687_v32 = vld [vmem:[%s4520_s19 + $0x194] ss:$8 sps:$4 sm:$0xff]   ;;  %v3690_v34 = vld [vmem:[%s4520_s19 + $0x190] ss:$8 sps:$4 sm:$0xff]   ;;  %v3691_v35 = vld [vmem:[%s4520_s19 + $0x84] ss:$8 sps:$4 sm:$0xff]  }
  0x9c   : > { %v3693_v36 = vld [vmem:[%s4520_s19 + $0x184] ss:$8 sps:$4 sm:$0xff]   ;;  %v3695_v37 = vld [vmem:[%s4520_s19 + $0x80] ss:$8 sps:$4 sm:$0xff]   ;;  %v3705_v39 = vld [vmem:[%s4520_s19 + $0x274] ss:$8 sps:$4 sm:$0xff]  }
  0x9d   : > { %2346 = vmatpush1.bf16.msra.mxu0 %v3635_v59  ;;  %v3696_v38 = vld [vmem:[%s4520_s19 + $0x180] ss:$8 sps:$4 sm:$0xff]   ;;  %v3708_v40 = vld [vmem:[%s4520_s19 + $0x374] ss:$8 sps:$4 sm:$0xff]   ;;  %v3703_v43 = vld [vmem:[%s4520_s19 + $0x270] ss:$8 sps:$4 sm:$0xff]  }
  0x9e   : > { %2399 = vmatpush1.bf16.msra.mxu1 %v3636_v60  ;;  %2347 = vmatprep.subr.bf16.mxu0 %v3637_v61  ;;  %v3697_v41 = vld [vmem:[%s4518_s27] ss:$72 sps:$4 sm:$0xff]   ;;  %v3706_v44 = vld [vmem:[%s4520_s19 + $0x370] ss:$8 sps:$4 sm:$0xff]   ;;  %v3711_v45 = vld [vmem:[%s4520_s19 + $0x264] ss:$8 sps:$4 sm:$0xff]  }
  0x9f   : > { %2400 = vmatprep.subr.bf16.mxu1 %v3639_v62  ;;  %v3700_v42 = vld [vmem:[%s4518_s27 + $0x8] ss:$72 sps:$4 sm:$0xff]   ;;  %v3714_v46 = vld [vmem:[%s4520_s19 + $0x364] ss:$8 sps:$4 sm:$0xff]   ;;  %v3717_v49 = vld [vmem:[%s4520_s19 + $0x254] ss:$8 sps:$4 sm:$0xff]  }
  0xa0   : > { %v3709_v47 = vld [vmem:[%s4520_s19 + $0x260] ss:$8 sps:$4 sm:$0xff]   ;;  %v3720_v50 = vld [vmem:[%s4520_s19 + $0x354] ss:$8 sps:$4 sm:$0xff]   ;;  %v3715_v51 = vld [vmem:[%s4520_s19 + $0x250] ss:$8 sps:$4 sm:$0xff]  }
  0xa1   : > { %2348 = vmatpush1.bf16.msra.mxu0 %v3641_v63  ;;  %v3712_v48 = vld [vmem:[%s4520_s19 + $0x360] ss:$8 sps:$4 sm:$0xff]   ;;  %v3718_v52 = vld [vmem:[%s4520_s19 + $0x350] ss:$8 sps:$4 sm:$0xff]   ;;  %v3723_v53 = vld [vmem:[%s4520_s19 + $0x244] ss:$8 sps:$4 sm:$0xff]  }
  0xa2   : > { %2401 = vmatpush1.bf16.msra.mxu1 %v3642_v0  ;;  %2349 = vmatprep.subr.bf16.mxu0 %v3643_v1  ;;  %v3726_v54 = vld [vmem:[%s4520_s19 + $0x344] ss:$8 sps:$4 sm:$0xff]   ;;  %v3721_v55 = vld [vmem:[%s4520_s19 + $0x240] ss:$8 sps:$4 sm:$0xff]   ;;  %v3729_v57 = vld [vmem:[%s4520_s19 + $0x234] ss:$8 sps:$4 sm:$0xff]  }
  0xa3   : > { %2402 = vmatprep.subr.bf16.mxu1 %v3645_v2  ;;  %v3724_v56 = vld [vmem:[%s4520_s19 + $0x340] ss:$8 sps:$4 sm:$0xff]   ;;  %v3732_v58 = vld [vmem:[%s4520_s19 + $0x334] ss:$8 sps:$4 sm:$0xff]   ;;  %v3727_v59 = vld [vmem:[%s4520_s19 + $0x230] ss:$8 sps:$4 sm:$0xff]  }
  0xa4   : > { %v3730_v60 = vld [vmem:[%s4520_s19 + $0x330] ss:$8 sps:$4 sm:$0xff]   ;;  %v3735_v61 = vld [vmem:[%s4520_s19 + $0x224] ss:$8 sps:$4 sm:$0xff]   ;;  %v3781_v63 = vld [vmem:[%s4518_s27 + $0x94] ss:$72 sps:$4 sm:$0xff]  }
  0xa5   : > { %2350 = vmatpush1.bf16.msra.mxu0 %v3647_v3  ;;  %v3738_v62 = vld [vmem:[%s4520_s19 + $0x324] ss:$8 sps:$4 sm:$0xff]   ;;  %v3785_v1 = vld [vmem:[%s4518_s27 + $0x90] ss:$72 sps:$4 sm:$0xff]   ;;  %v3733_v3 = vld [vmem:[%s4520_s19 + $0x220] ss:$8 sps:$4 sm:$0xff]  }
  0xa6   : > { %2403 = vmatpush1.bf16.msra.mxu1 %v3648_v4  ;;  %2351 = vmatprep.subr.bf16.mxu0 %v3649_v5  ;;  %v3783_v0 = vld [vmem:[%s4518_s27 + $0x9c] ss:$72 sps:$4 sm:$0xff]   ;;  %v3786_v2 = vld [vmem:[%s4518_s27 + $0x98] ss:$72 sps:$4 sm:$0xff]   ;;  %p3435_p12 = scmp.ne.s32.totalorder %s4233_s20, 1 }
  0xa7   : > { %2404 = vmatprep.subr.bf16.mxu1 %v3651_v6  ;;  %v3736_v4 = vld [vmem:[%s4520_s19 + $0x320] ss:$8 sps:$4 sm:$0xff]   ;;  %v3741_v5 = vld [vmem:[%s4520_s19 + $0x214] ss:$8 sps:$4 sm:$0xff]  }
  0xa8   : > { %v3744_v6 = vld [vmem:[%s4520_s19 + $0x314] ss:$8 sps:$4 sm:$0xff]   ;;  %v3760_v22 = vld [vmem:[%s4520_s19 + $0x3e0] ss:$8 sps:$4 sm:$0xff]  }
  0xa9   : > { %2352 = vmatpush2.bf16.msra.mxu0 %v3653_v7  ;;  %v3739_v7 = vld [vmem:[%s4520_s19 + $0x210] ss:$8 sps:$4 sm:$0xff]   ;;  %v3768_v24 = vld [vmem:[%s4520_s19 + $0x3d4] ss:$8 sps:$4 sm:$0xff]  }
  0xaa   : > { %2405 = vmatpush2.bf16.msra.mxu1 %v3654_v8  ;;  %2353 = vmatprep.subr.bf16.mxu0 %v3655_v9  ;;  %v3742_v8 = vld [vmem:[%s4520_s19 + $0x310] ss:$8 sps:$4 sm:$0xff]   ;;  %v3747_v9 = vld [vmem:[%s4520_s19 + $0x204] ss:$8 sps:$4 sm:$0xff]  }
  0xab   : > { %2406 = vmatprep.subr.bf16.mxu1 %v3657_v10  ;;  %v3750_v10 = vld [vmem:[%s4520_s19 + $0x304] ss:$8 sps:$4 sm:$0xff]  }
  0xad   : > { %2354 = vmatpush2.bf16.msra.mxu0 %v3659_v11  ;;  %v3745_v11 = vld [vmem:[%s4520_s19 + $0x200] ss:$8 sps:$4 sm:$0xff]  }
  0xae   : > { %2407 = vmatpush2.bf16.msra.mxu1 %v3660_v12  ;;  %2355 = vmatprep.subr.bf16.mxu0 %v3661_v13  ;;  %v3748_v12 = vld [vmem:[%s4520_s19 + $0x300] ss:$8 sps:$4 sm:$0xff]   ;;  %v3753_v13 = vld [vmem:[%s4520_s19 + $0x2f4] ss:$8 sps:$4 sm:$0xff]  }
  0xaf   : > { %2408 = vmatprep.subr.bf16.mxu1 %v3663_v14  ;;  %v3807_v14 = vld [vmem:[%s4518_s27 + $0x14] ss:$72 sps:$4 sm:$0xff]  }
  0xb1   : > { %2356 = vmatpush2.bf16.msra.mxu0 %v3665_v15  ;;  %v3756_v15 = vld [vmem:[%s4520_s19 + $0x3f4] ss:$8 sps:$4 sm:$0xff]  }
  0xb2   : > { %2409 = vmatpush2.bf16.msra.mxu1 %v3666_v16  ;;  %2357 = vmatprep.subr.bf16.mxu0 %v3667_v17  ;;  %v3810_v16 = vld [vmem:[%s4518_s27 + $0x1c] ss:$72 sps:$4 sm:$0xff]   ;;  %v3751_v17 = vld [vmem:[%s4520_s19 + $0x2f0] ss:$8 sps:$4 sm:$0xff]  }
  0xb3   : > { %2410 = vmatprep.subr.bf16.mxu1 %v3669_v18  ;;  %v3754_v18 = vld [vmem:[%s4520_s19 + $0x3f0] ss:$8 sps:$4 sm:$0xff]  }
  0xb5   : > { %2358 = vmatpush2.bf16.msra.mxu0 %v3671_v19  ;;  %v3759_v19 = vld [vmem:[%s4520_s19 + $0x2e4] ss:$8 sps:$4 sm:$0xff]  }
  0xb6   : > { %2411 = vmatpush2.bf16.msra.mxu1 %v3672_v20  ;;  %2359 = vmatprep.subr.bf16.mxu0 %v3673_v21  ;;  %v3762_v20 = vld [vmem:[%s4520_s19 + $0x3e4] ss:$8 sps:$4 sm:$0xff]   ;;  %v3757_v21 = vld [vmem:[%s4520_s19 + $0x2e0] ss:$8 sps:$4 sm:$0xff]  }
  0xb7   : > { %2412 = vmatprep.subr.bf16.mxu1 %v3675_v23  ;;  %v3765_v23 = vld [vmem:[%s4520_s19 + $0x2d4] ss:$8 sps:$4 sm:$0xff]  }
  0xb9   : > { %2360 = vmatpush2.bf16.msra.mxu0 %v3677_v25  ;;  %v3763_v25 = vld [vmem:[%s4520_s19 + $0x2d0] ss:$8 sps:$4 sm:$0xff]  }
  0xba   : > { %2413 = vmatpush2.bf16.msra.mxu1 %v3678_v26  ;;  %2361 = vmatprep.subr.bf16.mxu0 %v3679_v27  ;;  %v3766_v26 = vld [vmem:[%s4520_s19 + $0x3d0] ss:$8 sps:$4 sm:$0xff]   ;;  %v3771_v27 = vld [vmem:[%s4520_s19 + $0x2c4] ss:$8 sps:$4 sm:$0xff]  }
  0xbb   : > { %2414 = vmatprep.subr.bf16.mxu1 %v3681_v28  ;;  %v3774_v28 = vld [vmem:[%s4520_s19 + $0x3c4] ss:$8 sps:$4 sm:$0xff]  }
  0xbd   : > { %2362 = vmatpush2.bf16.msra.mxu0 %v3683_v29  ;;  %v3769_v29 = vld [vmem:[%s4520_s19 + $0x2c0] ss:$8 sps:$4 sm:$0xff]  }
  0xbe   : > { %2415 = vmatpush2.bf16.msra.mxu1 %v3684_v30  ;;  %2363 = vmatprep.subr.bf16.mxu0 %v3685_v31  ;;  %v3772_v30 = vld [vmem:[%s4520_s19 + $0x3c0] ss:$8 sps:$4 sm:$0xff]   ;;  %v3777_v31 = vld [vmem:[%s4520_s19 + $0x2b4] ss:$8 sps:$4 sm:$0xff]  }
  0xbf   : > { %2416 = vmatprep.subr.bf16.mxu1 %v3687_v32  ;;  %v3780_v32 = vld [vmem:[%s4520_s19 + $0x3b4] ss:$8 sps:$4 sm:$0xff]  }
  0xc1   : > { %2364 = vmatpush2.bf16.msra.mxu0 %v3689_v33  ;;  %v3775_v33 = vld [vmem:[%s4520_s19 + $0x2b0] ss:$8 sps:$4 sm:$0xff]  }
  0xc2   : > { %2417 = vmatpush2.bf16.msra.mxu1 %v3690_v34  ;;  %2365 = vmatprep.subr.bf16.mxu0 %v3691_v35  ;;  %v3778_v34 = vld [vmem:[%s4520_s19 + $0x3b0] ss:$8 sps:$4 sm:$0xff]   ;;  %v3789_v35 = vld [vmem:[%s4520_s19 + $0x2a4] ss:$8 sps:$4 sm:$0xff]  }
  0xc3   : > { %2418 = vmatprep.subr.bf16.mxu1 %v3693_v36  ;;  %v3792_v36 = vld [vmem:[%s4520_s19 + $0x3a4] ss:$8 sps:$4 sm:$0xff]  }
  0xc5   : > { %2366 = vmatpush2.bf16.msra.mxu0 %v3695_v37  ;;  %v3787_v37 = vld [vmem:[%s4520_s19 + $0x2a0] ss:$8 sps:$4 sm:$0xff]  }
  0xc6   : > { %2419 = vmatpush2.bf16.msra.mxu1 %v3696_v38  ;;  %2441 = vmatprep.subr.bf16.mxu0 %v3705_v39  ;;  %v3790_v38 = vld [vmem:[%s4520_s19 + $0x3a0] ss:$8 sps:$4 sm:$0xff]   ;;  %v3795_v39 = vld [vmem:[%s4520_s19 + $0x294] ss:$8 sps:$4 sm:$0xff]  }
  0xc7   : > { %2494 = vmatprep.subr.bf16.mxu1 %v3708_v40  ;;  %v3798_v40 = vld [vmem:[%s4520_s19 + $0x394] ss:$8 sps:$4 sm:$0xff]  }
  0xc8   : > { %2368 = vmatmul.mubr.bf16.vlgmr.msra.gmra.mxu0 %v3697_v41  ;;  %v3793_v41 = vld [vmem:[%s4520_s19 + $0x290] ss:$8 sps:$4 sm:$0xff]  }
  0xc9   : > { %2421 = vmatmul.mubr.bf16.vlgmr.msra.gmra.mxu1 %v3700_v42  ;;  %2442 = vmatpush1.bf16.msra.mxu0 %v3703_v43  ;;  %v3796_v42 = vld [vmem:[%s4520_s19 + $0x390] ss:$8 sps:$4 sm:$0xff]   ;;  %v3801_v43 = vld [vmem:[%s4520_s19 + $0x284] ss:$8 sps:$4 sm:$0xff]  }
  0xca   : > { %2495 = vmatpush1.bf16.msra.mxu1 %v3706_v44  ;;  %2443 = vmatprep.subr.bf16.mxu0 %v3711_v45  ;;  %v3804_v44 = vld [vmem:[%s4520_s19 + $0x384] ss:$8 sps:$4 sm:$0xff]   ;;  %v3799_v45 = vld [vmem:[%s4520_s19 + $0x280] ss:$8 sps:$4 sm:$0xff]  }
  0xcb   : > { %2496 = vmatprep.subr.bf16.mxu1 %v3714_v46  ;;  %2377 = vmatprep.mubr.bf16.mxu0 %v3781_v63  ;;  %v3802_v46 = vld [vmem:[%s4520_s19 + $0x380] ss:$8 sps:$4 sm:$0xff]   ;;  %v3829_v63 = vld [vmem:[%s4520_s19 + $0x550] ss:$8 sps:$4 sm:$0xff]  }
  0xcc   : > { %2430 = vmatprep.mubr.bf16.mxu1 %v3783_v0  ;;  %v3834_v0 = vld [vmem:[%s4518_s27 + $0xa8] ss:$72 sps:$4 sm:$0xff]  }
  0xcd   : > { %2444 = vmatpush1.bf16.msra.mxu0 %v3709_v47  ;;  %v3813_v47 = vld [vmem:[%s4520_s19 + $0x474] ss:$8 sps:$4 sm:$0xff]  }
  0xce   : > { %2497 = vmatpush1.bf16.msra.mxu1 %v3712_v48  ;;  %2445 = vmatprep.subr.bf16.mxu0 %v3717_v49  ;;  %v3816_v48 = vld [vmem:[%s4520_s19 + $0x574] ss:$8 sps:$4 sm:$0xff]   ;;  %v3805_v49 = vld [vmem:[%s4518_s27 + $0x10] ss:$72 sps:$4 sm:$0xff]  }
  0xcf   : > { %2498 = vmatprep.subr.bf16.mxu1 %v3720_v50  ;;  %v3808_v50 = vld [vmem:[%s4518_s27 + $0x18] ss:$72 sps:$4 sm:$0xff]  }
  0xd0   : > { %2378 = vmatmul.mubr.bf16.gmra.mxu0 %v3785_v1  ;;  %v3837_v1 = vld [vmem:[%s4520_s19 + $0x444] ss:$8 sps:$4 sm:$0xff]  }
  0xd1   : > { %2446 = vmatpush1.bf16.msra.mxu0 %v3715_v51  ;;  %2431 = vmatmul.mubr.bf16.gmra.mxu1 %v3786_v2  ;;  %v3811_v51 = vld [vmem:[%s4520_s19 + $0x470] ss:$8 sps:$4 sm:$0xff]   ;;  %v3840_v2 = vld [vmem:[%s4520_s19 + $0x544] ss:$8 sps:$4 sm:$0xff]  }
  0xd2   : > { %2499 = vmatpush1.bf16.msra.mxu1 %v3718_v52  ;;  %2447 = vmatprep.subr.bf16.mxu0 %v3723_v53  ;;  %v3814_v52 = vld [vmem:[%s4520_s19 + $0x570] ss:$8 sps:$4 sm:$0xff]   ;;  %v3819_v53 = vld [vmem:[%s4520_s19 + $0x464] ss:$8 sps:$4 sm:$0xff]  }
  0xd3   : > { %2500 = vmatprep.subr.bf16.mxu1 %v3726_v54  ;;  %2473 = vmatprep.mubr.bf16.mxu0 %v3807_v14  ;;  %v3822_v54 = vld [vmem:[%s4520_s19 + $0x564] ss:$8 sps:$4 sm:$0xff]   ;;  %v3850_v14 = vld [vmem:[%s4520_s19 + $0x520] ss:$8 sps:$4 sm:$0xff]  }
  0xd4   : > { %2526 = vmatprep.mubr.bf16.mxu1 %v3810_v16  ;;  %v3858_v16 = vld [vmem:[%s4520_s19 + $0x514] ss:$8 sps:$4 sm:$0xff]  }
  0xd5   : > { %2448 = vmatpush1.bf16.msra.mxu0 %v3721_v55  ;;  %v3823_v55 = vld [vmem:[%s4518_s27 + $0xa4] ss:$72 sps:$4 sm:$0xff]  }
  0xd6   : > { %2501 = vmatpush1.bf16.msra.mxu1 %v3724_v56  ;;  %2449 = vmatprep.subr.bf16.mxu0 %v3729_v57  ;;  %v3832_v56 = vld [vmem:[%s4518_s27 + $0xac] ss:$72 sps:$4 sm:$0xff]   ;;  %v3817_v57 = vld [vmem:[%s4520_s19 + $0x460] ss:$8 sps:$4 sm:$0xff]  }
  0xd7   : > { %2502 = vmatprep.subr.bf16.mxu1 %v3732_v58  ;;  %v3820_v58 = vld [vmem:[%s4520_s19 + $0x560] ss:$8 sps:$4 sm:$0xff]  }
  0xd9   : > { %2450 = vmatpush1.bf16.msra.mxu0 %v3727_v59  ;;  %v3828_v59 = vld [vmem:[%s4520_s19 + $0x454] ss:$8 sps:$4 sm:$0xff]  }
  0xda   : > { %2503 = vmatpush1.bf16.msra.mxu1 %v3730_v60  ;;  %2451 = vmatprep.subr.bf16.mxu0 %v3735_v61  ;;  %v3831_v60 = vld [vmem:[%s4520_s19 + $0x554] ss:$8 sps:$4 sm:$0xff]   ;;  %v3825_v61 = vld [vmem:[%s4518_s27 + $0xa0] ss:$72 sps:$4 sm:$0xff]  }
  0xdb   : > { %2504 = vmatprep.subr.bf16.mxu1 %v3738_v62  ;;  %v3826_v62 = vld [vmem:[%s4520_s19 + $0x450] ss:$8 sps:$4 sm:$0xff]  }
  0xdd   : > { %2452 = vmatpush1.bf16.msra.mxu0 %v3733_v3  ;;  %v3835_v3 = vld [vmem:[%s4520_s19 + $0x440] ss:$8 sps:$4 sm:$0xff]  }
  0xde   : > { %2505 = vmatpush1.bf16.msra.mxu1 %v3736_v4  ;;  %2453 = vmatprep.subr.bf16.mxu0 %v3741_v5  ;;  %v3838_v4 = vld [vmem:[%s4520_s19 + $0x540] ss:$8 sps:$4 sm:$0xff]   ;;  %v3843_v5 = vld [vmem:[%s4520_s19 + $0x434] ss:$8 sps:$4 sm:$0xff]  }
  0xdf   : > { %2506 = vmatprep.subr.bf16.mxu1 %v3744_v6  ;;  %v3915_v6 = vld [vmem:[%s4518_s27 + $0x24] ss:$72 sps:$4 sm:$0xff]  }
  0xe1   : > { %2454 = vmatpush1.bf16.msra.mxu0 %v3739_v7  ;;  %v3846_v7 = vld [vmem:[%s4520_s19 + $0x534] ss:$8 sps:$4 sm:$0xff]  }
  0xe2   : > { %2507 = vmatpush1.bf16.msra.mxu1 %v3742_v8  ;;  %2455 = vmatprep.subr.bf16.mxu0 %v3747_v9  ;;  %v3918_v8 = vld [vmem:[%s4518_s27 + $0x2c] ss:$72 sps:$4 sm:$0xff]   ;;  %v3841_v9 = vld [vmem:[%s4520_s19 + $0x430] ss:$8 sps:$4 sm:$0xff]  }
  0xe3   : > { %2508 = vmatprep.subr.bf16.mxu1 %v3750_v10  ;;  %v3844_v10 = vld [vmem:[%s4520_s19 + $0x530] ss:$8 sps:$4 sm:$0xff]  }
  0xe5   : > { %2456 = vmatpush1.bf16.msra.mxu0 %v3745_v11  ;;  %v3849_v11 = vld [vmem:[%s4520_s19 + $0x424] ss:$8 sps:$4 sm:$0xff]  }
  0xe6   : > { %2509 = vmatpush1.bf16.msra.mxu1 %v3748_v12  ;;  %2457 = vmatprep.subr.bf16.mxu0 %v3753_v13  ;;  %v3852_v12 = vld [vmem:[%s4520_s19 + $0x524] ss:$8 sps:$4 sm:$0xff]   ;;  %v3847_v13 = vld [vmem:[%s4520_s19 + $0x420] ss:$8 sps:$4 sm:$0xff]  }
  0xe7   : > { %2510 = vmatprep.subr.bf16.mxu1 %v3756_v15  ;;  %v3855_v15 = vld [vmem:[%s4520_s19 + $0x414] ss:$8 sps:$4 sm:$0xff]  }
  0xe9   : > { %2458 = vmatpush2.bf16.msra.mxu0 %v3751_v17  ;;  %v3853_v17 = vld [vmem:[%s4520_s19 + $0x410] ss:$8 sps:$4 sm:$0xff]  }
  0xea   : > { %2511 = vmatpush2.bf16.msra.mxu1 %v3754_v18  ;;  %2459 = vmatprep.subr.bf16.mxu0 %v3759_v19  ;;  %v3856_v18 = vld [vmem:[%s4520_s19 + $0x510] ss:$8 sps:$4 sm:$0xff]   ;;  %v3861_v19 = vld [vmem:[%s4520_s19 + $0x404] ss:$8 sps:$4 sm:$0xff]  }
  0xeb   : > { %2512 = vmatprep.subr.bf16.mxu1 %v3762_v20  ;;  %v3864_v20 = vld [vmem:[%s4520_s19 + $0x504] ss:$8 sps:$4 sm:$0xff]  }
  0xed   : > { %2460 = vmatpush2.bf16.msra.mxu0 %v3757_v21  ;;  %v3859_v21 = vld [vmem:[%s4520_s19 + $0x400] ss:$8 sps:$4 sm:$0xff]  }
  0xee   : > { %2513 = vmatpush2.bf16.msra.mxu1 %v3760_v22  ;;  %2461 = vmatprep.subr.bf16.mxu0 %v3765_v23  ;;  %v3862_v22 = vld [vmem:[%s4520_s19 + $0x500] ss:$8 sps:$4 sm:$0xff]   ;;  %v3867_v23 = vld [vmem:[%s4520_s19 + $0x4f4] ss:$8 sps:$4 sm:$0xff]  }
  0xef   : > { %2514 = vmatprep.subr.bf16.mxu1 %v3768_v24  ;;  %v3870_v24 = vld [vmem:[%s4520_s19 + $0x5f4] ss:$8 sps:$4 sm:$0xff]  }
  0xf1   : > { %2462 = vmatpush2.bf16.msra.mxu0 %v3763_v25  ;;  %v3865_v25 = vld [vmem:[%s4520_s19 + $0x4f0] ss:$8 sps:$4 sm:$0xff]  }
  0xf2   : > { %2515 = vmatpush2.bf16.msra.mxu1 %v3766_v26  ;;  %2463 = vmatprep.subr.bf16.mxu0 %v3771_v27  ;;  %v3868_v26 = vld [vmem:[%s4520_s19 + $0x5f0] ss:$8 sps:$4 sm:$0xff]   ;;  %v3873_v27 = vld [vmem:[%s4520_s19 + $0x4e4] ss:$8 sps:$4 sm:$0xff]  }
  0xf3   : > { %2516 = vmatprep.subr.bf16.mxu1 %v3774_v28  ;;  %v3876_v28 = vld [vmem:[%s4520_s19 + $0x5e4] ss:$8 sps:$4 sm:$0xff]  }
  0xf5   : > { %2464 = vmatpush2.bf16.msra.mxu0 %v3769_v29  ;;  %v3871_v29 = vld [vmem:[%s4520_s19 + $0x4e0] ss:$8 sps:$4 sm:$0xff]  }
  0xf6   : > { %2517 = vmatpush2.bf16.msra.mxu1 %v3772_v30  ;;  %2465 = vmatprep.subr.bf16.mxu0 %v3777_v31  ;;  %v3874_v30 = vld [vmem:[%s4520_s19 + $0x5e0] ss:$8 sps:$4 sm:$0xff]   ;;  %v3879_v31 = vld [vmem:[%s4520_s19 + $0x4d4] ss:$8 sps:$4 sm:$0xff]  }
  0xf7   : > { %2518 = vmatprep.subr.bf16.mxu1 %v3780_v32  ;;  %v3882_v32 = vld [vmem:[%s4520_s19 + $0x5d4] ss:$8 sps:$4 sm:$0xff]  }
  0xf9   : > { %2466 = vmatpush2.bf16.msra.mxu0 %v3775_v33  ;;  %v3877_v33 = vld [vmem:[%s4520_s19 + $0x4d0] ss:$8 sps:$4 sm:$0xff]  }
  0xfa   : > { %2519 = vmatpush2.bf16.msra.mxu1 %v3778_v34  ;;  %2467 = vmatprep.subr.bf16.mxu0 %v3789_v35  ;;  %v3880_v34 = vld [vmem:[%s4520_s19 + $0x5d0] ss:$8 sps:$4 sm:$0xff]   ;;  %v3885_v35 = vld [vmem:[%s4520_s19 + $0x4c4] ss:$8 sps:$4 sm:$0xff]  }
  0xfb   : > { %2520 = vmatprep.subr.bf16.mxu1 %v3792_v36  ;;  %v3888_v36 = vld [vmem:[%s4520_s19 + $0x5c4] ss:$8 sps:$4 sm:$0xff]  }
  0xfd   : > { %2468 = vmatpush2.bf16.msra.mxu0 %v3787_v37  ;;  %v3883_v37 = vld [vmem:[%s4520_s19 + $0x4c0] ss:$8 sps:$4 sm:$0xff]  }
  0xfe   : > { %2521 = vmatpush2.bf16.msra.mxu1 %v3790_v38  ;;  %2469 = vmatprep.subr.bf16.mxu0 %v3795_v39  ;;  %v3886_v38 = vld [vmem:[%s4520_s19 + $0x5c0] ss:$8 sps:$4 sm:$0xff]   ;;  %v3891_v39 = vld [vmem:[%s4520_s19 + $0x4b4] ss:$8 sps:$4 sm:$0xff]  }
  0xff   : > { %2522 = vmatprep.subr.bf16.mxu1 %v3798_v40  ;;  %v3894_v40 = vld [vmem:[%s4520_s19 + $0x5b4] ss:$8 sps:$4 sm:$0xff]  }
 0x101   : > { %2470 = vmatpush2.bf16.msra.mxu0 %v3793_v41  ;;  %v3889_v41 = vld [vmem:[%s4520_s19 + $0x4b0] ss:$8 sps:$4 sm:$0xff]  }
 0x102   : > { %2523 = vmatpush2.bf16.msra.mxu1 %v3796_v42  ;;  %2471 = vmatprep.subr.bf16.mxu0 %v3801_v43  ;;  %v3892_v42 = vld [vmem:[%s4520_s19 + $0x5b0] ss:$8 sps:$4 sm:$0xff]   ;;  %v3897_v43 = vld [vmem:[%s4520_s19 + $0x4a4] ss:$8 sps:$4 sm:$0xff]  }
 0x103   : > { %2524 = vmatprep.subr.bf16.mxu1 %v3804_v44  ;;  %v3900_v44 = vld [vmem:[%s4520_s19 + $0x5a4] ss:$8 sps:$4 sm:$0xff]  }
 0x105   : > { %2472 = vmatpush2.bf16.msra.mxu0 %v3799_v45  ;;  %v3895_v45 = vld [vmem:[%s4520_s19 + $0x4a0] ss:$8 sps:$4 sm:$0xff]  }
 0x106   : > { %2525 = vmatpush2.bf16.msra.mxu1 %v3802_v46  ;;  %2547 = vmatprep.subr.bf16.mxu0 %v3813_v47  ;;  %v3898_v46 = vld [vmem:[%s4520_s19 + $0x5a0] ss:$8 sps:$4 sm:$0xff]   ;;  %v3903_v47 = vld [vmem:[%s4520_s19 + $0x494] ss:$8 sps:$4 sm:$0xff]  }
 0x107   : > { %2600 = vmatprep.subr.bf16.mxu1 %v3816_v48  ;;  %v3906_v48 = vld [vmem:[%s4520_s19 + $0x594] ss:$8 sps:$4 sm:$0xff]  }
 0x108   : > { %2474 = vmatmul.mubr.bf16.vlgmr.msra.gmra.mxu0 %v3805_v49  ;;  %v3901_v49 = vld [vmem:[%s4520_s19 + $0x490] ss:$8 sps:$4 sm:$0xff]  }
 0x109   : > { %2527 = vmatmul.mubr.bf16.vlgmr.msra.gmra.mxu1 %v3808_v50  ;;  %2548 = vmatpush1.bf16.msra.mxu0 %v3811_v51  ;;  %v3904_v50 = vld [vmem:[%s4520_s19 + $0x590] ss:$8 sps:$4 sm:$0xff]   ;;  %v3909_v51 = vld [vmem:[%s4520_s19 + $0x484] ss:$8 sps:$4 sm:$0xff]  }
 0x10a   : > { %2601 = vmatpush1.bf16.msra.mxu1 %v3814_v52  ;;  %2549 = vmatprep.subr.bf16.mxu0 %v3819_v53  ;;  %v3912_v52 = vld [vmem:[%s4520_s19 + $0x584] ss:$8 sps:$4 sm:$0xff]   ;;  %v3907_v53 = vld [vmem:[%s4520_s19 + $0x480] ss:$8 sps:$4 sm:$0xff]  }
 0x10b   : > { %2602 = vmatprep.subr.bf16.mxu1 %v3822_v54  ;;  %2483 = vmatprep.mubr.bf16.mxu0 %v3823_v55  ;;  %v3910_v54 = vld [vmem:[%s4520_s19 + $0x580] ss:$8 sps:$4 sm:$0xff]   ;;  %v3921_v55 = vld [vmem:[%s4520_s19 + $0x674] ss:$8 sps:$4 sm:$0xff]  }
 0x10c   : > { %2536 = vmatprep.mubr.bf16.mxu1 %v3832_v56  ;;  %v3924_v56 = vld [vmem:[%s4520_s19 + $0x774] ss:$8 sps:$4 sm:$0xff]  }
 0x10d   : > { %2550 = vmatpush1.bf16.msra.mxu0 %v3817_v57  ;;  %v3913_v57 = vld [vmem:[%s4518_s27 + $0x20] ss:$72 sps:$4 sm:$0xff]  }
 0x10e   : > { %2603 = vmatpush1.bf16.msra.mxu1 %v3820_v58  ;;  %2551 = vmatprep.subr.bf16.mxu0 %v3828_v59  ;;  %v3916_v58 = vld [vmem:[%s4518_s27 + $0x28] ss:$72 sps:$4 sm:$0xff]  }
 0x10f   : > { %2604 = vmatprep.subr.bf16.mxu1 %v3831_v60  ;;  %v3919_v59 = vld [vmem:[%s4520_s19 + $0x670] ss:$8 sps:$4 sm:$0xff]  }
 0x110   : > { %2484 = vmatmul.mubr.bf16.gmra.mxu0 %v3825_v61  ;;  %v3922_v60 = vld [vmem:[%s4520_s19 + $0x770] ss:$8 sps:$4 sm:$0xff]   ;;  %v3927_v61 = vld [vmem:[%s4520_s19 + $0x664] ss:$8 sps:$4 sm:$0xff]  }
 0x111   : > { %2537 = vmatmul.mubr.bf16.gmra.mxu1 %v3834_v0  ;;  %2552 = vmatpush1.bf16.msra.mxu0 %v3826_v62  ;;  %v3930_v62 = vld [vmem:[%s4520_s19 + $0x764] ss:$8 sps:$4 sm:$0xff]  }
 0x112   : > { %2605 = vmatpush1.bf16.msra.mxu1 %v3829_v63  ;;  %2553 = vmatprep.subr.bf16.mxu0 %v3837_v1  ;;  %v3931_v63 = vld [vmem:[%s4518_s27 + $0xb4] ss:$72 sps:$4 sm:$0xff]   ;;  %v3925_v1 = vld [vmem:[%s4520_s19 + $0x660] ss:$8 sps:$4 sm:$0xff]  }
 0x113   : > { %2606 = vmatprep.subr.bf16.mxu1 %v3840_v2  ;;  %2579 = vmatprep.mubr.bf16.mxu0 %v3915_v6  ;;  %v3940_v0 = vld [vmem:[%s4518_s27 + $0xbc] ss:$72 sps:$4 sm:$0xff]   ;;  %v3928_v2 = vld [vmem:[%s4520_s19 + $0x760] ss:$8 sps:$4 sm:$0xff]   ;;  %v3934_v6 = vld [vmem:[%s4520_s19 + $0x650] ss:$8 sps:$4 sm:$0xff]  }
 0x114   : > { %2632 = vmatprep.mubr.bf16.mxu1 %v3918_v8  ;;  %v3942_v8 = vld [vmem:[%s4518_s27 + $0xb8] ss:$72 sps:$4 sm:$0xff]  }
 0x115   : > { %2554 = vmatpush1.bf16.msra.mxu0 %v3835_v3  ;;  %v3936_v3 = vld [vmem:[%s4520_s19 + $0x654] ss:$8 sps:$4 sm:$0xff]  }
 0x116   : > { %2607 = vmatpush1.bf16.msra.mxu1 %v3838_v4  ;;  %2555 = vmatprep.subr.bf16.mxu0 %v3843_v5  ;;  %v3939_v4 = vld [vmem:[%s4520_s19 + $0x754] ss:$8 sps:$4 sm:$0xff]   ;;  %v3933_v5 = vld [vmem:[%s4518_s27 + $0xb0] ss:$72 sps:$4 sm:$0xff]  }
 0x117   : > { %2608 = vmatprep.subr.bf16.mxu1 %v3846_v7  ;;  %v3937_v7 = vld [vmem:[%s4520_s19 + $0x750] ss:$8 sps:$4 sm:$0xff]  }
 0x119   : > { %2556 = vmatpush1.bf16.msra.mxu0 %v3841_v9  ;;  %v3945_v9 = vld [vmem:[%s4520_s19 + $0x644] ss:$8 sps:$4 sm:$0xff]  }
 0x11a   : > { %2609 = vmatpush1.bf16.msra.mxu1 %v3844_v10  ;;  %2557 = vmatprep.subr.bf16.mxu0 %v3849_v11  ;;  %v3948_v10 = vld [vmem:[%s4520_s19 + $0x744] ss:$8 sps:$4 sm:$0xff]   ;;  %v4023_v11 = vld [vmem:[%s4518_s27 + $0x34] ss:$72 sps:$4 sm:$0xff]  }
 0x11b   : > { %2610 = vmatprep.subr.bf16.mxu1 %v3852_v12  ;;  %v4026_v12 = vld [vmem:[%s4518_s27 + $0x3c] ss:$72 sps:$4 sm:$0xff]  }
 0x11d   : > { %2558 = vmatpush1.bf16.msra.mxu0 %v3847_v13  ;;  %v3943_v13 = vld [vmem:[%s4520_s19 + $0x640] ss:$8 sps:$4 sm:$0xff]  }
 0x11e   : > { %2611 = vmatpush1.bf16.msra.mxu1 %v3850_v14  ;;  %2559 = vmatprep.subr.bf16.mxu0 %v3855_v15  ;;  %v3946_v14 = vld [vmem:[%s4520_s19 + $0x740] ss:$8 sps:$4 sm:$0xff]   ;;  %v3951_v15 = vld [vmem:[%s4520_s19 + $0x634] ss:$8 sps:$4 sm:$0xff]  }
 0x11f   : > { %2612 = vmatprep.subr.bf16.mxu1 %v3858_v16  ;;  %v3954_v16 = vld [vmem:[%s4520_s19 + $0x734] ss:$8 sps:$4 sm:$0xff]  }
 0x121   : > { %2560 = vmatpush1.bf16.msra.mxu0 %v3853_v17  ;;  %v3949_v17 = vld [vmem:[%s4520_s19 + $0x630] ss:$8 sps:$4 sm:$0xff]  }
 0x122   : > { %2613 = vmatpush1.bf16.msra.mxu1 %v3856_v18  ;;  %2561 = vmatprep.subr.bf16.mxu0 %v3861_v19  ;;  %v3952_v18 = vld [vmem:[%s4520_s19 + $0x730] ss:$8 sps:$4 sm:$0xff]   ;;  %v3957_v19 = vld [vmem:[%s4520_s19 + $0x624] ss:$8 sps:$4 sm:$0xff]  }
 0x123   : > { %2614 = vmatprep.subr.bf16.mxu1 %v3864_v20  ;;  %v3960_v20 = vld [vmem:[%s4520_s19 + $0x724] ss:$8 sps:$4 sm:$0xff]  }
 0x125   : > { %2562 = vmatpush1.bf16.msra.mxu0 %v3859_v21  ;;  %v3955_v21 = vld [vmem:[%s4520_s19 + $0x620] ss:$8 sps:$4 sm:$0xff]  }
 0x126   : > { %2615 = vmatpush1.bf16.msra.mxu1 %v3862_v22  ;;  %2563 = vmatprep.subr.bf16.mxu0 %v3867_v23  ;;  %v3958_v22 = vld [vmem:[%s4520_s19 + $0x720] ss:$8 sps:$4 sm:$0xff]   ;;  %v3963_v23 = vld [vmem:[%s4520_s19 + $0x614] ss:$8 sps:$4 sm:$0xff]  }
 0x127   : > { %2616 = vmatprep.subr.bf16.mxu1 %v3870_v24  ;;  %v3966_v24 = vld [vmem:[%s4520_s19 + $0x714] ss:$8 sps:$4 sm:$0xff]  }
 0x129   : > { %2564 = vmatpush2.bf16.msra.mxu0 %v3865_v25  ;;  %v3961_v25 = vld [vmem:[%s4520_s19 + $0x610] ss:$8 sps:$4 sm:$0xff]  }
 0x12a   : > { %2617 = vmatpush2.bf16.msra.mxu1 %v3868_v26  ;;  %2565 = vmatprep.subr.bf16.mxu0 %v3873_v27  ;;  %v3964_v26 = vld [vmem:[%s4520_s19 + $0x710] ss:$8 sps:$4 sm:$0xff]   ;;  %v3969_v27 = vld [vmem:[%s4520_s19 + $0x604] ss:$8 sps:$4 sm:$0xff]  }
 0x12b   : > { %2618 = vmatprep.subr.bf16.mxu1 %v3876_v28  ;;  %v3972_v28 = vld [vmem:[%s4520_s19 + $0x704] ss:$8 sps:$4 sm:$0xff]  }
 0x12d   : > { %2566 = vmatpush2.bf16.msra.mxu0 %v3871_v29  ;;  %v3967_v29 = vld [vmem:[%s4520_s19 + $0x600] ss:$8 sps:$4 sm:$0xff]  }
 0x12e   : > { %2619 = vmatpush2.bf16.msra.mxu1 %v3874_v30  ;;  %2567 = vmatprep.subr.bf16.mxu0 %v3879_v31  ;;  %v3970_v30 = vld [vmem:[%s4520_s19 + $0x700] ss:$8 sps:$4 sm:$0xff]   ;;  %v3975_v31 = vld [vmem:[%s4520_s19 + $0x6f4] ss:$8 sps:$4 sm:$0xff]  }
 0x12f   : > { %2620 = vmatprep.subr.bf16.mxu1 %v3882_v32  ;;  %v3978_v32 = vld [vmem:[%s4520_s19 + $0x7f4] ss:$8 sps:$4 sm:$0xff]  }
 0x131   : > { %2568 = vmatpush2.bf16.msra.mxu0 %v3877_v33  ;;  %v3973_v33 = vld [vmem:[%s4520_s19 + $0x6f0] ss:$8 sps:$4 sm:$0xff]  }
 0x132   : > { %2621 = vmatpush2.bf16.msra.mxu1 %v3880_v34  ;;  %2569 = vmatprep.subr.bf16.mxu0 %v3885_v35  ;;  %v3976_v34 = vld [vmem:[%s4520_s19 + $0x7f0] ss:$8 sps:$4 sm:$0xff]   ;;  %v3981_v35 = vld [vmem:[%s4520_s19 + $0x6e4] ss:$8 sps:$4 sm:$0xff]  }
 0x133   : > { %2622 = vmatprep.subr.bf16.mxu1 %v3888_v36  ;;  %v3984_v36 = vld [vmem:[%s4520_s19 + $0x7e4] ss:$8 sps:$4 sm:$0xff]  }
 0x135   : > { %2570 = vmatpush2.bf16.msra.mxu0 %v3883_v37  ;;  %v3979_v37 = vld [vmem:[%s4520_s19 + $0x6e0] ss:$8 sps:$4 sm:$0xff]  }
 0x136   : > { %2623 = vmatpush2.bf16.msra.mxu1 %v3886_v38  ;;  %2571 = vmatprep.subr.bf16.mxu0 %v3891_v39  ;;  %v3982_v38 = vld [vmem:[%s4520_s19 + $0x7e0] ss:$8 sps:$4 sm:$0xff]   ;;  %v3987_v39 = vld [vmem:[%s4520_s19 + $0x6d4] ss:$8 sps:$4 sm:$0xff]  }
 0x137   : > { %2624 = vmatprep.subr.bf16.mxu1 %v3894_v40  ;;  %v3990_v40 = vld [vmem:[%s4520_s19 + $0x7d4] ss:$8 sps:$4 sm:$0xff]  }
 0x139   : > { %2572 = vmatpush2.bf16.msra.mxu0 %v3889_v41  ;;  %v3985_v41 = vld [vmem:[%s4520_s19 + $0x6d0] ss:$8 sps:$4 sm:$0xff]  }
 0x13a   : > { %2625 = vmatpush2.bf16.msra.mxu1 %v3892_v42  ;;  %2573 = vmatprep.subr.bf16.mxu0 %v3897_v43  ;;  %v3988_v42 = vld [vmem:[%s4520_s19 + $0x7d0] ss:$8 sps:$4 sm:$0xff]   ;;  %v3993_v43 = vld [vmem:[%s4520_s19 + $0x6c4] ss:$8 sps:$4 sm:$0xff]  }
 0x13b   : > { %2626 = vmatprep.subr.bf16.mxu1 %v3900_v44  ;;  %v3996_v44 = vld [vmem:[%s4520_s19 + $0x7c4] ss:$8 sps:$4 sm:$0xff]  }
 0x13d   : > { %2574 = vmatpush2.bf16.msra.mxu0 %v3895_v45  ;;  %v3991_v45 = vld [vmem:[%s4520_s19 + $0x6c0] ss:$8 sps:$4 sm:$0xff]  }
 0x13e   : > { %2627 = vmatpush2.bf16.msra.mxu1 %v3898_v46  ;;  %2575 = vmatprep.subr.bf16.mxu0 %v3903_v47  ;;  %v3994_v46 = vld [vmem:[%s4520_s19 + $0x7c0] ss:$8 sps:$4 sm:$0xff]   ;;  %v3999_v47 = vld [vmem:[%s4520_s19 + $0x6b4] ss:$8 sps:$4 sm:$0xff]  }
 0x13f   : > { %2628 = vmatprep.subr.bf16.mxu1 %v3906_v48  ;;  %v4002_v48 = vld [vmem:[%s4520_s19 + $0x7b4] ss:$8 sps:$4 sm:$0xff]  }
 0x141   : > { %2576 = vmatpush2.bf16.msra.mxu0 %v3901_v49  ;;  %v3997_v49 = vld [vmem:[%s4520_s19 + $0x6b0] ss:$8 sps:$4 sm:$0xff]  }
 0x142   : > { %2629 = vmatpush2.bf16.msra.mxu1 %v3904_v50  ;;  %2577 = vmatprep.subr.bf16.mxu0 %v3909_v51  ;;  %v4000_v50 = vld [vmem:[%s4520_s19 + $0x7b0] ss:$8 sps:$4 sm:$0xff]   ;;  %v4005_v51 = vld [vmem:[%s4520_s19 + $0x6a4] ss:$8 sps:$4 sm:$0xff]  }
 0x143   : > { %2630 = vmatprep.subr.bf16.mxu1 %v3912_v52  ;;  %v4008_v52 = vld [vmem:[%s4520_s19 + $0x7a4] ss:$8 sps:$4 sm:$0xff]  }
 0x145   : > { %2578 = vmatpush2.bf16.msra.mxu0 %v3907_v53  ;;  %v4003_v53 = vld [vmem:[%s4520_s19 + $0x6a0] ss:$8 sps:$4 sm:$0xff]  }
 0x146   : > { %2631 = vmatpush2.bf16.msra.mxu1 %v3910_v54  ;;  %2653 = vmatprep.subr.bf16.mxu0 %v3921_v55  ;;  %v4006_v54 = vld [vmem:[%s4520_s19 + $0x7a0] ss:$8 sps:$4 sm:$0xff]   ;;  %v4011_v55 = vld [vmem:[%s4520_s19 + $0x694] ss:$8 sps:$4 sm:$0xff]  }
 0x147   : > { %2706 = vmatprep.subr.bf16.mxu1 %v3924_v56  ;;  %v4014_v56 = vld [vmem:[%s4520_s19 + $0x794] ss:$8 sps:$4 sm:$0xff]  }
 0x148   : > { %2580 = vmatmul.mubr.bf16.vlgmr.msra.gmra.mxu0 %v3913_v57  ;;  %v4009_v57 = vld [vmem:[%s4520_s19 + $0x690] ss:$8 sps:$4 sm:$0xff]  }
 0x149   : > { %2633 = vmatmul.mubr.bf16.vlgmr.msra.gmra.mxu1 %v3916_v58  ;;  %2654 = vmatpush1.bf16.msra.mxu0 %v3919_v59  ;;  %v4012_v58 = vld [vmem:[%s4520_s19 + $0x790] ss:$8 sps:$4 sm:$0xff]   ;;  %v4017_v59 = vld [vmem:[%s4520_s19 + $0x684] ss:$8 sps:$4 sm:$0xff]  }
 0x14a   : > { %2707 = vmatpush1.bf16.msra.mxu1 %v3922_v60  ;;  %2655 = vmatprep.subr.bf16.mxu0 %v3927_v61  ;;  %v4020_v60 = vld [vmem:[%s4520_s19 + $0x784] ss:$8 sps:$4 sm:$0xff]   ;;  %v4015_v61 = vld [vmem:[%s4520_s19 + $0x680] ss:$8 sps:$4 sm:$0xff]  }
 0x14b   : > { %2708 = vmatprep.subr.bf16.mxu1 %v3930_v62  ;;  %2589 = vmatprep.mubr.bf16.mxu0 %v3931_v63  ;;  %v4018_v62 = vld [vmem:[%s4520_s19 + $0x780] ss:$8 sps:$4 sm:$0xff]   ;;  %v4029_v63 = vld [vmem:[%s4520_s19 + $0x874] ss:$8 sps:$4 sm:$0xff]  }
 0x14c   : > { %2642 = vmatprep.mubr.bf16.mxu1 %v3940_v0  ;;  %v4021_v0 = vld [vmem:[%s4518_s27 + $0x30] ss:$72 sps:$4 sm:$0xff]  }
 0x14d   : > { %2656 = vmatpush1.bf16.msra.mxu0 %v3925_v1  ;;  %v4024_v1 = vld [vmem:[%s4518_s27 + $0x38] ss:$72 sps:$4 sm:$0xff]  }
 0x14e   : > { %2709 = vmatpush1.bf16.msra.mxu1 %v3928_v2  ;;  %2657 = vmatprep.subr.bf16.mxu0 %v3936_v3  ;;  %v4027_v2 = vld [vmem:[%s4520_s19 + $0x870] ss:$8 sps:$4 sm:$0xff]   ;;  %v4032_v3 = vld [vmem:[%s4520_s19 + $0x864] ss:$8 sps:$4 sm:$0xff]  }
 0x14f   : > { %2710 = vmatprep.subr.bf16.mxu1 %v3939_v4  ;;  %v4033_v4 = vld [vmem:[%s4518_s27 + $0xc4] ss:$72 sps:$4 sm:$0xff]  }
 0x150   : > { %2590 = vmatmul.mubr.bf16.gmra.mxu0 %v3933_v5  ;;  %v4039_v5 = vld [vmem:[%s4518_s27 + $0xcc] ss:$72 sps:$4 sm:$0xff]  }
 0x151   : > { %2643 = vmatmul.mubr.bf16.gmra.mxu1 %v3942_v8  ;;  %2658 = vmatpush1.bf16.msra.mxu0 %v3934_v6  ;;  %v4030_v6 = vld [vmem:[%s4520_s19 + $0x860] ss:$8 sps:$4 sm:$0xff]  }
 0x152   : > { %2711 = vmatpush1.bf16.msra.mxu1 %v3937_v7  ;;  %2659 = vmatprep.subr.bf16.mxu0 %v3945_v9  ;;  %v4038_v7 = vld [vmem:[%s4520_s19 + $0x854] ss:$8 sps:$4 sm:$0xff]   ;;  %v4035_v8 = vld [vmem:[%s4518_s27 + $0xc0] ss:$72 sps:$4 sm:$0xff]  }
 0x153   : > { %2712 = vmatprep.subr.bf16.mxu1 %v3948_v10  ;;  %2685 = vmatprep.mubr.bf16.mxu0 %v4023_v11  ;;  %v4041_v9 = vld [vmem:[%s4518_s27 + $0xc8] ss:$72 sps:$4 sm:$0xff]   ;;  %v4044_v11 = vld [vmem:[%s4520_s19 + $0x844] ss:$8 sps:$4 sm:$0xff]  }
 0x154   : > { %2738 = vmatprep.mubr.bf16.mxu1 %v4026_v12  ;;  %v4036_v10 = vld [vmem:[%s4520_s19 + $0x850] ss:$8 sps:$4 sm:$0xff]   ;;  %v4083_v12 = vld [vmem:[%s4518_s27 + $0x44] ss:$72 sps:$4 sm:$0xff]  }
 0x155   : > { %2660 = vmatpush1.bf16.msra.mxu0 %v3943_v13  ;;  %v4086_v13 = vld [vmem:[%s4518_s27 + $0xd4] ss:$72 sps:$4 sm:$0xff]  }
 0x156   : > { %2713 = vmatpush1.bf16.msra.mxu1 %v3946_v14  ;;  %2661 = vmatprep.subr.bf16.mxu0 %v3951_v15  ;;  %v4042_v14 = vld [vmem:[%s4520_s19 + $0x840] ss:$8 sps:$4 sm:$0xff]   ;;  %v4047_v15 = vld [vmem:[%s4520_s19 + $0x834] ss:$8 sps:$4 sm:$0xff]  }
 0x157   : > { %2714 = vmatprep.subr.bf16.mxu1 %v3954_v16  ;;  %v4045_v16 = vld [vmem:[%s4520_s19 + $0x830] ss:$8 sps:$4 sm:$0xff]  }
 0x159   : > { %2662 = vmatpush1.bf16.msra.mxu0 %v3949_v17  ;;  %v4050_v17 = vld [vmem:[%s4520_s19 + $0x824] ss:$8 sps:$4 sm:$0xff]  }
 0x15a   : > { %2715 = vmatpush1.bf16.msra.mxu1 %v3952_v18  ;;  %2663 = vmatprep.subr.bf16.mxu0 %v3957_v19  ;;  %v4048_v18 = vld [vmem:[%s4520_s19 + $0x820] ss:$8 sps:$4 sm:$0xff]   ;;  %v4053_v19 = vld [vmem:[%s4520_s19 + $0x814] ss:$8 sps:$4 sm:$0xff]  }
 0x15b   : > { %2716 = vmatprep.subr.bf16.mxu1 %v3960_v20  ;;  %v4051_v20 = vld [vmem:[%s4520_s19 + $0x810] ss:$8 sps:$4 sm:$0xff]  }
 0x15d   : > { %2664 = vmatpush1.bf16.msra.mxu0 %v3955_v21  ;;  %v4056_v21 = vld [vmem:[%s4520_s19 + $0x804] ss:$8 sps:$4 sm:$0xff]  }
 0x15e   : > { %2717 = vmatpush1.bf16.msra.mxu1 %v3958_v22  ;;  %2665 = vmatprep.subr.bf16.mxu0 %v3963_v23  ;;  %v4054_v22 = vld [vmem:[%s4520_s19 + $0x800] ss:$8 sps:$4 sm:$0xff]   ;;  %v4059_v23 = vld [vmem:[%s4520_s19 + $0x8f4] ss:$8 sps:$4 sm:$0xff]  }
 0x15f   : > { %2718 = vmatprep.subr.bf16.mxu1 %v3966_v24  ;;  %v4057_v24 = vld [vmem:[%s4520_s19 + $0x8f0] ss:$8 sps:$4 sm:$0xff]  }
 0x161   : > { %2666 = vmatpush1.bf16.msra.mxu0 %v3961_v25  ;;  %v4062_v25 = vld [vmem:[%s4520_s19 + $0x8e4] ss:$8 sps:$4 sm:$0xff]  }
 0x162   : > { %2719 = vmatpush1.bf16.msra.mxu1 %v3964_v26  ;;  %2667 = vmatprep.subr.bf16.mxu0 %v3969_v27  ;;  %v4060_v26 = vld [vmem:[%s4520_s19 + $0x8e0] ss:$8 sps:$4 sm:$0xff]   ;;  %v4065_v27 = vld [vmem:[%s4520_s19 + $0x8d4] ss:$8 sps:$4 sm:$0xff]  }
 0x163   : > { %2720 = vmatprep.subr.bf16.mxu1 %v3972_v28  ;;  %v4063_v28 = vld [vmem:[%s4520_s19 + $0x8d0] ss:$8 sps:$4 sm:$0xff]  }
 0x165   : > { %2668 = vmatpush1.bf16.msra.mxu0 %v3967_v29  ;;  %v4068_v29 = vld [vmem:[%s4520_s19 + $0x8c4] ss:$8 sps:$4 sm:$0xff]  }
 0x166   : > { %2721 = vmatpush1.bf16.msra.mxu1 %v3970_v30  ;;  %2669 = vmatprep.subr.bf16.mxu0 %v3975_v31  ;;  %v4066_v30 = vld [vmem:[%s4520_s19 + $0x8c0] ss:$8 sps:$4 sm:$0xff]   ;;  %v4071_v31 = vld [vmem:[%s4520_s19 + $0x8b4] ss:$8 sps:$4 sm:$0xff]  }
 0x167   : > { %2722 = vmatprep.subr.bf16.mxu1 %v3978_v32  ;;  %v4069_v32 = vld [vmem:[%s4520_s19 + $0x8b0] ss:$8 sps:$4 sm:$0xff]  }
 0x169   : > { %2670 = vmatpush2.bf16.msra.mxu0 %v3973_v33  ;;  %v4074_v33 = vld [vmem:[%s4520_s19 + $0x8a4] ss:$8 sps:$4 sm:$0xff]  }
 0x16a   : > { %2723 = vmatpush2.bf16.msra.mxu1 %v3976_v34  ;;  %2671 = vmatprep.subr.bf16.mxu0 %v3981_v35  ;;  %v4072_v34 = vld [vmem:[%s4520_s19 + $0x8a0] ss:$8 sps:$4 sm:$0xff]   ;;  %v4077_v35 = vld [vmem:[%s4520_s19 + $0x894] ss:$8 sps:$4 sm:$0xff]  }
 0x16b   : > { %2724 = vmatprep.subr.bf16.mxu1 %v3984_v36  ;;  %v4075_v36 = vld [vmem:[%s4520_s19 + $0x890] ss:$8 sps:$4 sm:$0xff]  }
 0x16d   : > { %2672 = vmatpush2.bf16.msra.mxu0 %v3979_v37  ;;  %v4080_v37 = vld [vmem:[%s4520_s19 + $0x884] ss:$8 sps:$4 sm:$0xff]  }
 0x16e   : > { %2725 = vmatpush2.bf16.msra.mxu1 %v3982_v38  ;;  %2673 = vmatprep.subr.bf16.mxu0 %v3987_v39  ;;  %v4078_v38 = vld [vmem:[%s4520_s19 + $0x880] ss:$8 sps:$4 sm:$0xff]  }
 0x16f   : > { %2726 = vmatprep.subr.bf16.mxu1 %v3990_v40  ;;  %v4081_v39 = vld [vmem:[%s4518_s27 + $0x40] ss:$72 sps:$4 sm:$0xff]   ;;  %v4084_v40 = vld [vmem:[%s4518_s27 + $0xd0] ss:$72 sps:$4 sm:$0xff]  }
 0x171   : > { %2674 = vmatpush2.bf16.msra.mxu0 %v3985_v41 }
 0x172   : > { %2727 = vmatpush2.bf16.msra.mxu1 %v3988_v42  ;;  %2675 = vmatprep.subr.bf16.mxu0 %v3993_v43 }
 0x173   : > { %2728 = vmatprep.subr.bf16.mxu1 %v3996_v44 }
 0x175   : > { %2676 = vmatpush2.bf16.msra.mxu0 %v3991_v45 }
 0x176   : > { %2729 = vmatpush2.bf16.msra.mxu1 %v3994_v46  ;;  %2677 = vmatprep.subr.bf16.mxu0 %v3999_v47 }
 0x177   : > { %2730 = vmatprep.subr.bf16.mxu1 %v4002_v48 }
 0x179   : > { %2678 = vmatpush2.bf16.msra.mxu0 %v3997_v49 }
 0x17a   : > { %2731 = vmatpush2.bf16.msra.mxu1 %v4000_v50  ;;  %2679 = vmatprep.subr.bf16.mxu0 %v4005_v51 }
 0x17b   : > { %2732 = vmatprep.subr.bf16.mxu1 %v4008_v52 }
 0x17d   : > { %2680 = vmatpush2.bf16.msra.mxu0 %v4003_v53 }
 0x17e   : > { %2733 = vmatpush2.bf16.msra.mxu1 %v4006_v54  ;;  %2681 = vmatprep.subr.bf16.mxu0 %v4011_v55 }
 0x17f   : > { %2734 = vmatprep.subr.bf16.mxu1 %v4014_v56 }
 0x181   : > { %2682 = vmatpush2.bf16.msra.mxu0 %v4009_v57 }
 0x182   : > { %2735 = vmatpush2.bf16.msra.mxu1 %v4012_v58  ;;  %2683 = vmatprep.subr.bf16.mxu0 %v4017_v59 }
 0x183   : > { %2736 = vmatprep.subr.bf16.mxu1 %v4020_v60 }
 0x185   : > { %2684 = vmatpush2.bf16.msra.mxu0 %v4015_v61 }
 0x186   : > { %2737 = vmatpush2.bf16.msra.mxu1 %v4018_v62  ;;  %2759 = vmatprep.subr.bf16.mxu0 %v4029_v63 }
 0x187   : > { %3453 = vmatprep.subr.bf16.mxu1 %v4029_v63 }
 0x188   : > { %2686 = vmatmul.mubr.bf16.vlgmr.msra.gmra.mxu0 %v4021_v0  ;;  %v2369_v41 = vpop.f32.mrf.mxu0 }
 0x189   : > { %2739 = vmatmul.mubr.bf16.vlgmr.msra.gmra.mxu1 %v4024_v1  ;;  %2760 = vmatpush1.bf16.msra.mxu0 %v4027_v2  ;;  %v2422_v43 = vpop.f32.mrf.mxu1 }
 0x18a   : > { %3469 = vmatpush1.bf16.msra.mxu1 %v4027_v2  ;;  %2761 = vmatprep.subr.bf16.mxu0 %v4032_v3  ;;  %v2371_v42 = vpop.f32.mrf.mxu0 }
 0x18b   : > { %3454 = vmatprep.subr.bf16.mxu1 %v4032_v3  ;;  %2695 = vmatprep.mubr.bf16.mxu0 %v4033_v4  ;;  %v2424_v45 = vpop.f32.mrf.mxu1 }
 0x18c   : > { %2748 = vmatprep.mubr.bf16.mxu1 %v4039_v5  ;;  %v2373_v44 = vpop.f32.mrf.mxu0 }
 0x18d   : > { %2762 = vmatpush1.bf16.msra.mxu0 %v4030_v6  ;;  %v2426_v48 = vpop.f32.mrf.mxu1 }
 0x18e   : > { %3470 = vmatpush1.bf16.msra.mxu1 %v4030_v6  ;;  %2763 = vmatprep.subr.bf16.mxu0 %v4038_v7  ;;  %v2375_v46 = vpop.f32.mrf.mxu0 }
 0x18f   : > { %3455 = vmatprep.subr.bf16.mxu1 %v4038_v7  ;;  %v2428_v50 = vpop.f32.mrf.mxu1 }
 0x190   : > { %2696 = vmatmul.mubr.bf16.gmra.mxu0 %v4035_v8  ;;  %v2379_v47 = vpop.f32.mrf.mxu0 }
 0x191   : > { %2749 = vmatmul.mubr.bf16.gmra.mxu1 %v4041_v9  ;;  %2764 = vmatpush1.bf16.msra.mxu0 %v4036_v10  ;;  %v2432_v51 = vpop.f32.mrf.mxu1 }
 0x192   : > { %3471 = vmatpush1.bf16.msra.mxu1 %v4036_v10  ;;  %2765 = vmatprep.subr.bf16.mxu0 %v4044_v11  ;;  %v2381_v49 = vpop.f32.mrf.mxu0 }
 0x193   : > { %3456 = vmatprep.subr.bf16.mxu1 %v4044_v11  ;;  %2791 = vmatprep.mubr.bf16.mxu0 %v4083_v12  ;;  %v2434_v53 = vpop.f32.mrf.mxu1 }
 0x194   : > { %2801 = vmatprep.mubr.bf16.mxu1 %v4086_v13  ;;  %v2383_v52 = vpop.f32.mrf.mxu0 }
 0x195   : > { %2766 = vmatpush1.bf16.msra.mxu0 %v4042_v14  ;;  %v2436_v56 = vpop.f32.mrf.mxu1 }
 0x196   : > { %3472 = vmatpush1.bf16.msra.mxu1 %v4042_v14  ;;  %2767 = vmatprep.subr.bf16.mxu0 %v4047_v15  ;;  %v2385_v54 = vpop.f32.mrf.mxu0 }
 0x197   : > { %3457 = vmatprep.subr.bf16.mxu1 %v4047_v15  ;;  %v2438_v58 = vpop.f32.mrf.mxu1 }
 0x199   : > { %2768 = vmatpush1.bf16.msra.mxu0 %v4045_v16 }
 0x19a   : > { %3473 = vmatpush1.bf16.msra.mxu1 %v4045_v16  ;;  %2769 = vmatprep.subr.bf16.mxu0 %v4050_v17 }
 0x19b   : > { %3458 = vmatprep.subr.bf16.mxu1 %v4050_v17 }
 0x19d   : > { %2770 = vmatpush1.bf16.msra.mxu0 %v4048_v18 }
 0x19e   : > { %3474 = vmatpush1.bf16.msra.mxu1 %v4048_v18  ;;  %2771 = vmatprep.subr.bf16.mxu0 %v4053_v19 }
 0x19f   : > { %3459 = vmatprep.subr.bf16.mxu1 %v4053_v19 }
 0x1a1   : > { %2772 = vmatpush1.bf16.msra.mxu0 %v4051_v20 }
 0x1a2   : > { %3475 = vmatpush1.bf16.msra.mxu1 %v4051_v20  ;;  %2773 = vmatprep.subr.bf16.mxu0 %v4056_v21 }
 0x1a3   : > { %3460 = vmatprep.subr.bf16.mxu1 %v4056_v21 }
 0x1a5   : > { %2774 = vmatpush1.bf16.msra.mxu0 %v4054_v22 }
 0x1a6   : > { %3476 = vmatpush1.bf16.msra.mxu1 %v4054_v22  ;;  %2775 = vmatprep.subr.bf16.mxu0 %v4059_v23 }
 0x1a7   : > { %3461 = vmatprep.subr.bf16.mxu1 %v4059_v23 }
 0x1a9   : > { %2776 = vmatpush2.bf16.msra.mxu0 %v4057_v24 }
 0x1aa   : > { %3477 = vmatpush2.bf16.msra.mxu1 %v4057_v24  ;;  %2777 = vmatprep.subr.bf16.mxu0 %v4062_v25 }
 0x1ab   : > { %3462 = vmatprep.subr.bf16.mxu1 %v4062_v25 }
 0x1ad   : > { %2778 = vmatpush2.bf16.msra.mxu0 %v4060_v26 }
 0x1ae   : > { %3478 = vmatpush2.bf16.msra.mxu1 %v4060_v26  ;;  %2779 = vmatprep.subr.bf16.mxu0 %v4065_v27 }
 0x1af   : > { %3463 = vmatprep.subr.bf16.mxu1 %v4065_v27 }
 0x1b1   : > { %2780 = vmatpush2.bf16.msra.mxu0 %v4063_v28 }
 0x1b2   : > { %3479 = vmatpush2.bf16.msra.mxu1 %v4063_v28  ;;  %2781 = vmatprep.subr.bf16.mxu0 %v4068_v29 }
 0x1b3   : > { %3464 = vmatprep.subr.bf16.mxu1 %v4068_v29 }
 0x1b5   : > { %2782 = vmatpush2.bf16.msra.mxu0 %v4066_v30 }
 0x1b6   : > { %3480 = vmatpush2.bf16.msra.mxu1 %v4066_v30  ;;  %2783 = vmatprep.subr.bf16.mxu0 %v4071_v31 }
 0x1b7   : > { %3465 = vmatprep.subr.bf16.mxu1 %v4071_v31  ;;  %v2423_v31 = vadd.f32 %v2422_v43, %v2369_v41  ;;  %v2429_v41 = vadd.f32 %v2428_v50, %v2375_v46  ;;  %v2439_v43 = vadd.f32 %v2438_v58, %v2385_v54 }
 0x1b9   : > { %2784 = vmatpush2.bf16.msra.mxu0 %v4069_v32 }
 0x1ba   : > { %3481 = vmatpush2.bf16.msra.mxu1 %v4069_v32  ;;  %2785 = vmatprep.subr.bf16.mxu0 %v4074_v33  ;;  %v2433_v32 = vadd.f32 %v2432_v51, %v2379_v47 }
 0x1bb   : > { %3466 = vmatprep.subr.bf16.mxu1 %v4074_v33 }
 0x1bd   : > { %2786 = vmatpush2.bf16.msra.mxu0 %v4072_v34 }
 0x1be   : > { %3482 = vmatpush2.bf16.msra.mxu1 %v4072_v34  ;;  %2787 = vmatprep.subr.bf16.mxu0 %v4077_v35  ;;  %v2425_v34 = vadd.f32 %v2424_v45, %v2371_v42 }
 0x1bf   : > { %3467 = vmatprep.subr.bf16.mxu1 %v4077_v35  ;;  %v2435_v35 = vadd.f32 %v2434_v53, %v2381_v49 }
 0x1c1   : > { %2788 = vmatpush2.bf16.msra.mxu0 %v4075_v36 }
 0x1c2   : > { %3483 = vmatpush2.bf16.msra.mxu1 %v4075_v36  ;;  %2789 = vmatprep.subr.bf16.mxu0 %v4080_v37 }
 0x1c3   : > { %3468 = vmatprep.subr.bf16.mxu1 %v4080_v37 }
 0x1c5   : > { %2790 = vmatpush2.bf16.msra.mxu0 %v4078_v38 }
 0x1c6   : > { %3484 = vmatpush2.bf16.msra.mxu1 %v4078_v38  ;;  %v2427_v38 = vadd.f32 %v2426_v48, %v2373_v44 }
 0x1c8   : > { %2792 = vmatmul.mubr.bf16.vlgmr.msra.gmra.mxu0 %v4081_v39  ;;  %v2475_v55 = vpop.f32.mrf.mxu0  ;;  %v2437_v39 = vadd.f32 %v2436_v56, %v2383_v52 }
 0x1c9   : > { %2802 = vmatmul.mubr.bf16.vlgmr.msra.gmra.mxu1 %v4084_v40  ;;  %v2528_v59 = vpop.f32.mrf.mxu1  ;;  %v2476_v36 = vadd.f32 %v2475_v55, %v2423_v31 }
 0x1ca   : > { %v2477_v57 = vpop.f32.mrf.mxu0 }
 0x1cb   : > { %v2530_v61 = vpop.f32.mrf.mxu1  ;;  %v2529_v45 = vadd.f32 %v2528_v59, %v2476_v36 }
 0x1cc   : > { %v2479_v60 = vpop.f32.mrf.mxu0 }
 0x1cd   : > { %v2532_v63 = vpop.f32.mrf.mxu1  ;;  %v2480_v47 = vadd.f32 %v2479_v60, %v2427_v38 }
 0x1ce   : > { %v2481_v62 = vpop.f32.mrf.mxu0 }
 0x1cf   : > { %v2534_v1 = vpop.f32.mrf.mxu1  ;;  %v2482_v53 = vadd.f32 %v2481_v62, %v2429_v41  ;;  %v2533_v52 = vadd.f32 %v2532_v63, %v2480_v47  ;;  %v388_v41 = vld [vmem:[#allocation2 + $0x20] sm:$0xff] }
 0x1d0   : > { %v2485_v0 = vpop.f32.mrf.mxu0 }
 0x1d1   : > { %v2538_v3 = vpop.f32.mrf.mxu1  ;;  %v2486_v37 = vadd.f32 %v2485_v0, %v2433_v32 }
 0x1d2   : > { %v2487_v2 = vpop.f32.mrf.mxu0 }
 0x1d3   : > { %v2540_v5 = vpop.f32.mrf.mxu1  ;;  %v2539_v49 = vadd.f32 %v2538_v3, %v2486_v37 }
 0x1d4   : > { %v2489_v4 = vpop.f32.mrf.mxu0 }
 0x1d5   : > { %v2542_v7 = vpop.f32.mrf.mxu1  ;;  %v2490_v51 = vadd.f32 %v2489_v4, %v2437_v39 }
 0x1d6   : > { %v2491_v6 = vpop.f32.mrf.mxu0 }
 0x1d7   : > { %v2544_v9 = vpop.f32.mrf.mxu1  ;;  %v2492_v31 = vadd.f32 %v2491_v6, %v2439_v43  ;;  %v2543_v56 = vadd.f32 %v2542_v7, %v2490_v51 }
 0x1d9   : > { %v2545_v46 = vadd.f32 %v2544_v9, %v2492_v31 }
 0x208   : > { %v2581_v8 = vpop.f32.mrf.mxu0 }
 0x209   : > { %v2634_v11 = vpop.f32.mrf.mxu1  ;;  %v2582_v32 = vadd.f32 %v2581_v8, %v2529_v45 }
 0x20a   : > { %v2583_v10 = vpop.f32.mrf.mxu0 }
 0x20b   : > { %v2636_v13 = vpop.f32.mrf.mxu1  ;;  %v2635_v58 = vadd.f32 %v2634_v11, %v2582_v32 }
 0x20c   : > { %v2585_v12 = vpop.f32.mrf.mxu0 }
 0x20d   : > { %v2638_v15 = vpop.f32.mrf.mxu1  ;;  %v2586_v50 = vadd.f32 %v2585_v12, %v2533_v52  ;;  %v386_v52 = vld [vmem:[#allocation2 + $0x10] sm:$0xff] }
 0x20e   : > { %v2587_v14 = vpop.f32.mrf.mxu0 }
 0x20f   : > { %v4860_v17 = vpop.f32.mrf.mxu1 }
 0x210   : > { %v2591_v16 = vpop.f32.mrf.mxu0  ;;  %4962 = vst [vmem:[#allocation20_spill] sm:$0xff] %v4860_v17  ;;  %v2478_v17 = vadd.f32 %v2477_v57, %v2425_v34  ;;  %v2535_v34 = vadd.f32 %v2534_v1, %v2482_v53  ;;  %v385_v53 = vld [vmem:[#allocation2 + $0x18] sm:$0xff] }
 0x211   : > { %v2644_v18 = vpop.f32.mrf.mxu1  ;;  %v2592_v44 = vadd.f32 %v2591_v16, %v2539_v49  ;;  %v2639_v16 = vadd.f32 %v2638_v15, %v2586_v50 }
 0x212   : > { %v2593_v19 = vpop.f32.mrf.mxu0  ;;  %v2531_v55 = vadd.f32 %v2530_v61, %v2478_v17  ;;  %v2588_v3 = vadd.f32 %v2587_v14, %v2535_v34 }
 0x213   : > { %v2646_v20 = vpop.f32.mrf.mxu1  ;;  %v2645_v60 = vadd.f32 %v2644_v18, %v2592_v44 }
 0x214   : > { %v2595_v21 = vpop.f32.mrf.mxu0  ;;  %v2584_v57 = vadd.f32 %v2583_v10, %v2531_v55  ;;  %v389_v55 = vld [vmem:[#allocation2 + $0x28] sm:$0xff] }
 0x215   : > { %v2648_v22 = vpop.f32.mrf.mxu1  ;;  %v2596_v54 = vadd.f32 %v2595_v21, %v2543_v56 }
 0x216   : > { %v2597_v23 = vpop.f32.mrf.mxu0  ;;  %v2637_v61 = vadd.f32 %v2636_v13, %v2584_v57  ;;  %v390_v57 = vld [vmem:[#allocation2 + $0x38] sm:$0xff] }
 0x217   : > { %v2650_v25 = vpop.f32.mrf.mxu1  ;;  %v2598_v62 = vadd.f32 %v2597_v23, %v2545_v46  ;;  %v2649_v63 = vadd.f32 %v2648_v22, %v2596_v54 }
 0x219   : > { %v2651_v9 = vadd.f32 %v2650_v25, %v2598_v62  ;;  %v384_v25 = vld [vmem:[#allocation2] sm:$0xff] }
 0x248   : > { %v2687_v24 = vpop.f32.mrf.mxu0 }
 0x249   : > { %v2740_v26 = vpop.f32.mrf.mxu1  ;;  %v2688_v6 = vadd.f32 %v2687_v24, %v2635_v58 }
 0x24a   : > { %v2689_v27 = vpop.f32.mrf.mxu0 }
 0x24b   : > { %v4862_v28 = vpop.f32.mrf.mxu1  ;;  %v2690_v7 = vadd.f32 %v2689_v27, %v2637_v61  ;;  %v2741_v18 = vadd.f32 %v2740_v26, %v2688_v6 }
 0x24c   : > { %4963 = vst [vmem:[#allocation21_spill] sm:$0xff] %v4862_v28  ;;  %v2691_v29 = vpop.f32.mrf.mxu0  ;;  %v2488_v28 = vadd.f32 %v2487_v2, %v2435_v35  ;;  %v383_v35 = vld [vmem:[#allocation2 + $0x30] sm:$0xff] }
 0x24d   : > { %v4864_v30 = vpop.f32.mrf.mxu1  ;;  %v2692_v12 = vadd.f32 %v2691_v29, %v2639_v16 }
 0x24e   : > { %4964 = vst [vmem:[#allocation22_spill] sm:$0xff] %v4864_v30  ;;  %v2693_v33 = vpop.f32.mrf.mxu0  ;;  %v2541_v0 = vadd.f32 %v2540_v5, %v2488_v28 }
 0x24f   : > { %v4866_v40 = vpop.f32.mrf.mxu1 }
 0x250   : > { %4965 = vst [vmem:[#allocation23_spill] sm:$0xff] %v4866_v40  ;;  %v2697_v30 = vpop.f32.mrf.mxu0  ;;  %v2594_v2 = vadd.f32 %v2593_v19, %v2541_v0  ;;  %v4966_v19 = vld [vmem:[#allocation20_spill] sm:$0xff] }
 0x251   : > { %v2750_v42 = vpop.f32.mrf.mxu1  ;;  %v2698_v8 = vadd.f32 %v2697_v30, %v2645_v60  ;;  %v2641_v1 = vadd.f32 %v4966_v19, %v2588_v3 }
 0x252   : > { %v2699_v48 = vpop.f32.mrf.mxu0  ;;  %v2647_v5 = vadd.f32 %v2646_v20, %v2594_v2  ;;  %v387_v20 = vld [vmem:[#allocation2 + $0x8] sm:$0xff] }
 0x253   : > { %v2752_v40 = vpop.f32.mrf.mxu1  ;;  %v2751_v28 = vadd.f32 %v2750_v42, %v2698_v8  ;;  %v2694_v14 = vadd.f32 %v2693_v33, %v2641_v1  ;;  %v4967_v30 = vld [vmem:[#allocation21_spill] sm:$0xff] }
 0x254   : > { %v2701_v59 = vpop.f32.mrf.mxu0  ;;  %v2700_v17 = vadd.f32 %v2699_v48, %v2647_v5  ;;  %v2743_v15 = vadd.f32 %v4967_v30, %v2690_v7 }
 0x255   : > { %v2754_v4 = vpop.f32.mrf.mxu1  ;;  %v2702_v21 = vadd.f32 %v2701_v59, %v2649_v63  ;;  %v4968_v37 = vld [vmem:[#allocation22_spill] sm:$0xff] }
 0x256   : > { %v2703_v10 = vpop.f32.mrf.mxu0  ;;  %v2753_v22 = vadd.f32 %v2752_v40, %v2700_v17  ;;  %v2745_v38 = vadd.f32 %v4968_v37, %v2692_v12 }
 0x257   : > { %v2756_v11 = vpop.f32.mrf.mxu1  ;;  %v2704_v23 = vadd.f32 %v2703_v10, %v2651_v9  ;;  %v2755_v39 = vadd.f32 %v2754_v4, %v2702_v21  ;;  %v4969_v42 = vld [vmem:[#allocation23_spill] sm:$0xff] }
 0x258   : > { %v2747_v45 = vadd.f32 %v4969_v42, %v2694_v14 }
 0x259   : > { %v2757_v49 = vadd.f32 %v2756_v11, %v2704_v23 }
 0x288   : > { %v2793_v13 = vpop.f32.mrf.mxu0 }
 0x289   : > { %v2803_v24 = vpop.f32.mrf.mxu1  ;;  %v2794_v27 = vadd.f32 %v2793_v13, %v2741_v18 }
 0x28a   : > { %v2804_v36 = vadd.f32 %v2803_v24, %v2751_v28  ;;  %v2795_v29 = vpop.f32.mrf.mxu0 }
 0x28b   : > { %v2805_v43 = vpop.f32.mrf.mxu1  ;;  %v2812_v26 = vadd.f32 %v2794_v27, %v383_v35  ;;  %v2796_v33 = vadd.f32 %v2795_v29, %v2743_v15 }
 0x28c   : > { %v2816_v47 = vadd.f32 %v2804_v36, %v387_v20  ;;  %v2806_v51 = vadd.f32 %v2805_v43, %v2753_v22  ;;  %v2797_v31 = vpop.f32.mrf.mxu0 }
 0x28d   : > { %v2807_v40 = vpop.f32.mrf.mxu1  ;;  %2820 = vst [vmem:[#allocation2 + $0x30] sm:$0xff] %v2812_v26  ;;  %v2813_v0 = vadd.f32 %v2796_v33, %v384_v25  ;;  %v2798_v44 = vadd.f32 %v2797_v31, %v2745_v38 }
 0x28e   : > { %2824 = vst [vmem:[#allocation2 + $0x8] sm:$0xff] %v2816_v47  ;;  %v2817_v32 = vadd.f32 %v2806_v51, %v388_v41  ;;  %v2808_v48 = vadd.f32 %v2807_v40, %v2755_v39  ;;  %v2799_v56 = vpop.f32.mrf.mxu0 }
 0x28f   : > { %v2809_v2 = vpop.f32.mrf.mxu1  ;;  %2821 = vst [vmem:[#allocation2] sm:$0xff] %v2813_v0  ;;  %v2814_v34 = vadd.f32 %v2798_v44, %v385_v53  ;;  %v2800_v50 = vadd.f32 %v2799_v56, %v2747_v45 }
 0x290   : > { %2825 = vst [vmem:[#allocation2 + $0x20] sm:$0xff] %v2817_v32  ;;  %v2818_v46 = vadd.f32 %v2808_v48, %v389_v55  ;;  %v2810_v54 = vadd.f32 %v2809_v2, %v2757_v49  ;;  %2831 = sbr.rel (%p3435_p12) target bundleno = 682 (0x2aa), region = 71 }
 0x291   : > { %2822 = vst [vmem:[#allocation2 + $0x18] sm:$0xff] %v2814_v34  ;;  %v2815_v58 = vadd.f32 %v2800_v50, %v386_v52 }
 0x292   : > { %2826 = vst [vmem:[#allocation2 + $0x28] sm:$0xff] %v2818_v46  ;;  %v2819_v60 = vadd.f32 %v2810_v54, %v390_v57 }
 0x293   : > { %2823 = vst [vmem:[#allocation2 + $0x10] sm:$0xff] %v2815_v58 }
 0x294   : > { %2827 = vst [vmem:[#allocation2 + $0x38] sm:$0xff] %v2819_v60 }
 0x295   : > { %v2842_v59 = vlaneseq  ;;  %v2840_v62 = vld [vmem:[%s4527_s12] sm:$0x3]  ;;  %v2832_v4 = vld [vmem:[#allocation2 + $0x30] sm:$0xff]  ;;  %v2836_v63 = vld [vmem:[#allocation2 + $0x8] sm:$0xff] }
 0x296   : > { %v2833_v61 = vld [vmem:[#allocation2] sm:$0xff] }
 0x297   : > { %v2843_v3 = vshrl.u32 %v2842_v59, 7  ;;  %v2837_v10 = vld [vmem:[#allocation2 + $0x20] sm:$0xff] }
 0x298   : > { %v2834_v8 = vld [vmem:[#allocation2 + $0x18] sm:$0xff] }
 0x299   : > { %v2844_v5 = vsub.s32 0, %v2843_v3  ;;  %v2848_v6 = vsub.s32 1, %v2843_v3  ;;  %v2838_v19 = vld [vmem:[#allocation2 + $0x28] sm:$0xff] }
 0x29a   : > { %v2835_v16 = vld [vmem:[#allocation2 + $0x10] sm:$0xff] }
 0x29b   : > { %v2845_v7 = vrot.slane %v2840_v62, %v2844_v5  ;;  %v2849_v17 = vrot.slane %v2840_v62, %v2848_v6  ;;  %v2839_v1 = vld [vmem:[#allocation2 + $0x38] sm:$0xff] }
 0x29d   : > { %v2852_v9 = vadd.f32 %v2845_v7, %v2832_v4  ;;  %v2853_v12 = vadd.f32 %v2849_v17, %v2833_v61  ;;  %v2854_v21 = vadd.f32 %v2845_v7, %v2834_v8  ;;  %v2855_v11 = vadd.f32 %v2849_v17, %v2835_v16 }
 0x29e   : > { %v2856_v18 = vadd.f32 %v2845_v7, %v2836_v63  ;;  %v2857_v28 = vadd.f32 %v2849_v17, %v2837_v10  ;;  %v2858_v14 = vadd.f32 %v2845_v7, %v2838_v19  ;;  %v2859_v23 = vadd.f32 %v2849_v17, %v2839_v1 }
 0x29f   : > { %vm2860_vm0 = vcmp.ge.f32.partialorder %v2852_v9, 0.0  ;;  %vm2861_vm1 = vcmp.ge.f32.partialorder %v2853_v12, 0.0  ;;  %v2868_v35 = vmul.f32 0.2, %v2852_v9  ;;  %v2869_v13 = vmul.f32 0.2, %v2853_v12 }
 0x2a0   : > { %vm2862_vm2 = vcmp.ge.f32.partialorder %v2854_v21, 0.0  ;;  %vm2863_vm3 = vcmp.ge.f32.partialorder %v2855_v11, 0.0  ;;  %v2870_v20 = vmul.f32 0.2, %v2854_v21  ;;  %v2871_v24 = vmul.f32 0.2, %v2855_v11 }
 0x2a1   : > { %v2876_v30 = vsel %vm2860_vm0, %v2852_v9, %v2868_v35  ;;  %v2877_v15 = vsel %vm2861_vm1, %v2853_v12, %v2869_v13  ;;  %vm2864_vm4 = vcmp.ge.f32.partialorder %v2856_v18, 0.0  ;;  %vm2865_vm5 = vcmp.ge.f32.partialorder %v2857_v28, 0.0 }
 0x2a2   : > { %v3448_v22 = vpack.c.bf16 %v2877_v15, %v2876_v30  ;;  %v2878_v27 = vsel %vm2862_vm2, %v2854_v21, %v2870_v20  ;;  %v2879_v36 = vsel %vm2863_vm3, %v2855_v11, %v2871_v24  ;;  %v2872_v37 = vmul.f32 0.2, %v2856_v18 }
 0x2a3   : > { %v3449_v38 = vpack.c.bf16 %v2879_v36, %v2878_v27  ;;  %v2873_v39 = vmul.f32 0.2, %v2857_v28  ;;  %vm2866_vm6 = vcmp.ge.f32.partialorder %v2858_v14, 0.0  ;;  %vm2867_vm7 = vcmp.ge.f32.partialorder %v2859_v23, 0.0 }
 0x2a4   : > { %2908 = vst [vmem:[%s4533_s25] sm:$0xff] %v3448_v22  ;;  %v2880_v25 = vsel %vm2864_vm4, %v2856_v18, %v2872_v37  ;;  %v2874_v29 = vmul.f32 0.2, %v2858_v14  ;;  %v2875_v41 = vmul.f32 0.2, %v2859_v23 }
 0x2a5   : > { %2909 = vst [vmem:[%s4533_s25 + $0x8] sm:$0xff] %v3449_v38  ;;  %v2881_v43 = vsel %vm2865_vm5, %v2857_v28, %v2873_v39 }
 0x2a6   : > { %v3450_v26 = vpack.c.bf16 %v2881_v43, %v2880_v25  ;;  %v2882_v47 = vsel %vm2866_vm6, %v2858_v14, %v2874_v29  ;;  %v2883_v33 = vsel %vm2867_vm7, %v2859_v23, %v2875_v41 }
 0x2a7   : > { %v3451_v51 = vpack.c.bf16 %v2883_v33, %v2882_v47 }
 0x2a8   : > { %2910 = vst [vmem:[%s4533_s25 + $0x10] sm:$0xff] %v3450_v26 }
 0x2a9   : > { %2911 = vst [vmem:[%s4533_s25 + $0x18] sm:$0xff] %v3451_v51 }
 0x2aa PF: > { %2918 = sbr.rel (!%p4407_p6) target bundleno = 692 (0x2b4), region = 75  ;;  %s4970_s20 = sld [smem:[#allocation13_spill]] (%p4407_p6) }
 0x2ab   : > { %v2959_v42 = vld [vmem:[%s4533_s25] sm:$0xff] (%p4407_p6)  ;;  %s4971_s6 = sld [smem:[#allocation26_spill]] (%p4407_p6) }
 0x2ac   : > { %v2961_v45 = vld [vmem:[%s4533_s25 + $0x8] sm:$0xff] (%p4407_p6) }
 0x2af   : > { %v2963_v49 = vld [vmem:[%s4533_s25 + $0x10] sm:$0xff] }
 0x2b0   : > { %s3452_s10 = sshll.u32 %s4970_s20, 3  ;;  %v2965_v53 = vld [vmem:[%s4533_s25 + $0x18] sm:$0xff] }
 0x2b1   : > { %s2924_s17 = scalar_lea.vmem %s4971_s6, %s3452_s10 }
 0x2b2   : > { %2960 = vst [vmem:[%s2924_s17] sm:$0xff] %v2959_v42  ;;  %2962 = vst [vmem:[%s2924_s17 + $0x10] sm:$0xff] %v2961_v45 }
 0x2b3   : > { %2964 = vst [vmem:[%s2924_s17 + $0x20] sm:$0xff] %v2963_v49  ;;  %2966 = vst [vmem:[%s2924_s17 + $0x30] sm:$0xff] %v2965_v53 }
 0x2b4 PF: > { %s19_s24 = sadd.s32 1, %s4249_s24   ;;  %s4973_s21 = sld [smem:[#allocation19_spill]] }
 0x2b5   : > { %p4889_p4 = scmp.ge.s32.totalorder %s19_s24, 6   ;;  %s4974_s7 = sld [smem:[#allocation11_spill]] }
 0x2b6   : > { %s4975_s17 = sld [smem:[#allocation18_spill]]  ;;  %s4981_s12 = smov %s4205_s13 }
 0x2b7   : > { %s4976_s18 = sld [smem:[#allocation12_spill]]  ;;  %s4982_s13 = smov %s4209_s14 }
 0x2b8   : > { %s4977_s19 = sld [smem:[#allocation17_spill]]  ;;  %s4984_s15 = smov %s4217_s16 }
 0x2b9   : > { %s4978_s20 = sld [smem:[#allocation14_spill]] }
 0x2ba   : > { %s4979_s22 = sld [smem:[#allocation15_spill]]  ;;  %s4983_s14 = smov %s4973_s21 }
 0x2bb   : > { %s4980_s11 = sld [smem:[#allocation16_spill]]  ;;  %s4985_s16 = smov %s4974_s7 }
 0x2bc   : > { %s4986_s21 = smov %s4245_s23 }
 0x2bd   :  { %18 = sbr.rel (!%p4889_p4) target bundleno = 14 (0xe), region = 162 }
 0x2c1   : > { %s4987_s23 = smov %s4980_s11 }
 0x2c2   :  { %2982 = vsyncpa [#allocation5], 1 }
 0x2c3   :  { %2984 = vsyncpa [#allocation5 + $0x1], 1 }
 0x2c4   :  { %2985 = vsyncpa [#allocation7], 1 }
 0x2c5   :  { %2987 = vsyncpa [#allocation7 + $0x1], 1 }

// kernel: _apply.8
= control target key start
LH: loop header
LB: loop body
LE: loop exit
PB: predicated region body
PF: predicated region fallthrough
CT: control target
= control target key end

     0   :  { %s6472_s0 = inlined_call_operand.vmem [shape: bf16[32,4608], index: 0, kind: input, shape index: {}]   ;;  %s6473_s1 = inlined_call_operand.vmem [shape: bf16[4608,512], index: 1, kind: input, shape index: {}]   ;;  %s6474_s2 = inlined_call_operand.vmem [shape: f32[1,512], index: 2, kind: input, shape index: {}]   ;;  %s6475_s3 = inlined_call_operand.vmem [shape: bf16[32,512], index: 3, kind: output, shape index: {}]  }
   0x1   :  { %6477 = sst [smem:[#allocation11_spill]] %s6472_s0 }
   0x2   :  { %6478 = sst [smem:[#allocation12_spill]] %s6473_s1 }
   0x3   :  { %s5294_s12 = smov 0   ;;  %s5296_s13 = smov 0  }
   0x4   :  { %s5298_s14 = smov 0   ;;  %s5300_s15 = smov 0  }
   0x5   :  { %s5302_s16 = smov 0   ;;  %s5304_s17 = smov 0  }
   0x6   :  { %s5306_s18 = smov 0   ;;  %s5308_s19 = smov 0  }
   0x7   :  { %s5310_s20 = smov 0   ;;  %s5312_s21 = smov 0  }
   0x8   :  { %s5314_s22 = smov 0  }
   0x9 LB: > { %s4221_s23 = sadd.s32 4294967295, %s5271_s22   ;;  %s25_s24 = sadd.s32 1, %s5263_s20  ;;  %s5271_s22 = sphi %s5314_s22, %s13_s22   ;;  %s5267_s21 = sphi %s5312_s21, %s6503_s21   ;;  %s5263_s20 = sphi %s5310_s20, %s6502_s20   ;;  %s5259_s19 = sphi %s5308_s19, %s6501_s19   ;;  %s5255_s18 = sphi %s5306_s18, %s6500_s18   ;;  %s5251_s17 = sphi %s5304_s17, %s6499_s17   ;;  %s5247_s16 = sphi %s5302_s16, %s6498_s16   ;;  %s5243_s15 = sphi %s5300_s15, %s6497_s15   ;;  %s5239_s14 = sphi %s5298_s14, %s6496_s14   ;;  %s5235_s13 = sphi %s5296_s13, %s6495_s13   ;;  %s5231_s12 = sphi %s5294_s12, %s6494_s12  }
   0xa   : > { %p26_p0 = scmp.ge.s32.totalorder %s25_s24, 2  ;;  %s28_s25 = sadd.s32 1, %s5267_s21 }
   0xb   : > { %s41_s26 = sadd.s32 1, %s5251_s17  ;;  %p48_p1 = scmp.ne.s32.totalorder %s5251_s17, %s5247_s16 }
   0xc   : > { %s6505_s24 = smov (%p26_p0, %s25_s24), 0  ;;  %s6507_s25 = smov (!%p26_p0, %s28_s25), %s5267_s21 }
   0xd   : > { %s37_s27 = ssub.s32 %s5263_s20, %s6505_s24  ;;  %p49_p2 = scmp.eq.s32.totalorder %s5271_s22, 0 }
   0xe   : > { %p30_p3 = scmp.ge.s32.totalorder %s6507_s25, 2  ;;  %p39_p4 = scmp.eq.s32.totalorder %s37_s27, 0 }
   0xf   : > { %p5361_p5 = por %p49_p2, %p48_p1  ;;  %s69_s29 = sadd.s32 1, %s5243_s15 }
  0x10   : > { %s6509_s25 = smov (%p30_p3, %s6507_s25), 0  ;;  %p76_p6 = scmp.ne.s32.totalorder %s5243_s15, %s5239_s14 }
  0x11   : > { %6480 = sst [smem:[#allocation6_spill]] %s6509_s25  ;;  %s65_s4 = ssub.s32 %s5267_s21, %s6509_s25 }
  0x12   : > { %s5369_s30 = scalar_select %p39_p4, %s5251_s17, %s41_s26  }
  0x13   : > { %s66_s5 = sor.u32 %s65_s4, %s37_s27  ;;  %p121_p7 = scmp.eq.s32.totalorder %s65_s4, 0 }
  0x14   : > { %p67_p8 = scmp.eq.s32.totalorder %s66_s5, 0  ;;  %p5375_p9 = por %p76_p6, %p49_p2 }
  0x15   : > { %s123_s7 = sadd.s32 1, %s5235_s13  ;;  %p133_p10 = scmp.ne.s32.totalorder %s5235_s13, %s5231_s12 }
  0x16   : > { %s5383_s8 = scalar_select %p67_p8, %s5243_s15, %s69_s29  }
  0x17   : > { %s5386_s9 = scalar_select %p121_p7, %s5235_s13, %s123_s7  }
  0x18   : > { %p134_p11 = scmp.eq.s32.totalorder %s4221_s23, 3  ;;  %p4224_p13 = scmp.ge.s32.totalorder %s5271_s22, 4 }
  0x1a   : > { %p5388_p12 = por %p134_p11, %p133_p10  ;;  %156 = sbr.rel (%p4224_p13) target bundleno = 212 (0xd4), region = 16 }
  0x1f   : > { %159 = sbr.rel (!%p5361_p5) target bundleno = 58 (0x3a), region = 20  ;;  %s161_s11 = sand.u32 (%p5361_p5), 1, %s5251_s17  }
  0x20   : > { %s4567_s26 = smul.u32 (%p5361_p5), 72, %s5263_s20  ;;  %s6483_s0 = sld [smem:[#allocation11_spill]] (%p5361_p5) }
  0x21   : > { %s4606_s27 = smul.u32 (%p5361_p5), 288, %s161_s11 }
  0x23   : > { %s5405_s23 = scalar_lea.vmem (%p5361_p5), [#allocation3], %s4606_s27 }
  0x26   : > { %s5400_s5 = scalar_lea.vmem %s6483_s0, %s4567_s26 }
  0x27   : > { %v182_v0 = vld [vmem:[%s5400_s5] sm:$0xff]  ;;  %v184_v1 = vld [vmem:[%s5400_s5 + $0x8] sm:$0xff]  ;;  %v186_v2 = vld [vmem:[%s5400_s5 + $0x10] sm:$0xff] }
  0x28   : > { %183 = vst [vmem:[%s5405_s23] sm:$0xff] %v182_v0  ;;  %185 = vst [vmem:[%s5405_s23 + $0x8] sm:$0xff] %v184_v1  ;;  %v188_v3 = vld [vmem:[%s5400_s5 + $0x18] sm:$0xff]  ;;  %v190_v4 = vld [vmem:[%s5400_s5 + $0x20] sm:$0xff] }
  0x29   : > { %187 = vst [vmem:[%s5405_s23 + $0x10] sm:$0xff] %v186_v2  ;;  %v192_v5 = vld [vmem:[%s5400_s5 + $0x28] sm:$0xff]  ;;  %189 = vst [vmem:[%s5405_s23 + $0x18] sm:$0xff] %v188_v3  ;;  %v194_v6 = vld [vmem:[%s5400_s5 + $0x30] sm:$0xff] }
  0x2a   : > { %191 = vst [vmem:[%s5405_s23 + $0x20] sm:$0xff] %v190_v4  ;;  %193 = vst [vmem:[%s5405_s23 + $0x28] sm:$0xff] %v192_v5  ;;  %v196_v7 = vld [vmem:[%s5400_s5 + $0x38] sm:$0xff]  ;;  %v198_v8 = vld [vmem:[%s5400_s5 + $0x40] sm:$0xff] }
  0x2b   : > { %195 = vst [vmem:[%s5405_s23 + $0x30] sm:$0xff] %v194_v6  ;;  %197 = vst [vmem:[%s5405_s23 + $0x38] sm:$0xff] %v196_v7  ;;  %v200_v9 = vld [vmem:[%s5400_s5 + $0x90] sm:$0xff]  ;;  %v202_v10 = vld [vmem:[%s5400_s5 + $0x98] sm:$0xff] }
  0x2c   : > { %199 = vst [vmem:[%s5405_s23 + $0x40] sm:$0xff] %v198_v8  ;;  %v204_v11 = vld [vmem:[%s5400_s5 + $0xa0] sm:$0xff]  ;;  %201 = vst [vmem:[%s5405_s23 + $0x48] sm:$0xff] %v200_v9  ;;  %v206_v12 = vld [vmem:[%s5400_s5 + $0xa8] sm:$0xff] }
  0x2d   : > { %203 = vst [vmem:[%s5405_s23 + $0x50] sm:$0xff] %v202_v10  ;;  %205 = vst [vmem:[%s5405_s23 + $0x58] sm:$0xff] %v204_v11  ;;  %v208_v13 = vld [vmem:[%s5400_s5 + $0xb0] sm:$0xff]  ;;  %v210_v14 = vld [vmem:[%s5400_s5 + $0xb8] sm:$0xff] }
  0x2e   : > { %207 = vst [vmem:[%s5405_s23 + $0x60] sm:$0xff] %v206_v12  ;;  %209 = vst [vmem:[%s5405_s23 + $0x68] sm:$0xff] %v208_v13  ;;  %v212_v15 = vld [vmem:[%s5400_s5 + $0xc0] sm:$0xff]  ;;  %v214_v16 = vld [vmem:[%s5400_s5 + $0xc8] sm:$0xff] }
  0x2f   : > { %211 = vst [vmem:[%s5405_s23 + $0x70] sm:$0xff] %v210_v14  ;;  %v216_v17 = vld [vmem:[%s5400_s5 + $0xd0] sm:$0xff]  ;;  %213 = vst [vmem:[%s5405_s23 + $0x78] sm:$0xff] %v212_v15  ;;  %v218_v18 = vld [vmem:[%s5400_s5 + $0x120] sm:$0xff] }
  0x30   : > { %215 = vst [vmem:[%s5405_s23 + $0x80] sm:$0xff] %v214_v16  ;;  %217 = vst [vmem:[%s5405_s23 + $0x88] sm:$0xff] %v216_v17  ;;  %v220_v19 = vld [vmem:[%s5400_s5 + $0x128] sm:$0xff]  ;;  %v222_v20 = vld [vmem:[%s5400_s5 + $0x130] sm:$0xff] }
  0x31   : > { %219 = vst [vmem:[%s5405_s23 + $0x90] sm:$0xff] %v218_v18  ;;  %221 = vst [vmem:[%s5405_s23 + $0x98] sm:$0xff] %v220_v19  ;;  %v224_v21 = vld [vmem:[%s5400_s5 + $0x138] sm:$0xff]  ;;  %v226_v22 = vld [vmem:[%s5400_s5 + $0x140] sm:$0xff] }
  0x32   : > { %223 = vst [vmem:[%s5405_s23 + $0xa0] sm:$0xff] %v222_v20  ;;  %v228_v23 = vld [vmem:[%s5400_s5 + $0x148] sm:$0xff]  ;;  %225 = vst [vmem:[%s5405_s23 + $0xa8] sm:$0xff] %v224_v21  ;;  %v230_v24 = vld [vmem:[%s5400_s5 + $0x150] sm:$0xff] }
  0x33   : > { %227 = vst [vmem:[%s5405_s23 + $0xb0] sm:$0xff] %v226_v22  ;;  %229 = vst [vmem:[%s5405_s23 + $0xb8] sm:$0xff] %v228_v23  ;;  %v232_v25 = vld [vmem:[%s5400_s5 + $0x158] sm:$0xff]  ;;  %v234_v26 = vld [vmem:[%s5400_s5 + $0x160] sm:$0xff] }
  0x34   : > { %231 = vst [vmem:[%s5405_s23 + $0xc0] sm:$0xff] %v230_v24  ;;  %233 = vst [vmem:[%s5405_s23 + $0xc8] sm:$0xff] %v232_v25  ;;  %v236_v27 = vld [vmem:[%s5400_s5 + $0x1b0] sm:$0xff]  ;;  %v238_v28 = vld [vmem:[%s5400_s5 + $0x1b8] sm:$0xff] }
  0x35   : > { %235 = vst [vmem:[%s5405_s23 + $0xd0] sm:$0xff] %v234_v26  ;;  %v240_v29 = vld [vmem:[%s5400_s5 + $0x1c0] sm:$0xff]  ;;  %237 = vst [vmem:[%s5405_s23 + $0xd8] sm:$0xff] %v236_v27  ;;  %v242_v30 = vld [vmem:[%s5400_s5 + $0x1c8] sm:$0xff] }
  0x36   : > { %239 = vst [vmem:[%s5405_s23 + $0xe0] sm:$0xff] %v238_v28  ;;  %241 = vst [vmem:[%s5405_s23 + $0xe8] sm:$0xff] %v240_v29  ;;  %v244_v31 = vld [vmem:[%s5400_s5 + $0x1d0] sm:$0xff]  ;;  %v246_v32 = vld [vmem:[%s5400_s5 + $0x1d8] sm:$0xff] }
  0x37   : > { %243 = vst [vmem:[%s5405_s23 + $0xf0] sm:$0xff] %v242_v30  ;;  %245 = vst [vmem:[%s5405_s23 + $0xf8] sm:$0xff] %v244_v31  ;;  %v248_v33 = vld [vmem:[%s5400_s5 + $0x1e0] sm:$0xff]  ;;  %v250_v34 = vld [vmem:[%s5400_s5 + $0x1e8] sm:$0xff] }
  0x38   : > { %247 = vst [vmem:[%s5405_s23 + $0x100] sm:$0xff] %v246_v32  ;;  %v252_v35 = vld [vmem:[%s5400_s5 + $0x1f0] sm:$0xff]  ;;  %249 = vst [vmem:[%s5405_s23 + $0x108] sm:$0xff] %v248_v33 }
  0x39   : > { %251 = vst [vmem:[%s5405_s23 + $0x110] sm:$0xff] %v250_v34  ;;  %253 = vst [vmem:[%s5405_s23 + $0x118] sm:$0xff] %v252_v35 }
  0x3a PF: > { %259 = sbr.rel (!%p5375_p9) target bundleno = 212 (0xd4), region = 43  ;;  %s261_s28 = sand.u32 (%p5375_p9), 1, %s5243_s15  }
  0x3b   : > { %s4607_s7 = smul.u32 (%p5375_p9), 2304, %s261_s28  ;;  %s4226_s11 = sshll.u32 (%p5375_p9), %s5267_s21, 1 }
  0x3c   : > { %s4568_s26 = smul.u32 (%p5375_p9), 1152, %s5263_s20  ;;  %s6484_s1 = sld [smem:[#allocation12_spill]] (%p5375_p9) }
  0x3d   : > { %s5489_s6 = scalar_lea.vmem (%p5375_p9), [#allocation4], %s4607_s7 }
  0x3e   : > { %s267_s27 = sadd.s32 (%p5375_p9), %s4568_s26, %s4226_s11 }
  0x3f   : > { %s4228_s29 = sshll.u32 %s267_s27, 2 }
  0x42   : > { %s5484_s5 = scalar_lea.vmem %s6484_s1, %s4228_s29 }
  0x43   : > { %v872_v36 = vld [vmem:[%s5484_s5] sm:$0xff]  ;;  %v874_v37 = vld [vmem:[%s5484_s5 + $0x10] sm:$0xff] }
  0x44   : > { %v876_v38 = vld [vmem:[%s5484_s5 + $0x20] sm:$0xff]  ;;  %873 = vst [vmem:[%s5489_s6] sm:$0xff] %v872_v36  ;;  %875 = vst [vmem:[%s5489_s6 + $0x8] sm:$0xff] %v874_v37  ;;  %v878_v39 = vld [vmem:[%s5484_s5 + $0x30] sm:$0xff] }
  0x45   : > { %877 = vst [vmem:[%s5489_s6 + $0x10] sm:$0xff] %v876_v38  ;;  %v880_v40 = vld [vmem:[%s5484_s5 + $0x40] sm:$0xff]  ;;  %v882_v41 = vld [vmem:[%s5484_s5 + $0x50] sm:$0xff]  ;;  %879 = vst [vmem:[%s5489_s6 + $0x18] sm:$0xff] %v878_v39 }
  0x46   : > { %881 = vst [vmem:[%s5489_s6 + $0x20] sm:$0xff] %v880_v40  ;;  %883 = vst [vmem:[%s5489_s6 + $0x28] sm:$0xff] %v882_v41  ;;  %v884_v42 = vld [vmem:[%s5484_s5 + $0x60] sm:$0xff]  ;;  %v886_v43 = vld [vmem:[%s5484_s5 + $0x70] sm:$0xff] }
  0x47   : > { %v888_v44 = vld [vmem:[%s5484_s5 + $0x80] sm:$0xff]  ;;  %885 = vst [vmem:[%s5489_s6 + $0x30] sm:$0xff] %v884_v42  ;;  %887 = vst [vmem:[%s5489_s6 + $0x38] sm:$0xff] %v886_v43  ;;  %v890_v45 = vld [vmem:[%s5484_s5 + $0x90] sm:$0xff] }
  0x48   : > { %889 = vst [vmem:[%s5489_s6 + $0x40] sm:$0xff] %v888_v44  ;;  %v892_v46 = vld [vmem:[%s5484_s5 + $0xa0] sm:$0xff]  ;;  %v894_v47 = vld [vmem:[%s5484_s5 + $0xb0] sm:$0xff]  ;;  %891 = vst [vmem:[%s5489_s6 + $0x48] sm:$0xff] %v890_v45 }
  0x49   : > { %893 = vst [vmem:[%s5489_s6 + $0x50] sm:$0xff] %v892_v46  ;;  %895 = vst [vmem:[%s5489_s6 + $0x58] sm:$0xff] %v894_v47  ;;  %v896_v48 = vld [vmem:[%s5484_s5 + $0xc0] sm:$0xff]  ;;  %v898_v49 = vld [vmem:[%s5484_s5 + $0xd0] sm:$0xff] }
  0x4a   : > { %v900_v50 = vld [vmem:[%s5484_s5 + $0xe0] sm:$0xff]  ;;  %897 = vst [vmem:[%s5489_s6 + $0x60] sm:$0xff] %v896_v48  ;;  %899 = vst [vmem:[%s5489_s6 + $0x68] sm:$0xff] %v898_v49  ;;  %v902_v51 = vld [vmem:[%s5484_s5 + $0xf0] sm:$0xff] }
  0x4b   : > { %901 = vst [vmem:[%s5489_s6 + $0x70] sm:$0xff] %v900_v50  ;;  %v904_v52 = vld [vmem:[%s5484_s5 + $0x100] sm:$0xff]  ;;  %v906_v53 = vld [vmem:[%s5484_s5 + $0x110] sm:$0xff]  ;;  %903 = vst [vmem:[%s5489_s6 + $0x78] sm:$0xff] %v902_v51 }
  0x4c   : > { %905 = vst [vmem:[%s5489_s6 + $0x80] sm:$0xff] %v904_v52  ;;  %907 = vst [vmem:[%s5489_s6 + $0x88] sm:$0xff] %v906_v53  ;;  %v908_v54 = vld [vmem:[%s5484_s5 + $0x120] sm:$0xff]  ;;  %v910_v55 = vld [vmem:[%s5484_s5 + $0x130] sm:$0xff] }
  0x4d   : > { %v912_v56 = vld [vmem:[%s5484_s5 + $0x140] sm:$0xff]  ;;  %909 = vst [vmem:[%s5489_s6 + $0x90] sm:$0xff] %v908_v54  ;;  %911 = vst [vmem:[%s5489_s6 + $0x98] sm:$0xff] %v910_v55  ;;  %v914_v57 = vld [vmem:[%s5484_s5 + $0x150] sm:$0xff] }
  0x4e   : > { %913 = vst [vmem:[%s5489_s6 + $0xa0] sm:$0xff] %v912_v56  ;;  %v916_v58 = vld [vmem:[%s5484_s5 + $0x160] sm:$0xff]  ;;  %v918_v59 = vld [vmem:[%s5484_s5 + $0x170] sm:$0xff]  ;;  %915 = vst [vmem:[%s5489_s6 + $0xa8] sm:$0xff] %v914_v57 }
  0x4f   : > { %917 = vst [vmem:[%s5489_s6 + $0xb0] sm:$0xff] %v916_v58  ;;  %919 = vst [vmem:[%s5489_s6 + $0xb8] sm:$0xff] %v918_v59  ;;  %v920_v60 = vld [vmem:[%s5484_s5 + $0x180] sm:$0xff]  ;;  %v922_v61 = vld [vmem:[%s5484_s5 + $0x190] sm:$0xff] }
  0x50   : > { %v924_v62 = vld [vmem:[%s5484_s5 + $0x1a0] sm:$0xff]  ;;  %921 = vst [vmem:[%s5489_s6 + $0xc0] sm:$0xff] %v920_v60  ;;  %923 = vst [vmem:[%s5489_s6 + $0xc8] sm:$0xff] %v922_v61  ;;  %v926_v63 = vld [vmem:[%s5484_s5 + $0x1b0] sm:$0xff] }
  0x51   : > { %925 = vst [vmem:[%s5489_s6 + $0xd0] sm:$0xff] %v924_v62  ;;  %v928_v0 = vld [vmem:[%s5484_s5 + $0x1c0] sm:$0xff]  ;;  %v930_v1 = vld [vmem:[%s5484_s5 + $0x1d0] sm:$0xff]  ;;  %927 = vst [vmem:[%s5489_s6 + $0xd8] sm:$0xff] %v926_v63 }
  0x52   : > { %929 = vst [vmem:[%s5489_s6 + $0xe0] sm:$0xff] %v928_v0  ;;  %931 = vst [vmem:[%s5489_s6 + $0xe8] sm:$0xff] %v930_v1  ;;  %v932_v2 = vld [vmem:[%s5484_s5 + $0x1e0] sm:$0xff]  ;;  %v934_v3 = vld [vmem:[%s5484_s5 + $0x1f0] sm:$0xff] }
  0x53   : > { %v936_v4 = vld [vmem:[%s5484_s5 + $0x200] sm:$0xff]  ;;  %933 = vst [vmem:[%s5489_s6 + $0xf0] sm:$0xff] %v932_v2  ;;  %935 = vst [vmem:[%s5489_s6 + $0xf8] sm:$0xff] %v934_v3  ;;  %v938_v5 = vld [vmem:[%s5484_s5 + $0x210] sm:$0xff] }
  0x54   : > { %937 = vst [vmem:[%s5489_s6 + $0x100] sm:$0xff] %v936_v4  ;;  %v940_v6 = vld [vmem:[%s5484_s5 + $0x220] sm:$0xff]  ;;  %v942_v7 = vld [vmem:[%s5484_s5 + $0x230] sm:$0xff]  ;;  %939 = vst [vmem:[%s5489_s6 + $0x108] sm:$0xff] %v938_v5 }
  0x55   : > { %941 = vst [vmem:[%s5489_s6 + $0x110] sm:$0xff] %v940_v6  ;;  %943 = vst [vmem:[%s5489_s6 + $0x118] sm:$0xff] %v942_v7  ;;  %v944_v8 = vld [vmem:[%s5484_s5 + $0x240] sm:$0xff]  ;;  %v946_v9 = vld [vmem:[%s5484_s5 + $0x250] sm:$0xff] }
  0x56   : > { %v948_v10 = vld [vmem:[%s5484_s5 + $0x260] sm:$0xff]  ;;  %945 = vst [vmem:[%s5489_s6 + $0x120] sm:$0xff] %v944_v8  ;;  %947 = vst [vmem:[%s5489_s6 + $0x128] sm:$0xff] %v946_v9  ;;  %v950_v11 = vld [vmem:[%s5484_s5 + $0x270] sm:$0xff] }
  0x57   : > { %949 = vst [vmem:[%s5489_s6 + $0x130] sm:$0xff] %v948_v10  ;;  %v952_v12 = vld [vmem:[%s5484_s5 + $0x280] sm:$0xff]  ;;  %v954_v13 = vld [vmem:[%s5484_s5 + $0x290] sm:$0xff]  ;;  %951 = vst [vmem:[%s5489_s6 + $0x138] sm:$0xff] %v950_v11 }
  0x58   : > { %953 = vst [vmem:[%s5489_s6 + $0x140] sm:$0xff] %v952_v12  ;;  %955 = vst [vmem:[%s5489_s6 + $0x148] sm:$0xff] %v954_v13  ;;  %v956_v14 = vld [vmem:[%s5484_s5 + $0x2a0] sm:$0xff]  ;;  %v958_v15 = vld [vmem:[%s5484_s5 + $0x2b0] sm:$0xff] }
  0x59   : > { %v960_v16 = vld [vmem:[%s5484_s5 + $0x2c0] sm:$0xff]  ;;  %957 = vst [vmem:[%s5489_s6 + $0x150] sm:$0xff] %v956_v14  ;;  %959 = vst [vmem:[%s5489_s6 + $0x158] sm:$0xff] %v958_v15  ;;  %v962_v17 = vld [vmem:[%s5484_s5 + $0x2d0] sm:$0xff] }
  0x5a   : > { %961 = vst [vmem:[%s5489_s6 + $0x160] sm:$0xff] %v960_v16  ;;  %v964_v18 = vld [vmem:[%s5484_s5 + $0x2e0] sm:$0xff]  ;;  %v966_v19 = vld [vmem:[%s5484_s5 + $0x2f0] sm:$0xff]  ;;  %963 = vst [vmem:[%s5489_s6 + $0x168] sm:$0xff] %v962_v17 }
  0x5b   : > { %965 = vst [vmem:[%s5489_s6 + $0x170] sm:$0xff] %v964_v18  ;;  %967 = vst [vmem:[%s5489_s6 + $0x178] sm:$0xff] %v966_v19  ;;  %v968_v20 = vld [vmem:[%s5484_s5 + $0x300] sm:$0xff]  ;;  %v970_v21 = vld [vmem:[%s5484_s5 + $0x310] sm:$0xff] }
  0x5c   : > { %v972_v22 = vld [vmem:[%s5484_s5 + $0x320] sm:$0xff]  ;;  %969 = vst [vmem:[%s5489_s6 + $0x180] sm:$0xff] %v968_v20  ;;  %971 = vst [vmem:[%s5489_s6 + $0x188] sm:$0xff] %v970_v21  ;;  %v974_v23 = vld [vmem:[%s5484_s5 + $0x330] sm:$0xff] }
  0x5d   : > { %973 = vst [vmem:[%s5489_s6 + $0x190] sm:$0xff] %v972_v22  ;;  %v976_v24 = vld [vmem:[%s5484_s5 + $0x340] sm:$0xff]  ;;  %v978_v25 = vld [vmem:[%s5484_s5 + $0x350] sm:$0xff]  ;;  %975 = vst [vmem:[%s5489_s6 + $0x198] sm:$0xff] %v974_v23 }
  0x5e   : > { %977 = vst [vmem:[%s5489_s6 + $0x1a0] sm:$0xff] %v976_v24  ;;  %979 = vst [vmem:[%s5489_s6 + $0x1a8] sm:$0xff] %v978_v25  ;;  %v980_v26 = vld [vmem:[%s5484_s5 + $0x360] sm:$0xff]  ;;  %v982_v27 = vld [vmem:[%s5484_s5 + $0x370] sm:$0xff] }
  0x5f   : > { %v984_v28 = vld [vmem:[%s5484_s5 + $0x380] sm:$0xff]  ;;  %981 = vst [vmem:[%s5489_s6 + $0x1b0] sm:$0xff] %v980_v26  ;;  %983 = vst [vmem:[%s5489_s6 + $0x1b8] sm:$0xff] %v982_v27  ;;  %v986_v29 = vld [vmem:[%s5484_s5 + $0x390] sm:$0xff] }
  0x60   : > { %985 = vst [vmem:[%s5489_s6 + $0x1c0] sm:$0xff] %v984_v28  ;;  %v988_v30 = vld [vmem:[%s5484_s5 + $0x3a0] sm:$0xff]  ;;  %v990_v31 = vld [vmem:[%s5484_s5 + $0x3b0] sm:$0xff]  ;;  %987 = vst [vmem:[%s5489_s6 + $0x1c8] sm:$0xff] %v986_v29 }
  0x61   : > { %989 = vst [vmem:[%s5489_s6 + $0x1d0] sm:$0xff] %v988_v30  ;;  %991 = vst [vmem:[%s5489_s6 + $0x1d8] sm:$0xff] %v990_v31  ;;  %v992_v32 = vld [vmem:[%s5484_s5 + $0x3c0] sm:$0xff]  ;;  %v994_v33 = vld [vmem:[%s5484_s5 + $0x3d0] sm:$0xff] }
  0x62   : > { %v996_v34 = vld [vmem:[%s5484_s5 + $0x3e0] sm:$0xff]  ;;  %993 = vst [vmem:[%s5489_s6 + $0x1e0] sm:$0xff] %v992_v32  ;;  %995 = vst [vmem:[%s5489_s6 + $0x1e8] sm:$0xff] %v994_v33  ;;  %v998_v35 = vld [vmem:[%s5484_s5 + $0x3f0] sm:$0xff] }
  0x63   : > { %997 = vst [vmem:[%s5489_s6 + $0x1f0] sm:$0xff] %v996_v34  ;;  %v1000_v36 = vld [vmem:[%s5484_s5 + $0x400] sm:$0xff]  ;;  %v1002_v37 = vld [vmem:[%s5484_s5 + $0x410] sm:$0xff]  ;;  %999 = vst [vmem:[%s5489_s6 + $0x1f8] sm:$0xff] %v998_v35 }
  0x64   : > { %1001 = vst [vmem:[%s5489_s6 + $0x200] sm:$0xff] %v1000_v36  ;;  %1003 = vst [vmem:[%s5489_s6 + $0x208] sm:$0xff] %v1002_v37  ;;  %v1004_v38 = vld [vmem:[%s5484_s5 + $0x420] sm:$0xff]  ;;  %v1006_v39 = vld [vmem:[%s5484_s5 + $0x430] sm:$0xff] }
  0x65   : > { %v1008_v40 = vld [vmem:[%s5484_s5 + $0x440] sm:$0xff]  ;;  %1005 = vst [vmem:[%s5489_s6 + $0x210] sm:$0xff] %v1004_v38  ;;  %1007 = vst [vmem:[%s5489_s6 + $0x218] sm:$0xff] %v1006_v39  ;;  %v1010_v41 = vld [vmem:[%s5484_s5 + $0x450] sm:$0xff] }
  0x66   : > { %1009 = vst [vmem:[%s5489_s6 + $0x220] sm:$0xff] %v1008_v40  ;;  %v1012_v42 = vld [vmem:[%s5484_s5 + $0x460] sm:$0xff]  ;;  %v1014_v43 = vld [vmem:[%s5484_s5 + $0x470] sm:$0xff]  ;;  %1011 = vst [vmem:[%s5489_s6 + $0x228] sm:$0xff] %v1010_v41 }
  0x67   : > { %1013 = vst [vmem:[%s5489_s6 + $0x230] sm:$0xff] %v1012_v42  ;;  %1015 = vst [vmem:[%s5489_s6 + $0x238] sm:$0xff] %v1014_v43  ;;  %v1016_v44 = vld [vmem:[%s5484_s5 + $0x480] sm:$0xff]  ;;  %v1018_v45 = vld [vmem:[%s5484_s5 + $0x490] sm:$0xff] }
  0x68   : > { %v1020_v46 = vld [vmem:[%s5484_s5 + $0x4a0] sm:$0xff]  ;;  %1017 = vst [vmem:[%s5489_s6 + $0x240] sm:$0xff] %v1016_v44  ;;  %1019 = vst [vmem:[%s5489_s6 + $0x248] sm:$0xff] %v1018_v45  ;;  %v1022_v47 = vld [vmem:[%s5484_s5 + $0x4b0] sm:$0xff] }
  0x69   : > { %1021 = vst [vmem:[%s5489_s6 + $0x250] sm:$0xff] %v1020_v46  ;;  %v1024_v48 = vld [vmem:[%s5484_s5 + $0x4c0] sm:$0xff]  ;;  %v1026_v49 = vld [vmem:[%s5484_s5 + $0x4d0] sm:$0xff]  ;;  %1023 = vst [vmem:[%s5489_s6 + $0x258] sm:$0xff] %v1022_v47 }
  0x6a   : > { %1025 = vst [vmem:[%s5489_s6 + $0x260] sm:$0xff] %v1024_v48  ;;  %1027 = vst [vmem:[%s5489_s6 + $0x268] sm:$0xff] %v1026_v49  ;;  %v1028_v50 = vld [vmem:[%s5484_s5 + $0x4e0] sm:$0xff]  ;;  %v1030_v51 = vld [vmem:[%s5484_s5 + $0x4f0] sm:$0xff] }
  0x6b   : > { %v1032_v52 = vld [vmem:[%s5484_s5 + $0x500] sm:$0xff]  ;;  %1029 = vst [vmem:[%s5489_s6 + $0x270] sm:$0xff] %v1028_v50  ;;  %1031 = vst [vmem:[%s5489_s6 + $0x278] sm:$0xff] %v1030_v51  ;;  %v1034_v53 = vld [vmem:[%s5484_s5 + $0x510] sm:$0xff] }
  0x6c   : > { %1033 = vst [vmem:[%s5489_s6 + $0x280] sm:$0xff] %v1032_v52  ;;  %v1036_v54 = vld [vmem:[%s5484_s5 + $0x520] sm:$0xff]  ;;  %v1038_v55 = vld [vmem:[%s5484_s5 + $0x530] sm:$0xff]  ;;  %1035 = vst [vmem:[%s5489_s6 + $0x288] sm:$0xff] %v1034_v53 }
  0x6d   : > { %1037 = vst [vmem:[%s5489_s6 + $0x290] sm:$0xff] %v1036_v54  ;;  %1039 = vst [vmem:[%s5489_s6 + $0x298] sm:$0xff] %v1038_v55  ;;  %v1040_v56 = vld [vmem:[%s5484_s5 + $0x540] sm:$0xff]  ;;  %v1042_v57 = vld [vmem:[%s5484_s5 + $0x550] sm:$0xff] }
  0x6e   : > { %v1044_v58 = vld [vmem:[%s5484_s5 + $0x560] sm:$0xff]  ;;  %1041 = vst [vmem:[%s5489_s6 + $0x2a0] sm:$0xff] %v1040_v56  ;;  %1043 = vst [vmem:[%s5489_s6 + $0x2a8] sm:$0xff] %v1042_v57  ;;  %v1046_v59 = vld [vmem:[%s5484_s5 + $0x570] sm:$0xff] }
  0x6f   : > { %1045 = vst [vmem:[%s5489_s6 + $0x2b0] sm:$0xff] %v1044_v58  ;;  %v1048_v60 = vld [vmem:[%s5484_s5 + $0x580] sm:$0xff]  ;;  %v1050_v61 = vld [vmem:[%s5484_s5 + $0x590] sm:$0xff]  ;;  %1047 = vst [vmem:[%s5489_s6 + $0x2b8] sm:$0xff] %v1046_v59 }
  0x70   : > { %1049 = vst [vmem:[%s5489_s6 + $0x2c0] sm:$0xff] %v1048_v60  ;;  %1051 = vst [vmem:[%s5489_s6 + $0x2c8] sm:$0xff] %v1050_v61  ;;  %v1052_v62 = vld [vmem:[%s5484_s5 + $0x5a0] sm:$0xff]  ;;  %v1054_v63 = vld [vmem:[%s5484_s5 + $0x5b0] sm:$0xff] }
  0x71   : > { %v1056_v0 = vld [vmem:[%s5484_s5 + $0x5c0] sm:$0xff]  ;;  %1053 = vst [vmem:[%s5489_s6 + $0x2d0] sm:$0xff] %v1052_v62  ;;  %1055 = vst [vmem:[%s5489_s6 + $0x2d8] sm:$0xff] %v1054_v63  ;;  %v1058_v1 = vld [vmem:[%s5484_s5 + $0x5d0] sm:$0xff] }
  0x72   : > { %1057 = vst [vmem:[%s5489_s6 + $0x2e0] sm:$0xff] %v1056_v0  ;;  %v1060_v2 = vld [vmem:[%s5484_s5 + $0x5e0] sm:$0xff]  ;;  %v1062_v3 = vld [vmem:[%s5484_s5 + $0x5f0] sm:$0xff]  ;;  %1059 = vst [vmem:[%s5489_s6 + $0x2e8] sm:$0xff] %v1058_v1 }
  0x73   : > { %1061 = vst [vmem:[%s5489_s6 + $0x2f0] sm:$0xff] %v1060_v2  ;;  %1063 = vst [vmem:[%s5489_s6 + $0x2f8] sm:$0xff] %v1062_v3  ;;  %v1064_v4 = vld [vmem:[%s5484_s5 + $0x600] sm:$0xff]  ;;  %v1066_v5 = vld [vmem:[%s5484_s5 + $0x610] sm:$0xff] }
  0x74   : > { %v1068_v6 = vld [vmem:[%s5484_s5 + $0x620] sm:$0xff]  ;;  %1065 = vst [vmem:[%s5489_s6 + $0x300] sm:$0xff] %v1064_v4  ;;  %1067 = vst [vmem:[%s5489_s6 + $0x308] sm:$0xff] %v1066_v5  ;;  %v1070_v7 = vld [vmem:[%s5484_s5 + $0x630] sm:$0xff] }
  0x75   : > { %1069 = vst [vmem:[%s5489_s6 + $0x310] sm:$0xff] %v1068_v6  ;;  %v1072_v8 = vld [vmem:[%s5484_s5 + $0x640] sm:$0xff]  ;;  %v1074_v9 = vld [vmem:[%s5484_s5 + $0x650] sm:$0xff]  ;;  %1071 = vst [vmem:[%s5489_s6 + $0x318] sm:$0xff] %v1070_v7 }
  0x76   : > { %1073 = vst [vmem:[%s5489_s6 + $0x320] sm:$0xff] %v1072_v8  ;;  %1075 = vst [vmem:[%s5489_s6 + $0x328] sm:$0xff] %v1074_v9  ;;  %v1076_v10 = vld [vmem:[%s5484_s5 + $0x660] sm:$0xff]  ;;  %v1078_v11 = vld [vmem:[%s5484_s5 + $0x670] sm:$0xff] }
  0x77   : > { %v1080_v12 = vld [vmem:[%s5484_s5 + $0x680] sm:$0xff]  ;;  %1077 = vst [vmem:[%s5489_s6 + $0x330] sm:$0xff] %v1076_v10  ;;  %1079 = vst [vmem:[%s5489_s6 + $0x338] sm:$0xff] %v1078_v11  ;;  %v1082_v13 = vld [vmem:[%s5484_s5 + $0x690] sm:$0xff] }
  0x78   : > { %1081 = vst [vmem:[%s5489_s6 + $0x340] sm:$0xff] %v1080_v12  ;;  %v1084_v14 = vld [vmem:[%s5484_s5 + $0x6a0] sm:$0xff]  ;;  %v1086_v15 = vld [vmem:[%s5484_s5 + $0x6b0] sm:$0xff]  ;;  %1083 = vst [vmem:[%s5489_s6 + $0x348] sm:$0xff] %v1082_v13 }
  0x79   : > { %1085 = vst [vmem:[%s5489_s6 + $0x350] sm:$0xff] %v1084_v14  ;;  %1087 = vst [vmem:[%s5489_s6 + $0x358] sm:$0xff] %v1086_v15  ;;  %v1088_v16 = vld [vmem:[%s5484_s5 + $0x6c0] sm:$0xff]  ;;  %v1090_v17 = vld [vmem:[%s5484_s5 + $0x6d0] sm:$0xff] }
  0x7a   : > { %v1092_v18 = vld [vmem:[%s5484_s5 + $0x6e0] sm:$0xff]  ;;  %1089 = vst [vmem:[%s5489_s6 + $0x360] sm:$0xff] %v1088_v16  ;;  %1091 = vst [vmem:[%s5489_s6 + $0x368] sm:$0xff] %v1090_v17  ;;  %v1094_v19 = vld [vmem:[%s5484_s5 + $0x6f0] sm:$0xff] }
  0x7b   : > { %1093 = vst [vmem:[%s5489_s6 + $0x370] sm:$0xff] %v1092_v18  ;;  %v1096_v20 = vld [vmem:[%s5484_s5 + $0x700] sm:$0xff]  ;;  %v1098_v21 = vld [vmem:[%s5484_s5 + $0x710] sm:$0xff]  ;;  %1095 = vst [vmem:[%s5489_s6 + $0x378] sm:$0xff] %v1094_v19 }
  0x7c   : > { %1097 = vst [vmem:[%s5489_s6 + $0x380] sm:$0xff] %v1096_v20  ;;  %1099 = vst [vmem:[%s5489_s6 + $0x388] sm:$0xff] %v1098_v21  ;;  %v1100_v22 = vld [vmem:[%s5484_s5 + $0x720] sm:$0xff]  ;;  %v1102_v23 = vld [vmem:[%s5484_s5 + $0x730] sm:$0xff] }
  0x7d   : > { %v1104_v24 = vld [vmem:[%s5484_s5 + $0x740] sm:$0xff]  ;;  %1101 = vst [vmem:[%s5489_s6 + $0x390] sm:$0xff] %v1100_v22  ;;  %1103 = vst [vmem:[%s5489_s6 + $0x398] sm:$0xff] %v1102_v23  ;;  %v1106_v25 = vld [vmem:[%s5484_s5 + $0x750] sm:$0xff] }
  0x7e   : > { %1105 = vst [vmem:[%s5489_s6 + $0x3a0] sm:$0xff] %v1104_v24  ;;  %v1108_v26 = vld [vmem:[%s5484_s5 + $0x760] sm:$0xff]  ;;  %v1110_v27 = vld [vmem:[%s5484_s5 + $0x770] sm:$0xff]  ;;  %1107 = vst [vmem:[%s5489_s6 + $0x3a8] sm:$0xff] %v1106_v25 }
  0x7f   : > { %1109 = vst [vmem:[%s5489_s6 + $0x3b0] sm:$0xff] %v1108_v26  ;;  %1111 = vst [vmem:[%s5489_s6 + $0x3b8] sm:$0xff] %v1110_v27  ;;  %v1112_v28 = vld [vmem:[%s5484_s5 + $0x780] sm:$0xff]  ;;  %v1114_v29 = vld [vmem:[%s5484_s5 + $0x790] sm:$0xff] }
  0x80   : > { %v1116_v30 = vld [vmem:[%s5484_s5 + $0x7a0] sm:$0xff]  ;;  %1113 = vst [vmem:[%s5489_s6 + $0x3c0] sm:$0xff] %v1112_v28  ;;  %1115 = vst [vmem:[%s5489_s6 + $0x3c8] sm:$0xff] %v1114_v29  ;;  %v1118_v31 = vld [vmem:[%s5484_s5 + $0x7b0] sm:$0xff] }
  0x81   : > { %1117 = vst [vmem:[%s5489_s6 + $0x3d0] sm:$0xff] %v1116_v30  ;;  %v1120_v32 = vld [vmem:[%s5484_s5 + $0x7c0] sm:$0xff]  ;;  %v1122_v33 = vld [vmem:[%s5484_s5 + $0x7d0] sm:$0xff]  ;;  %1119 = vst [vmem:[%s5489_s6 + $0x3d8] sm:$0xff] %v1118_v31 }
  0x82   : > { %1121 = vst [vmem:[%s5489_s6 + $0x3e0] sm:$0xff] %v1120_v32  ;;  %1123 = vst [vmem:[%s5489_s6 + $0x3e8] sm:$0xff] %v1122_v33  ;;  %v1124_v34 = vld [vmem:[%s5484_s5 + $0x7e0] sm:$0xff]  ;;  %v1126_v35 = vld [vmem:[%s5484_s5 + $0x7f0] sm:$0xff] }
  0x83   : > { %v1128_v36 = vld [vmem:[%s5484_s5 + $0x800] sm:$0xff]  ;;  %1125 = vst [vmem:[%s5489_s6 + $0x3f0] sm:$0xff] %v1124_v34  ;;  %1127 = vst [vmem:[%s5489_s6 + $0x3f8] sm:$0xff] %v1126_v35  ;;  %v1130_v37 = vld [vmem:[%s5484_s5 + $0x810] sm:$0xff] }
  0x84   : > { %1129 = vst [vmem:[%s5489_s6 + $0x400] sm:$0xff] %v1128_v36  ;;  %v1132_v38 = vld [vmem:[%s5484_s5 + $0x820] sm:$0xff]  ;;  %v1134_v39 = vld [vmem:[%s5484_s5 + $0x830] sm:$0xff]  ;;  %1131 = vst [vmem:[%s5489_s6 + $0x408] sm:$0xff] %v1130_v37 }
  0x85   : > { %1133 = vst [vmem:[%s5489_s6 + $0x410] sm:$0xff] %v1132_v38  ;;  %1135 = vst [vmem:[%s5489_s6 + $0x418] sm:$0xff] %v1134_v39  ;;  %v1136_v40 = vld [vmem:[%s5484_s5 + $0x840] sm:$0xff]  ;;  %v1138_v41 = vld [vmem:[%s5484_s5 + $0x850] sm:$0xff] }
  0x86   : > { %v1140_v42 = vld [vmem:[%s5484_s5 + $0x860] sm:$0xff]  ;;  %1137 = vst [vmem:[%s5489_s6 + $0x420] sm:$0xff] %v1136_v40  ;;  %1139 = vst [vmem:[%s5489_s6 + $0x428] sm:$0xff] %v1138_v41  ;;  %v1142_v43 = vld [vmem:[%s5484_s5 + $0x870] sm:$0xff] }
  0x87   : > { %1141 = vst [vmem:[%s5489_s6 + $0x430] sm:$0xff] %v1140_v42  ;;  %v1144_v44 = vld [vmem:[%s5484_s5 + $0x880] sm:$0xff]  ;;  %v1146_v45 = vld [vmem:[%s5484_s5 + $0x890] sm:$0xff]  ;;  %1143 = vst [vmem:[%s5489_s6 + $0x438] sm:$0xff] %v1142_v43 }
  0x88   : > { %1145 = vst [vmem:[%s5489_s6 + $0x440] sm:$0xff] %v1144_v44  ;;  %1147 = vst [vmem:[%s5489_s6 + $0x448] sm:$0xff] %v1146_v45  ;;  %v1148_v46 = vld [vmem:[%s5484_s5 + $0x8a0] sm:$0xff]  ;;  %v1150_v47 = vld [vmem:[%s5484_s5 + $0x8b0] sm:$0xff] }
  0x89   : > { %v1152_v48 = vld [vmem:[%s5484_s5 + $0x8c0] sm:$0xff]  ;;  %1149 = vst [vmem:[%s5489_s6 + $0x450] sm:$0xff] %v1148_v46  ;;  %1151 = vst [vmem:[%s5489_s6 + $0x458] sm:$0xff] %v1150_v47  ;;  %v1154_v49 = vld [vmem:[%s5484_s5 + $0x8d0] sm:$0xff] }
  0x8a   : > { %1153 = vst [vmem:[%s5489_s6 + $0x460] sm:$0xff] %v1152_v48  ;;  %v1156_v50 = vld [vmem:[%s5484_s5 + $0x8e0] sm:$0xff]  ;;  %v1158_v51 = vld [vmem:[%s5484_s5 + $0x8f0] sm:$0xff]  ;;  %1155 = vst [vmem:[%s5489_s6 + $0x468] sm:$0xff] %v1154_v49 }
  0x8b   : > { %1157 = vst [vmem:[%s5489_s6 + $0x470] sm:$0xff] %v1156_v50  ;;  %1159 = vst [vmem:[%s5489_s6 + $0x478] sm:$0xff] %v1158_v51  ;;  %v1160_v52 = vld [vmem:[%s5484_s5 + $0x900] sm:$0xff]  ;;  %v1162_v53 = vld [vmem:[%s5484_s5 + $0x910] sm:$0xff] }
  0x8c   : > { %v1164_v54 = vld [vmem:[%s5484_s5 + $0x920] sm:$0xff]  ;;  %1161 = vst [vmem:[%s5489_s6 + $0x480] sm:$0xff] %v1160_v52  ;;  %1163 = vst [vmem:[%s5489_s6 + $0x488] sm:$0xff] %v1162_v53  ;;  %v1166_v55 = vld [vmem:[%s5484_s5 + $0x930] sm:$0xff] }
  0x8d   : > { %1165 = vst [vmem:[%s5489_s6 + $0x490] sm:$0xff] %v1164_v54  ;;  %v1168_v56 = vld [vmem:[%s5484_s5 + $0x940] sm:$0xff]  ;;  %v1170_v57 = vld [vmem:[%s5484_s5 + $0x950] sm:$0xff]  ;;  %1167 = vst [vmem:[%s5489_s6 + $0x498] sm:$0xff] %v1166_v55 }
  0x8e   : > { %1169 = vst [vmem:[%s5489_s6 + $0x4a0] sm:$0xff] %v1168_v56  ;;  %1171 = vst [vmem:[%s5489_s6 + $0x4a8] sm:$0xff] %v1170_v57  ;;  %v1172_v58 = vld [vmem:[%s5484_s5 + $0x960] sm:$0xff]  ;;  %v1174_v59 = vld [vmem:[%s5484_s5 + $0x970] sm:$0xff] }
  0x8f   : > { %v1176_v60 = vld [vmem:[%s5484_s5 + $0x980] sm:$0xff]  ;;  %1173 = vst [vmem:[%s5489_s6 + $0x4b0] sm:$0xff] %v1172_v58  ;;  %1175 = vst [vmem:[%s5489_s6 + $0x4b8] sm:$0xff] %v1174_v59  ;;  %v1178_v61 = vld [vmem:[%s5484_s5 + $0x990] sm:$0xff] }
  0x90   : > { %1177 = vst [vmem:[%s5489_s6 + $0x4c0] sm:$0xff] %v1176_v60  ;;  %v1180_v62 = vld [vmem:[%s5484_s5 + $0x9a0] sm:$0xff]  ;;  %v1182_v63 = vld [vmem:[%s5484_s5 + $0x9b0] sm:$0xff]  ;;  %1179 = vst [vmem:[%s5489_s6 + $0x4c8] sm:$0xff] %v1178_v61 }
  0x91   : > { %1181 = vst [vmem:[%s5489_s6 + $0x4d0] sm:$0xff] %v1180_v62  ;;  %1183 = vst [vmem:[%s5489_s6 + $0x4d8] sm:$0xff] %v1182_v63  ;;  %v1184_v0 = vld [vmem:[%s5484_s5 + $0x9c0] sm:$0xff]  ;;  %v1186_v1 = vld [vmem:[%s5484_s5 + $0x9d0] sm:$0xff] }
  0x92   : > { %v1188_v2 = vld [vmem:[%s5484_s5 + $0x9e0] sm:$0xff]  ;;  %1185 = vst [vmem:[%s5489_s6 + $0x4e0] sm:$0xff] %v1184_v0  ;;  %1187 = vst [vmem:[%s5489_s6 + $0x4e8] sm:$0xff] %v1186_v1  ;;  %v1190_v3 = vld [vmem:[%s5484_s5 + $0x9f0] sm:$0xff] }
  0x93   : > { %1189 = vst [vmem:[%s5489_s6 + $0x4f0] sm:$0xff] %v1188_v2  ;;  %v1192_v4 = vld [vmem:[%s5484_s5 + $0xa00] sm:$0xff]  ;;  %v1194_v5 = vld [vmem:[%s5484_s5 + $0xa10] sm:$0xff]  ;;  %1191 = vst [vmem:[%s5489_s6 + $0x4f8] sm:$0xff] %v1190_v3 }
  0x94   : > { %1193 = vst [vmem:[%s5489_s6 + $0x500] sm:$0xff] %v1192_v4  ;;  %1195 = vst [vmem:[%s5489_s6 + $0x508] sm:$0xff] %v1194_v5  ;;  %v1196_v6 = vld [vmem:[%s5484_s5 + $0xa20] sm:$0xff]  ;;  %v1198_v7 = vld [vmem:[%s5484_s5 + $0xa30] sm:$0xff] }
  0x95   : > { %v1200_v8 = vld [vmem:[%s5484_s5 + $0xa40] sm:$0xff]  ;;  %1197 = vst [vmem:[%s5489_s6 + $0x510] sm:$0xff] %v1196_v6  ;;  %1199 = vst [vmem:[%s5489_s6 + $0x518] sm:$0xff] %v1198_v7  ;;  %v1202_v9 = vld [vmem:[%s5484_s5 + $0xa50] sm:$0xff] }
  0x96   : > { %1201 = vst [vmem:[%s5489_s6 + $0x520] sm:$0xff] %v1200_v8  ;;  %v1204_v10 = vld [vmem:[%s5484_s5 + $0xa60] sm:$0xff]  ;;  %v1206_v11 = vld [vmem:[%s5484_s5 + $0xa70] sm:$0xff]  ;;  %1203 = vst [vmem:[%s5489_s6 + $0x528] sm:$0xff] %v1202_v9 }
  0x97   : > { %1205 = vst [vmem:[%s5489_s6 + $0x530] sm:$0xff] %v1204_v10  ;;  %1207 = vst [vmem:[%s5489_s6 + $0x538] sm:$0xff] %v1206_v11  ;;  %v1208_v12 = vld [vmem:[%s5484_s5 + $0xa80] sm:$0xff]  ;;  %v1210_v13 = vld [vmem:[%s5484_s5 + $0xa90] sm:$0xff] }
  0x98   : > { %v1212_v14 = vld [vmem:[%s5484_s5 + $0xaa0] sm:$0xff]  ;;  %1209 = vst [vmem:[%s5489_s6 + $0x540] sm:$0xff] %v1208_v12  ;;  %1211 = vst [vmem:[%s5489_s6 + $0x548] sm:$0xff] %v1210_v13  ;;  %v1214_v15 = vld [vmem:[%s5484_s5 + $0xab0] sm:$0xff] }
  0x99   : > { %1213 = vst [vmem:[%s5489_s6 + $0x550] sm:$0xff] %v1212_v14  ;;  %v1216_v16 = vld [vmem:[%s5484_s5 + $0xac0] sm:$0xff]  ;;  %v1218_v17 = vld [vmem:[%s5484_s5 + $0xad0] sm:$0xff]  ;;  %1215 = vst [vmem:[%s5489_s6 + $0x558] sm:$0xff] %v1214_v15 }
  0x9a   : > { %1217 = vst [vmem:[%s5489_s6 + $0x560] sm:$0xff] %v1216_v16  ;;  %1219 = vst [vmem:[%s5489_s6 + $0x568] sm:$0xff] %v1218_v17  ;;  %v1220_v18 = vld [vmem:[%s5484_s5 + $0xae0] sm:$0xff]  ;;  %v1222_v19 = vld [vmem:[%s5484_s5 + $0xaf0] sm:$0xff] }
  0x9b   : > { %v1224_v20 = vld [vmem:[%s5484_s5 + $0xb00] sm:$0xff]  ;;  %1221 = vst [vmem:[%s5489_s6 + $0x570] sm:$0xff] %v1220_v18  ;;  %1223 = vst [vmem:[%s5489_s6 + $0x578] sm:$0xff] %v1222_v19  ;;  %v1226_v21 = vld [vmem:[%s5484_s5 + $0xb10] sm:$0xff] }
  0x9c   : > { %1225 = vst [vmem:[%s5489_s6 + $0x580] sm:$0xff] %v1224_v20  ;;  %v1228_v22 = vld [vmem:[%s5484_s5 + $0xb20] sm:$0xff]  ;;  %v1230_v23 = vld [vmem:[%s5484_s5 + $0xb30] sm:$0xff]  ;;  %1227 = vst [vmem:[%s5489_s6 + $0x588] sm:$0xff] %v1226_v21 }
  0x9d   : > { %1229 = vst [vmem:[%s5489_s6 + $0x590] sm:$0xff] %v1228_v22  ;;  %1231 = vst [vmem:[%s5489_s6 + $0x598] sm:$0xff] %v1230_v23  ;;  %v1232_v24 = vld [vmem:[%s5484_s5 + $0xb40] sm:$0xff]  ;;  %v1234_v25 = vld [vmem:[%s5484_s5 + $0xb50] sm:$0xff] }
  0x9e   : > { %v1236_v26 = vld [vmem:[%s5484_s5 + $0xb60] sm:$0xff]  ;;  %1233 = vst [vmem:[%s5489_s6 + $0x5a0] sm:$0xff] %v1232_v24  ;;  %1235 = vst [vmem:[%s5489_s6 + $0x5a8] sm:$0xff] %v1234_v25  ;;  %v1238_v27 = vld [vmem:[%s5484_s5 + $0xb70] sm:$0xff] }
  0x9f   : > { %1237 = vst [vmem:[%s5489_s6 + $0x5b0] sm:$0xff] %v1236_v26  ;;  %v1240_v28 = vld [vmem:[%s5484_s5 + $0xb80] sm:$0xff]  ;;  %v1242_v29 = vld [vmem:[%s5484_s5 + $0xb90] sm:$0xff]  ;;  %1239 = vst [vmem:[%s5489_s6 + $0x5b8] sm:$0xff] %v1238_v27 }
  0xa0   : > { %1241 = vst [vmem:[%s5489_s6 + $0x5c0] sm:$0xff] %v1240_v28  ;;  %1243 = vst [vmem:[%s5489_s6 + $0x5c8] sm:$0xff] %v1242_v29  ;;  %v1244_v30 = vld [vmem:[%s5484_s5 + $0xba0] sm:$0xff]  ;;  %v1246_v31 = vld [vmem:[%s5484_s5 + $0xbb0] sm:$0xff] }
  0xa1   : > { %v1248_v32 = vld [vmem:[%s5484_s5 + $0xbc0] sm:$0xff]  ;;  %1245 = vst [vmem:[%s5489_s6 + $0x5d0] sm:$0xff] %v1244_v30  ;;  %1247 = vst [vmem:[%s5489_s6 + $0x5d8] sm:$0xff] %v1246_v31  ;;  %v1250_v33 = vld [vmem:[%s5484_s5 + $0xbd0] sm:$0xff] }
  0xa2   : > { %1249 = vst [vmem:[%s5489_s6 + $0x5e0] sm:$0xff] %v1248_v32  ;;  %v1252_v34 = vld [vmem:[%s5484_s5 + $0xbe0] sm:$0xff]  ;;  %v1254_v35 = vld [vmem:[%s5484_s5 + $0xbf0] sm:$0xff]  ;;  %1251 = vst [vmem:[%s5489_s6 + $0x5e8] sm:$0xff] %v1250_v33 }
  0xa3   : > { %1253 = vst [vmem:[%s5489_s6 + $0x5f0] sm:$0xff] %v1252_v34  ;;  %1255 = vst [vmem:[%s5489_s6 + $0x5f8] sm:$0xff] %v1254_v35  ;;  %v1256_v36 = vld [vmem:[%s5484_s5 + $0xc00] sm:$0xff]  ;;  %v1258_v37 = vld [vmem:[%s5484_s5 + $0xc10] sm:$0xff] }
  0xa4   : > { %v1260_v38 = vld [vmem:[%s5484_s5 + $0xc20] sm:$0xff]  ;;  %1257 = vst [vmem:[%s5489_s6 + $0x600] sm:$0xff] %v1256_v36  ;;  %1259 = vst [vmem:[%s5489_s6 + $0x608] sm:$0xff] %v1258_v37  ;;  %v1262_v39 = vld [vmem:[%s5484_s5 + $0xc30] sm:$0xff] }
  0xa5   : > { %1261 = vst [vmem:[%s5489_s6 + $0x610] sm:$0xff] %v1260_v38  ;;  %v1264_v40 = vld [vmem:[%s5484_s5 + $0xc40] sm:$0xff]  ;;  %v1266_v41 = vld [vmem:[%s5484_s5 + $0xc50] sm:$0xff]  ;;  %1263 = vst [vmem:[%s5489_s6 + $0x618] sm:$0xff] %v1262_v39 }
  0xa6   : > { %1265 = vst [vmem:[%s5489_s6 + $0x620] sm:$0xff] %v1264_v40  ;;  %1267 = vst [vmem:[%s5489_s6 + $0x628] sm:$0xff] %v1266_v41  ;;  %v1268_v42 = vld [vmem:[%s5484_s5 + $0xc60] sm:$0xff]  ;;  %v1270_v43 = vld [vmem:[%s5484_s5 + $0xc70] sm:$0xff] }
  0xa7   : > { %v1272_v44 = vld [vmem:[%s5484_s5 + $0xc80] sm:$0xff]  ;;  %1269 = vst [vmem:[%s5489_s6 + $0x630] sm:$0xff] %v1268_v42  ;;  %1271 = vst [vmem:[%s5489_s6 + $0x638] sm:$0xff] %v1270_v43  ;;  %v1274_v45 = vld [vmem:[%s5484_s5 + $0xc90] sm:$0xff] }
  0xa8   : > { %1273 = vst [vmem:[%s5489_s6 + $0x640] sm:$0xff] %v1272_v44  ;;  %v1276_v46 = vld [vmem:[%s5484_s5 + $0xca0] sm:$0xff]  ;;  %v1278_v47 = vld [vmem:[%s5484_s5 + $0xcb0] sm:$0xff]  ;;  %1275 = vst [vmem:[%s5489_s6 + $0x648] sm:$0xff] %v1274_v45 }
  0xa9   : > { %1277 = vst [vmem:[%s5489_s6 + $0x650] sm:$0xff] %v1276_v46  ;;  %1279 = vst [vmem:[%s5489_s6 + $0x658] sm:$0xff] %v1278_v47  ;;  %v1280_v48 = vld [vmem:[%s5484_s5 + $0xcc0] sm:$0xff]  ;;  %v1282_v49 = vld [vmem:[%s5484_s5 + $0xcd0] sm:$0xff] }
  0xaa   : > { %v1284_v50 = vld [vmem:[%s5484_s5 + $0xce0] sm:$0xff]  ;;  %1281 = vst [vmem:[%s5489_s6 + $0x660] sm:$0xff] %v1280_v48  ;;  %1283 = vst [vmem:[%s5489_s6 + $0x668] sm:$0xff] %v1282_v49  ;;  %v1286_v51 = vld [vmem:[%s5484_s5 + $0xcf0] sm:$0xff] }
  0xab   : > { %1285 = vst [vmem:[%s5489_s6 + $0x670] sm:$0xff] %v1284_v50  ;;  %v1288_v52 = vld [vmem:[%s5484_s5 + $0xd00] sm:$0xff]  ;;  %v1290_v53 = vld [vmem:[%s5484_s5 + $0xd10] sm:$0xff]  ;;  %1287 = vst [vmem:[%s5489_s6 + $0x678] sm:$0xff] %v1286_v51 }
  0xac   : > { %1289 = vst [vmem:[%s5489_s6 + $0x680] sm:$0xff] %v1288_v52  ;;  %1291 = vst [vmem:[%s5489_s6 + $0x688] sm:$0xff] %v1290_v53  ;;  %v1292_v54 = vld [vmem:[%s5484_s5 + $0xd20] sm:$0xff]  ;;  %v1294_v55 = vld [vmem:[%s5484_s5 + $0xd30] sm:$0xff] }
  0xad   : > { %v1296_v56 = vld [vmem:[%s5484_s5 + $0xd40] sm:$0xff]  ;;  %1293 = vst [vmem:[%s5489_s6 + $0x690] sm:$0xff] %v1292_v54  ;;  %1295 = vst [vmem:[%s5489_s6 + $0x698] sm:$0xff] %v1294_v55  ;;  %v1298_v57 = vld [vmem:[%s5484_s5 + $0xd50] sm:$0xff] }
  0xae   : > { %1297 = vst [vmem:[%s5489_s6 + $0x6a0] sm:$0xff] %v1296_v56  ;;  %v1300_v58 = vld [vmem:[%s5484_s5 + $0xd60] sm:$0xff]  ;;  %v1302_v59 = vld [vmem:[%s5484_s5 + $0xd70] sm:$0xff]  ;;  %1299 = vst [vmem:[%s5489_s6 + $0x6a8] sm:$0xff] %v1298_v57 }
  0xaf   : > { %1301 = vst [vmem:[%s5489_s6 + $0x6b0] sm:$0xff] %v1300_v58  ;;  %1303 = vst [vmem:[%s5489_s6 + $0x6b8] sm:$0xff] %v1302_v59  ;;  %v1304_v60 = vld [vmem:[%s5484_s5 + $0xd80] sm:$0xff]  ;;  %v1306_v61 = vld [vmem:[%s5484_s5 + $0xd90] sm:$0xff] }
  0xb0   : > { %v1308_v62 = vld [vmem:[%s5484_s5 + $0xda0] sm:$0xff]  ;;  %1305 = vst [vmem:[%s5489_s6 + $0x6c0] sm:$0xff] %v1304_v60  ;;  %1307 = vst [vmem:[%s5489_s6 + $0x6c8] sm:$0xff] %v1306_v61  ;;  %v1310_v63 = vld [vmem:[%s5484_s5 + $0xdb0] sm:$0xff] }
  0xb1   : > { %1309 = vst [vmem:[%s5489_s6 + $0x6d0] sm:$0xff] %v1308_v62  ;;  %v1312_v0 = vld [vmem:[%s5484_s5 + $0xdc0] sm:$0xff]  ;;  %v1314_v1 = vld [vmem:[%s5484_s5 + $0xdd0] sm:$0xff]  ;;  %1311 = vst [vmem:[%s5489_s6 + $0x6d8] sm:$0xff] %v1310_v63 }
  0xb2   : > { %1313 = vst [vmem:[%s5489_s6 + $0x6e0] sm:$0xff] %v1312_v0  ;;  %1315 = vst [vmem:[%s5489_s6 + $0x6e8] sm:$0xff] %v1314_v1  ;;  %v1316_v2 = vld [vmem:[%s5484_s5 + $0xde0] sm:$0xff]  ;;  %v1318_v3 = vld [vmem:[%s5484_s5 + $0xdf0] sm:$0xff] }
  0xb3   : > { %v1320_v4 = vld [vmem:[%s5484_s5 + $0xe00] sm:$0xff]  ;;  %1317 = vst [vmem:[%s5489_s6 + $0x6f0] sm:$0xff] %v1316_v2  ;;  %1319 = vst [vmem:[%s5489_s6 + $0x6f8] sm:$0xff] %v1318_v3  ;;  %v1322_v5 = vld [vmem:[%s5484_s5 + $0xe10] sm:$0xff] }
  0xb4   : > { %1321 = vst [vmem:[%s5489_s6 + $0x700] sm:$0xff] %v1320_v4  ;;  %v1324_v6 = vld [vmem:[%s5484_s5 + $0xe20] sm:$0xff]  ;;  %v1326_v7 = vld [vmem:[%s5484_s5 + $0xe30] sm:$0xff]  ;;  %1323 = vst [vmem:[%s5489_s6 + $0x708] sm:$0xff] %v1322_v5 }
  0xb5   : > { %1325 = vst [vmem:[%s5489_s6 + $0x710] sm:$0xff] %v1324_v6  ;;  %1327 = vst [vmem:[%s5489_s6 + $0x718] sm:$0xff] %v1326_v7  ;;  %v1328_v8 = vld [vmem:[%s5484_s5 + $0xe40] sm:$0xff]  ;;  %v1330_v9 = vld [vmem:[%s5484_s5 + $0xe50] sm:$0xff] }
  0xb6   : > { %v1332_v10 = vld [vmem:[%s5484_s5 + $0xe60] sm:$0xff]  ;;  %1329 = vst [vmem:[%s5489_s6 + $0x720] sm:$0xff] %v1328_v8  ;;  %1331 = vst [vmem:[%s5489_s6 + $0x728] sm:$0xff] %v1330_v9  ;;  %v1334_v11 = vld [vmem:[%s5484_s5 + $0xe70] sm:$0xff] }
  0xb7   : > { %1333 = vst [vmem:[%s5489_s6 + $0x730] sm:$0xff] %v1332_v10  ;;  %v1336_v12 = vld [vmem:[%s5484_s5 + $0xe80] sm:$0xff]  ;;  %v1338_v13 = vld [vmem:[%s5484_s5 + $0xe90] sm:$0xff]  ;;  %1335 = vst [vmem:[%s5489_s6 + $0x738] sm:$0xff] %v1334_v11 }
  0xb8   : > { %1337 = vst [vmem:[%s5489_s6 + $0x740] sm:$0xff] %v1336_v12  ;;  %1339 = vst [vmem:[%s5489_s6 + $0x748] sm:$0xff] %v1338_v13  ;;  %v1340_v14 = vld [vmem:[%s5484_s5 + $0xea0] sm:$0xff]  ;;  %v1342_v15 = vld [vmem:[%s5484_s5 + $0xeb0] sm:$0xff] }
  0xb9   : > { %v1344_v16 = vld [vmem:[%s5484_s5 + $0xec0] sm:$0xff]  ;;  %1341 = vst [vmem:[%s5489_s6 + $0x750] sm:$0xff] %v1340_v14  ;;  %1343 = vst [vmem:[%s5489_s6 + $0x758] sm:$0xff] %v1342_v15  ;;  %v1346_v17 = vld [vmem:[%s5484_s5 + $0xed0] sm:$0xff] }
  0xba   : > { %1345 = vst [vmem:[%s5489_s6 + $0x760] sm:$0xff] %v1344_v16  ;;  %v1348_v18 = vld [vmem:[%s5484_s5 + $0xee0] sm:$0xff]  ;;  %v1350_v19 = vld [vmem:[%s5484_s5 + $0xef0] sm:$0xff]  ;;  %1347 = vst [vmem:[%s5489_s6 + $0x768] sm:$0xff] %v1346_v17 }
  0xbb   : > { %1349 = vst [vmem:[%s5489_s6 + $0x770] sm:$0xff] %v1348_v18  ;;  %1351 = vst [vmem:[%s5489_s6 + $0x778] sm:$0xff] %v1350_v19  ;;  %v1352_v20 = vld [vmem:[%s5484_s5 + $0xf00] sm:$0xff]  ;;  %v1354_v21 = vld [vmem:[%s5484_s5 + $0xf10] sm:$0xff] }
  0xbc   : > { %v1356_v22 = vld [vmem:[%s5484_s5 + $0xf20] sm:$0xff]  ;;  %1353 = vst [vmem:[%s5489_s6 + $0x780] sm:$0xff] %v1352_v20  ;;  %1355 = vst [vmem:[%s5489_s6 + $0x788] sm:$0xff] %v1354_v21  ;;  %v1358_v23 = vld [vmem:[%s5484_s5 + $0xf30] sm:$0xff] }
  0xbd   : > { %1357 = vst [vmem:[%s5489_s6 + $0x790] sm:$0xff] %v1356_v22  ;;  %v1360_v24 = vld [vmem:[%s5484_s5 + $0xf40] sm:$0xff]  ;;  %v1362_v25 = vld [vmem:[%s5484_s5 + $0xf50] sm:$0xff]  ;;  %1359 = vst [vmem:[%s5489_s6 + $0x798] sm:$0xff] %v1358_v23 }
  0xbe   : > { %1361 = vst [vmem:[%s5489_s6 + $0x7a0] sm:$0xff] %v1360_v24  ;;  %1363 = vst [vmem:[%s5489_s6 + $0x7a8] sm:$0xff] %v1362_v25  ;;  %v1364_v26 = vld [vmem:[%s5484_s5 + $0xf60] sm:$0xff]  ;;  %v1366_v27 = vld [vmem:[%s5484_s5 + $0xf70] sm:$0xff] }
  0xbf   : > { %v1368_v28 = vld [vmem:[%s5484_s5 + $0xf80] sm:$0xff]  ;;  %1365 = vst [vmem:[%s5489_s6 + $0x7b0] sm:$0xff] %v1364_v26  ;;  %1367 = vst [vmem:[%s5489_s6 + $0x7b8] sm:$0xff] %v1366_v27  ;;  %v1370_v29 = vld [vmem:[%s5484_s5 + $0xf90] sm:$0xff] }
  0xc0   : > { %1369 = vst [vmem:[%s5489_s6 + $0x7c0] sm:$0xff] %v1368_v28  ;;  %v1372_v30 = vld [vmem:[%s5484_s5 + $0xfa0] sm:$0xff]  ;;  %v1374_v31 = vld [vmem:[%s5484_s5 + $0xfb0] sm:$0xff]  ;;  %1371 = vst [vmem:[%s5489_s6 + $0x7c8] sm:$0xff] %v1370_v29 }
  0xc1   : > { %1373 = vst [vmem:[%s5489_s6 + $0x7d0] sm:$0xff] %v1372_v30  ;;  %1375 = vst [vmem:[%s5489_s6 + $0x7d8] sm:$0xff] %v1374_v31  ;;  %v1376_v32 = vld [vmem:[%s5484_s5 + $0xfc0] sm:$0xff]  ;;  %v1378_v33 = vld [vmem:[%s5484_s5 + $0xfd0] sm:$0xff] }
  0xc2   : > { %v1380_v34 = vld [vmem:[%s5484_s5 + $0xfe0] sm:$0xff]  ;;  %1377 = vst [vmem:[%s5489_s6 + $0x7e0] sm:$0xff] %v1376_v32  ;;  %1379 = vst [vmem:[%s5489_s6 + $0x7e8] sm:$0xff] %v1378_v33  ;;  %v1382_v35 = vld [vmem:[%s5484_s5 + $0xff0] sm:$0xff] }
  0xc3   : > { %1381 = vst [vmem:[%s5489_s6 + $0x7f0] sm:$0xff] %v1380_v34  ;;  %v1384_v36 = vld [vmem:[%s5484_s5 + $0x1000] sm:$0xff]  ;;  %v1386_v37 = vld [vmem:[%s5484_s5 + $0x1010] sm:$0xff]  ;;  %1383 = vst [vmem:[%s5489_s6 + $0x7f8] sm:$0xff] %v1382_v35 }
  0xc4   : > { %1385 = vst [vmem:[%s5489_s6 + $0x800] sm:$0xff] %v1384_v36  ;;  %1387 = vst [vmem:[%s5489_s6 + $0x808] sm:$0xff] %v1386_v37  ;;  %v1388_v38 = vld [vmem:[%s5484_s5 + $0x1020] sm:$0xff]  ;;  %v1390_v39 = vld [vmem:[%s5484_s5 + $0x1030] sm:$0xff] }
  0xc5   : > { %v1392_v40 = vld [vmem:[%s5484_s5 + $0x1040] sm:$0xff]  ;;  %1389 = vst [vmem:[%s5489_s6 + $0x810] sm:$0xff] %v1388_v38  ;;  %1391 = vst [vmem:[%s5489_s6 + $0x818] sm:$0xff] %v1390_v39  ;;  %v1394_v41 = vld [vmem:[%s5484_s5 + $0x1050] sm:$0xff] }
  0xc6   : > { %1393 = vst [vmem:[%s5489_s6 + $0x820] sm:$0xff] %v1392_v40  ;;  %v1396_v42 = vld [vmem:[%s5484_s5 + $0x1060] sm:$0xff]  ;;  %v1398_v43 = vld [vmem:[%s5484_s5 + $0x1070] sm:$0xff]  ;;  %1395 = vst [vmem:[%s5489_s6 + $0x828] sm:$0xff] %v1394_v41 }
  0xc7   : > { %1397 = vst [vmem:[%s5489_s6 + $0x830] sm:$0xff] %v1396_v42  ;;  %1399 = vst [vmem:[%s5489_s6 + $0x838] sm:$0xff] %v1398_v43  ;;  %v1400_v44 = vld [vmem:[%s5484_s5 + $0x1080] sm:$0xff]  ;;  %v1402_v45 = vld [vmem:[%s5484_s5 + $0x1090] sm:$0xff] }
  0xc8   : > { %v1404_v46 = vld [vmem:[%s5484_s5 + $0x10a0] sm:$0xff]  ;;  %1401 = vst [vmem:[%s5489_s6 + $0x840] sm:$0xff] %v1400_v44  ;;  %1403 = vst [vmem:[%s5489_s6 + $0x848] sm:$0xff] %v1402_v45  ;;  %v1406_v47 = vld [vmem:[%s5484_s5 + $0x10b0] sm:$0xff] }
  0xc9   : > { %1405 = vst [vmem:[%s5489_s6 + $0x850] sm:$0xff] %v1404_v46  ;;  %v1408_v48 = vld [vmem:[%s5484_s5 + $0x10c0] sm:$0xff]  ;;  %v1410_v49 = vld [vmem:[%s5484_s5 + $0x10d0] sm:$0xff]  ;;  %1407 = vst [vmem:[%s5489_s6 + $0x858] sm:$0xff] %v1406_v47 }
  0xca   : > { %1409 = vst [vmem:[%s5489_s6 + $0x860] sm:$0xff] %v1408_v48  ;;  %1411 = vst [vmem:[%s5489_s6 + $0x868] sm:$0xff] %v1410_v49  ;;  %v1412_v50 = vld [vmem:[%s5484_s5 + $0x10e0] sm:$0xff]  ;;  %v1414_v51 = vld [vmem:[%s5484_s5 + $0x10f0] sm:$0xff] }
  0xcb   : > { %v1416_v52 = vld [vmem:[%s5484_s5 + $0x1100] sm:$0xff]  ;;  %1413 = vst [vmem:[%s5489_s6 + $0x870] sm:$0xff] %v1412_v50  ;;  %1415 = vst [vmem:[%s5489_s6 + $0x878] sm:$0xff] %v1414_v51  ;;  %v1418_v53 = vld [vmem:[%s5484_s5 + $0x1110] sm:$0xff] }
  0xcc   : > { %1417 = vst [vmem:[%s5489_s6 + $0x880] sm:$0xff] %v1416_v52  ;;  %v1420_v54 = vld [vmem:[%s5484_s5 + $0x1120] sm:$0xff]  ;;  %v1422_v55 = vld [vmem:[%s5484_s5 + $0x1130] sm:$0xff]  ;;  %1419 = vst [vmem:[%s5489_s6 + $0x888] sm:$0xff] %v1418_v53 }
  0xcd   : > { %1421 = vst [vmem:[%s5489_s6 + $0x890] sm:$0xff] %v1420_v54  ;;  %1423 = vst [vmem:[%s5489_s6 + $0x898] sm:$0xff] %v1422_v55  ;;  %v1424_v56 = vld [vmem:[%s5484_s5 + $0x1140] sm:$0xff]  ;;  %v1426_v57 = vld [vmem:[%s5484_s5 + $0x1150] sm:$0xff] }
  0xce   : > { %v1428_v58 = vld [vmem:[%s5484_s5 + $0x1160] sm:$0xff]  ;;  %1425 = vst [vmem:[%s5489_s6 + $0x8a0] sm:$0xff] %v1424_v56  ;;  %1427 = vst [vmem:[%s5489_s6 + $0x8a8] sm:$0xff] %v1426_v57  ;;  %v1430_v59 = vld [vmem:[%s5484_s5 + $0x1170] sm:$0xff] }
  0xcf   : > { %1429 = vst [vmem:[%s5489_s6 + $0x8b0] sm:$0xff] %v1428_v58  ;;  %v1432_v60 = vld [vmem:[%s5484_s5 + $0x1180] sm:$0xff]  ;;  %v1434_v61 = vld [vmem:[%s5484_s5 + $0x1190] sm:$0xff]  ;;  %1431 = vst [vmem:[%s5489_s6 + $0x8b8] sm:$0xff] %v1430_v59 }
  0xd0   : > { %1433 = vst [vmem:[%s5489_s6 + $0x8c0] sm:$0xff] %v1432_v60  ;;  %1435 = vst [vmem:[%s5489_s6 + $0x8c8] sm:$0xff] %v1434_v61  ;;  %v1436_v62 = vld [vmem:[%s5484_s5 + $0x11a0] sm:$0xff]  ;;  %v1438_v63 = vld [vmem:[%s5484_s5 + $0x11b0] sm:$0xff] }
  0xd1   : > { %v1440_v0 = vld [vmem:[%s5484_s5 + $0x11c0] sm:$0xff]  ;;  %1437 = vst [vmem:[%s5489_s6 + $0x8d0] sm:$0xff] %v1436_v62  ;;  %1439 = vst [vmem:[%s5489_s6 + $0x8d8] sm:$0xff] %v1438_v63  ;;  %v1442_v1 = vld [vmem:[%s5484_s5 + $0x11d0] sm:$0xff] }
  0xd2   : > { %1441 = vst [vmem:[%s5489_s6 + $0x8e0] sm:$0xff] %v1440_v0  ;;  %v1444_v2 = vld [vmem:[%s5484_s5 + $0x11e0] sm:$0xff]  ;;  %v1446_v3 = vld [vmem:[%s5484_s5 + $0x11f0] sm:$0xff]  ;;  %1443 = vst [vmem:[%s5489_s6 + $0x8e8] sm:$0xff] %v1442_v1 }
  0xd3   : > { %1445 = vst [vmem:[%s5489_s6 + $0x8f0] sm:$0xff] %v1444_v2  ;;  %1447 = vst [vmem:[%s5489_s6 + $0x8f8] sm:$0xff] %v1446_v3 }
  0xd4 PF: > { %p4229_p0 = scmp.ge.s32.totalorder %s5271_s22, 1  ;;  %p1460_p1 = scmp.lt.s32.totalorder %s5271_s22, 5 }
  0xd6   : > { %p1461_p2 = pnand %p4229_p0, %p1460_p1 }
  0xd8   : > { %1464 = sbr.rel (%p1461_p2) target bundleno = 793 (0x319), region = 85 }
  0xdd   : > { %s1467_s0 = sand.u32 1, %s5247_s16   ;;  %s1474_s23 = sand.u32 1, %s5239_s14  }
  0xde   : > { %s4608_s28 = smul.u32 288, %s1467_s0  ;;  %s1501_s7 = sand.u32 1, %s5231_s12  }
  0xdf   : > { %s4609_s11 = smul.u32 2304, %s1474_s23  ;;  %s4230_s26 = sshll.u32 %s1501_s7, 5 }
  0xe0   : > { %s4231_s27 = sshll.u32 %s5259_s19, 1  ;;  %s6076_s6 = scalar_lea.vmem [#allocation3], %s4608_s28 }
  0xe1   : > { %p1509_p3 = scmp.lt.s32.totalorder %s4231_s27, 3  ;;  %s6078_s1 = scalar_lea.vmem [#allocation4], %s4609_s11 }
  0xe2   : > { %s6080_s25 = scalar_lea.vmem [#allocation5], %s4230_s26  ;;  %p4232_p4 = scmp.ne.s32.totalorder %s5255_s18, 0 }
  0xe3   : > { %s6511_s27 = smov (!%p1509_p3, %s4231_s27), 3 }
  0xe4   : > { %s1511_s5 = scalar_lea.vmem %s6474_s2, %s6511_s27  ;;  %1518 = sbr.rel (%p4232_p4) target bundleno = 238 (0xee), region = 97 }
  0xe9   : > { %v5273_v4 = vmov 0.0  }
  0xea   : > { %1519 = vst [vmem:[#allocation2 + $0x30] sm:$0xff] %v5273_v4  ;;  %1520 = vst [vmem:[#allocation2] sm:$0xff] %v5273_v4 }
  0xeb   : > { %1521 = vst [vmem:[#allocation2 + $0x18] sm:$0xff] %v5273_v4  ;;  %1522 = vst [vmem:[#allocation2 + $0x10] sm:$0xff] %v5273_v4 }
  0xec   : > { %1523 = vst [vmem:[#allocation2 + $0x8] sm:$0xff] %v5273_v4  ;;  %1524 = vst [vmem:[#allocation2 + $0x20] sm:$0xff] %v5273_v4 }
  0xed   : > { %1525 = vst [vmem:[#allocation2 + $0x28] sm:$0xff] %v5273_v4  ;;  %1526 = vst [vmem:[#allocation2 + $0x38] sm:$0xff] %v5273_v4 }
  0xee PF: > { %v4699_v5 = vld [vmem:[%s6078_s1 + $0x74] ss:$8 sps:$4 sm:$0xff]   ;;  %v4703_v7 = vld [vmem:[%s6078_s1 + $0x70] ss:$8 sps:$4 sm:$0xff]   ;;  %v4705_v9 = vld [vmem:[%s6078_s1 + $0x64] ss:$8 sps:$4 sm:$0xff]  }
  0xef   : > { %v4701_v6 = vld [vmem:[%s6078_s1 + $0x174] ss:$8 sps:$4 sm:$0xff]   ;;  %3479 = vmatprep.subr.bf16.mxu0 %v4699_v5  ;;  %v4704_v8 = vld [vmem:[%s6078_s1 + $0x170] ss:$8 sps:$4 sm:$0xff]   ;;  %v4707_v10 = vld [vmem:[%s6078_s1 + $0x164] ss:$8 sps:$4 sm:$0xff]  }
  0xf0   : > { %3532 = vmatprep.subr.bf16.mxu1 %v4701_v6  ;;  %3480 = vmatpush1.bf16.msra.mxu0 %v4703_v7  ;;  %v4709_v11 = vld [vmem:[%s6078_s1 + $0x60] ss:$8 sps:$4 sm:$0xff]   ;;  %v4711_v13 = vld [vmem:[%s6078_s1 + $0x54] ss:$8 sps:$4 sm:$0xff]   ;;  %v4715_v15 = vld [vmem:[%s6078_s1 + $0x50] ss:$8 sps:$4 sm:$0xff]  }
  0xf1   : > { %3533 = vmatpush1.bf16.msra.mxu1 %v4704_v8  ;;  %3481 = vmatprep.subr.bf16.mxu0 %v4705_v9  ;;  %v4710_v12 = vld [vmem:[%s6078_s1 + $0x160] ss:$8 sps:$4 sm:$0xff]   ;;  %v4713_v14 = vld [vmem:[%s6078_s1 + $0x154] ss:$8 sps:$4 sm:$0xff]   ;;  %v4716_v16 = vld [vmem:[%s6078_s1 + $0x150] ss:$8 sps:$4 sm:$0xff]  }
  0xf2   : > { %3534 = vmatprep.subr.bf16.mxu1 %v4707_v10  ;;  %v4717_v17 = vld [vmem:[%s6078_s1 + $0x44] ss:$8 sps:$4 sm:$0xff]   ;;  %v4721_v19 = vld [vmem:[%s6078_s1 + $0x40] ss:$8 sps:$4 sm:$0xff]   ;;  %v4723_v21 = vld [vmem:[%s6078_s1 + $0x34] ss:$8 sps:$4 sm:$0xff]  }
  0xf3   : > { %v4719_v18 = vld [vmem:[%s6078_s1 + $0x144] ss:$8 sps:$4 sm:$0xff]   ;;  %v4722_v20 = vld [vmem:[%s6078_s1 + $0x140] ss:$8 sps:$4 sm:$0xff]   ;;  %v4725_v22 = vld [vmem:[%s6078_s1 + $0x134] ss:$8 sps:$4 sm:$0xff]  }
  0xf4   : > { %3482 = vmatpush1.bf16.msra.mxu0 %v4709_v11  ;;  %v4727_v23 = vld [vmem:[%s6078_s1 + $0x30] ss:$8 sps:$4 sm:$0xff]   ;;  %v4729_v25 = vld [vmem:[%s6078_s1 + $0x24] ss:$8 sps:$4 sm:$0xff]   ;;  %v4733_v27 = vld [vmem:[%s6078_s1 + $0x20] ss:$8 sps:$4 sm:$0xff]  }
  0xf5   : > { %3535 = vmatpush1.bf16.msra.mxu1 %v4710_v12  ;;  %3483 = vmatprep.subr.bf16.mxu0 %v4711_v13  ;;  %v4728_v24 = vld [vmem:[%s6078_s1 + $0x130] ss:$8 sps:$4 sm:$0xff]   ;;  %v4731_v26 = vld [vmem:[%s6078_s1 + $0x124] ss:$8 sps:$4 sm:$0xff]   ;;  %v4734_v28 = vld [vmem:[%s6078_s1 + $0x120] ss:$8 sps:$4 sm:$0xff]  }
  0xf6   : > { %3536 = vmatprep.subr.bf16.mxu1 %v4713_v14  ;;  %v4735_v29 = vld [vmem:[%s6078_s1 + $0x14] ss:$8 sps:$4 sm:$0xff]   ;;  %v4739_v31 = vld [vmem:[%s6078_s1 + $0x10] ss:$8 sps:$4 sm:$0xff]   ;;  %v4741_v33 = vld [vmem:[%s6078_s1 + $0x4] ss:$8 sps:$4 sm:$0xff]  }
  0xf7   : > { %v4737_v30 = vld [vmem:[%s6078_s1 + $0x114] ss:$8 sps:$4 sm:$0xff]   ;;  %v4740_v32 = vld [vmem:[%s6078_s1 + $0x110] ss:$8 sps:$4 sm:$0xff]   ;;  %v4743_v34 = vld [vmem:[%s6078_s1 + $0x104] ss:$8 sps:$4 sm:$0xff]  }
  0xf8   : > { %3484 = vmatpush1.bf16.msra.mxu0 %v4715_v15  ;;  %v4745_v35 = vld [vmem:[%s6078_s1] ss:$8 sps:$4 sm:$0xff]   ;;  %v4747_v37 = vld [vmem:[%s6078_s1 + $0xf4] ss:$8 sps:$4 sm:$0xff]   ;;  %v4751_v39 = vld [vmem:[%s6078_s1 + $0xf0] ss:$8 sps:$4 sm:$0xff]  }
  0xf9   : > { %3537 = vmatpush1.bf16.msra.mxu1 %v4716_v16  ;;  %3485 = vmatprep.subr.bf16.mxu0 %v4717_v17  ;;  %v4746_v36 = vld [vmem:[%s6078_s1 + $0x100] ss:$8 sps:$4 sm:$0xff]   ;;  %v4749_v38 = vld [vmem:[%s6078_s1 + $0x1f4] ss:$8 sps:$4 sm:$0xff]   ;;  %v4752_v40 = vld [vmem:[%s6078_s1 + $0x1f0] ss:$8 sps:$4 sm:$0xff]  }
  0xfa   : > { %3538 = vmatprep.subr.bf16.mxu1 %v4719_v18  ;;  %v4753_v41 = vld [vmem:[%s6078_s1 + $0xe4] ss:$8 sps:$4 sm:$0xff]   ;;  %v4757_v43 = vld [vmem:[%s6078_s1 + $0xe0] ss:$8 sps:$4 sm:$0xff]   ;;  %v4759_v45 = vld [vmem:[%s6078_s1 + $0xd4] ss:$8 sps:$4 sm:$0xff]  }
  0xfb   : > { %v4755_v42 = vld [vmem:[%s6078_s1 + $0x1e4] ss:$8 sps:$4 sm:$0xff]   ;;  %v4758_v44 = vld [vmem:[%s6078_s1 + $0x1e0] ss:$8 sps:$4 sm:$0xff]   ;;  %v4761_v46 = vld [vmem:[%s6078_s1 + $0x1d4] ss:$8 sps:$4 sm:$0xff]  }
  0xfc   : > { %3486 = vmatpush1.bf16.msra.mxu0 %v4721_v19  ;;  %v4763_v47 = vld [vmem:[%s6078_s1 + $0xd0] ss:$8 sps:$4 sm:$0xff]   ;;  %v4765_v49 = vld [vmem:[%s6078_s1 + $0xc4] ss:$8 sps:$4 sm:$0xff]   ;;  %v4769_v51 = vld [vmem:[%s6078_s1 + $0xc0] ss:$8 sps:$4 sm:$0xff]  }
  0xfd   : > { %3539 = vmatpush1.bf16.msra.mxu1 %v4722_v20  ;;  %3487 = vmatprep.subr.bf16.mxu0 %v4723_v21  ;;  %v4764_v48 = vld [vmem:[%s6078_s1 + $0x1d0] ss:$8 sps:$4 sm:$0xff]   ;;  %v4767_v50 = vld [vmem:[%s6078_s1 + $0x1c4] ss:$8 sps:$4 sm:$0xff]   ;;  %v4770_v52 = vld [vmem:[%s6078_s1 + $0x1c0] ss:$8 sps:$4 sm:$0xff]  }
  0xfe   : > { %3540 = vmatprep.subr.bf16.mxu1 %v4725_v22  ;;  %v4771_v53 = vld [vmem:[%s6078_s1 + $0xb4] ss:$8 sps:$4 sm:$0xff]   ;;  %v4797_v54 = vld [vmem:[%s6076_s6 + $0x4] ss:$72 sps:$4 sm:$0xff]   ;;  %v4775_v57 = vld [vmem:[%s6078_s1 + $0xb0] ss:$8 sps:$4 sm:$0xff]  }
  0xff   : > { %v4773_v55 = vld [vmem:[%s6078_s1 + $0x1b4] ss:$8 sps:$4 sm:$0xff]   ;;  %3511 = vmatprep.mubr.bf16.mxu0 %v4797_v54  ;;  %v4776_v58 = vld [vmem:[%s6078_s1 + $0x1b0] ss:$8 sps:$4 sm:$0xff]   ;;  %v4777_v59 = vld [vmem:[%s6078_s1 + $0xa4] ss:$8 sps:$4 sm:$0xff]  }
 0x100   : > { %3488 = vmatpush1.bf16.msra.mxu0 %v4727_v23  ;;  %v4800_v56 = vld [vmem:[%s6076_s6 + $0xc] ss:$72 sps:$4 sm:$0xff]   ;;  %v4781_v61 = vld [vmem:[%s6078_s1 + $0xa0] ss:$8 sps:$4 sm:$0xff]   ;;  %v4787_v1 = vld [vmem:[%s6078_s1 + $0x90] ss:$8 sps:$4 sm:$0xff]  }
 0x101   : > { %3541 = vmatpush1.bf16.msra.mxu1 %v4728_v24  ;;  %3489 = vmatprep.subr.bf16.mxu0 %v4729_v25  ;;  %v4779_v60 = vld [vmem:[%s6078_s1 + $0x1a4] ss:$8 sps:$4 sm:$0xff]   ;;  %v4782_v62 = vld [vmem:[%s6078_s1 + $0x1a0] ss:$8 sps:$4 sm:$0xff]   ;;  %v4783_v63 = vld [vmem:[%s6078_s1 + $0x94] ss:$8 sps:$4 sm:$0xff]  }
 0x102   : > { %3542 = vmatprep.subr.bf16.mxu1 %v4731_v26  ;;  %3564 = vmatprep.mubr.bf16.mxu1 %v4800_v56  ;;  %v4785_v0 = vld [vmem:[%s6078_s1 + $0x194] ss:$8 sps:$4 sm:$0xff]   ;;  %v4788_v2 = vld [vmem:[%s6078_s1 + $0x190] ss:$8 sps:$4 sm:$0xff]   ;;  %v4789_v3 = vld [vmem:[%s6078_s1 + $0x84] ss:$8 sps:$4 sm:$0xff]  }
 0x103   : > { %v4791_v4 = vld [vmem:[%s6078_s1 + $0x184] ss:$8 sps:$4 sm:$0xff]   ;;  %v4793_v5 = vld [vmem:[%s6078_s1 + $0x80] ss:$8 sps:$4 sm:$0xff]   ;;  %v4803_v7 = vld [vmem:[%s6078_s1 + $0x274] ss:$8 sps:$4 sm:$0xff]  }
 0x104   : > { %3490 = vmatpush1.bf16.msra.mxu0 %v4733_v27  ;;  %v4794_v6 = vld [vmem:[%s6078_s1 + $0x180] ss:$8 sps:$4 sm:$0xff]   ;;  %v4806_v8 = vld [vmem:[%s6078_s1 + $0x374] ss:$8 sps:$4 sm:$0xff]   ;;  %v4801_v11 = vld [vmem:[%s6078_s1 + $0x270] ss:$8 sps:$4 sm:$0xff]  }
 0x105   : > { %3543 = vmatpush1.bf16.msra.mxu1 %v4734_v28  ;;  %3491 = vmatprep.subr.bf16.mxu0 %v4735_v29  ;;  %v4795_v9 = vld [vmem:[%s6076_s6] ss:$72 sps:$4 sm:$0xff]   ;;  %v4804_v12 = vld [vmem:[%s6078_s1 + $0x370] ss:$8 sps:$4 sm:$0xff]   ;;  %v4809_v13 = vld [vmem:[%s6078_s1 + $0x264] ss:$8 sps:$4 sm:$0xff]  }
 0x106   : > { %3544 = vmatprep.subr.bf16.mxu1 %v4737_v30  ;;  %v4798_v10 = vld [vmem:[%s6076_s6 + $0x8] ss:$72 sps:$4 sm:$0xff]   ;;  %v4812_v14 = vld [vmem:[%s6078_s1 + $0x364] ss:$8 sps:$4 sm:$0xff]   ;;  %v4815_v17 = vld [vmem:[%s6078_s1 + $0x254] ss:$8 sps:$4 sm:$0xff]  }
 0x107   : > { %v4807_v15 = vld [vmem:[%s6078_s1 + $0x260] ss:$8 sps:$4 sm:$0xff]   ;;  %v4818_v18 = vld [vmem:[%s6078_s1 + $0x354] ss:$8 sps:$4 sm:$0xff]   ;;  %v4813_v19 = vld [vmem:[%s6078_s1 + $0x250] ss:$8 sps:$4 sm:$0xff]  }
 0x108   : > { %3492 = vmatpush1.bf16.msra.mxu0 %v4739_v31  ;;  %v4810_v16 = vld [vmem:[%s6078_s1 + $0x360] ss:$8 sps:$4 sm:$0xff]   ;;  %v4816_v20 = vld [vmem:[%s6078_s1 + $0x350] ss:$8 sps:$4 sm:$0xff]   ;;  %v4821_v21 = vld [vmem:[%s6078_s1 + $0x244] ss:$8 sps:$4 sm:$0xff]  }
 0x109   : > { %3545 = vmatpush1.bf16.msra.mxu1 %v4740_v32  ;;  %3493 = vmatprep.subr.bf16.mxu0 %v4741_v33  ;;  %v4824_v22 = vld [vmem:[%s6078_s1 + $0x344] ss:$8 sps:$4 sm:$0xff]   ;;  %v4819_v23 = vld [vmem:[%s6078_s1 + $0x240] ss:$8 sps:$4 sm:$0xff]   ;;  %v4827_v25 = vld [vmem:[%s6078_s1 + $0x234] ss:$8 sps:$4 sm:$0xff]  }
 0x10a   : > { %3546 = vmatprep.subr.bf16.mxu1 %v4743_v34  ;;  %v4822_v24 = vld [vmem:[%s6078_s1 + $0x340] ss:$8 sps:$4 sm:$0xff]   ;;  %v4830_v26 = vld [vmem:[%s6078_s1 + $0x334] ss:$8 sps:$4 sm:$0xff]   ;;  %v4825_v27 = vld [vmem:[%s6078_s1 + $0x230] ss:$8 sps:$4 sm:$0xff]  }
 0x10b   : > { %v4828_v28 = vld [vmem:[%s6078_s1 + $0x330] ss:$8 sps:$4 sm:$0xff]   ;;  %v4833_v29 = vld [vmem:[%s6078_s1 + $0x224] ss:$8 sps:$4 sm:$0xff]   ;;  %v4879_v31 = vld [vmem:[%s6076_s6 + $0x94] ss:$72 sps:$4 sm:$0xff]  }
 0x10c   : > { %3494 = vmatpush1.bf16.msra.mxu0 %v4745_v35  ;;  %v4836_v30 = vld [vmem:[%s6078_s1 + $0x324] ss:$8 sps:$4 sm:$0xff]   ;;  %v4883_v33 = vld [vmem:[%s6076_s6 + $0x90] ss:$72 sps:$4 sm:$0xff]   ;;  %v4831_v35 = vld [vmem:[%s6078_s1 + $0x220] ss:$8 sps:$4 sm:$0xff]  }
 0x10d   : > { %3547 = vmatpush1.bf16.msra.mxu1 %v4746_v36  ;;  %3495 = vmatprep.subr.bf16.mxu0 %v4747_v37  ;;  %v4881_v32 = vld [vmem:[%s6076_s6 + $0x9c] ss:$72 sps:$4 sm:$0xff]   ;;  %v4884_v34 = vld [vmem:[%s6076_s6 + $0x98] ss:$72 sps:$4 sm:$0xff]   ;;  %p4557_p5 = scmp.ne.s32.totalorder %s5255_s18, 1 }
 0x10e   : > { %3548 = vmatprep.subr.bf16.mxu1 %v4749_v38  ;;  %v4834_v36 = vld [vmem:[%s6078_s1 + $0x320] ss:$8 sps:$4 sm:$0xff]   ;;  %v4839_v37 = vld [vmem:[%s6078_s1 + $0x214] ss:$8 sps:$4 sm:$0xff]  }
 0x10f   : > { %v4842_v38 = vld [vmem:[%s6078_s1 + $0x314] ss:$8 sps:$4 sm:$0xff]   ;;  %v4858_v54 = vld [vmem:[%s6078_s1 + $0x3e0] ss:$8 sps:$4 sm:$0xff]  }
 0x110   : > { %3496 = vmatpush2.bf16.msra.mxu0 %v4751_v39  ;;  %v4837_v39 = vld [vmem:[%s6078_s1 + $0x210] ss:$8 sps:$4 sm:$0xff]   ;;  %v4866_v56 = vld [vmem:[%s6078_s1 + $0x3d4] ss:$8 sps:$4 sm:$0xff]  }
 0x111   : > { %3549 = vmatpush2.bf16.msra.mxu1 %v4752_v40  ;;  %3497 = vmatprep.subr.bf16.mxu0 %v4753_v41  ;;  %v4840_v40 = vld [vmem:[%s6078_s1 + $0x310] ss:$8 sps:$4 sm:$0xff]   ;;  %v4845_v41 = vld [vmem:[%s6078_s1 + $0x204] ss:$8 sps:$4 sm:$0xff]  }
 0x112   : > { %3550 = vmatprep.subr.bf16.mxu1 %v4755_v42  ;;  %v4848_v42 = vld [vmem:[%s6078_s1 + $0x304] ss:$8 sps:$4 sm:$0xff]  }
 0x114   : > { %3498 = vmatpush2.bf16.msra.mxu0 %v4757_v43  ;;  %v4843_v43 = vld [vmem:[%s6078_s1 + $0x200] ss:$8 sps:$4 sm:$0xff]  }
 0x115   : > { %3551 = vmatpush2.bf16.msra.mxu1 %v4758_v44  ;;  %3499 = vmatprep.subr.bf16.mxu0 %v4759_v45  ;;  %v4846_v44 = vld [vmem:[%s6078_s1 + $0x300] ss:$8 sps:$4 sm:$0xff]   ;;  %v4851_v45 = vld [vmem:[%s6078_s1 + $0x2f4] ss:$8 sps:$4 sm:$0xff]  }
 0x116   : > { %3552 = vmatprep.subr.bf16.mxu1 %v4761_v46  ;;  %v4905_v46 = vld [vmem:[%s6076_s6 + $0x14] ss:$72 sps:$4 sm:$0xff]  }
 0x118   : > { %3500 = vmatpush2.bf16.msra.mxu0 %v4763_v47  ;;  %v4854_v47 = vld [vmem:[%s6078_s1 + $0x3f4] ss:$8 sps:$4 sm:$0xff]  }
 0x119   : > { %3553 = vmatpush2.bf16.msra.mxu1 %v4764_v48  ;;  %3501 = vmatprep.subr.bf16.mxu0 %v4765_v49  ;;  %v4908_v48 = vld [vmem:[%s6076_s6 + $0x1c] ss:$72 sps:$4 sm:$0xff]   ;;  %v4849_v49 = vld [vmem:[%s6078_s1 + $0x2f0] ss:$8 sps:$4 sm:$0xff]  }
 0x11a   : > { %3554 = vmatprep.subr.bf16.mxu1 %v4767_v50  ;;  %v4852_v50 = vld [vmem:[%s6078_s1 + $0x3f0] ss:$8 sps:$4 sm:$0xff]  }
 0x11c   : > { %3502 = vmatpush2.bf16.msra.mxu0 %v4769_v51  ;;  %v4857_v51 = vld [vmem:[%s6078_s1 + $0x2e4] ss:$8 sps:$4 sm:$0xff]  }
 0x11d   : > { %3555 = vmatpush2.bf16.msra.mxu1 %v4770_v52  ;;  %3503 = vmatprep.subr.bf16.mxu0 %v4771_v53  ;;  %v4860_v52 = vld [vmem:[%s6078_s1 + $0x3e4] ss:$8 sps:$4 sm:$0xff]   ;;  %v4855_v53 = vld [vmem:[%s6078_s1 + $0x2e0] ss:$8 sps:$4 sm:$0xff]  }
 0x11e   : > { %3556 = vmatprep.subr.bf16.mxu1 %v4773_v55  ;;  %v4863_v55 = vld [vmem:[%s6078_s1 + $0x2d4] ss:$8 sps:$4 sm:$0xff]  }
 0x120   : > { %3504 = vmatpush2.bf16.msra.mxu0 %v4775_v57  ;;  %v4861_v57 = vld [vmem:[%s6078_s1 + $0x2d0] ss:$8 sps:$4 sm:$0xff]  }
 0x121   : > { %3557 = vmatpush2.bf16.msra.mxu1 %v4776_v58  ;;  %3505 = vmatprep.subr.bf16.mxu0 %v4777_v59  ;;  %v4864_v58 = vld [vmem:[%s6078_s1 + $0x3d0] ss:$8 sps:$4 sm:$0xff]   ;;  %v4869_v59 = vld [vmem:[%s6078_s1 + $0x2c4] ss:$8 sps:$4 sm:$0xff]  }
 0x122   : > { %3558 = vmatprep.subr.bf16.mxu1 %v4779_v60  ;;  %v4872_v60 = vld [vmem:[%s6078_s1 + $0x3c4] ss:$8 sps:$4 sm:$0xff]  }
 0x124   : > { %3506 = vmatpush2.bf16.msra.mxu0 %v4781_v61  ;;  %v4867_v61 = vld [vmem:[%s6078_s1 + $0x2c0] ss:$8 sps:$4 sm:$0xff]  }
 0x125   : > { %3559 = vmatpush2.bf16.msra.mxu1 %v4782_v62  ;;  %3507 = vmatprep.subr.bf16.mxu0 %v4783_v63  ;;  %v4870_v62 = vld [vmem:[%s6078_s1 + $0x3c0] ss:$8 sps:$4 sm:$0xff]   ;;  %v4875_v63 = vld [vmem:[%s6078_s1 + $0x2b4] ss:$8 sps:$4 sm:$0xff]  }
 0x126   : > { %3560 = vmatprep.subr.bf16.mxu1 %v4785_v0  ;;  %v4878_v0 = vld [vmem:[%s6078_s1 + $0x3b4] ss:$8 sps:$4 sm:$0xff]  }
 0x128   : > { %3508 = vmatpush2.bf16.msra.mxu0 %v4787_v1  ;;  %v4873_v1 = vld [vmem:[%s6078_s1 + $0x2b0] ss:$8 sps:$4 sm:$0xff]  }
 0x129   : > { %3561 = vmatpush2.bf16.msra.mxu1 %v4788_v2  ;;  %3509 = vmatprep.subr.bf16.mxu0 %v4789_v3  ;;  %v4876_v2 = vld [vmem:[%s6078_s1 + $0x3b0] ss:$8 sps:$4 sm:$0xff]   ;;  %v4887_v3 = vld [vmem:[%s6078_s1 + $0x2a4] ss:$8 sps:$4 sm:$0xff]  }
 0x12a   : > { %3562 = vmatprep.subr.bf16.mxu1 %v4791_v4  ;;  %v4890_v4 = vld [vmem:[%s6078_s1 + $0x3a4] ss:$8 sps:$4 sm:$0xff]  }
 0x12c   : > { %3510 = vmatpush2.bf16.msra.mxu0 %v4793_v5  ;;  %v4885_v5 = vld [vmem:[%s6078_s1 + $0x2a0] ss:$8 sps:$4 sm:$0xff]  }
 0x12d   : > { %3563 = vmatpush2.bf16.msra.mxu1 %v4794_v6  ;;  %3585 = vmatprep.subr.bf16.mxu0 %v4803_v7  ;;  %v4888_v6 = vld [vmem:[%s6078_s1 + $0x3a0] ss:$8 sps:$4 sm:$0xff]   ;;  %v4893_v7 = vld [vmem:[%s6078_s1 + $0x294] ss:$8 sps:$4 sm:$0xff]  }
 0x12e   : > { %3638 = vmatprep.subr.bf16.mxu1 %v4806_v8  ;;  %v4896_v8 = vld [vmem:[%s6078_s1 + $0x394] ss:$8 sps:$4 sm:$0xff]  }
 0x12f   : > { %3512 = vmatmul.mubr.bf16.vlgmr.msra.gmra.mxu0 %v4795_v9  ;;  %v4891_v9 = vld [vmem:[%s6078_s1 + $0x290] ss:$8 sps:$4 sm:$0xff]  }
 0x130   : > { %3565 = vmatmul.mubr.bf16.vlgmr.msra.gmra.mxu1 %v4798_v10  ;;  %3586 = vmatpush1.bf16.msra.mxu0 %v4801_v11  ;;  %v4894_v10 = vld [vmem:[%s6078_s1 + $0x390] ss:$8 sps:$4 sm:$0xff]   ;;  %v4899_v11 = vld [vmem:[%s6078_s1 + $0x284] ss:$8 sps:$4 sm:$0xff]  }
 0x131   : > { %3639 = vmatpush1.bf16.msra.mxu1 %v4804_v12  ;;  %3587 = vmatprep.subr.bf16.mxu0 %v4809_v13  ;;  %v4902_v12 = vld [vmem:[%s6078_s1 + $0x384] ss:$8 sps:$4 sm:$0xff]   ;;  %v4897_v13 = vld [vmem:[%s6078_s1 + $0x280] ss:$8 sps:$4 sm:$0xff]  }
 0x132   : > { %3640 = vmatprep.subr.bf16.mxu1 %v4812_v14  ;;  %3521 = vmatprep.mubr.bf16.mxu0 %v4879_v31  ;;  %v4900_v14 = vld [vmem:[%s6078_s1 + $0x380] ss:$8 sps:$4 sm:$0xff]   ;;  %v4927_v31 = vld [vmem:[%s6078_s1 + $0x550] ss:$8 sps:$4 sm:$0xff]  }
 0x133   : > { %3574 = vmatprep.mubr.bf16.mxu1 %v4881_v32  ;;  %v4932_v32 = vld [vmem:[%s6076_s6 + $0xa8] ss:$72 sps:$4 sm:$0xff]  }
 0x134   : > { %3588 = vmatpush1.bf16.msra.mxu0 %v4807_v15  ;;  %v4911_v15 = vld [vmem:[%s6078_s1 + $0x474] ss:$8 sps:$4 sm:$0xff]  }
 0x135   : > { %3641 = vmatpush1.bf16.msra.mxu1 %v4810_v16  ;;  %3589 = vmatprep.subr.bf16.mxu0 %v4815_v17  ;;  %v4914_v16 = vld [vmem:[%s6078_s1 + $0x574] ss:$8 sps:$4 sm:$0xff]   ;;  %v4903_v17 = vld [vmem:[%s6076_s6 + $0x10] ss:$72 sps:$4 sm:$0xff]  }
 0x136   : > { %3642 = vmatprep.subr.bf16.mxu1 %v4818_v18  ;;  %v4906_v18 = vld [vmem:[%s6076_s6 + $0x18] ss:$72 sps:$4 sm:$0xff]  }
 0x137   : > { %3522 = vmatmul.mubr.bf16.gmra.mxu0 %v4883_v33  ;;  %v4935_v33 = vld [vmem:[%s6078_s1 + $0x444] ss:$8 sps:$4 sm:$0xff]  }
 0x138   : > { %3590 = vmatpush1.bf16.msra.mxu0 %v4813_v19  ;;  %3575 = vmatmul.mubr.bf16.gmra.mxu1 %v4884_v34  ;;  %v4909_v19 = vld [vmem:[%s6078_s1 + $0x470] ss:$8 sps:$4 sm:$0xff]   ;;  %v4938_v34 = vld [vmem:[%s6078_s1 + $0x544] ss:$8 sps:$4 sm:$0xff]  }
 0x139   : > { %3643 = vmatpush1.bf16.msra.mxu1 %v4816_v20  ;;  %3591 = vmatprep.subr.bf16.mxu0 %v4821_v21  ;;  %v4912_v20 = vld [vmem:[%s6078_s1 + $0x570] ss:$8 sps:$4 sm:$0xff]   ;;  %v4917_v21 = vld [vmem:[%s6078_s1 + $0x464] ss:$8 sps:$4 sm:$0xff]  }
 0x13a   : > { %3644 = vmatprep.subr.bf16.mxu1 %v4824_v22  ;;  %3617 = vmatprep.mubr.bf16.mxu0 %v4905_v46  ;;  %v4920_v22 = vld [vmem:[%s6078_s1 + $0x564] ss:$8 sps:$4 sm:$0xff]   ;;  %v4948_v46 = vld [vmem:[%s6078_s1 + $0x520] ss:$8 sps:$4 sm:$0xff]  }
 0x13b   : > { %3670 = vmatprep.mubr.bf16.mxu1 %v4908_v48  ;;  %v4956_v48 = vld [vmem:[%s6078_s1 + $0x514] ss:$8 sps:$4 sm:$0xff]  }
 0x13c   : > { %3592 = vmatpush1.bf16.msra.mxu0 %v4819_v23  ;;  %v4921_v23 = vld [vmem:[%s6076_s6 + $0xa4] ss:$72 sps:$4 sm:$0xff]  }
 0x13d   : > { %3645 = vmatpush1.bf16.msra.mxu1 %v4822_v24  ;;  %3593 = vmatprep.subr.bf16.mxu0 %v4827_v25  ;;  %v4930_v24 = vld [vmem:[%s6076_s6 + $0xac] ss:$72 sps:$4 sm:$0xff]   ;;  %v4915_v25 = vld [vmem:[%s6078_s1 + $0x460] ss:$8 sps:$4 sm:$0xff]  }
 0x13e   : > { %3646 = vmatprep.subr.bf16.mxu1 %v4830_v26  ;;  %v4918_v26 = vld [vmem:[%s6078_s1 + $0x560] ss:$8 sps:$4 sm:$0xff]  }
 0x140   : > { %3594 = vmatpush1.bf16.msra.mxu0 %v4825_v27  ;;  %v4926_v27 = vld [vmem:[%s6078_s1 + $0x454] ss:$8 sps:$4 sm:$0xff]  }
 0x141   : > { %3647 = vmatpush1.bf16.msra.mxu1 %v4828_v28  ;;  %3595 = vmatprep.subr.bf16.mxu0 %v4833_v29  ;;  %v4929_v28 = vld [vmem:[%s6078_s1 + $0x554] ss:$8 sps:$4 sm:$0xff]   ;;  %v4923_v29 = vld [vmem:[%s6076_s6 + $0xa0] ss:$72 sps:$4 sm:$0xff]  }
 0x142   : > { %3648 = vmatprep.subr.bf16.mxu1 %v4836_v30  ;;  %v4924_v30 = vld [vmem:[%s6078_s1 + $0x450] ss:$8 sps:$4 sm:$0xff]  }
 0x144   : > { %3596 = vmatpush1.bf16.msra.mxu0 %v4831_v35  ;;  %v4933_v35 = vld [vmem:[%s6078_s1 + $0x440] ss:$8 sps:$4 sm:$0xff]  }
 0x145   : > { %3649 = vmatpush1.bf16.msra.mxu1 %v4834_v36  ;;  %3597 = vmatprep.subr.bf16.mxu0 %v4839_v37  ;;  %v4936_v36 = vld [vmem:[%s6078_s1 + $0x540] ss:$8 sps:$4 sm:$0xff]   ;;  %v4941_v37 = vld [vmem:[%s6078_s1 + $0x434] ss:$8 sps:$4 sm:$0xff]  }
 0x146   : > { %3650 = vmatprep.subr.bf16.mxu1 %v4842_v38  ;;  %v5013_v38 = vld [vmem:[%s6076_s6 + $0x24] ss:$72 sps:$4 sm:$0xff]  }
 0x148   : > { %3598 = vmatpush1.bf16.msra.mxu0 %v4837_v39  ;;  %v4944_v39 = vld [vmem:[%s6078_s1 + $0x534] ss:$8 sps:$4 sm:$0xff]  }
 0x149   : > { %3651 = vmatpush1.bf16.msra.mxu1 %v4840_v40  ;;  %3599 = vmatprep.subr.bf16.mxu0 %v4845_v41  ;;  %v5016_v40 = vld [vmem:[%s6076_s6 + $0x2c] ss:$72 sps:$4 sm:$0xff]   ;;  %v4939_v41 = vld [vmem:[%s6078_s1 + $0x430] ss:$8 sps:$4 sm:$0xff]  }
 0x14a   : > { %3652 = vmatprep.subr.bf16.mxu1 %v4848_v42  ;;  %v4942_v42 = vld [vmem:[%s6078_s1 + $0x530] ss:$8 sps:$4 sm:$0xff]  }
 0x14c   : > { %3600 = vmatpush1.bf16.msra.mxu0 %v4843_v43  ;;  %v4947_v43 = vld [vmem:[%s6078_s1 + $0x424] ss:$8 sps:$4 sm:$0xff]  }
 0x14d   : > { %3653 = vmatpush1.bf16.msra.mxu1 %v4846_v44  ;;  %3601 = vmatprep.subr.bf16.mxu0 %v4851_v45  ;;  %v4950_v44 = vld [vmem:[%s6078_s1 + $0x524] ss:$8 sps:$4 sm:$0xff]   ;;  %v4945_v45 = vld [vmem:[%s6078_s1 + $0x420] ss:$8 sps:$4 sm:$0xff]  }
 0x14e   : > { %3654 = vmatprep.subr.bf16.mxu1 %v4854_v47  ;;  %v4953_v47 = vld [vmem:[%s6078_s1 + $0x414] ss:$8 sps:$4 sm:$0xff]  }
 0x150   : > { %3602 = vmatpush2.bf16.msra.mxu0 %v4849_v49  ;;  %v4951_v49 = vld [vmem:[%s6078_s1 + $0x410] ss:$8 sps:$4 sm:$0xff]  }
 0x151   : > { %3655 = vmatpush2.bf16.msra.mxu1 %v4852_v50  ;;  %3603 = vmatprep.subr.bf16.mxu0 %v4857_v51  ;;  %v4954_v50 = vld [vmem:[%s6078_s1 + $0x510] ss:$8 sps:$4 sm:$0xff]   ;;  %v4959_v51 = vld [vmem:[%s6078_s1 + $0x404] ss:$8 sps:$4 sm:$0xff]  }
 0x152   : > { %3656 = vmatprep.subr.bf16.mxu1 %v4860_v52  ;;  %v4962_v52 = vld [vmem:[%s6078_s1 + $0x504] ss:$8 sps:$4 sm:$0xff]  }
 0x154   : > { %3604 = vmatpush2.bf16.msra.mxu0 %v4855_v53  ;;  %v4957_v53 = vld [vmem:[%s6078_s1 + $0x400] ss:$8 sps:$4 sm:$0xff]  }
 0x155   : > { %3657 = vmatpush2.bf16.msra.mxu1 %v4858_v54  ;;  %3605 = vmatprep.subr.bf16.mxu0 %v4863_v55  ;;  %v4960_v54 = vld [vmem:[%s6078_s1 + $0x500] ss:$8 sps:$4 sm:$0xff]   ;;  %v4965_v55 = vld [vmem:[%s6078_s1 + $0x4f4] ss:$8 sps:$4 sm:$0xff]  }
 0x156   : > { %3658 = vmatprep.subr.bf16.mxu1 %v4866_v56  ;;  %v4968_v56 = vld [vmem:[%s6078_s1 + $0x5f4] ss:$8 sps:$4 sm:$0xff]  }
 0x158   : > { %3606 = vmatpush2.bf16.msra.mxu0 %v4861_v57  ;;  %v4963_v57 = vld [vmem:[%s6078_s1 + $0x4f0] ss:$8 sps:$4 sm:$0xff]  }
 0x159   : > { %3659 = vmatpush2.bf16.msra.mxu1 %v4864_v58  ;;  %3607 = vmatprep.subr.bf16.mxu0 %v4869_v59  ;;  %v4966_v58 = vld [vmem:[%s6078_s1 + $0x5f0] ss:$8 sps:$4 sm:$0xff]   ;;  %v4971_v59 = vld [vmem:[%s6078_s1 + $0x4e4] ss:$8 sps:$4 sm:$0xff]  }
 0x15a   : > { %3660 = vmatprep.subr.bf16.mxu1 %v4872_v60  ;;  %v4974_v60 = vld [vmem:[%s6078_s1 + $0x5e4] ss:$8 sps:$4 sm:$0xff]  }
 0x15c   : > { %3608 = vmatpush2.bf16.msra.mxu0 %v4867_v61  ;;  %v4969_v61 = vld [vmem:[%s6078_s1 + $0x4e0] ss:$8 sps:$4 sm:$0xff]  }
 0x15d   : > { %3661 = vmatpush2.bf16.msra.mxu1 %v4870_v62  ;;  %3609 = vmatprep.subr.bf16.mxu0 %v4875_v63  ;;  %v4972_v62 = vld [vmem:[%s6078_s1 + $0x5e0] ss:$8 sps:$4 sm:$0xff]   ;;  %v4977_v63 = vld [vmem:[%s6078_s1 + $0x4d4] ss:$8 sps:$4 sm:$0xff]  }
 0x15e   : > { %3662 = vmatprep.subr.bf16.mxu1 %v4878_v0  ;;  %v4980_v0 = vld [vmem:[%s6078_s1 + $0x5d4] ss:$8 sps:$4 sm:$0xff]  }
 0x160   : > { %3610 = vmatpush2.bf16.msra.mxu0 %v4873_v1  ;;  %v4975_v1 = vld [vmem:[%s6078_s1 + $0x4d0] ss:$8 sps:$4 sm:$0xff]  }
 0x161   : > { %3663 = vmatpush2.bf16.msra.mxu1 %v4876_v2  ;;  %3611 = vmatprep.subr.bf16.mxu0 %v4887_v3  ;;  %v4978_v2 = vld [vmem:[%s6078_s1 + $0x5d0] ss:$8 sps:$4 sm:$0xff]   ;;  %v4983_v3 = vld [vmem:[%s6078_s1 + $0x4c4] ss:$8 sps:$4 sm:$0xff]  }
 0x162   : > { %3664 = vmatprep.subr.bf16.mxu1 %v4890_v4  ;;  %v4986_v4 = vld [vmem:[%s6078_s1 + $0x5c4] ss:$8 sps:$4 sm:$0xff]  }
 0x164   : > { %3612 = vmatpush2.bf16.msra.mxu0 %v4885_v5  ;;  %v4981_v5 = vld [vmem:[%s6078_s1 + $0x4c0] ss:$8 sps:$4 sm:$0xff]  }
 0x165   : > { %3665 = vmatpush2.bf16.msra.mxu1 %v4888_v6  ;;  %3613 = vmatprep.subr.bf16.mxu0 %v4893_v7  ;;  %v4984_v6 = vld [vmem:[%s6078_s1 + $0x5c0] ss:$8 sps:$4 sm:$0xff]   ;;  %v4989_v7 = vld [vmem:[%s6078_s1 + $0x4b4] ss:$8 sps:$4 sm:$0xff]  }
 0x166   : > { %3666 = vmatprep.subr.bf16.mxu1 %v4896_v8  ;;  %v4992_v8 = vld [vmem:[%s6078_s1 + $0x5b4] ss:$8 sps:$4 sm:$0xff]  }
 0x168   : > { %3614 = vmatpush2.bf16.msra.mxu0 %v4891_v9  ;;  %v4987_v9 = vld [vmem:[%s6078_s1 + $0x4b0] ss:$8 sps:$4 sm:$0xff]  }
 0x169   : > { %3667 = vmatpush2.bf16.msra.mxu1 %v4894_v10  ;;  %3615 = vmatprep.subr.bf16.mxu0 %v4899_v11  ;;  %v4990_v10 = vld [vmem:[%s6078_s1 + $0x5b0] ss:$8 sps:$4 sm:$0xff]   ;;  %v4995_v11 = vld [vmem:[%s6078_s1 + $0x4a4] ss:$8 sps:$4 sm:$0xff]  }
 0x16a   : > { %3668 = vmatprep.subr.bf16.mxu1 %v4902_v12  ;;  %v4998_v12 = vld [vmem:[%s6078_s1 + $0x5a4] ss:$8 sps:$4 sm:$0xff]  }
 0x16c   : > { %3616 = vmatpush2.bf16.msra.mxu0 %v4897_v13  ;;  %v4993_v13 = vld [vmem:[%s6078_s1 + $0x4a0] ss:$8 sps:$4 sm:$0xff]  }
 0x16d   : > { %3669 = vmatpush2.bf16.msra.mxu1 %v4900_v14  ;;  %3691 = vmatprep.subr.bf16.mxu0 %v4911_v15  ;;  %v4996_v14 = vld [vmem:[%s6078_s1 + $0x5a0] ss:$8 sps:$4 sm:$0xff]   ;;  %v5001_v15 = vld [vmem:[%s6078_s1 + $0x494] ss:$8 sps:$4 sm:$0xff]  }
 0x16e   : > { %3744 = vmatprep.subr.bf16.mxu1 %v4914_v16  ;;  %v5004_v16 = vld [vmem:[%s6078_s1 + $0x594] ss:$8 sps:$4 sm:$0xff]  }
 0x16f   : > { %3618 = vmatmul.mubr.bf16.vlgmr.msra.gmra.mxu0 %v4903_v17  ;;  %v4999_v17 = vld [vmem:[%s6078_s1 + $0x490] ss:$8 sps:$4 sm:$0xff]  }
 0x170   : > { %3671 = vmatmul.mubr.bf16.vlgmr.msra.gmra.mxu1 %v4906_v18  ;;  %3692 = vmatpush1.bf16.msra.mxu0 %v4909_v19  ;;  %v5002_v18 = vld [vmem:[%s6078_s1 + $0x590] ss:$8 sps:$4 sm:$0xff]   ;;  %v5007_v19 = vld [vmem:[%s6078_s1 + $0x484] ss:$8 sps:$4 sm:$0xff]  }
 0x171   : > { %3745 = vmatpush1.bf16.msra.mxu1 %v4912_v20  ;;  %3693 = vmatprep.subr.bf16.mxu0 %v4917_v21  ;;  %v5010_v20 = vld [vmem:[%s6078_s1 + $0x584] ss:$8 sps:$4 sm:$0xff]   ;;  %v5005_v21 = vld [vmem:[%s6078_s1 + $0x480] ss:$8 sps:$4 sm:$0xff]  }
 0x172   : > { %3746 = vmatprep.subr.bf16.mxu1 %v4920_v22  ;;  %3627 = vmatprep.mubr.bf16.mxu0 %v4921_v23  ;;  %v5008_v22 = vld [vmem:[%s6078_s1 + $0x580] ss:$8 sps:$4 sm:$0xff]   ;;  %v5019_v23 = vld [vmem:[%s6078_s1 + $0x674] ss:$8 sps:$4 sm:$0xff]  }
 0x173   : > { %3680 = vmatprep.mubr.bf16.mxu1 %v4930_v24  ;;  %v5022_v24 = vld [vmem:[%s6078_s1 + $0x774] ss:$8 sps:$4 sm:$0xff]  }
 0x174   : > { %3694 = vmatpush1.bf16.msra.mxu0 %v4915_v25  ;;  %v5011_v25 = vld [vmem:[%s6076_s6 + $0x20] ss:$72 sps:$4 sm:$0xff]  }
 0x175   : > { %3747 = vmatpush1.bf16.msra.mxu1 %v4918_v26  ;;  %3695 = vmatprep.subr.bf16.mxu0 %v4926_v27  ;;  %v5014_v26 = vld [vmem:[%s6076_s6 + $0x28] ss:$72 sps:$4 sm:$0xff]  }
 0x176   : > { %3748 = vmatprep.subr.bf16.mxu1 %v4929_v28  ;;  %v5017_v27 = vld [vmem:[%s6078_s1 + $0x670] ss:$8 sps:$4 sm:$0xff]  }
 0x177   : > { %3628 = vmatmul.mubr.bf16.gmra.mxu0 %v4923_v29  ;;  %v5020_v28 = vld [vmem:[%s6078_s1 + $0x770] ss:$8 sps:$4 sm:$0xff]   ;;  %v5025_v29 = vld [vmem:[%s6078_s1 + $0x664] ss:$8 sps:$4 sm:$0xff]  }
 0x178   : > { %3681 = vmatmul.mubr.bf16.gmra.mxu1 %v4932_v32  ;;  %3696 = vmatpush1.bf16.msra.mxu0 %v4924_v30  ;;  %v5028_v30 = vld [vmem:[%s6078_s1 + $0x764] ss:$8 sps:$4 sm:$0xff]  }
 0x179   : > { %3749 = vmatpush1.bf16.msra.mxu1 %v4927_v31  ;;  %3697 = vmatprep.subr.bf16.mxu0 %v4935_v33  ;;  %v5029_v31 = vld [vmem:[%s6076_s6 + $0xb4] ss:$72 sps:$4 sm:$0xff]   ;;  %v5023_v33 = vld [vmem:[%s6078_s1 + $0x660] ss:$8 sps:$4 sm:$0xff]  }
 0x17a   : > { %3750 = vmatprep.subr.bf16.mxu1 %v4938_v34  ;;  %3723 = vmatprep.mubr.bf16.mxu0 %v5013_v38  ;;  %v5038_v32 = vld [vmem:[%s6076_s6 + $0xbc] ss:$72 sps:$4 sm:$0xff]   ;;  %v5026_v34 = vld [vmem:[%s6078_s1 + $0x760] ss:$8 sps:$4 sm:$0xff]   ;;  %v5032_v38 = vld [vmem:[%s6078_s1 + $0x650] ss:$8 sps:$4 sm:$0xff]  }
 0x17b   : > { %3776 = vmatprep.mubr.bf16.mxu1 %v5016_v40  ;;  %v5040_v40 = vld [vmem:[%s6076_s6 + $0xb8] ss:$72 sps:$4 sm:$0xff]  }
 0x17c   : > { %3698 = vmatpush1.bf16.msra.mxu0 %v4933_v35  ;;  %v5034_v35 = vld [vmem:[%s6078_s1 + $0x654] ss:$8 sps:$4 sm:$0xff]  }
 0x17d   : > { %3751 = vmatpush1.bf16.msra.mxu1 %v4936_v36  ;;  %3699 = vmatprep.subr.bf16.mxu0 %v4941_v37  ;;  %v5037_v36 = vld [vmem:[%s6078_s1 + $0x754] ss:$8 sps:$4 sm:$0xff]   ;;  %v5031_v37 = vld [vmem:[%s6076_s6 + $0xb0] ss:$72 sps:$4 sm:$0xff]  }
 0x17e   : > { %3752 = vmatprep.subr.bf16.mxu1 %v4944_v39  ;;  %v5035_v39 = vld [vmem:[%s6078_s1 + $0x750] ss:$8 sps:$4 sm:$0xff]  }
 0x180   : > { %3700 = vmatpush1.bf16.msra.mxu0 %v4939_v41  ;;  %v5043_v41 = vld [vmem:[%s6078_s1 + $0x644] ss:$8 sps:$4 sm:$0xff]  }
 0x181   : > { %3753 = vmatpush1.bf16.msra.mxu1 %v4942_v42  ;;  %3701 = vmatprep.subr.bf16.mxu0 %v4947_v43  ;;  %v5046_v42 = vld [vmem:[%s6078_s1 + $0x744] ss:$8 sps:$4 sm:$0xff]   ;;  %v5121_v43 = vld [vmem:[%s6076_s6 + $0x34] ss:$72 sps:$4 sm:$0xff]  }
 0x182   : > { %3754 = vmatprep.subr.bf16.mxu1 %v4950_v44  ;;  %v5124_v44 = vld [vmem:[%s6076_s6 + $0x3c] ss:$72 sps:$4 sm:$0xff]  }
 0x184   : > { %3702 = vmatpush1.bf16.msra.mxu0 %v4945_v45  ;;  %v5041_v45 = vld [vmem:[%s6078_s1 + $0x640] ss:$8 sps:$4 sm:$0xff]  }
 0x185   : > { %3755 = vmatpush1.bf16.msra.mxu1 %v4948_v46  ;;  %3703 = vmatprep.subr.bf16.mxu0 %v4953_v47  ;;  %v5044_v46 = vld [vmem:[%s6078_s1 + $0x740] ss:$8 sps:$4 sm:$0xff]   ;;  %v5049_v47 = vld [vmem:[%s6078_s1 + $0x634] ss:$8 sps:$4 sm:$0xff]  }
 0x186   : > { %3756 = vmatprep.subr.bf16.mxu1 %v4956_v48  ;;  %v5052_v48 = vld [vmem:[%s6078_s1 + $0x734] ss:$8 sps:$4 sm:$0xff]  }
 0x188   : > { %3704 = vmatpush1.bf16.msra.mxu0 %v4951_v49  ;;  %v5047_v49 = vld [vmem:[%s6078_s1 + $0x630] ss:$8 sps:$4 sm:$0xff]  }
 0x189   : > { %3757 = vmatpush1.bf16.msra.mxu1 %v4954_v50  ;;  %3705 = vmatprep.subr.bf16.mxu0 %v4959_v51  ;;  %v5050_v50 = vld [vmem:[%s6078_s1 + $0x730] ss:$8 sps:$4 sm:$0xff]   ;;  %v5055_v51 = vld [vmem:[%s6078_s1 + $0x624] ss:$8 sps:$4 sm:$0xff]  }
 0x18a   : > { %3758 = vmatprep.subr.bf16.mxu1 %v4962_v52  ;;  %v5058_v52 = vld [vmem:[%s6078_s1 + $0x724] ss:$8 sps:$4 sm:$0xff]  }
 0x18c   : > { %3706 = vmatpush1.bf16.msra.mxu0 %v4957_v53  ;;  %v5053_v53 = vld [vmem:[%s6078_s1 + $0x620] ss:$8 sps:$4 sm:$0xff]  }
 0x18d   : > { %3759 = vmatpush1.bf16.msra.mxu1 %v4960_v54  ;;  %3707 = vmatprep.subr.bf16.mxu0 %v4965_v55  ;;  %v5056_v54 = vld [vmem:[%s6078_s1 + $0x720] ss:$8 sps:$4 sm:$0xff]   ;;  %v5061_v55 = vld [vmem:[%s6078_s1 + $0x614] ss:$8 sps:$4 sm:$0xff]  }
 0x18e   : > { %3760 = vmatprep.subr.bf16.mxu1 %v4968_v56  ;;  %v5064_v56 = vld [vmem:[%s6078_s1 + $0x714] ss:$8 sps:$4 sm:$0xff]  }
 0x190   : > { %3708 = vmatpush2.bf16.msra.mxu0 %v4963_v57  ;;  %v5059_v57 = vld [vmem:[%s6078_s1 + $0x610] ss:$8 sps:$4 sm:$0xff]  }
 0x191   : > { %3761 = vmatpush2.bf16.msra.mxu1 %v4966_v58  ;;  %3709 = vmatprep.subr.bf16.mxu0 %v4971_v59  ;;  %v5062_v58 = vld [vmem:[%s6078_s1 + $0x710] ss:$8 sps:$4 sm:$0xff]   ;;  %v5067_v59 = vld [vmem:[%s6078_s1 + $0x604] ss:$8 sps:$4 sm:$0xff]  }
 0x192   : > { %3762 = vmatprep.subr.bf16.mxu1 %v4974_v60  ;;  %v5070_v60 = vld [vmem:[%s6078_s1 + $0x704] ss:$8 sps:$4 sm:$0xff]  }
 0x194   : > { %3710 = vmatpush2.bf16.msra.mxu0 %v4969_v61  ;;  %v5065_v61 = vld [vmem:[%s6078_s1 + $0x600] ss:$8 sps:$4 sm:$0xff]  }
 0x195   : > { %3763 = vmatpush2.bf16.msra.mxu1 %v4972_v62  ;;  %3711 = vmatprep.subr.bf16.mxu0 %v4977_v63  ;;  %v5068_v62 = vld [vmem:[%s6078_s1 + $0x700] ss:$8 sps:$4 sm:$0xff]   ;;  %v5073_v63 = vld [vmem:[%s6078_s1 + $0x6f4] ss:$8 sps:$4 sm:$0xff]  }
 0x196   : > { %3764 = vmatprep.subr.bf16.mxu1 %v4980_v0  ;;  %v5076_v0 = vld [vmem:[%s6078_s1 + $0x7f4] ss:$8 sps:$4 sm:$0xff]  }
 0x198   : > { %3712 = vmatpush2.bf16.msra.mxu0 %v4975_v1  ;;  %v5071_v1 = vld [vmem:[%s6078_s1 + $0x6f0] ss:$8 sps:$4 sm:$0xff]  }
 0x199   : > { %3765 = vmatpush2.bf16.msra.mxu1 %v4978_v2  ;;  %3713 = vmatprep.subr.bf16.mxu0 %v4983_v3  ;;  %v5074_v2 = vld [vmem:[%s6078_s1 + $0x7f0] ss:$8 sps:$4 sm:$0xff]   ;;  %v5079_v3 = vld [vmem:[%s6078_s1 + $0x6e4] ss:$8 sps:$4 sm:$0xff]  }
 0x19a   : > { %3766 = vmatprep.subr.bf16.mxu1 %v4986_v4  ;;  %v5082_v4 = vld [vmem:[%s6078_s1 + $0x7e4] ss:$8 sps:$4 sm:$0xff]  }
 0x19c   : > { %3714 = vmatpush2.bf16.msra.mxu0 %v4981_v5  ;;  %v5077_v5 = vld [vmem:[%s6078_s1 + $0x6e0] ss:$8 sps:$4 sm:$0xff]  }
 0x19d   : > { %3767 = vmatpush2.bf16.msra.mxu1 %v4984_v6  ;;  %3715 = vmatprep.subr.bf16.mxu0 %v4989_v7  ;;  %v5080_v6 = vld [vmem:[%s6078_s1 + $0x7e0] ss:$8 sps:$4 sm:$0xff]   ;;  %v5085_v7 = vld [vmem:[%s6078_s1 + $0x6d4] ss:$8 sps:$4 sm:$0xff]  }
 0x19e   : > { %3768 = vmatprep.subr.bf16.mxu1 %v4992_v8  ;;  %v5088_v8 = vld [vmem:[%s6078_s1 + $0x7d4] ss:$8 sps:$4 sm:$0xff]  }
 0x1a0   : > { %3716 = vmatpush2.bf16.msra.mxu0 %v4987_v9  ;;  %v5083_v9 = vld [vmem:[%s6078_s1 + $0x6d0] ss:$8 sps:$4 sm:$0xff]  }
 0x1a1   : > { %3769 = vmatpush2.bf16.msra.mxu1 %v4990_v10  ;;  %3717 = vmatprep.subr.bf16.mxu0 %v4995_v11  ;;  %v5086_v10 = vld [vmem:[%s6078_s1 + $0x7d0] ss:$8 sps:$4 sm:$0xff]   ;;  %v5091_v11 = vld [vmem:[%s6078_s1 + $0x6c4] ss:$8 sps:$4 sm:$0xff]  }
 0x1a2   : > { %3770 = vmatprep.subr.bf16.mxu1 %v4998_v12  ;;  %v5094_v12 = vld [vmem:[%s6078_s1 + $0x7c4] ss:$8 sps:$4 sm:$0xff]  }
 0x1a4   : > { %3718 = vmatpush2.bf16.msra.mxu0 %v4993_v13  ;;  %v5089_v13 = vld [vmem:[%s6078_s1 + $0x6c0] ss:$8 sps:$4 sm:$0xff]  }
 0x1a5   : > { %3771 = vmatpush2.bf16.msra.mxu1 %v4996_v14  ;;  %3719 = vmatprep.subr.bf16.mxu0 %v5001_v15  ;;  %v5092_v14 = vld [vmem:[%s6078_s1 + $0x7c0] ss:$8 sps:$4 sm:$0xff]   ;;  %v5097_v15 = vld [vmem:[%s6078_s1 + $0x6b4] ss:$8 sps:$4 sm:$0xff]  }
 0x1a6   : > { %3772 = vmatprep.subr.bf16.mxu1 %v5004_v16  ;;  %v5100_v16 = vld [vmem:[%s6078_s1 + $0x7b4] ss:$8 sps:$4 sm:$0xff]  }
 0x1a8   : > { %3720 = vmatpush2.bf16.msra.mxu0 %v4999_v17  ;;  %v5095_v17 = vld [vmem:[%s6078_s1 + $0x6b0] ss:$8 sps:$4 sm:$0xff]  }
 0x1a9   : > { %3773 = vmatpush2.bf16.msra.mxu1 %v5002_v18  ;;  %3721 = vmatprep.subr.bf16.mxu0 %v5007_v19  ;;  %v5098_v18 = vld [vmem:[%s6078_s1 + $0x7b0] ss:$8 sps:$4 sm:$0xff]   ;;  %v5103_v19 = vld [vmem:[%s6078_s1 + $0x6a4] ss:$8 sps:$4 sm:$0xff]  }
 0x1aa   : > { %3774 = vmatprep.subr.bf16.mxu1 %v5010_v20  ;;  %v5106_v20 = vld [vmem:[%s6078_s1 + $0x7a4] ss:$8 sps:$4 sm:$0xff]  }
 0x1ac   : > { %3722 = vmatpush2.bf16.msra.mxu0 %v5005_v21  ;;  %v5101_v21 = vld [vmem:[%s6078_s1 + $0x6a0] ss:$8 sps:$4 sm:$0xff]  }
 0x1ad   : > { %3775 = vmatpush2.bf16.msra.mxu1 %v5008_v22  ;;  %3797 = vmatprep.subr.bf16.mxu0 %v5019_v23  ;;  %v5104_v22 = vld [vmem:[%s6078_s1 + $0x7a0] ss:$8 sps:$4 sm:$0xff]   ;;  %v5109_v23 = vld [vmem:[%s6078_s1 + $0x694] ss:$8 sps:$4 sm:$0xff]  }
 0x1ae   : > { %3850 = vmatprep.subr.bf16.mxu1 %v5022_v24  ;;  %v5112_v24 = vld [vmem:[%s6078_s1 + $0x794] ss:$8 sps:$4 sm:$0xff]  }
 0x1af   : > { %3724 = vmatmul.mubr.bf16.vlgmr.msra.gmra.mxu0 %v5011_v25  ;;  %v5107_v25 = vld [vmem:[%s6078_s1 + $0x690] ss:$8 sps:$4 sm:$0xff]  }
 0x1b0   : > { %3777 = vmatmul.mubr.bf16.vlgmr.msra.gmra.mxu1 %v5014_v26  ;;  %3798 = vmatpush1.bf16.msra.mxu0 %v5017_v27  ;;  %v5110_v26 = vld [vmem:[%s6078_s1 + $0x790] ss:$8 sps:$4 sm:$0xff]   ;;  %v5115_v27 = vld [vmem:[%s6078_s1 + $0x684] ss:$8 sps:$4 sm:$0xff]  }
 0x1b1   : > { %3851 = vmatpush1.bf16.msra.mxu1 %v5020_v28  ;;  %3799 = vmatprep.subr.bf16.mxu0 %v5025_v29  ;;  %v5118_v28 = vld [vmem:[%s6078_s1 + $0x784] ss:$8 sps:$4 sm:$0xff]   ;;  %v5113_v29 = vld [vmem:[%s6078_s1 + $0x680] ss:$8 sps:$4 sm:$0xff]  }
 0x1b2   : > { %3852 = vmatprep.subr.bf16.mxu1 %v5028_v30  ;;  %3733 = vmatprep.mubr.bf16.mxu0 %v5029_v31  ;;  %v5116_v30 = vld [vmem:[%s6078_s1 + $0x780] ss:$8 sps:$4 sm:$0xff]   ;;  %v5127_v31 = vld [vmem:[%s6078_s1 + $0x874] ss:$8 sps:$4 sm:$0xff]  }
 0x1b3   : > { %3786 = vmatprep.mubr.bf16.mxu1 %v5038_v32  ;;  %v5119_v32 = vld [vmem:[%s6076_s6 + $0x30] ss:$72 sps:$4 sm:$0xff]  }
 0x1b4   : > { %3800 = vmatpush1.bf16.msra.mxu0 %v5023_v33  ;;  %v5122_v33 = vld [vmem:[%s6076_s6 + $0x38] ss:$72 sps:$4 sm:$0xff]  }
 0x1b5   : > { %3853 = vmatpush1.bf16.msra.mxu1 %v5026_v34  ;;  %3801 = vmatprep.subr.bf16.mxu0 %v5034_v35  ;;  %v5125_v34 = vld [vmem:[%s6078_s1 + $0x870] ss:$8 sps:$4 sm:$0xff]   ;;  %v5130_v35 = vld [vmem:[%s6078_s1 + $0x864] ss:$8 sps:$4 sm:$0xff]  }
 0x1b6   : > { %3854 = vmatprep.subr.bf16.mxu1 %v5037_v36  ;;  %v5131_v36 = vld [vmem:[%s6076_s6 + $0xc4] ss:$72 sps:$4 sm:$0xff]  }
 0x1b7   : > { %3734 = vmatmul.mubr.bf16.gmra.mxu0 %v5031_v37  ;;  %v5137_v37 = vld [vmem:[%s6076_s6 + $0xcc] ss:$72 sps:$4 sm:$0xff]  }
 0x1b8   : > { %3787 = vmatmul.mubr.bf16.gmra.mxu1 %v5040_v40  ;;  %3802 = vmatpush1.bf16.msra.mxu0 %v5032_v38  ;;  %v5128_v38 = vld [vmem:[%s6078_s1 + $0x860] ss:$8 sps:$4 sm:$0xff]  }
 0x1b9   : > { %3855 = vmatpush1.bf16.msra.mxu1 %v5035_v39  ;;  %3803 = vmatprep.subr.bf16.mxu0 %v5043_v41  ;;  %v5136_v39 = vld [vmem:[%s6078_s1 + $0x854] ss:$8 sps:$4 sm:$0xff]   ;;  %v5133_v40 = vld [vmem:[%s6076_s6 + $0xc0] ss:$72 sps:$4 sm:$0xff]  }
 0x1ba   : > { %3856 = vmatprep.subr.bf16.mxu1 %v5046_v42  ;;  %3829 = vmatprep.mubr.bf16.mxu0 %v5121_v43  ;;  %v5139_v41 = vld [vmem:[%s6076_s6 + $0xc8] ss:$72 sps:$4 sm:$0xff]   ;;  %v5142_v43 = vld [vmem:[%s6078_s1 + $0x844] ss:$8 sps:$4 sm:$0xff]  }
 0x1bb   : > { %3882 = vmatprep.mubr.bf16.mxu1 %v5124_v44  ;;  %v5134_v42 = vld [vmem:[%s6078_s1 + $0x850] ss:$8 sps:$4 sm:$0xff]   ;;  %v5181_v44 = vld [vmem:[%s6076_s6 + $0x44] ss:$72 sps:$4 sm:$0xff]  }
 0x1bc   : > { %3804 = vmatpush1.bf16.msra.mxu0 %v5041_v45  ;;  %v5184_v45 = vld [vmem:[%s6076_s6 + $0xd4] ss:$72 sps:$4 sm:$0xff]  }
 0x1bd   : > { %3857 = vmatpush1.bf16.msra.mxu1 %v5044_v46  ;;  %3805 = vmatprep.subr.bf16.mxu0 %v5049_v47  ;;  %v5140_v46 = vld [vmem:[%s6078_s1 + $0x840] ss:$8 sps:$4 sm:$0xff]   ;;  %v5145_v47 = vld [vmem:[%s6078_s1 + $0x834] ss:$8 sps:$4 sm:$0xff]  }
 0x1be   : > { %3858 = vmatprep.subr.bf16.mxu1 %v5052_v48  ;;  %v5143_v48 = vld [vmem:[%s6078_s1 + $0x830] ss:$8 sps:$4 sm:$0xff]  }
 0x1c0   : > { %3806 = vmatpush1.bf16.msra.mxu0 %v5047_v49  ;;  %v5148_v49 = vld [vmem:[%s6078_s1 + $0x824] ss:$8 sps:$4 sm:$0xff]  }
 0x1c1   : > { %3859 = vmatpush1.bf16.msra.mxu1 %v5050_v50  ;;  %3807 = vmatprep.subr.bf16.mxu0 %v5055_v51  ;;  %v5146_v50 = vld [vmem:[%s6078_s1 + $0x820] ss:$8 sps:$4 sm:$0xff]   ;;  %v5151_v51 = vld [vmem:[%s6078_s1 + $0x814] ss:$8 sps:$4 sm:$0xff]  }
 0x1c2   : > { %3860 = vmatprep.subr.bf16.mxu1 %v5058_v52  ;;  %v5149_v52 = vld [vmem:[%s6078_s1 + $0x810] ss:$8 sps:$4 sm:$0xff]  }
 0x1c4   : > { %3808 = vmatpush1.bf16.msra.mxu0 %v5053_v53  ;;  %v5154_v53 = vld [vmem:[%s6078_s1 + $0x804] ss:$8 sps:$4 sm:$0xff]  }
 0x1c5   : > { %3861 = vmatpush1.bf16.msra.mxu1 %v5056_v54  ;;  %3809 = vmatprep.subr.bf16.mxu0 %v5061_v55  ;;  %v5152_v54 = vld [vmem:[%s6078_s1 + $0x800] ss:$8 sps:$4 sm:$0xff]   ;;  %v5157_v55 = vld [vmem:[%s6078_s1 + $0x8f4] ss:$8 sps:$4 sm:$0xff]  }
 0x1c6   : > { %3862 = vmatprep.subr.bf16.mxu1 %v5064_v56  ;;  %v5155_v56 = vld [vmem:[%s6078_s1 + $0x8f0] ss:$8 sps:$4 sm:$0xff]  }
 0x1c8   : > { %3810 = vmatpush1.bf16.msra.mxu0 %v5059_v57  ;;  %v5160_v57 = vld [vmem:[%s6078_s1 + $0x8e4] ss:$8 sps:$4 sm:$0xff]  }
 0x1c9   : > { %3863 = vmatpush1.bf16.msra.mxu1 %v5062_v58  ;;  %3811 = vmatprep.subr.bf16.mxu0 %v5067_v59  ;;  %v5158_v58 = vld [vmem:[%s6078_s1 + $0x8e0] ss:$8 sps:$4 sm:$0xff]   ;;  %v5163_v59 = vld [vmem:[%s6078_s1 + $0x8d4] ss:$8 sps:$4 sm:$0xff]  }
 0x1ca   : > { %3864 = vmatprep.subr.bf16.mxu1 %v5070_v60  ;;  %v5161_v60 = vld [vmem:[%s6078_s1 + $0x8d0] ss:$8 sps:$4 sm:$0xff]  }
 0x1cc   : > { %3812 = vmatpush1.bf16.msra.mxu0 %v5065_v61  ;;  %v5166_v61 = vld [vmem:[%s6078_s1 + $0x8c4] ss:$8 sps:$4 sm:$0xff]  }
 0x1cd   : > { %3865 = vmatpush1.bf16.msra.mxu1 %v5068_v62  ;;  %3813 = vmatprep.subr.bf16.mxu0 %v5073_v63  ;;  %v5164_v62 = vld [vmem:[%s6078_s1 + $0x8c0] ss:$8 sps:$4 sm:$0xff]   ;;  %v5169_v63 = vld [vmem:[%s6078_s1 + $0x8b4] ss:$8 sps:$4 sm:$0xff]  }
 0x1ce   : > { %3866 = vmatprep.subr.bf16.mxu1 %v5076_v0  ;;  %v5167_v0 = vld [vmem:[%s6078_s1 + $0x8b0] ss:$8 sps:$4 sm:$0xff]  }
 0x1d0   : > { %3814 = vmatpush2.bf16.msra.mxu0 %v5071_v1  ;;  %v5172_v1 = vld [vmem:[%s6078_s1 + $0x8a4] ss:$8 sps:$4 sm:$0xff]  }
 0x1d1   : > { %3867 = vmatpush2.bf16.msra.mxu1 %v5074_v2  ;;  %3815 = vmatprep.subr.bf16.mxu0 %v5079_v3  ;;  %v5170_v2 = vld [vmem:[%s6078_s1 + $0x8a0] ss:$8 sps:$4 sm:$0xff]   ;;  %v5175_v3 = vld [vmem:[%s6078_s1 + $0x894] ss:$8 sps:$4 sm:$0xff]  }
 0x1d2   : > { %3868 = vmatprep.subr.bf16.mxu1 %v5082_v4  ;;  %v5173_v4 = vld [vmem:[%s6078_s1 + $0x890] ss:$8 sps:$4 sm:$0xff]  }
 0x1d4   : > { %3816 = vmatpush2.bf16.msra.mxu0 %v5077_v5  ;;  %v5178_v5 = vld [vmem:[%s6078_s1 + $0x884] ss:$8 sps:$4 sm:$0xff]  }
 0x1d5   : > { %3869 = vmatpush2.bf16.msra.mxu1 %v5080_v6  ;;  %3817 = vmatprep.subr.bf16.mxu0 %v5085_v7  ;;  %v5176_v6 = vld [vmem:[%s6078_s1 + $0x880] ss:$8 sps:$4 sm:$0xff]  }
 0x1d6   : > { %3870 = vmatprep.subr.bf16.mxu1 %v5088_v8  ;;  %v5179_v7 = vld [vmem:[%s6076_s6 + $0x40] ss:$72 sps:$4 sm:$0xff]   ;;  %v5182_v8 = vld [vmem:[%s6076_s6 + $0xd0] ss:$72 sps:$4 sm:$0xff]  }
 0x1d8   : > { %3818 = vmatpush2.bf16.msra.mxu0 %v5083_v9 }
 0x1d9   : > { %3871 = vmatpush2.bf16.msra.mxu1 %v5086_v10  ;;  %3819 = vmatprep.subr.bf16.mxu0 %v5091_v11 }
 0x1da   : > { %3872 = vmatprep.subr.bf16.mxu1 %v5094_v12 }
 0x1dc   : > { %3820 = vmatpush2.bf16.msra.mxu0 %v5089_v13 }
 0x1dd   : > { %3873 = vmatpush2.bf16.msra.mxu1 %v5092_v14  ;;  %3821 = vmatprep.subr.bf16.mxu0 %v5097_v15 }
 0x1de   : > { %3874 = vmatprep.subr.bf16.mxu1 %v5100_v16 }
 0x1e0   : > { %3822 = vmatpush2.bf16.msra.mxu0 %v5095_v17 }
 0x1e1   : > { %3875 = vmatpush2.bf16.msra.mxu1 %v5098_v18  ;;  %3823 = vmatprep.subr.bf16.mxu0 %v5103_v19 }
 0x1e2   : > { %3876 = vmatprep.subr.bf16.mxu1 %v5106_v20 }
 0x1e4   : > { %3824 = vmatpush2.bf16.msra.mxu0 %v5101_v21 }
 0x1e5   : > { %3877 = vmatpush2.bf16.msra.mxu1 %v5104_v22  ;;  %3825 = vmatprep.subr.bf16.mxu0 %v5109_v23 }
 0x1e6   : > { %3878 = vmatprep.subr.bf16.mxu1 %v5112_v24 }
 0x1e8   : > { %3826 = vmatpush2.bf16.msra.mxu0 %v5107_v25 }
 0x1e9   : > { %3879 = vmatpush2.bf16.msra.mxu1 %v5110_v26  ;;  %3827 = vmatprep.subr.bf16.mxu0 %v5115_v27 }
 0x1ea   : > { %3880 = vmatprep.subr.bf16.mxu1 %v5118_v28 }
 0x1ec   : > { %3828 = vmatpush2.bf16.msra.mxu0 %v5113_v29 }
 0x1ed   : > { %3881 = vmatpush2.bf16.msra.mxu1 %v5116_v30  ;;  %3903 = vmatprep.subr.bf16.mxu0 %v5127_v31 }
 0x1ee   : > { %4574 = vmatprep.subr.bf16.mxu1 %v5127_v31 }
 0x1ef   : > { %3830 = vmatmul.mubr.bf16.vlgmr.msra.gmra.mxu0 %v5119_v32  ;;  %v3513_v9 = vpop.f32.mrf.mxu0 }
 0x1f0   : > { %3883 = vmatmul.mubr.bf16.vlgmr.msra.gmra.mxu1 %v5122_v33  ;;  %3904 = vmatpush1.bf16.msra.mxu0 %v5125_v34  ;;  %v3566_v11 = vpop.f32.mrf.mxu1 }
 0x1f1   : > { %4590 = vmatpush1.bf16.msra.mxu1 %v5125_v34  ;;  %3905 = vmatprep.subr.bf16.mxu0 %v5130_v35  ;;  %v3515_v10 = vpop.f32.mrf.mxu0 }
 0x1f2   : > { %4575 = vmatprep.subr.bf16.mxu1 %v5130_v35  ;;  %3839 = vmatprep.mubr.bf16.mxu0 %v5131_v36  ;;  %v3568_v13 = vpop.f32.mrf.mxu1 }
 0x1f3   : > { %3892 = vmatprep.mubr.bf16.mxu1 %v5137_v37  ;;  %v3517_v12 = vpop.f32.mrf.mxu0 }
 0x1f4   : > { %3906 = vmatpush1.bf16.msra.mxu0 %v5128_v38  ;;  %v3570_v16 = vpop.f32.mrf.mxu1 }
 0x1f5   : > { %4591 = vmatpush1.bf16.msra.mxu1 %v5128_v38  ;;  %3907 = vmatprep.subr.bf16.mxu0 %v5136_v39  ;;  %v3519_v14 = vpop.f32.mrf.mxu0 }
 0x1f6   : > { %4576 = vmatprep.subr.bf16.mxu1 %v5136_v39  ;;  %v3572_v18 = vpop.f32.mrf.mxu1 }
 0x1f7   : > { %3840 = vmatmul.mubr.bf16.gmra.mxu0 %v5133_v40  ;;  %v3523_v15 = vpop.f32.mrf.mxu0 }
 0x1f8   : > { %3893 = vmatmul.mubr.bf16.gmra.mxu1 %v5139_v41  ;;  %3908 = vmatpush1.bf16.msra.mxu0 %v5134_v42  ;;  %v3576_v19 = vpop.f32.mrf.mxu1 }
 0x1f9   : > { %4592 = vmatpush1.bf16.msra.mxu1 %v5134_v42  ;;  %3909 = vmatprep.subr.bf16.mxu0 %v5142_v43  ;;  %v3525_v17 = vpop.f32.mrf.mxu0 }
 0x1fa   : > { %4577 = vmatprep.subr.bf16.mxu1 %v5142_v43  ;;  %3935 = vmatprep.mubr.bf16.mxu0 %v5181_v44  ;;  %v3578_v21 = vpop.f32.mrf.mxu1 }
 0x1fb   : > { %3945 = vmatprep.mubr.bf16.mxu1 %v5184_v45  ;;  %v3527_v20 = vpop.f32.mrf.mxu0 }
 0x1fc   : > { %3910 = vmatpush1.bf16.msra.mxu0 %v5140_v46  ;;  %v3580_v24 = vpop.f32.mrf.mxu1 }
 0x1fd   : > { %4593 = vmatpush1.bf16.msra.mxu1 %v5140_v46  ;;  %3911 = vmatprep.subr.bf16.mxu0 %v5145_v47  ;;  %v3529_v22 = vpop.f32.mrf.mxu0 }
 0x1fe   : > { %4578 = vmatprep.subr.bf16.mxu1 %v5145_v47  ;;  %v3582_v26 = vpop.f32.mrf.mxu1 }
 0x200   : > { %3912 = vmatpush1.bf16.msra.mxu0 %v5143_v48 }
 0x201   : > { %4594 = vmatpush1.bf16.msra.mxu1 %v5143_v48  ;;  %3913 = vmatprep.subr.bf16.mxu0 %v5148_v49 }
 0x202   : > { %4579 = vmatprep.subr.bf16.mxu1 %v5148_v49 }
 0x204   : > { %3914 = vmatpush1.bf16.msra.mxu0 %v5146_v50 }
 0x205   : > { %4595 = vmatpush1.bf16.msra.mxu1 %v5146_v50  ;;  %3915 = vmatprep.subr.bf16.mxu0 %v5151_v51 }
 0x206   : > { %4580 = vmatprep.subr.bf16.mxu1 %v5151_v51 }
 0x208   : > { %3916 = vmatpush1.bf16.msra.mxu0 %v5149_v52 }
 0x209   : > { %4596 = vmatpush1.bf16.msra.mxu1 %v5149_v52  ;;  %3917 = vmatprep.subr.bf16.mxu0 %v5154_v53 }
 0x20a   : > { %4581 = vmatprep.subr.bf16.mxu1 %v5154_v53 }
 0x20c   : > { %3918 = vmatpush1.bf16.msra.mxu0 %v5152_v54 }
 0x20d   : > { %4597 = vmatpush1.bf16.msra.mxu1 %v5152_v54  ;;  %3919 = vmatprep.subr.bf16.mxu0 %v5157_v55 }
 0x20e   : > { %4582 = vmatprep.subr.bf16.mxu1 %v5157_v55 }
 0x210   : > { %3920 = vmatpush2.bf16.msra.mxu0 %v5155_v56 }
 0x211   : > { %4598 = vmatpush2.bf16.msra.mxu1 %v5155_v56  ;;  %3921 = vmatprep.subr.bf16.mxu0 %v5160_v57 }
 0x212   : > { %4583 = vmatprep.subr.bf16.mxu1 %v5160_v57 }
 0x214   : > { %3922 = vmatpush2.bf16.msra.mxu0 %v5158_v58 }
 0x215   : > { %4599 = vmatpush2.bf16.msra.mxu1 %v5158_v58  ;;  %3923 = vmatprep.subr.bf16.mxu0 %v5163_v59 }
 0x216   : > { %4584 = vmatprep.subr.bf16.mxu1 %v5163_v59 }
 0x218   : > { %3924 = vmatpush2.bf16.msra.mxu0 %v5161_v60 }
 0x219   : > { %4600 = vmatpush2.bf16.msra.mxu1 %v5161_v60  ;;  %3925 = vmatprep.subr.bf16.mxu0 %v5166_v61 }
 0x21a   : > { %4585 = vmatprep.subr.bf16.mxu1 %v5166_v61 }
 0x21c   : > { %3926 = vmatpush2.bf16.msra.mxu0 %v5164_v62 }
 0x21d   : > { %4601 = vmatpush2.bf16.msra.mxu1 %v5164_v62  ;;  %3927 = vmatprep.subr.bf16.mxu0 %v5169_v63 }
 0x21e   : > { %4586 = vmatprep.subr.bf16.mxu1 %v5169_v63  ;;  %v3567_v63 = vadd.f32 %v3566_v11, %v3513_v9  ;;  %v3573_v9 = vadd.f32 %v3572_v18, %v3519_v14  ;;  %v3583_v11 = vadd.f32 %v3582_v26, %v3529_v22 }
 0x220   : > { %3928 = vmatpush2.bf16.msra.mxu0 %v5167_v0 }
 0x221   : > { %4602 = vmatpush2.bf16.msra.mxu1 %v5167_v0  ;;  %3929 = vmatprep.subr.bf16.mxu0 %v5172_v1  ;;  %v3577_v0 = vadd.f32 %v3576_v19, %v3523_v15 }
 0x222   : > { %4587 = vmatprep.subr.bf16.mxu1 %v5172_v1 }
 0x224   : > { %3930 = vmatpush2.bf16.msra.mxu0 %v5170_v2 }
 0x225   : > { %4603 = vmatpush2.bf16.msra.mxu1 %v5170_v2  ;;  %3931 = vmatprep.subr.bf16.mxu0 %v5175_v3  ;;  %v3569_v2 = vadd.f32 %v3568_v13, %v3515_v10 }
 0x226   : > { %4588 = vmatprep.subr.bf16.mxu1 %v5175_v3  ;;  %v3579_v3 = vadd.f32 %v3578_v21, %v3525_v17 }
 0x228   : > { %3932 = vmatpush2.bf16.msra.mxu0 %v5173_v4 }
 0x229   : > { %4604 = vmatpush2.bf16.msra.mxu1 %v5173_v4  ;;  %3933 = vmatprep.subr.bf16.mxu0 %v5178_v5 }
 0x22a   : > { %4589 = vmatprep.subr.bf16.mxu1 %v5178_v5 }
 0x22c   : > { %3934 = vmatpush2.bf16.msra.mxu0 %v5176_v6 }
 0x22d   : > { %4605 = vmatpush2.bf16.msra.mxu1 %v5176_v6  ;;  %v3571_v6 = vadd.f32 %v3570_v16, %v3517_v12 }
 0x22f   : > { %3936 = vmatmul.mubr.bf16.vlgmr.msra.gmra.mxu0 %v5179_v7  ;;  %v3619_v23 = vpop.f32.mrf.mxu0  ;;  %v3581_v7 = vadd.f32 %v3580_v24, %v3527_v20 }
 0x230   : > { %3946 = vmatmul.mubr.bf16.vlgmr.msra.gmra.mxu1 %v5182_v8  ;;  %v3672_v27 = vpop.f32.mrf.mxu1  ;;  %v3620_v4 = vadd.f32 %v3619_v23, %v3567_v63 }
 0x231   : > { %v3621_v25 = vpop.f32.mrf.mxu0 }
 0x232   : > { %v3674_v29 = vpop.f32.mrf.mxu1  ;;  %v3673_v13 = vadd.f32 %v3672_v27, %v3620_v4 }
 0x233   : > { %v3623_v28 = vpop.f32.mrf.mxu0 }
 0x234   : > { %v3676_v31 = vpop.f32.mrf.mxu1  ;;  %v3624_v15 = vadd.f32 %v3623_v28, %v3571_v6 }
 0x235   : > { %v3625_v30 = vpop.f32.mrf.mxu0 }
 0x236   : > { %v3678_v33 = vpop.f32.mrf.mxu1  ;;  %v3626_v21 = vadd.f32 %v3625_v30, %v3573_v9  ;;  %v3677_v20 = vadd.f32 %v3676_v31, %v3624_v15  ;;  %v1532_v9 = vld [vmem:[#allocation2 + $0x20] sm:$0xff] }
 0x237   : > { %v3629_v32 = vpop.f32.mrf.mxu0 }
 0x238   : > { %v3682_v35 = vpop.f32.mrf.mxu1  ;;  %v3630_v5 = vadd.f32 %v3629_v32, %v3577_v0 }
 0x239   : > { %v3631_v34 = vpop.f32.mrf.mxu0 }
 0x23a   : > { %v3684_v37 = vpop.f32.mrf.mxu1  ;;  %v3683_v17 = vadd.f32 %v3682_v35, %v3630_v5 }
 0x23b   : > { %v3633_v36 = vpop.f32.mrf.mxu0 }
 0x23c   : > { %v3686_v39 = vpop.f32.mrf.mxu1  ;;  %v3634_v19 = vadd.f32 %v3633_v36, %v3581_v7 }
 0x23d   : > { %v3635_v38 = vpop.f32.mrf.mxu0 }
 0x23e   : > { %v3688_v41 = vpop.f32.mrf.mxu1  ;;  %v3636_v23 = vadd.f32 %v3635_v38, %v3583_v11  ;;  %v3687_v24 = vadd.f32 %v3686_v39, %v3634_v19 }
 0x240   : > { %v3689_v14 = vadd.f32 %v3688_v41, %v3636_v23 }
 0x26f   : > { %v3725_v40 = vpop.f32.mrf.mxu0 }
 0x270   : > { %v3778_v43 = vpop.f32.mrf.mxu1  ;;  %v3726_v32 = vadd.f32 %v3725_v40, %v3673_v13 }
 0x271   : > { %v3727_v42 = vpop.f32.mrf.mxu0 }
 0x272   : > { %v3780_v45 = vpop.f32.mrf.mxu1  ;;  %v3779_v26 = vadd.f32 %v3778_v43, %v3726_v32 }
 0x273   : > { %v3729_v44 = vpop.f32.mrf.mxu0 }
 0x274   : > { %v3782_v47 = vpop.f32.mrf.mxu1  ;;  %v3730_v18 = vadd.f32 %v3729_v44, %v3677_v20  ;;  %v1530_v20 = vld [vmem:[#allocation2 + $0x10] sm:$0xff] }
 0x275   : > { %v3731_v46 = vpop.f32.mrf.mxu0 }
 0x276   : > { %v6407_v49 = vpop.f32.mrf.mxu1 }
 0x277   : > { %v3735_v48 = vpop.f32.mrf.mxu0  ;;  %6485 = vst [vmem:[#allocation7_spill] sm:$0xff] %v6407_v49  ;;  %v3622_v49 = vadd.f32 %v3621_v25, %v3569_v2  ;;  %v3679_v2 = vadd.f32 %v3678_v33, %v3626_v21  ;;  %v1529_v21 = vld [vmem:[#allocation2 + $0x18] sm:$0xff] }
 0x278   : > { %v3788_v50 = vpop.f32.mrf.mxu1  ;;  %v3736_v12 = vadd.f32 %v3735_v48, %v3683_v17  ;;  %v3783_v48 = vadd.f32 %v3782_v47, %v3730_v18 }
 0x279   : > { %v3737_v51 = vpop.f32.mrf.mxu0  ;;  %v3675_v63 = vadd.f32 %v3674_v29, %v3622_v49  ;;  %v3732_v35 = vadd.f32 %v3731_v46, %v3679_v2 }
 0x27a   : > { %v3790_v52 = vpop.f32.mrf.mxu1  ;;  %v3789_v28 = vadd.f32 %v3788_v50, %v3736_v12 }
 0x27b   : > { %v3739_v53 = vpop.f32.mrf.mxu0  ;;  %v3728_v25 = vadd.f32 %v3727_v42, %v3675_v63  ;;  %v1533_v63 = vld [vmem:[#allocation2 + $0x28] sm:$0xff] }
 0x27c   : > { %v3792_v54 = vpop.f32.mrf.mxu1  ;;  %v3740_v22 = vadd.f32 %v3739_v53, %v3687_v24 }
 0x27d   : > { %v3741_v55 = vpop.f32.mrf.mxu0  ;;  %v3781_v29 = vadd.f32 %v3780_v45, %v3728_v25  ;;  %v1534_v25 = vld [vmem:[#allocation2 + $0x38] sm:$0xff] }
 0x27e   : > { %v3794_v57 = vpop.f32.mrf.mxu1  ;;  %v3742_v30 = vadd.f32 %v3741_v55, %v3689_v14  ;;  %v3793_v31 = vadd.f32 %v3792_v54, %v3740_v22 }
 0x280   : > { %v3795_v41 = vadd.f32 %v3794_v57, %v3742_v30  ;;  %v1528_v57 = vld [vmem:[#allocation2] sm:$0xff] }
 0x2af   : > { %v3831_v56 = vpop.f32.mrf.mxu0 }
 0x2b0   : > { %v3884_v58 = vpop.f32.mrf.mxu1  ;;  %v3832_v38 = vadd.f32 %v3831_v56, %v3779_v26 }
 0x2b1   : > { %v3833_v59 = vpop.f32.mrf.mxu0 }
 0x2b2   : > { %v6409_v60 = vpop.f32.mrf.mxu1  ;;  %v3834_v39 = vadd.f32 %v3833_v59, %v3781_v29  ;;  %v3885_v50 = vadd.f32 %v3884_v58, %v3832_v38 }
 0x2b3   : > { %6486 = vst [vmem:[#allocation8_spill] sm:$0xff] %v6409_v60  ;;  %v3835_v61 = vpop.f32.mrf.mxu0  ;;  %v3632_v60 = vadd.f32 %v3631_v34, %v3579_v3  ;;  %v1527_v3 = vld [vmem:[#allocation2 + $0x30] sm:$0xff] }
 0x2b4   : > { %v6411_v62 = vpop.f32.mrf.mxu1  ;;  %v3836_v44 = vadd.f32 %v3835_v61, %v3783_v48 }
 0x2b5   : > { %6487 = vst [vmem:[#allocation9_spill] sm:$0xff] %v6411_v62  ;;  %v3837_v1 = vpop.f32.mrf.mxu0  ;;  %v3685_v0 = vadd.f32 %v3684_v37, %v3632_v60 }
 0x2b6   : > { %v6413_v8 = vpop.f32.mrf.mxu1 }
 0x2b7   : > { %6488 = vst [vmem:[#allocation10_spill] sm:$0xff] %v6413_v8  ;;  %v3841_v62 = vpop.f32.mrf.mxu0  ;;  %v3738_v34 = vadd.f32 %v3737_v51, %v3685_v0  ;;  %v6489_v51 = vld [vmem:[#allocation7_spill] sm:$0xff] }
 0x2b8   : > { %v3894_v10 = vpop.f32.mrf.mxu1  ;;  %v3842_v40 = vadd.f32 %v3841_v62, %v3789_v28  ;;  %v3785_v33 = vadd.f32 %v6489_v51, %v3732_v35 }
 0x2b9   : > { %v3843_v16 = vpop.f32.mrf.mxu0  ;;  %v3791_v37 = vadd.f32 %v3790_v52, %v3738_v34  ;;  %v1531_v52 = vld [vmem:[#allocation2 + $0x8] sm:$0xff] }
 0x2ba   : > { %v3896_v8 = vpop.f32.mrf.mxu1  ;;  %v3895_v60 = vadd.f32 %v3894_v10, %v3842_v40  ;;  %v3838_v46 = vadd.f32 %v3837_v1, %v3785_v33  ;;  %v6490_v62 = vld [vmem:[#allocation8_spill] sm:$0xff] }
 0x2bb   : > { %v3845_v27 = vpop.f32.mrf.mxu0  ;;  %v3844_v49 = vadd.f32 %v3843_v16, %v3791_v37  ;;  %v3887_v47 = vadd.f32 %v6490_v62, %v3834_v39 }
 0x2bc   : > { %v3898_v36 = vpop.f32.mrf.mxu1  ;;  %v3846_v53 = vadd.f32 %v3845_v27, %v3793_v31  ;;  %v6491_v5 = vld [vmem:[#allocation9_spill] sm:$0xff] }
 0x2bd   : > { %v3847_v42 = vpop.f32.mrf.mxu0  ;;  %v3897_v54 = vadd.f32 %v3896_v8, %v3844_v49  ;;  %v3889_v6 = vadd.f32 %v6491_v5, %v3836_v44 }
 0x2be   : > { %v3900_v43 = vpop.f32.mrf.mxu1  ;;  %v3848_v55 = vadd.f32 %v3847_v42, %v3795_v41  ;;  %v3899_v7 = vadd.f32 %v3898_v36, %v3846_v53  ;;  %v6492_v10 = vld [vmem:[#allocation10_spill] sm:$0xff] }
 0x2bf   : > { %v3891_v13 = vadd.f32 %v6492_v10, %v3838_v46 }
 0x2c0   : > { %v3901_v17 = vadd.f32 %v3900_v43, %v3848_v55 }
 0x2ef   : > { %v3937_v45 = vpop.f32.mrf.mxu0 }
 0x2f0   : > { %v3947_v56 = vpop.f32.mrf.mxu1  ;;  %v3938_v59 = vadd.f32 %v3937_v45, %v3885_v50 }
 0x2f1   : > { %v3948_v4 = vadd.f32 %v3947_v56, %v3895_v60  ;;  %v3939_v61 = vpop.f32.mrf.mxu0 }
 0x2f2   : > { %v3949_v11 = vpop.f32.mrf.mxu1  ;;  %v3956_v58 = vadd.f32 %v3938_v59, %v1527_v3  ;;  %v3940_v1 = vadd.f32 %v3939_v61, %v3887_v47 }
 0x2f3   : > { %v3960_v15 = vadd.f32 %v3948_v4, %v1531_v52  ;;  %v3950_v19 = vadd.f32 %v3949_v11, %v3897_v54  ;;  %v3941_v23 = vpop.f32.mrf.mxu0 }
 0x2f4   : > { %v3951_v8 = vpop.f32.mrf.mxu1  ;;  %3964 = vst [vmem:[#allocation2 + $0x30] sm:$0xff] %v3956_v58  ;;  %v3957_v0 = vadd.f32 %v3940_v1, %v1528_v57  ;;  %v3942_v12 = vadd.f32 %v3941_v23, %v3889_v6 }
 0x2f5   : > { %3968 = vst [vmem:[#allocation2 + $0x8] sm:$0xff] %v3960_v15  ;;  %v3961_v32 = vadd.f32 %v3950_v19, %v1532_v9  ;;  %v3952_v16 = vadd.f32 %v3951_v8, %v3899_v7  ;;  %v3943_v24 = vpop.f32.mrf.mxu0 }
 0x2f6   : > { %v3953_v34 = vpop.f32.mrf.mxu1  ;;  %3965 = vst [vmem:[#allocation2] sm:$0xff] %v3957_v0  ;;  %v3958_v2 = vadd.f32 %v3942_v12, %v1529_v21  ;;  %v3944_v18 = vadd.f32 %v3943_v24, %v3891_v13 }
 0x2f7   : > { %3969 = vst [vmem:[#allocation2 + $0x20] sm:$0xff] %v3961_v32  ;;  %v3962_v14 = vadd.f32 %v3952_v16, %v1533_v63  ;;  %v3954_v22 = vadd.f32 %v3953_v34, %v3901_v17  ;;  %3975 = sbr.rel (%p4557_p5) target bundleno = 785 (0x311), region = 101 }
 0x2f8   : > { %3966 = vst [vmem:[#allocation2 + $0x18] sm:$0xff] %v3958_v2  ;;  %v3959_v26 = vadd.f32 %v3944_v18, %v1530_v20 }
 0x2f9   : > { %3970 = vst [vmem:[#allocation2 + $0x28] sm:$0xff] %v3962_v14  ;;  %v3963_v28 = vadd.f32 %v3954_v22, %v1534_v25 }
 0x2fa   : > { %3967 = vst [vmem:[#allocation2 + $0x10] sm:$0xff] %v3959_v26 }
 0x2fb   : > { %3971 = vst [vmem:[#allocation2 + $0x38] sm:$0xff] %v3963_v28 }
 0x2fc   : > { %v3986_v27 = vlaneseq  ;;  %v3984_v30 = vld [vmem:[%s1511_s5] sm:$0x3]  ;;  %v3976_v36 = vld [vmem:[#allocation2 + $0x30] sm:$0xff]  ;;  %v3980_v31 = vld [vmem:[#allocation2 + $0x8] sm:$0xff] }
 0x2fd   : > { %v3977_v29 = vld [vmem:[#allocation2] sm:$0xff] }
 0x2fe   : > { %v3987_v35 = vshrl.u32 %v3986_v27, 7  ;;  %v3981_v42 = vld [vmem:[#allocation2 + $0x20] sm:$0xff] }
 0x2ff   : > { %v3978_v40 = vld [vmem:[#allocation2 + $0x18] sm:$0xff] }
 0x300   : > { %v3988_v37 = vsub.s32 0, %v3987_v35  ;;  %v3992_v38 = vsub.s32 1, %v3987_v35  ;;  %v3982_v51 = vld [vmem:[#allocation2 + $0x28] sm:$0xff] }
 0x301   : > { %v3979_v48 = vld [vmem:[#allocation2 + $0x10] sm:$0xff] }
 0x302   : > { %v3989_v39 = vrot.slane %v3984_v30, %v3988_v37  ;;  %v3993_v49 = vrot.slane %v3984_v30, %v3992_v38  ;;  %v3983_v33 = vld [vmem:[#allocation2 + $0x38] sm:$0xff] }
 0x304   : > { %v3996_v41 = vadd.f32 %v3989_v39, %v3976_v36  ;;  %v3997_v44 = vadd.f32 %v3993_v49, %v3977_v29  ;;  %v3998_v53 = vadd.f32 %v3989_v39, %v3978_v40  ;;  %v3999_v43 = vadd.f32 %v3993_v49, %v3979_v48 }
 0x305   : > { %v4000_v50 = vadd.f32 %v3989_v39, %v3980_v31  ;;  %v4001_v60 = vadd.f32 %v3993_v49, %v3981_v42  ;;  %v4002_v46 = vadd.f32 %v3989_v39, %v3982_v51  ;;  %v4003_v55 = vadd.f32 %v3993_v49, %v3983_v33 }
 0x306   : > { %vm4004_vm0 = vcmp.ge.f32.partialorder %v3996_v41, 0.0  ;;  %vm4005_vm1 = vcmp.ge.f32.partialorder %v3997_v44, 0.0  ;;  %v4012_v3 = vmul.f32 0.2, %v3996_v41  ;;  %v4013_v45 = vmul.f32 0.2, %v3997_v44 }
 0x307   : > { %vm4006_vm2 = vcmp.ge.f32.partialorder %v3998_v53, 0.0  ;;  %vm4007_vm3 = vcmp.ge.f32.partialorder %v3999_v43, 0.0  ;;  %v4014_v52 = vmul.f32 0.2, %v3998_v53  ;;  %v4015_v56 = vmul.f32 0.2, %v3999_v43 }
 0x308   : > { %v4020_v62 = vsel %vm4004_vm0, %v3996_v41, %v4012_v3  ;;  %v4021_v47 = vsel %vm4005_vm1, %v3997_v44, %v4013_v45  ;;  %vm4008_vm4 = vcmp.ge.f32.partialorder %v4000_v50, 0.0  ;;  %vm4009_vm5 = vcmp.ge.f32.partialorder %v4001_v60, 0.0 }
 0x309   : > { %v4569_v54 = vpack.c.bf16 %v4021_v47, %v4020_v62  ;;  %v4022_v59 = vsel %vm4006_vm2, %v3998_v53, %v4014_v52  ;;  %v4023_v4 = vsel %vm4007_vm3, %v3999_v43, %v4015_v56  ;;  %v4016_v5 = vmul.f32 0.2, %v4000_v50 }
 0x30a   : > { %v4570_v6 = vpack.c.bf16 %v4023_v4, %v4022_v59  ;;  %v4017_v7 = vmul.f32 0.2, %v4001_v60  ;;  %vm4010_vm6 = vcmp.ge.f32.partialorder %v4002_v46, 0.0  ;;  %vm4011_vm7 = vcmp.ge.f32.partialorder %v4003_v55, 0.0 }
 0x30b   : > { %4052 = vst [vmem:[%s6080_s25] sm:$0xff] %v4569_v54  ;;  %v4024_v57 = vsel %vm4008_vm4, %v4000_v50, %v4016_v5  ;;  %v4018_v61 = vmul.f32 0.2, %v4002_v46  ;;  %v4019_v9 = vmul.f32 0.2, %v4003_v55 }
 0x30c   : > { %4053 = vst [vmem:[%s6080_s25 + $0x8] sm:$0xff] %v4570_v6  ;;  %v4025_v11 = vsel %vm4009_vm5, %v4001_v60, %v4017_v7 }
 0x30d   : > { %v4571_v58 = vpack.c.bf16 %v4025_v11, %v4024_v57  ;;  %v4026_v15 = vsel %vm4010_vm6, %v4002_v46, %v4018_v61  ;;  %v4027_v1 = vsel %vm4011_vm7, %v4003_v55, %v4019_v9 }
 0x30e   : > { %v4572_v19 = vpack.c.bf16 %v4027_v1, %v4026_v15 }
 0x30f   : > { %4054 = vst [vmem:[%s6080_s25 + $0x10] sm:$0xff] %v4571_v58 }
 0x310   : > { %4055 = vst [vmem:[%s6080_s25 + $0x18] sm:$0xff] %v4572_v19 }
 0x311 PF: > { %4062 = sbr.rel (!%p5388_p12) target bundleno = 793 (0x319), region = 105  ;;  %s4573_s14 = sshll.u32 (%p5388_p12), %s5259_s19, 3 }
 0x312   : > { %v4103_v10 = vld [vmem:[%s6080_s25] sm:$0xff] (%p5388_p12)  ;;  %s4068_s0 = scalar_lea.vmem (%p5388_p12), %s6475_s3, %s4573_s14 }
 0x313   : > { %v4105_v13 = vld [vmem:[%s6080_s25 + $0x8] sm:$0xff] (%p5388_p12)  ;;  %4104 = vst [vmem:[%s4068_s0] sm:$0xff] (%p5388_p12), %v4103_v10 }
 0x314   : > { %4106 = vst [vmem:[%s4068_s0 + $0x10] sm:$0xff] (%p5388_p12), %v4105_v13 }
 0x316   : > { %v4107_v17 = vld [vmem:[%s6080_s25 + $0x10] sm:$0xff] }
 0x317   : > { %v4109_v21 = vld [vmem:[%s6080_s25 + $0x18] sm:$0xff]  ;;  %4108 = vst [vmem:[%s4068_s0 + $0x20] sm:$0xff] %v4107_v17 }
 0x318   : > { %4110 = vst [vmem:[%s4068_s0 + $0x30] sm:$0xff] %v4109_v21 }
 0x319 PF: > { %s13_s22 = sadd.s32 1, %s5271_s22   ;;  %s6493_s10 = sld [smem:[#allocation6_spill]] }
 0x31a   : > { %p10_p6 = scmp.ge.s32.totalorder %s13_s22, 6   ;;  %s6494_s12 = smov %s5235_s13 }
 0x31b   : > { %s6495_s13 = smov %s5386_s9  ;;  %s6496_s14 = smov %s5243_s15 }
 0x31c   : > { %s6497_s15 = smov %s5383_s8  ;;  %s6498_s16 = smov %s5251_s17 }
 0x31d   : > { %s6499_s17 = smov %s5369_s30  ;;  %s6500_s18 = smov %s5263_s20 }
 0x31e   : > { %s6501_s19 = smov %s5267_s21  ;;  %s6502_s20 = smov %s6505_s24 }
 0x31f   : > { %s6503_s21 = smov %s6493_s10  ;;  %12 = sbr.rel (!%p10_p6) target bundleno = 9 (0x9), region = 185 }

// kernel: _apply.11
= control target key start
LH: loop header
LB: loop body
LE: loop exit
PB: predicated region body
PF: predicated region fallthrough
CT: control target
= control target key end

     0   :  { %s6624_s0 = inlined_call_operand.vmem [shape: bf16[32,4608], index: 0, kind: input, shape index: {}]   ;;  %s6625_s1 = inlined_call_operand.vmem [shape: bf16[4608,512], index: 1, kind: input, shape index: {}]   ;;  %s6626_s2 = inlined_call_operand.vmem [shape: f32[1,512], index: 2, kind: input, shape index: {}]   ;;  %s6627_s3 = inlined_call_operand.vmem [shape: bf16[32,512], index: 3, kind: input, shape index: {}]   ;;  %s6628_s4 = inlined_call_operand.vmem [shape: bf16[32,512], index: 4, kind: output, shape index: {}]  }
   0x1   :  { %6631 = sst [smem:[#allocation13_spill]] %s6624_s0 }
   0x2   :  { %6632 = sst [smem:[#allocation14_spill]] %s6625_s1 }
   0x3   :  { %s5423_s15 = smov 0   ;;  %s5425_s16 = smov 0  }
   0x4   :  { %s5427_s17 = smov 0   ;;  %s5429_s18 = smov 0  }
   0x5   :  { %s5431_s19 = smov 0   ;;  %s5433_s20 = smov 0  }
   0x6   :  { %s5435_s21 = smov 0   ;;  %s5437_s22 = smov 0  }
   0x7   :  { %s5439_s23 = smov 0   ;;  %s5441_s24 = smov 0  }
   0x8   :  { %s5443_s25 = smov 0  }
   0x9 LB: > { %s4340_s26 = sadd.s32 4294967295, %s5395_s25   ;;  %s26_s27 = sadd.s32 1, %s5387_s23  ;;  %s5395_s25 = sphi %s5443_s25, %s14_s25   ;;  %s5391_s24 = sphi %s5441_s24, %s6660_s24   ;;  %s5387_s23 = sphi %s5439_s23, %s6659_s23   ;;  %s5383_s22 = sphi %s5437_s22, %s6658_s22   ;;  %s5379_s21 = sphi %s5435_s21, %s6657_s21   ;;  %s5375_s20 = sphi %s5433_s20, %s6656_s20   ;;  %s5371_s19 = sphi %s5431_s19, %s6655_s19   ;;  %s5367_s18 = sphi %s5429_s18, %s6654_s18   ;;  %s5363_s17 = sphi %s5427_s17, %s6653_s17   ;;  %s5359_s16 = sphi %s5425_s16, %s6652_s16   ;;  %s5355_s15 = sphi %s5423_s15, %s6651_s15  }
   0xa   : > { %p27_p0 = scmp.ge.s32.totalorder %s26_s27, 2  ;;  %s29_s28 = sadd.s32 1, %s5391_s24 }
   0xb   : > { %s42_s29 = sadd.s32 1, %s5375_s20  ;;  %p49_p1 = scmp.ne.s32.totalorder %s5375_s20, %s5371_s19 }
   0xc   : > { %s6662_s27 = smov (%p27_p0, %s26_s27), 0  ;;  %s6664_s28 = smov (!%p27_p0, %s29_s28), %s5391_s24 }
   0xd   : > { %6633 = sst [smem:[#allocation7_spill]] %s6662_s27  ;;  %s38_s30 = ssub.s32 %s5387_s23, %s6662_s27 }
   0xe   : > { %p50_p2 = scmp.eq.s32.totalorder %s5395_s25, 0  ;;  %p31_p3 = scmp.ge.s32.totalorder %s6664_s28, 2 }
   0xf   : > { %p40_p4 = scmp.eq.s32.totalorder %s38_s30, 0  ;;  %s70_s6 = sadd.s32 1, %s5367_s18 }
  0x10   : > { %p5492_p5 = por %p50_p2, %p49_p1  ;;  %s6666_s28 = smov (%p31_p3, %s6664_s28), 0 }
  0x11   : > { %6635 = sst [smem:[#allocation8_spill]] %s6666_s28  ;;  %s66_s8 = ssub.s32 %s5391_s24, %s6666_s28 }
  0x12   : > { %s5500_s7 = scalar_select %p40_p4, %s5375_s20, %s42_s29  }
  0x13   : > { %p77_p6 = scmp.ne.s32.totalorder %s5367_s18, %s5363_s17  ;;  %s67_s9 = sor.u32 %s66_s8, %s38_s30 }
  0x14   : > { %p122_p7 = scmp.eq.s32.totalorder %s66_s8, 0  ;;  %p68_p8 = scmp.eq.s32.totalorder %s67_s9, 0 }
  0x15   : > { %p5508_p9 = por %p77_p6, %p50_p2  ;;  %s124_s11 = sadd.s32 1, %s5359_s16 }
  0x16   : > { %p131_p10 = scmp.ne.s32.totalorder %s5359_s16, %s5355_s15  ;;  %p163_p12 = scmp.eq.s32.totalorder %s4340_s26, 3 }
  0x17   : > { %s5516_s12 = scalar_select %p68_p8, %s5367_s18, %s70_s6  }
  0x18   : > { %s5519_s13 = scalar_select %p122_p7, %s5359_s16, %s124_s11  }
  0x19   : > { %p5523_p11 = por %p131_p10, %p50_p2  ;;  %p5527_p13 = por %p163_p12, %p131_p10 }
  0x1a   : > { %p4343_p0 = scmp.ge.s32.totalorder %s5395_s25, 4 }
  0x1c   : > { %185 = sbr.rel (%p4343_p0) target bundleno = 220 (0xdc), region = 16 }
  0x21   : > { %188 = sbr.rel (!%p5492_p5) target bundleno = 60 (0x3c), region = 20  ;;  %s190_s30 = sand.u32 (%p5492_p5), 1, %s5375_s20  }
  0x22   : > { %s4690_s6 = smul.u32 (%p5492_p5), 72, %s5387_s23  ;;  %s6639_s0 = sld [smem:[#allocation13_spill]] (%p5492_p5) }
  0x23   : > { %s4730_s8 = smul.u32 (%p5492_p5), 288, %s190_s30 }
  0x25   : > { %s5544_s26 = scalar_lea.vmem (%p5492_p5), [#allocation3], %s4730_s8 }
  0x28   : > { %s5539_s28 = scalar_lea.vmem %s6639_s0, %s4690_s6 }
  0x29   : > { %v211_v0 = vld [vmem:[%s5539_s28] sm:$0xff]  ;;  %v213_v1 = vld [vmem:[%s5539_s28 + $0x8] sm:$0xff]  ;;  %v215_v2 = vld [vmem:[%s5539_s28 + $0x10] sm:$0xff] }
  0x2a   : > { %212 = vst [vmem:[%s5544_s26] sm:$0xff] %v211_v0  ;;  %214 = vst [vmem:[%s5544_s26 + $0x8] sm:$0xff] %v213_v1  ;;  %v217_v3 = vld [vmem:[%s5539_s28 + $0x18] sm:$0xff]  ;;  %v219_v4 = vld [vmem:[%s5539_s28 + $0x20] sm:$0xff] }
  0x2b   : > { %216 = vst [vmem:[%s5544_s26 + $0x10] sm:$0xff] %v215_v2  ;;  %v221_v5 = vld [vmem:[%s5539_s28 + $0x28] sm:$0xff]  ;;  %218 = vst [vmem:[%s5544_s26 + $0x18] sm:$0xff] %v217_v3  ;;  %v223_v6 = vld [vmem:[%s5539_s28 + $0x30] sm:$0xff] }
  0x2c   : > { %220 = vst [vmem:[%s5544_s26 + $0x20] sm:$0xff] %v219_v4  ;;  %222 = vst [vmem:[%s5544_s26 + $0x28] sm:$0xff] %v221_v5  ;;  %v225_v7 = vld [vmem:[%s5539_s28 + $0x38] sm:$0xff]  ;;  %v227_v8 = vld [vmem:[%s5539_s28 + $0x40] sm:$0xff] }
  0x2d   : > { %224 = vst [vmem:[%s5544_s26 + $0x30] sm:$0xff] %v223_v6  ;;  %226 = vst [vmem:[%s5544_s26 + $0x38] sm:$0xff] %v225_v7  ;;  %v229_v9 = vld [vmem:[%s5539_s28 + $0x90] sm:$0xff]  ;;  %v231_v10 = vld [vmem:[%s5539_s28 + $0x98] sm:$0xff] }
  0x2e   : > { %228 = vst [vmem:[%s5544_s26 + $0x40] sm:$0xff] %v227_v8  ;;  %v233_v11 = vld [vmem:[%s5539_s28 + $0xa0] sm:$0xff]  ;;  %230 = vst [vmem:[%s5544_s26 + $0x48] sm:$0xff] %v229_v9  ;;  %v235_v12 = vld [vmem:[%s5539_s28 + $0xa8] sm:$0xff] }
  0x2f   : > { %232 = vst [vmem:[%s5544_s26 + $0x50] sm:$0xff] %v231_v10  ;;  %234 = vst [vmem:[%s5544_s26 + $0x58] sm:$0xff] %v233_v11  ;;  %v237_v13 = vld [vmem:[%s5539_s28 + $0xb0] sm:$0xff]  ;;  %v239_v14 = vld [vmem:[%s5539_s28 + $0xb8] sm:$0xff] }
  0x30   : > { %236 = vst [vmem:[%s5544_s26 + $0x60] sm:$0xff] %v235_v12  ;;  %238 = vst [vmem:[%s5544_s26 + $0x68] sm:$0xff] %v237_v13  ;;  %v241_v15 = vld [vmem:[%s5539_s28 + $0xc0] sm:$0xff]  ;;  %v243_v16 = vld [vmem:[%s5539_s28 + $0xc8] sm:$0xff] }
  0x31   : > { %240 = vst [vmem:[%s5544_s26 + $0x70] sm:$0xff] %v239_v14  ;;  %v245_v17 = vld [vmem:[%s5539_s28 + $0xd0] sm:$0xff]  ;;  %242 = vst [vmem:[%s5544_s26 + $0x78] sm:$0xff] %v241_v15  ;;  %v247_v18 = vld [vmem:[%s5539_s28 + $0x120] sm:$0xff] }
  0x32   : > { %244 = vst [vmem:[%s5544_s26 + $0x80] sm:$0xff] %v243_v16  ;;  %246 = vst [vmem:[%s5544_s26 + $0x88] sm:$0xff] %v245_v17  ;;  %v249_v19 = vld [vmem:[%s5539_s28 + $0x128] sm:$0xff]  ;;  %v251_v20 = vld [vmem:[%s5539_s28 + $0x130] sm:$0xff] }
  0x33   : > { %248 = vst [vmem:[%s5544_s26 + $0x90] sm:$0xff] %v247_v18  ;;  %250 = vst [vmem:[%s5544_s26 + $0x98] sm:$0xff] %v249_v19  ;;  %v253_v21 = vld [vmem:[%s5539_s28 + $0x138] sm:$0xff]  ;;  %v255_v22 = vld [vmem:[%s5539_s28 + $0x140] sm:$0xff] }
  0x34   : > { %252 = vst [vmem:[%s5544_s26 + $0xa0] sm:$0xff] %v251_v20  ;;  %v257_v23 = vld [vmem:[%s5539_s28 + $0x148] sm:$0xff]  ;;  %254 = vst [vmem:[%s5544_s26 + $0xa8] sm:$0xff] %v253_v21  ;;  %v259_v24 = vld [vmem:[%s5539_s28 + $0x150] sm:$0xff] }
  0x35   : > { %256 = vst [vmem:[%s5544_s26 + $0xb0] sm:$0xff] %v255_v22  ;;  %258 = vst [vmem:[%s5544_s26 + $0xb8] sm:$0xff] %v257_v23  ;;  %v261_v25 = vld [vmem:[%s5539_s28 + $0x158] sm:$0xff]  ;;  %v263_v26 = vld [vmem:[%s5539_s28 + $0x160] sm:$0xff] }
  0x36   : > { %260 = vst [vmem:[%s5544_s26 + $0xc0] sm:$0xff] %v259_v24  ;;  %262 = vst [vmem:[%s5544_s26 + $0xc8] sm:$0xff] %v261_v25  ;;  %v265_v27 = vld [vmem:[%s5539_s28 + $0x1b0] sm:$0xff]  ;;  %v267_v28 = vld [vmem:[%s5539_s28 + $0x1b8] sm:$0xff] }
  0x37   : > { %264 = vst [vmem:[%s5544_s26 + $0xd0] sm:$0xff] %v263_v26  ;;  %v269_v29 = vld [vmem:[%s5539_s28 + $0x1c0] sm:$0xff]  ;;  %266 = vst [vmem:[%s5544_s26 + $0xd8] sm:$0xff] %v265_v27  ;;  %v271_v30 = vld [vmem:[%s5539_s28 + $0x1c8] sm:$0xff] }
  0x38   : > { %268 = vst [vmem:[%s5544_s26 + $0xe0] sm:$0xff] %v267_v28  ;;  %270 = vst [vmem:[%s5544_s26 + $0xe8] sm:$0xff] %v269_v29  ;;  %v273_v31 = vld [vmem:[%s5539_s28 + $0x1d0] sm:$0xff]  ;;  %v275_v32 = vld [vmem:[%s5539_s28 + $0x1d8] sm:$0xff] }
  0x39   : > { %272 = vst [vmem:[%s5544_s26 + $0xf0] sm:$0xff] %v271_v30  ;;  %274 = vst [vmem:[%s5544_s26 + $0xf8] sm:$0xff] %v273_v31  ;;  %v277_v33 = vld [vmem:[%s5539_s28 + $0x1e0] sm:$0xff]  ;;  %v279_v34 = vld [vmem:[%s5539_s28 + $0x1e8] sm:$0xff] }
  0x3a   : > { %276 = vst [vmem:[%s5544_s26 + $0x100] sm:$0xff] %v275_v32  ;;  %v281_v35 = vld [vmem:[%s5539_s28 + $0x1f0] sm:$0xff]  ;;  %278 = vst [vmem:[%s5544_s26 + $0x108] sm:$0xff] %v277_v33 }
  0x3b   : > { %280 = vst [vmem:[%s5544_s26 + $0x110] sm:$0xff] %v279_v34  ;;  %282 = vst [vmem:[%s5544_s26 + $0x118] sm:$0xff] %v281_v35 }
  0x3c PF: > { %288 = sbr.rel (!%p5508_p9) target bundleno = 214 (0xd6), region = 43  ;;  %s290_s5 = sand.u32 (%p5508_p9), 1, %s5367_s18  }
  0x3d   : > { %s4731_s30 = smul.u32 (%p5508_p9), 2304, %s290_s5  ;;  %s4345_s6 = sshll.u32 (%p5508_p9), %s5391_s24, 1 }
  0x3e   : > { %s4691_s8 = smul.u32 (%p5508_p9), 1152, %s5387_s23  ;;  %s6640_s1 = sld [smem:[#allocation14_spill]] (%p5508_p9) }
  0x3f   : > { %s5628_s10 = scalar_lea.vmem (%p5508_p9), [#allocation4], %s4731_s30 }
  0x40   : > { %s296_s9 = sadd.s32 (%p5508_p9), %s4691_s8, %s4345_s6 }
  0x41   : > { %s4347_s11 = sshll.u32 %s296_s9, 2 }
  0x44   : > { %s5623_s28 = scalar_lea.vmem %s6640_s1, %s4347_s11 }
  0x45   : > { %v901_v36 = vld [vmem:[%s5623_s28] sm:$0xff]  ;;  %v903_v37 = vld [vmem:[%s5623_s28 + $0x10] sm:$0xff] }
  0x46   : > { %v905_v38 = vld [vmem:[%s5623_s28 + $0x20] sm:$0xff]  ;;  %902 = vst [vmem:[%s5628_s10] sm:$0xff] %v901_v36  ;;  %904 = vst [vmem:[%s5628_s10 + $0x8] sm:$0xff] %v903_v37  ;;  %v907_v39 = vld [vmem:[%s5623_s28 + $0x30] sm:$0xff] }
  0x47   : > { %906 = vst [vmem:[%s5628_s10 + $0x10] sm:$0xff] %v905_v38  ;;  %v909_v40 = vld [vmem:[%s5623_s28 + $0x40] sm:$0xff]  ;;  %v911_v41 = vld [vmem:[%s5623_s28 + $0x50] sm:$0xff]  ;;  %908 = vst [vmem:[%s5628_s10 + $0x18] sm:$0xff] %v907_v39 }
  0x48   : > { %910 = vst [vmem:[%s5628_s10 + $0x20] sm:$0xff] %v909_v40  ;;  %912 = vst [vmem:[%s5628_s10 + $0x28] sm:$0xff] %v911_v41  ;;  %v913_v42 = vld [vmem:[%s5623_s28 + $0x60] sm:$0xff]  ;;  %v915_v43 = vld [vmem:[%s5623_s28 + $0x70] sm:$0xff] }
  0x49   : > { %v917_v44 = vld [vmem:[%s5623_s28 + $0x80] sm:$0xff]  ;;  %914 = vst [vmem:[%s5628_s10 + $0x30] sm:$0xff] %v913_v42  ;;  %916 = vst [vmem:[%s5628_s10 + $0x38] sm:$0xff] %v915_v43  ;;  %v919_v45 = vld [vmem:[%s5623_s28 + $0x90] sm:$0xff] }
  0x4a   : > { %918 = vst [vmem:[%s5628_s10 + $0x40] sm:$0xff] %v917_v44  ;;  %v921_v46 = vld [vmem:[%s5623_s28 + $0xa0] sm:$0xff]  ;;  %v923_v47 = vld [vmem:[%s5623_s28 + $0xb0] sm:$0xff]  ;;  %920 = vst [vmem:[%s5628_s10 + $0x48] sm:$0xff] %v919_v45 }
  0x4b   : > { %922 = vst [vmem:[%s5628_s10 + $0x50] sm:$0xff] %v921_v46  ;;  %924 = vst [vmem:[%s5628_s10 + $0x58] sm:$0xff] %v923_v47  ;;  %v925_v48 = vld [vmem:[%s5623_s28 + $0xc0] sm:$0xff]  ;;  %v927_v49 = vld [vmem:[%s5623_s28 + $0xd0] sm:$0xff] }
  0x4c   : > { %v929_v50 = vld [vmem:[%s5623_s28 + $0xe0] sm:$0xff]  ;;  %926 = vst [vmem:[%s5628_s10 + $0x60] sm:$0xff] %v925_v48  ;;  %928 = vst [vmem:[%s5628_s10 + $0x68] sm:$0xff] %v927_v49  ;;  %v931_v51 = vld [vmem:[%s5623_s28 + $0xf0] sm:$0xff] }
  0x4d   : > { %930 = vst [vmem:[%s5628_s10 + $0x70] sm:$0xff] %v929_v50  ;;  %v933_v52 = vld [vmem:[%s5623_s28 + $0x100] sm:$0xff]  ;;  %v935_v53 = vld [vmem:[%s5623_s28 + $0x110] sm:$0xff]  ;;  %932 = vst [vmem:[%s5628_s10 + $0x78] sm:$0xff] %v931_v51 }
  0x4e   : > { %934 = vst [vmem:[%s5628_s10 + $0x80] sm:$0xff] %v933_v52  ;;  %936 = vst [vmem:[%s5628_s10 + $0x88] sm:$0xff] %v935_v53  ;;  %v937_v54 = vld [vmem:[%s5623_s28 + $0x120] sm:$0xff]  ;;  %v939_v55 = vld [vmem:[%s5623_s28 + $0x130] sm:$0xff] }
  0x4f   : > { %v941_v56 = vld [vmem:[%s5623_s28 + $0x140] sm:$0xff]  ;;  %938 = vst [vmem:[%s5628_s10 + $0x90] sm:$0xff] %v937_v54  ;;  %940 = vst [vmem:[%s5628_s10 + $0x98] sm:$0xff] %v939_v55  ;;  %v943_v57 = vld [vmem:[%s5623_s28 + $0x150] sm:$0xff] }
  0x50   : > { %942 = vst [vmem:[%s5628_s10 + $0xa0] sm:$0xff] %v941_v56  ;;  %v945_v58 = vld [vmem:[%s5623_s28 + $0x160] sm:$0xff]  ;;  %v947_v59 = vld [vmem:[%s5623_s28 + $0x170] sm:$0xff]  ;;  %944 = vst [vmem:[%s5628_s10 + $0xa8] sm:$0xff] %v943_v57 }
  0x51   : > { %946 = vst [vmem:[%s5628_s10 + $0xb0] sm:$0xff] %v945_v58  ;;  %948 = vst [vmem:[%s5628_s10 + $0xb8] sm:$0xff] %v947_v59  ;;  %v949_v60 = vld [vmem:[%s5623_s28 + $0x180] sm:$0xff]  ;;  %v951_v61 = vld [vmem:[%s5623_s28 + $0x190] sm:$0xff] }
  0x52   : > { %v953_v62 = vld [vmem:[%s5623_s28 + $0x1a0] sm:$0xff]  ;;  %950 = vst [vmem:[%s5628_s10 + $0xc0] sm:$0xff] %v949_v60  ;;  %952 = vst [vmem:[%s5628_s10 + $0xc8] sm:$0xff] %v951_v61  ;;  %v955_v63 = vld [vmem:[%s5623_s28 + $0x1b0] sm:$0xff] }
  0x53   : > { %954 = vst [vmem:[%s5628_s10 + $0xd0] sm:$0xff] %v953_v62  ;;  %v957_v0 = vld [vmem:[%s5623_s28 + $0x1c0] sm:$0xff]  ;;  %v959_v1 = vld [vmem:[%s5623_s28 + $0x1d0] sm:$0xff]  ;;  %956 = vst [vmem:[%s5628_s10 + $0xd8] sm:$0xff] %v955_v63 }
  0x54   : > { %958 = vst [vmem:[%s5628_s10 + $0xe0] sm:$0xff] %v957_v0  ;;  %960 = vst [vmem:[%s5628_s10 + $0xe8] sm:$0xff] %v959_v1  ;;  %v961_v2 = vld [vmem:[%s5623_s28 + $0x1e0] sm:$0xff]  ;;  %v963_v3 = vld [vmem:[%s5623_s28 + $0x1f0] sm:$0xff] }
  0x55   : > { %v965_v4 = vld [vmem:[%s5623_s28 + $0x200] sm:$0xff]  ;;  %962 = vst [vmem:[%s5628_s10 + $0xf0] sm:$0xff] %v961_v2  ;;  %964 = vst [vmem:[%s5628_s10 + $0xf8] sm:$0xff] %v963_v3  ;;  %v967_v5 = vld [vmem:[%s5623_s28 + $0x210] sm:$0xff] }
  0x56   : > { %966 = vst [vmem:[%s5628_s10 + $0x100] sm:$0xff] %v965_v4  ;;  %v969_v6 = vld [vmem:[%s5623_s28 + $0x220] sm:$0xff]  ;;  %v971_v7 = vld [vmem:[%s5623_s28 + $0x230] sm:$0xff]  ;;  %968 = vst [vmem:[%s5628_s10 + $0x108] sm:$0xff] %v967_v5 }
  0x57   : > { %970 = vst [vmem:[%s5628_s10 + $0x110] sm:$0xff] %v969_v6  ;;  %972 = vst [vmem:[%s5628_s10 + $0x118] sm:$0xff] %v971_v7  ;;  %v973_v8 = vld [vmem:[%s5623_s28 + $0x240] sm:$0xff]  ;;  %v975_v9 = vld [vmem:[%s5623_s28 + $0x250] sm:$0xff] }
  0x58   : > { %v977_v10 = vld [vmem:[%s5623_s28 + $0x260] sm:$0xff]  ;;  %974 = vst [vmem:[%s5628_s10 + $0x120] sm:$0xff] %v973_v8  ;;  %976 = vst [vmem:[%s5628_s10 + $0x128] sm:$0xff] %v975_v9  ;;  %v979_v11 = vld [vmem:[%s5623_s28 + $0x270] sm:$0xff] }
  0x59   : > { %978 = vst [vmem:[%s5628_s10 + $0x130] sm:$0xff] %v977_v10  ;;  %v981_v12 = vld [vmem:[%s5623_s28 + $0x280] sm:$0xff]  ;;  %v983_v13 = vld [vmem:[%s5623_s28 + $0x290] sm:$0xff]  ;;  %980 = vst [vmem:[%s5628_s10 + $0x138] sm:$0xff] %v979_v11 }
  0x5a   : > { %982 = vst [vmem:[%s5628_s10 + $0x140] sm:$0xff] %v981_v12  ;;  %984 = vst [vmem:[%s5628_s10 + $0x148] sm:$0xff] %v983_v13  ;;  %v985_v14 = vld [vmem:[%s5623_s28 + $0x2a0] sm:$0xff]  ;;  %v987_v15 = vld [vmem:[%s5623_s28 + $0x2b0] sm:$0xff] }
  0x5b   : > { %v989_v16 = vld [vmem:[%s5623_s28 + $0x2c0] sm:$0xff]  ;;  %986 = vst [vmem:[%s5628_s10 + $0x150] sm:$0xff] %v985_v14  ;;  %988 = vst [vmem:[%s5628_s10 + $0x158] sm:$0xff] %v987_v15  ;;  %v991_v17 = vld [vmem:[%s5623_s28 + $0x2d0] sm:$0xff] }
  0x5c   : > { %990 = vst [vmem:[%s5628_s10 + $0x160] sm:$0xff] %v989_v16  ;;  %v993_v18 = vld [vmem:[%s5623_s28 + $0x2e0] sm:$0xff]  ;;  %v995_v19 = vld [vmem:[%s5623_s28 + $0x2f0] sm:$0xff]  ;;  %992 = vst [vmem:[%s5628_s10 + $0x168] sm:$0xff] %v991_v17 }
  0x5d   : > { %994 = vst [vmem:[%s5628_s10 + $0x170] sm:$0xff] %v993_v18  ;;  %996 = vst [vmem:[%s5628_s10 + $0x178] sm:$0xff] %v995_v19  ;;  %v997_v20 = vld [vmem:[%s5623_s28 + $0x300] sm:$0xff]  ;;  %v999_v21 = vld [vmem:[%s5623_s28 + $0x310] sm:$0xff] }
  0x5e   : > { %v1001_v22 = vld [vmem:[%s5623_s28 + $0x320] sm:$0xff]  ;;  %998 = vst [vmem:[%s5628_s10 + $0x180] sm:$0xff] %v997_v20  ;;  %1000 = vst [vmem:[%s5628_s10 + $0x188] sm:$0xff] %v999_v21  ;;  %v1003_v23 = vld [vmem:[%s5623_s28 + $0x330] sm:$0xff] }
  0x5f   : > { %1002 = vst [vmem:[%s5628_s10 + $0x190] sm:$0xff] %v1001_v22  ;;  %v1005_v24 = vld [vmem:[%s5623_s28 + $0x340] sm:$0xff]  ;;  %v1007_v25 = vld [vmem:[%s5623_s28 + $0x350] sm:$0xff]  ;;  %1004 = vst [vmem:[%s5628_s10 + $0x198] sm:$0xff] %v1003_v23 }
  0x60   : > { %1006 = vst [vmem:[%s5628_s10 + $0x1a0] sm:$0xff] %v1005_v24  ;;  %1008 = vst [vmem:[%s5628_s10 + $0x1a8] sm:$0xff] %v1007_v25  ;;  %v1009_v26 = vld [vmem:[%s5623_s28 + $0x360] sm:$0xff]  ;;  %v1011_v27 = vld [vmem:[%s5623_s28 + $0x370] sm:$0xff] }
  0x61   : > { %v1013_v28 = vld [vmem:[%s5623_s28 + $0x380] sm:$0xff]  ;;  %1010 = vst [vmem:[%s5628_s10 + $0x1b0] sm:$0xff] %v1009_v26  ;;  %1012 = vst [vmem:[%s5628_s10 + $0x1b8] sm:$0xff] %v1011_v27  ;;  %v1015_v29 = vld [vmem:[%s5623_s28 + $0x390] sm:$0xff] }
  0x62   : > { %1014 = vst [vmem:[%s5628_s10 + $0x1c0] sm:$0xff] %v1013_v28  ;;  %v1017_v30 = vld [vmem:[%s5623_s28 + $0x3a0] sm:$0xff]  ;;  %v1019_v31 = vld [vmem:[%s5623_s28 + $0x3b0] sm:$0xff]  ;;  %1016 = vst [vmem:[%s5628_s10 + $0x1c8] sm:$0xff] %v1015_v29 }
  0x63   : > { %1018 = vst [vmem:[%s5628_s10 + $0x1d0] sm:$0xff] %v1017_v30  ;;  %1020 = vst [vmem:[%s5628_s10 + $0x1d8] sm:$0xff] %v1019_v31  ;;  %v1021_v32 = vld [vmem:[%s5623_s28 + $0x3c0] sm:$0xff]  ;;  %v1023_v33 = vld [vmem:[%s5623_s28 + $0x3d0] sm:$0xff] }
  0x64   : > { %v1025_v34 = vld [vmem:[%s5623_s28 + $0x3e0] sm:$0xff]  ;;  %1022 = vst [vmem:[%s5628_s10 + $0x1e0] sm:$0xff] %v1021_v32  ;;  %1024 = vst [vmem:[%s5628_s10 + $0x1e8] sm:$0xff] %v1023_v33  ;;  %v1027_v35 = vld [vmem:[%s5623_s28 + $0x3f0] sm:$0xff] }
  0x65   : > { %1026 = vst [vmem:[%s5628_s10 + $0x1f0] sm:$0xff] %v1025_v34  ;;  %v1029_v36 = vld [vmem:[%s5623_s28 + $0x400] sm:$0xff]  ;;  %v1031_v37 = vld [vmem:[%s5623_s28 + $0x410] sm:$0xff]  ;;  %1028 = vst [vmem:[%s5628_s10 + $0x1f8] sm:$0xff] %v1027_v35 }
  0x66   : > { %1030 = vst [vmem:[%s5628_s10 + $0x200] sm:$0xff] %v1029_v36  ;;  %1032 = vst [vmem:[%s5628_s10 + $0x208] sm:$0xff] %v1031_v37  ;;  %v1033_v38 = vld [vmem:[%s5623_s28 + $0x420] sm:$0xff]  ;;  %v1035_v39 = vld [vmem:[%s5623_s28 + $0x430] sm:$0xff] }
  0x67   : > { %v1037_v40 = vld [vmem:[%s5623_s28 + $0x440] sm:$0xff]  ;;  %1034 = vst [vmem:[%s5628_s10 + $0x210] sm:$0xff] %v1033_v38  ;;  %1036 = vst [vmem:[%s5628_s10 + $0x218] sm:$0xff] %v1035_v39  ;;  %v1039_v41 = vld [vmem:[%s5623_s28 + $0x450] sm:$0xff] }
  0x68   : > { %1038 = vst [vmem:[%s5628_s10 + $0x220] sm:$0xff] %v1037_v40  ;;  %v1041_v42 = vld [vmem:[%s5623_s28 + $0x460] sm:$0xff]  ;;  %v1043_v43 = vld [vmem:[%s5623_s28 + $0x470] sm:$0xff]  ;;  %1040 = vst [vmem:[%s5628_s10 + $0x228] sm:$0xff] %v1039_v41 }
  0x69   : > { %1042 = vst [vmem:[%s5628_s10 + $0x230] sm:$0xff] %v1041_v42  ;;  %1044 = vst [vmem:[%s5628_s10 + $0x238] sm:$0xff] %v1043_v43  ;;  %v1045_v44 = vld [vmem:[%s5623_s28 + $0x480] sm:$0xff]  ;;  %v1047_v45 = vld [vmem:[%s5623_s28 + $0x490] sm:$0xff] }
  0x6a   : > { %v1049_v46 = vld [vmem:[%s5623_s28 + $0x4a0] sm:$0xff]  ;;  %1046 = vst [vmem:[%s5628_s10 + $0x240] sm:$0xff] %v1045_v44  ;;  %1048 = vst [vmem:[%s5628_s10 + $0x248] sm:$0xff] %v1047_v45  ;;  %v1051_v47 = vld [vmem:[%s5623_s28 + $0x4b0] sm:$0xff] }
  0x6b   : > { %1050 = vst [vmem:[%s5628_s10 + $0x250] sm:$0xff] %v1049_v46  ;;  %v1053_v48 = vld [vmem:[%s5623_s28 + $0x4c0] sm:$0xff]  ;;  %v1055_v49 = vld [vmem:[%s5623_s28 + $0x4d0] sm:$0xff]  ;;  %1052 = vst [vmem:[%s5628_s10 + $0x258] sm:$0xff] %v1051_v47 }
  0x6c   : > { %1054 = vst [vmem:[%s5628_s10 + $0x260] sm:$0xff] %v1053_v48  ;;  %1056 = vst [vmem:[%s5628_s10 + $0x268] sm:$0xff] %v1055_v49  ;;  %v1057_v50 = vld [vmem:[%s5623_s28 + $0x4e0] sm:$0xff]  ;;  %v1059_v51 = vld [vmem:[%s5623_s28 + $0x4f0] sm:$0xff] }
  0x6d   : > { %v1061_v52 = vld [vmem:[%s5623_s28 + $0x500] sm:$0xff]  ;;  %1058 = vst [vmem:[%s5628_s10 + $0x270] sm:$0xff] %v1057_v50  ;;  %1060 = vst [vmem:[%s5628_s10 + $0x278] sm:$0xff] %v1059_v51  ;;  %v1063_v53 = vld [vmem:[%s5623_s28 + $0x510] sm:$0xff] }
  0x6e   : > { %1062 = vst [vmem:[%s5628_s10 + $0x280] sm:$0xff] %v1061_v52  ;;  %v1065_v54 = vld [vmem:[%s5623_s28 + $0x520] sm:$0xff]  ;;  %v1067_v55 = vld [vmem:[%s5623_s28 + $0x530] sm:$0xff]  ;;  %1064 = vst [vmem:[%s5628_s10 + $0x288] sm:$0xff] %v1063_v53 }
  0x6f   : > { %1066 = vst [vmem:[%s5628_s10 + $0x290] sm:$0xff] %v1065_v54  ;;  %1068 = vst [vmem:[%s5628_s10 + $0x298] sm:$0xff] %v1067_v55  ;;  %v1069_v56 = vld [vmem:[%s5623_s28 + $0x540] sm:$0xff]  ;;  %v1071_v57 = vld [vmem:[%s5623_s28 + $0x550] sm:$0xff] }
  0x70   : > { %v1073_v58 = vld [vmem:[%s5623_s28 + $0x560] sm:$0xff]  ;;  %1070 = vst [vmem:[%s5628_s10 + $0x2a0] sm:$0xff] %v1069_v56  ;;  %1072 = vst [vmem:[%s5628_s10 + $0x2a8] sm:$0xff] %v1071_v57  ;;  %v1075_v59 = vld [vmem:[%s5623_s28 + $0x570] sm:$0xff] }
  0x71   : > { %1074 = vst [vmem:[%s5628_s10 + $0x2b0] sm:$0xff] %v1073_v58  ;;  %v1077_v60 = vld [vmem:[%s5623_s28 + $0x580] sm:$0xff]  ;;  %v1079_v61 = vld [vmem:[%s5623_s28 + $0x590] sm:$0xff]  ;;  %1076 = vst [vmem:[%s5628_s10 + $0x2b8] sm:$0xff] %v1075_v59 }
  0x72   : > { %1078 = vst [vmem:[%s5628_s10 + $0x2c0] sm:$0xff] %v1077_v60  ;;  %1080 = vst [vmem:[%s5628_s10 + $0x2c8] sm:$0xff] %v1079_v61  ;;  %v1081_v62 = vld [vmem:[%s5623_s28 + $0x5a0] sm:$0xff]  ;;  %v1083_v63 = vld [vmem:[%s5623_s28 + $0x5b0] sm:$0xff] }
  0x73   : > { %v1085_v0 = vld [vmem:[%s5623_s28 + $0x5c0] sm:$0xff]  ;;  %1082 = vst [vmem:[%s5628_s10 + $0x2d0] sm:$0xff] %v1081_v62  ;;  %1084 = vst [vmem:[%s5628_s10 + $0x2d8] sm:$0xff] %v1083_v63  ;;  %v1087_v1 = vld [vmem:[%s5623_s28 + $0x5d0] sm:$0xff] }
  0x74   : > { %1086 = vst [vmem:[%s5628_s10 + $0x2e0] sm:$0xff] %v1085_v0  ;;  %v1089_v2 = vld [vmem:[%s5623_s28 + $0x5e0] sm:$0xff]  ;;  %v1091_v3 = vld [vmem:[%s5623_s28 + $0x5f0] sm:$0xff]  ;;  %1088 = vst [vmem:[%s5628_s10 + $0x2e8] sm:$0xff] %v1087_v1 }
  0x75   : > { %1090 = vst [vmem:[%s5628_s10 + $0x2f0] sm:$0xff] %v1089_v2  ;;  %1092 = vst [vmem:[%s5628_s10 + $0x2f8] sm:$0xff] %v1091_v3  ;;  %v1093_v4 = vld [vmem:[%s5623_s28 + $0x600] sm:$0xff]  ;;  %v1095_v5 = vld [vmem:[%s5623_s28 + $0x610] sm:$0xff] }
  0x76   : > { %v1097_v6 = vld [vmem:[%s5623_s28 + $0x620] sm:$0xff]  ;;  %1094 = vst [vmem:[%s5628_s10 + $0x300] sm:$0xff] %v1093_v4  ;;  %1096 = vst [vmem:[%s5628_s10 + $0x308] sm:$0xff] %v1095_v5  ;;  %v1099_v7 = vld [vmem:[%s5623_s28 + $0x630] sm:$0xff] }
  0x77   : > { %1098 = vst [vmem:[%s5628_s10 + $0x310] sm:$0xff] %v1097_v6  ;;  %v1101_v8 = vld [vmem:[%s5623_s28 + $0x640] sm:$0xff]  ;;  %v1103_v9 = vld [vmem:[%s5623_s28 + $0x650] sm:$0xff]  ;;  %1100 = vst [vmem:[%s5628_s10 + $0x318] sm:$0xff] %v1099_v7 }
  0x78   : > { %1102 = vst [vmem:[%s5628_s10 + $0x320] sm:$0xff] %v1101_v8  ;;  %1104 = vst [vmem:[%s5628_s10 + $0x328] sm:$0xff] %v1103_v9  ;;  %v1105_v10 = vld [vmem:[%s5623_s28 + $0x660] sm:$0xff]  ;;  %v1107_v11 = vld [vmem:[%s5623_s28 + $0x670] sm:$0xff] }
  0x79   : > { %v1109_v12 = vld [vmem:[%s5623_s28 + $0x680] sm:$0xff]  ;;  %1106 = vst [vmem:[%s5628_s10 + $0x330] sm:$0xff] %v1105_v10  ;;  %1108 = vst [vmem:[%s5628_s10 + $0x338] sm:$0xff] %v1107_v11  ;;  %v1111_v13 = vld [vmem:[%s5623_s28 + $0x690] sm:$0xff] }
  0x7a   : > { %1110 = vst [vmem:[%s5628_s10 + $0x340] sm:$0xff] %v1109_v12  ;;  %v1113_v14 = vld [vmem:[%s5623_s28 + $0x6a0] sm:$0xff]  ;;  %v1115_v15 = vld [vmem:[%s5623_s28 + $0x6b0] sm:$0xff]  ;;  %1112 = vst [vmem:[%s5628_s10 + $0x348] sm:$0xff] %v1111_v13 }
  0x7b   : > { %1114 = vst [vmem:[%s5628_s10 + $0x350] sm:$0xff] %v1113_v14  ;;  %1116 = vst [vmem:[%s5628_s10 + $0x358] sm:$0xff] %v1115_v15  ;;  %v1117_v16 = vld [vmem:[%s5623_s28 + $0x6c0] sm:$0xff]  ;;  %v1119_v17 = vld [vmem:[%s5623_s28 + $0x6d0] sm:$0xff] }
  0x7c   : > { %v1121_v18 = vld [vmem:[%s5623_s28 + $0x6e0] sm:$0xff]  ;;  %1118 = vst [vmem:[%s5628_s10 + $0x360] sm:$0xff] %v1117_v16  ;;  %1120 = vst [vmem:[%s5628_s10 + $0x368] sm:$0xff] %v1119_v17  ;;  %v1123_v19 = vld [vmem:[%s5623_s28 + $0x6f0] sm:$0xff] }
  0x7d   : > { %1122 = vst [vmem:[%s5628_s10 + $0x370] sm:$0xff] %v1121_v18  ;;  %v1125_v20 = vld [vmem:[%s5623_s28 + $0x700] sm:$0xff]  ;;  %v1127_v21 = vld [vmem:[%s5623_s28 + $0x710] sm:$0xff]  ;;  %1124 = vst [vmem:[%s5628_s10 + $0x378] sm:$0xff] %v1123_v19 }
  0x7e   : > { %1126 = vst [vmem:[%s5628_s10 + $0x380] sm:$0xff] %v1125_v20  ;;  %1128 = vst [vmem:[%s5628_s10 + $0x388] sm:$0xff] %v1127_v21  ;;  %v1129_v22 = vld [vmem:[%s5623_s28 + $0x720] sm:$0xff]  ;;  %v1131_v23 = vld [vmem:[%s5623_s28 + $0x730] sm:$0xff] }
  0x7f   : > { %v1133_v24 = vld [vmem:[%s5623_s28 + $0x740] sm:$0xff]  ;;  %1130 = vst [vmem:[%s5628_s10 + $0x390] sm:$0xff] %v1129_v22  ;;  %1132 = vst [vmem:[%s5628_s10 + $0x398] sm:$0xff] %v1131_v23  ;;  %v1135_v25 = vld [vmem:[%s5623_s28 + $0x750] sm:$0xff] }
  0x80   : > { %1134 = vst [vmem:[%s5628_s10 + $0x3a0] sm:$0xff] %v1133_v24  ;;  %v1137_v26 = vld [vmem:[%s5623_s28 + $0x760] sm:$0xff]  ;;  %v1139_v27 = vld [vmem:[%s5623_s28 + $0x770] sm:$0xff]  ;;  %1136 = vst [vmem:[%s5628_s10 + $0x3a8] sm:$0xff] %v1135_v25 }
  0x81   : > { %1138 = vst [vmem:[%s5628_s10 + $0x3b0] sm:$0xff] %v1137_v26  ;;  %1140 = vst [vmem:[%s5628_s10 + $0x3b8] sm:$0xff] %v1139_v27  ;;  %v1141_v28 = vld [vmem:[%s5623_s28 + $0x780] sm:$0xff]  ;;  %v1143_v29 = vld [vmem:[%s5623_s28 + $0x790] sm:$0xff] }
  0x82   : > { %v1145_v30 = vld [vmem:[%s5623_s28 + $0x7a0] sm:$0xff]  ;;  %1142 = vst [vmem:[%s5628_s10 + $0x3c0] sm:$0xff] %v1141_v28  ;;  %1144 = vst [vmem:[%s5628_s10 + $0x3c8] sm:$0xff] %v1143_v29  ;;  %v1147_v31 = vld [vmem:[%s5623_s28 + $0x7b0] sm:$0xff] }
  0x83   : > { %1146 = vst [vmem:[%s5628_s10 + $0x3d0] sm:$0xff] %v1145_v30  ;;  %v1149_v32 = vld [vmem:[%s5623_s28 + $0x7c0] sm:$0xff]  ;;  %v1151_v33 = vld [vmem:[%s5623_s28 + $0x7d0] sm:$0xff]  ;;  %1148 = vst [vmem:[%s5628_s10 + $0x3d8] sm:$0xff] %v1147_v31 }
  0x84   : > { %1150 = vst [vmem:[%s5628_s10 + $0x3e0] sm:$0xff] %v1149_v32  ;;  %1152 = vst [vmem:[%s5628_s10 + $0x3e8] sm:$0xff] %v1151_v33  ;;  %v1153_v34 = vld [vmem:[%s5623_s28 + $0x7e0] sm:$0xff]  ;;  %v1155_v35 = vld [vmem:[%s5623_s28 + $0x7f0] sm:$0xff] }
  0x85   : > { %v1157_v36 = vld [vmem:[%s5623_s28 + $0x800] sm:$0xff]  ;;  %1154 = vst [vmem:[%s5628_s10 + $0x3f0] sm:$0xff] %v1153_v34  ;;  %1156 = vst [vmem:[%s5628_s10 + $0x3f8] sm:$0xff] %v1155_v35  ;;  %v1159_v37 = vld [vmem:[%s5623_s28 + $0x810] sm:$0xff] }
  0x86   : > { %1158 = vst [vmem:[%s5628_s10 + $0x400] sm:$0xff] %v1157_v36  ;;  %v1161_v38 = vld [vmem:[%s5623_s28 + $0x820] sm:$0xff]  ;;  %v1163_v39 = vld [vmem:[%s5623_s28 + $0x830] sm:$0xff]  ;;  %1160 = vst [vmem:[%s5628_s10 + $0x408] sm:$0xff] %v1159_v37 }
  0x87   : > { %1162 = vst [vmem:[%s5628_s10 + $0x410] sm:$0xff] %v1161_v38  ;;  %1164 = vst [vmem:[%s5628_s10 + $0x418] sm:$0xff] %v1163_v39  ;;  %v1165_v40 = vld [vmem:[%s5623_s28 + $0x840] sm:$0xff]  ;;  %v1167_v41 = vld [vmem:[%s5623_s28 + $0x850] sm:$0xff] }
  0x88   : > { %v1169_v42 = vld [vmem:[%s5623_s28 + $0x860] sm:$0xff]  ;;  %1166 = vst [vmem:[%s5628_s10 + $0x420] sm:$0xff] %v1165_v40  ;;  %1168 = vst [vmem:[%s5628_s10 + $0x428] sm:$0xff] %v1167_v41  ;;  %v1171_v43 = vld [vmem:[%s5623_s28 + $0x870] sm:$0xff] }
  0x89   : > { %1170 = vst [vmem:[%s5628_s10 + $0x430] sm:$0xff] %v1169_v42  ;;  %v1173_v44 = vld [vmem:[%s5623_s28 + $0x880] sm:$0xff]  ;;  %v1175_v45 = vld [vmem:[%s5623_s28 + $0x890] sm:$0xff]  ;;  %1172 = vst [vmem:[%s5628_s10 + $0x438] sm:$0xff] %v1171_v43 }
  0x8a   : > { %1174 = vst [vmem:[%s5628_s10 + $0x440] sm:$0xff] %v1173_v44  ;;  %1176 = vst [vmem:[%s5628_s10 + $0x448] sm:$0xff] %v1175_v45  ;;  %v1177_v46 = vld [vmem:[%s5623_s28 + $0x8a0] sm:$0xff]  ;;  %v1179_v47 = vld [vmem:[%s5623_s28 + $0x8b0] sm:$0xff] }
  0x8b   : > { %v1181_v48 = vld [vmem:[%s5623_s28 + $0x8c0] sm:$0xff]  ;;  %1178 = vst [vmem:[%s5628_s10 + $0x450] sm:$0xff] %v1177_v46  ;;  %1180 = vst [vmem:[%s5628_s10 + $0x458] sm:$0xff] %v1179_v47  ;;  %v1183_v49 = vld [vmem:[%s5623_s28 + $0x8d0] sm:$0xff] }
  0x8c   : > { %1182 = vst [vmem:[%s5628_s10 + $0x460] sm:$0xff] %v1181_v48  ;;  %v1185_v50 = vld [vmem:[%s5623_s28 + $0x8e0] sm:$0xff]  ;;  %v1187_v51 = vld [vmem:[%s5623_s28 + $0x8f0] sm:$0xff]  ;;  %1184 = vst [vmem:[%s5628_s10 + $0x468] sm:$0xff] %v1183_v49 }
  0x8d   : > { %1186 = vst [vmem:[%s5628_s10 + $0x470] sm:$0xff] %v1185_v50  ;;  %1188 = vst [vmem:[%s5628_s10 + $0x478] sm:$0xff] %v1187_v51  ;;  %v1189_v52 = vld [vmem:[%s5623_s28 + $0x900] sm:$0xff]  ;;  %v1191_v53 = vld [vmem:[%s5623_s28 + $0x910] sm:$0xff] }
  0x8e   : > { %v1193_v54 = vld [vmem:[%s5623_s28 + $0x920] sm:$0xff]  ;;  %1190 = vst [vmem:[%s5628_s10 + $0x480] sm:$0xff] %v1189_v52  ;;  %1192 = vst [vmem:[%s5628_s10 + $0x488] sm:$0xff] %v1191_v53  ;;  %v1195_v55 = vld [vmem:[%s5623_s28 + $0x930] sm:$0xff] }
  0x8f   : > { %1194 = vst [vmem:[%s5628_s10 + $0x490] sm:$0xff] %v1193_v54  ;;  %v1197_v56 = vld [vmem:[%s5623_s28 + $0x940] sm:$0xff]  ;;  %v1199_v57 = vld [vmem:[%s5623_s28 + $0x950] sm:$0xff]  ;;  %1196 = vst [vmem:[%s5628_s10 + $0x498] sm:$0xff] %v1195_v55 }
  0x90   : > { %1198 = vst [vmem:[%s5628_s10 + $0x4a0] sm:$0xff] %v1197_v56  ;;  %1200 = vst [vmem:[%s5628_s10 + $0x4a8] sm:$0xff] %v1199_v57  ;;  %v1201_v58 = vld [vmem:[%s5623_s28 + $0x960] sm:$0xff]  ;;  %v1203_v59 = vld [vmem:[%s5623_s28 + $0x970] sm:$0xff] }
  0x91   : > { %v1205_v60 = vld [vmem:[%s5623_s28 + $0x980] sm:$0xff]  ;;  %1202 = vst [vmem:[%s5628_s10 + $0x4b0] sm:$0xff] %v1201_v58  ;;  %1204 = vst [vmem:[%s5628_s10 + $0x4b8] sm:$0xff] %v1203_v59  ;;  %v1207_v61 = vld [vmem:[%s5623_s28 + $0x990] sm:$0xff] }
  0x92   : > { %1206 = vst [vmem:[%s5628_s10 + $0x4c0] sm:$0xff] %v1205_v60  ;;  %v1209_v62 = vld [vmem:[%s5623_s28 + $0x9a0] sm:$0xff]  ;;  %v1211_v63 = vld [vmem:[%s5623_s28 + $0x9b0] sm:$0xff]  ;;  %1208 = vst [vmem:[%s5628_s10 + $0x4c8] sm:$0xff] %v1207_v61 }
  0x93   : > { %1210 = vst [vmem:[%s5628_s10 + $0x4d0] sm:$0xff] %v1209_v62  ;;  %1212 = vst [vmem:[%s5628_s10 + $0x4d8] sm:$0xff] %v1211_v63  ;;  %v1213_v0 = vld [vmem:[%s5623_s28 + $0x9c0] sm:$0xff]  ;;  %v1215_v1 = vld [vmem:[%s5623_s28 + $0x9d0] sm:$0xff] }
  0x94   : > { %v1217_v2 = vld [vmem:[%s5623_s28 + $0x9e0] sm:$0xff]  ;;  %1214 = vst [vmem:[%s5628_s10 + $0x4e0] sm:$0xff] %v1213_v0  ;;  %1216 = vst [vmem:[%s5628_s10 + $0x4e8] sm:$0xff] %v1215_v1  ;;  %v1219_v3 = vld [vmem:[%s5623_s28 + $0x9f0] sm:$0xff] }
  0x95   : > { %1218 = vst [vmem:[%s5628_s10 + $0x4f0] sm:$0xff] %v1217_v2  ;;  %v1221_v4 = vld [vmem:[%s5623_s28 + $0xa00] sm:$0xff]  ;;  %v1223_v5 = vld [vmem:[%s5623_s28 + $0xa10] sm:$0xff]  ;;  %1220 = vst [vmem:[%s5628_s10 + $0x4f8] sm:$0xff] %v1219_v3 }
  0x96   : > { %1222 = vst [vmem:[%s5628_s10 + $0x500] sm:$0xff] %v1221_v4  ;;  %1224 = vst [vmem:[%s5628_s10 + $0x508] sm:$0xff] %v1223_v5  ;;  %v1225_v6 = vld [vmem:[%s5623_s28 + $0xa20] sm:$0xff]  ;;  %v1227_v7 = vld [vmem:[%s5623_s28 + $0xa30] sm:$0xff] }
  0x97   : > { %v1229_v8 = vld [vmem:[%s5623_s28 + $0xa40] sm:$0xff]  ;;  %1226 = vst [vmem:[%s5628_s10 + $0x510] sm:$0xff] %v1225_v6  ;;  %1228 = vst [vmem:[%s5628_s10 + $0x518] sm:$0xff] %v1227_v7  ;;  %v1231_v9 = vld [vmem:[%s5623_s28 + $0xa50] sm:$0xff] }
  0x98   : > { %1230 = vst [vmem:[%s5628_s10 + $0x520] sm:$0xff] %v1229_v8  ;;  %v1233_v10 = vld [vmem:[%s5623_s28 + $0xa60] sm:$0xff]  ;;  %v1235_v11 = vld [vmem:[%s5623_s28 + $0xa70] sm:$0xff]  ;;  %1232 = vst [vmem:[%s5628_s10 + $0x528] sm:$0xff] %v1231_v9 }
  0x99   : > { %1234 = vst [vmem:[%s5628_s10 + $0x530] sm:$0xff] %v1233_v10  ;;  %1236 = vst [vmem:[%s5628_s10 + $0x538] sm:$0xff] %v1235_v11  ;;  %v1237_v12 = vld [vmem:[%s5623_s28 + $0xa80] sm:$0xff]  ;;  %v1239_v13 = vld [vmem:[%s5623_s28 + $0xa90] sm:$0xff] }
  0x9a   : > { %v1241_v14 = vld [vmem:[%s5623_s28 + $0xaa0] sm:$0xff]  ;;  %1238 = vst [vmem:[%s5628_s10 + $0x540] sm:$0xff] %v1237_v12  ;;  %1240 = vst [vmem:[%s5628_s10 + $0x548] sm:$0xff] %v1239_v13  ;;  %v1243_v15 = vld [vmem:[%s5623_s28 + $0xab0] sm:$0xff] }
  0x9b   : > { %1242 = vst [vmem:[%s5628_s10 + $0x550] sm:$0xff] %v1241_v14  ;;  %v1245_v16 = vld [vmem:[%s5623_s28 + $0xac0] sm:$0xff]  ;;  %v1247_v17 = vld [vmem:[%s5623_s28 + $0xad0] sm:$0xff]  ;;  %1244 = vst [vmem:[%s5628_s10 + $0x558] sm:$0xff] %v1243_v15 }
  0x9c   : > { %1246 = vst [vmem:[%s5628_s10 + $0x560] sm:$0xff] %v1245_v16  ;;  %1248 = vst [vmem:[%s5628_s10 + $0x568] sm:$0xff] %v1247_v17  ;;  %v1249_v18 = vld [vmem:[%s5623_s28 + $0xae0] sm:$0xff]  ;;  %v1251_v19 = vld [vmem:[%s5623_s28 + $0xaf0] sm:$0xff] }
  0x9d   : > { %v1253_v20 = vld [vmem:[%s5623_s28 + $0xb00] sm:$0xff]  ;;  %1250 = vst [vmem:[%s5628_s10 + $0x570] sm:$0xff] %v1249_v18  ;;  %1252 = vst [vmem:[%s5628_s10 + $0x578] sm:$0xff] %v1251_v19  ;;  %v1255_v21 = vld [vmem:[%s5623_s28 + $0xb10] sm:$0xff] }
  0x9e   : > { %1254 = vst [vmem:[%s5628_s10 + $0x580] sm:$0xff] %v1253_v20  ;;  %v1257_v22 = vld [vmem:[%s5623_s28 + $0xb20] sm:$0xff]  ;;  %v1259_v23 = vld [vmem:[%s5623_s28 + $0xb30] sm:$0xff]  ;;  %1256 = vst [vmem:[%s5628_s10 + $0x588] sm:$0xff] %v1255_v21 }
  0x9f   : > { %1258 = vst [vmem:[%s5628_s10 + $0x590] sm:$0xff] %v1257_v22  ;;  %1260 = vst [vmem:[%s5628_s10 + $0x598] sm:$0xff] %v1259_v23  ;;  %v1261_v24 = vld [vmem:[%s5623_s28 + $0xb40] sm:$0xff]  ;;  %v1263_v25 = vld [vmem:[%s5623_s28 + $0xb50] sm:$0xff] }
  0xa0   : > { %v1265_v26 = vld [vmem:[%s5623_s28 + $0xb60] sm:$0xff]  ;;  %1262 = vst [vmem:[%s5628_s10 + $0x5a0] sm:$0xff] %v1261_v24  ;;  %1264 = vst [vmem:[%s5628_s10 + $0x5a8] sm:$0xff] %v1263_v25  ;;  %v1267_v27 = vld [vmem:[%s5623_s28 + $0xb70] sm:$0xff] }
  0xa1   : > { %1266 = vst [vmem:[%s5628_s10 + $0x5b0] sm:$0xff] %v1265_v26  ;;  %v1269_v28 = vld [vmem:[%s5623_s28 + $0xb80] sm:$0xff]  ;;  %v1271_v29 = vld [vmem:[%s5623_s28 + $0xb90] sm:$0xff]  ;;  %1268 = vst [vmem:[%s5628_s10 + $0x5b8] sm:$0xff] %v1267_v27 }
  0xa2   : > { %1270 = vst [vmem:[%s5628_s10 + $0x5c0] sm:$0xff] %v1269_v28  ;;  %1272 = vst [vmem:[%s5628_s10 + $0x5c8] sm:$0xff] %v1271_v29  ;;  %v1273_v30 = vld [vmem:[%s5623_s28 + $0xba0] sm:$0xff]  ;;  %v1275_v31 = vld [vmem:[%s5623_s28 + $0xbb0] sm:$0xff] }
  0xa3   : > { %v1277_v32 = vld [vmem:[%s5623_s28 + $0xbc0] sm:$0xff]  ;;  %1274 = vst [vmem:[%s5628_s10 + $0x5d0] sm:$0xff] %v1273_v30  ;;  %1276 = vst [vmem:[%s5628_s10 + $0x5d8] sm:$0xff] %v1275_v31  ;;  %v1279_v33 = vld [vmem:[%s5623_s28 + $0xbd0] sm:$0xff] }
  0xa4   : > { %1278 = vst [vmem:[%s5628_s10 + $0x5e0] sm:$0xff] %v1277_v32  ;;  %v1281_v34 = vld [vmem:[%s5623_s28 + $0xbe0] sm:$0xff]  ;;  %v1283_v35 = vld [vmem:[%s5623_s28 + $0xbf0] sm:$0xff]  ;;  %1280 = vst [vmem:[%s5628_s10 + $0x5e8] sm:$0xff] %v1279_v33 }
  0xa5   : > { %1282 = vst [vmem:[%s5628_s10 + $0x5f0] sm:$0xff] %v1281_v34  ;;  %1284 = vst [vmem:[%s5628_s10 + $0x5f8] sm:$0xff] %v1283_v35  ;;  %v1285_v36 = vld [vmem:[%s5623_s28 + $0xc00] sm:$0xff]  ;;  %v1287_v37 = vld [vmem:[%s5623_s28 + $0xc10] sm:$0xff] }
  0xa6   : > { %v1289_v38 = vld [vmem:[%s5623_s28 + $0xc20] sm:$0xff]  ;;  %1286 = vst [vmem:[%s5628_s10 + $0x600] sm:$0xff] %v1285_v36  ;;  %1288 = vst [vmem:[%s5628_s10 + $0x608] sm:$0xff] %v1287_v37  ;;  %v1291_v39 = vld [vmem:[%s5623_s28 + $0xc30] sm:$0xff] }
  0xa7   : > { %1290 = vst [vmem:[%s5628_s10 + $0x610] sm:$0xff] %v1289_v38  ;;  %v1293_v40 = vld [vmem:[%s5623_s28 + $0xc40] sm:$0xff]  ;;  %v1295_v41 = vld [vmem:[%s5623_s28 + $0xc50] sm:$0xff]  ;;  %1292 = vst [vmem:[%s5628_s10 + $0x618] sm:$0xff] %v1291_v39 }
  0xa8   : > { %1294 = vst [vmem:[%s5628_s10 + $0x620] sm:$0xff] %v1293_v40  ;;  %1296 = vst [vmem:[%s5628_s10 + $0x628] sm:$0xff] %v1295_v41  ;;  %v1297_v42 = vld [vmem:[%s5623_s28 + $0xc60] sm:$0xff]  ;;  %v1299_v43 = vld [vmem:[%s5623_s28 + $0xc70] sm:$0xff] }
  0xa9   : > { %v1301_v44 = vld [vmem:[%s5623_s28 + $0xc80] sm:$0xff]  ;;  %1298 = vst [vmem:[%s5628_s10 + $0x630] sm:$0xff] %v1297_v42  ;;  %1300 = vst [vmem:[%s5628_s10 + $0x638] sm:$0xff] %v1299_v43  ;;  %v1303_v45 = vld [vmem:[%s5623_s28 + $0xc90] sm:$0xff] }
  0xaa   : > { %1302 = vst [vmem:[%s5628_s10 + $0x640] sm:$0xff] %v1301_v44  ;;  %v1305_v46 = vld [vmem:[%s5623_s28 + $0xca0] sm:$0xff]  ;;  %v1307_v47 = vld [vmem:[%s5623_s28 + $0xcb0] sm:$0xff]  ;;  %1304 = vst [vmem:[%s5628_s10 + $0x648] sm:$0xff] %v1303_v45 }
  0xab   : > { %1306 = vst [vmem:[%s5628_s10 + $0x650] sm:$0xff] %v1305_v46  ;;  %1308 = vst [vmem:[%s5628_s10 + $0x658] sm:$0xff] %v1307_v47  ;;  %v1309_v48 = vld [vmem:[%s5623_s28 + $0xcc0] sm:$0xff]  ;;  %v1311_v49 = vld [vmem:[%s5623_s28 + $0xcd0] sm:$0xff] }
  0xac   : > { %v1313_v50 = vld [vmem:[%s5623_s28 + $0xce0] sm:$0xff]  ;;  %1310 = vst [vmem:[%s5628_s10 + $0x660] sm:$0xff] %v1309_v48  ;;  %1312 = vst [vmem:[%s5628_s10 + $0x668] sm:$0xff] %v1311_v49  ;;  %v1315_v51 = vld [vmem:[%s5623_s28 + $0xcf0] sm:$0xff] }
  0xad   : > { %1314 = vst [vmem:[%s5628_s10 + $0x670] sm:$0xff] %v1313_v50  ;;  %v1317_v52 = vld [vmem:[%s5623_s28 + $0xd00] sm:$0xff]  ;;  %v1319_v53 = vld [vmem:[%s5623_s28 + $0xd10] sm:$0xff]  ;;  %1316 = vst [vmem:[%s5628_s10 + $0x678] sm:$0xff] %v1315_v51 }
  0xae   : > { %1318 = vst [vmem:[%s5628_s10 + $0x680] sm:$0xff] %v1317_v52  ;;  %1320 = vst [vmem:[%s5628_s10 + $0x688] sm:$0xff] %v1319_v53  ;;  %v1321_v54 = vld [vmem:[%s5623_s28 + $0xd20] sm:$0xff]  ;;  %v1323_v55 = vld [vmem:[%s5623_s28 + $0xd30] sm:$0xff] }
  0xaf   : > { %v1325_v56 = vld [vmem:[%s5623_s28 + $0xd40] sm:$0xff]  ;;  %1322 = vst [vmem:[%s5628_s10 + $0x690] sm:$0xff] %v1321_v54  ;;  %1324 = vst [vmem:[%s5628_s10 + $0x698] sm:$0xff] %v1323_v55  ;;  %v1327_v57 = vld [vmem:[%s5623_s28 + $0xd50] sm:$0xff] }
  0xb0   : > { %1326 = vst [vmem:[%s5628_s10 + $0x6a0] sm:$0xff] %v1325_v56  ;;  %v1329_v58 = vld [vmem:[%s5623_s28 + $0xd60] sm:$0xff]  ;;  %v1331_v59 = vld [vmem:[%s5623_s28 + $0xd70] sm:$0xff]  ;;  %1328 = vst [vmem:[%s5628_s10 + $0x6a8] sm:$0xff] %v1327_v57 }
  0xb1   : > { %1330 = vst [vmem:[%s5628_s10 + $0x6b0] sm:$0xff] %v1329_v58  ;;  %1332 = vst [vmem:[%s5628_s10 + $0x6b8] sm:$0xff] %v1331_v59  ;;  %v1333_v60 = vld [vmem:[%s5623_s28 + $0xd80] sm:$0xff]  ;;  %v1335_v61 = vld [vmem:[%s5623_s28 + $0xd90] sm:$0xff] }
  0xb2   : > { %v1337_v62 = vld [vmem:[%s5623_s28 + $0xda0] sm:$0xff]  ;;  %1334 = vst [vmem:[%s5628_s10 + $0x6c0] sm:$0xff] %v1333_v60  ;;  %1336 = vst [vmem:[%s5628_s10 + $0x6c8] sm:$0xff] %v1335_v61  ;;  %v1339_v63 = vld [vmem:[%s5623_s28 + $0xdb0] sm:$0xff] }
  0xb3   : > { %1338 = vst [vmem:[%s5628_s10 + $0x6d0] sm:$0xff] %v1337_v62  ;;  %v1341_v0 = vld [vmem:[%s5623_s28 + $0xdc0] sm:$0xff]  ;;  %v1343_v1 = vld [vmem:[%s5623_s28 + $0xdd0] sm:$0xff]  ;;  %1340 = vst [vmem:[%s5628_s10 + $0x6d8] sm:$0xff] %v1339_v63 }
  0xb4   : > { %1342 = vst [vmem:[%s5628_s10 + $0x6e0] sm:$0xff] %v1341_v0  ;;  %1344 = vst [vmem:[%s5628_s10 + $0x6e8] sm:$0xff] %v1343_v1  ;;  %v1345_v2 = vld [vmem:[%s5623_s28 + $0xde0] sm:$0xff]  ;;  %v1347_v3 = vld [vmem:[%s5623_s28 + $0xdf0] sm:$0xff] }
  0xb5   : > { %v1349_v4 = vld [vmem:[%s5623_s28 + $0xe00] sm:$0xff]  ;;  %1346 = vst [vmem:[%s5628_s10 + $0x6f0] sm:$0xff] %v1345_v2  ;;  %1348 = vst [vmem:[%s5628_s10 + $0x6f8] sm:$0xff] %v1347_v3  ;;  %v1351_v5 = vld [vmem:[%s5623_s28 + $0xe10] sm:$0xff] }
  0xb6   : > { %1350 = vst [vmem:[%s5628_s10 + $0x700] sm:$0xff] %v1349_v4  ;;  %v1353_v6 = vld [vmem:[%s5623_s28 + $0xe20] sm:$0xff]  ;;  %v1355_v7 = vld [vmem:[%s5623_s28 + $0xe30] sm:$0xff]  ;;  %1352 = vst [vmem:[%s5628_s10 + $0x708] sm:$0xff] %v1351_v5 }
  0xb7   : > { %1354 = vst [vmem:[%s5628_s10 + $0x710] sm:$0xff] %v1353_v6  ;;  %1356 = vst [vmem:[%s5628_s10 + $0x718] sm:$0xff] %v1355_v7  ;;  %v1357_v8 = vld [vmem:[%s5623_s28 + $0xe40] sm:$0xff]  ;;  %v1359_v9 = vld [vmem:[%s5623_s28 + $0xe50] sm:$0xff] }
  0xb8   : > { %v1361_v10 = vld [vmem:[%s5623_s28 + $0xe60] sm:$0xff]  ;;  %1358 = vst [vmem:[%s5628_s10 + $0x720] sm:$0xff] %v1357_v8  ;;  %1360 = vst [vmem:[%s5628_s10 + $0x728] sm:$0xff] %v1359_v9  ;;  %v1363_v11 = vld [vmem:[%s5623_s28 + $0xe70] sm:$0xff] }
  0xb9   : > { %1362 = vst [vmem:[%s5628_s10 + $0x730] sm:$0xff] %v1361_v10  ;;  %v1365_v12 = vld [vmem:[%s5623_s28 + $0xe80] sm:$0xff]  ;;  %v1367_v13 = vld [vmem:[%s5623_s28 + $0xe90] sm:$0xff]  ;;  %1364 = vst [vmem:[%s5628_s10 + $0x738] sm:$0xff] %v1363_v11 }
  0xba   : > { %1366 = vst [vmem:[%s5628_s10 + $0x740] sm:$0xff] %v1365_v12  ;;  %1368 = vst [vmem:[%s5628_s10 + $0x748] sm:$0xff] %v1367_v13  ;;  %v1369_v14 = vld [vmem:[%s5623_s28 + $0xea0] sm:$0xff]  ;;  %v1371_v15 = vld [vmem:[%s5623_s28 + $0xeb0] sm:$0xff] }
  0xbb   : > { %v1373_v16 = vld [vmem:[%s5623_s28 + $0xec0] sm:$0xff]  ;;  %1370 = vst [vmem:[%s5628_s10 + $0x750] sm:$0xff] %v1369_v14  ;;  %1372 = vst [vmem:[%s5628_s10 + $0x758] sm:$0xff] %v1371_v15  ;;  %v1375_v17 = vld [vmem:[%s5623_s28 + $0xed0] sm:$0xff] }
  0xbc   : > { %1374 = vst [vmem:[%s5628_s10 + $0x760] sm:$0xff] %v1373_v16  ;;  %v1377_v18 = vld [vmem:[%s5623_s28 + $0xee0] sm:$0xff]  ;;  %v1379_v19 = vld [vmem:[%s5623_s28 + $0xef0] sm:$0xff]  ;;  %1376 = vst [vmem:[%s5628_s10 + $0x768] sm:$0xff] %v1375_v17 }
  0xbd   : > { %1378 = vst [vmem:[%s5628_s10 + $0x770] sm:$0xff] %v1377_v18  ;;  %1380 = vst [vmem:[%s5628_s10 + $0x778] sm:$0xff] %v1379_v19  ;;  %v1381_v20 = vld [vmem:[%s5623_s28 + $0xf00] sm:$0xff]  ;;  %v1383_v21 = vld [vmem:[%s5623_s28 + $0xf10] sm:$0xff] }
  0xbe   : > { %v1385_v22 = vld [vmem:[%s5623_s28 + $0xf20] sm:$0xff]  ;;  %1382 = vst [vmem:[%s5628_s10 + $0x780] sm:$0xff] %v1381_v20  ;;  %1384 = vst [vmem:[%s5628_s10 + $0x788] sm:$0xff] %v1383_v21  ;;  %v1387_v23 = vld [vmem:[%s5623_s28 + $0xf30] sm:$0xff] }
  0xbf   : > { %1386 = vst [vmem:[%s5628_s10 + $0x790] sm:$0xff] %v1385_v22  ;;  %v1389_v24 = vld [vmem:[%s5623_s28 + $0xf40] sm:$0xff]  ;;  %v1391_v25 = vld [vmem:[%s5623_s28 + $0xf50] sm:$0xff]  ;;  %1388 = vst [vmem:[%s5628_s10 + $0x798] sm:$0xff] %v1387_v23 }
  0xc0   : > { %1390 = vst [vmem:[%s5628_s10 + $0x7a0] sm:$0xff] %v1389_v24  ;;  %1392 = vst [vmem:[%s5628_s10 + $0x7a8] sm:$0xff] %v1391_v25  ;;  %v1393_v26 = vld [vmem:[%s5623_s28 + $0xf60] sm:$0xff]  ;;  %v1395_v27 = vld [vmem:[%s5623_s28 + $0xf70] sm:$0xff] }
  0xc1   : > { %v1397_v28 = vld [vmem:[%s5623_s28 + $0xf80] sm:$0xff]  ;;  %1394 = vst [vmem:[%s5628_s10 + $0x7b0] sm:$0xff] %v1393_v26  ;;  %1396 = vst [vmem:[%s5628_s10 + $0x7b8] sm:$0xff] %v1395_v27  ;;  %v1399_v29 = vld [vmem:[%s5623_s28 + $0xf90] sm:$0xff] }
  0xc2   : > { %1398 = vst [vmem:[%s5628_s10 + $0x7c0] sm:$0xff] %v1397_v28  ;;  %v1401_v30 = vld [vmem:[%s5623_s28 + $0xfa0] sm:$0xff]  ;;  %v1403_v31 = vld [vmem:[%s5623_s28 + $0xfb0] sm:$0xff]  ;;  %1400 = vst [vmem:[%s5628_s10 + $0x7c8] sm:$0xff] %v1399_v29 }
  0xc3   : > { %1402 = vst [vmem:[%s5628_s10 + $0x7d0] sm:$0xff] %v1401_v30  ;;  %1404 = vst [vmem:[%s5628_s10 + $0x7d8] sm:$0xff] %v1403_v31  ;;  %v1405_v32 = vld [vmem:[%s5623_s28 + $0xfc0] sm:$0xff]  ;;  %v1407_v33 = vld [vmem:[%s5623_s28 + $0xfd0] sm:$0xff] }
  0xc4   : > { %v1409_v34 = vld [vmem:[%s5623_s28 + $0xfe0] sm:$0xff]  ;;  %1406 = vst [vmem:[%s5628_s10 + $0x7e0] sm:$0xff] %v1405_v32  ;;  %1408 = vst [vmem:[%s5628_s10 + $0x7e8] sm:$0xff] %v1407_v33  ;;  %v1411_v35 = vld [vmem:[%s5623_s28 + $0xff0] sm:$0xff] }
  0xc5   : > { %1410 = vst [vmem:[%s5628_s10 + $0x7f0] sm:$0xff] %v1409_v34  ;;  %v1413_v36 = vld [vmem:[%s5623_s28 + $0x1000] sm:$0xff]  ;;  %v1415_v37 = vld [vmem:[%s5623_s28 + $0x1010] sm:$0xff]  ;;  %1412 = vst [vmem:[%s5628_s10 + $0x7f8] sm:$0xff] %v1411_v35 }
  0xc6   : > { %1414 = vst [vmem:[%s5628_s10 + $0x800] sm:$0xff] %v1413_v36  ;;  %1416 = vst [vmem:[%s5628_s10 + $0x808] sm:$0xff] %v1415_v37  ;;  %v1417_v38 = vld [vmem:[%s5623_s28 + $0x1020] sm:$0xff]  ;;  %v1419_v39 = vld [vmem:[%s5623_s28 + $0x1030] sm:$0xff] }
  0xc7   : > { %v1421_v40 = vld [vmem:[%s5623_s28 + $0x1040] sm:$0xff]  ;;  %1418 = vst [vmem:[%s5628_s10 + $0x810] sm:$0xff] %v1417_v38  ;;  %1420 = vst [vmem:[%s5628_s10 + $0x818] sm:$0xff] %v1419_v39  ;;  %v1423_v41 = vld [vmem:[%s5623_s28 + $0x1050] sm:$0xff] }
  0xc8   : > { %1422 = vst [vmem:[%s5628_s10 + $0x820] sm:$0xff] %v1421_v40  ;;  %v1425_v42 = vld [vmem:[%s5623_s28 + $0x1060] sm:$0xff]  ;;  %v1427_v43 = vld [vmem:[%s5623_s28 + $0x1070] sm:$0xff]  ;;  %1424 = vst [vmem:[%s5628_s10 + $0x828] sm:$0xff] %v1423_v41 }
  0xc9   : > { %1426 = vst [vmem:[%s5628_s10 + $0x830] sm:$0xff] %v1425_v42  ;;  %1428 = vst [vmem:[%s5628_s10 + $0x838] sm:$0xff] %v1427_v43  ;;  %v1429_v44 = vld [vmem:[%s5623_s28 + $0x1080] sm:$0xff]  ;;  %v1431_v45 = vld [vmem:[%s5623_s28 + $0x1090] sm:$0xff] }
  0xca   : > { %v1433_v46 = vld [vmem:[%s5623_s28 + $0x10a0] sm:$0xff]  ;;  %1430 = vst [vmem:[%s5628_s10 + $0x840] sm:$0xff] %v1429_v44  ;;  %1432 = vst [vmem:[%s5628_s10 + $0x848] sm:$0xff] %v1431_v45  ;;  %v1435_v47 = vld [vmem:[%s5623_s28 + $0x10b0] sm:$0xff] }
  0xcb   : > { %1434 = vst [vmem:[%s5628_s10 + $0x850] sm:$0xff] %v1433_v46  ;;  %v1437_v48 = vld [vmem:[%s5623_s28 + $0x10c0] sm:$0xff]  ;;  %v1439_v49 = vld [vmem:[%s5623_s28 + $0x10d0] sm:$0xff]  ;;  %1436 = vst [vmem:[%s5628_s10 + $0x858] sm:$0xff] %v1435_v47 }
  0xcc   : > { %1438 = vst [vmem:[%s5628_s10 + $0x860] sm:$0xff] %v1437_v48  ;;  %1440 = vst [vmem:[%s5628_s10 + $0x868] sm:$0xff] %v1439_v49  ;;  %v1441_v50 = vld [vmem:[%s5623_s28 + $0x10e0] sm:$0xff]  ;;  %v1443_v51 = vld [vmem:[%s5623_s28 + $0x10f0] sm:$0xff] }
  0xcd   : > { %v1445_v52 = vld [vmem:[%s5623_s28 + $0x1100] sm:$0xff]  ;;  %1442 = vst [vmem:[%s5628_s10 + $0x870] sm:$0xff] %v1441_v50  ;;  %1444 = vst [vmem:[%s5628_s10 + $0x878] sm:$0xff] %v1443_v51  ;;  %v1447_v53 = vld [vmem:[%s5623_s28 + $0x1110] sm:$0xff] }
  0xce   : > { %1446 = vst [vmem:[%s5628_s10 + $0x880] sm:$0xff] %v1445_v52  ;;  %v1449_v54 = vld [vmem:[%s5623_s28 + $0x1120] sm:$0xff]  ;;  %v1451_v55 = vld [vmem:[%s5623_s28 + $0x1130] sm:$0xff]  ;;  %1448 = vst [vmem:[%s5628_s10 + $0x888] sm:$0xff] %v1447_v53 }
  0xcf   : > { %1450 = vst [vmem:[%s5628_s10 + $0x890] sm:$0xff] %v1449_v54  ;;  %1452 = vst [vmem:[%s5628_s10 + $0x898] sm:$0xff] %v1451_v55  ;;  %v1453_v56 = vld [vmem:[%s5623_s28 + $0x1140] sm:$0xff]  ;;  %v1455_v57 = vld [vmem:[%s5623_s28 + $0x1150] sm:$0xff] }
  0xd0   : > { %v1457_v58 = vld [vmem:[%s5623_s28 + $0x1160] sm:$0xff]  ;;  %1454 = vst [vmem:[%s5628_s10 + $0x8a0] sm:$0xff] %v1453_v56  ;;  %1456 = vst [vmem:[%s5628_s10 + $0x8a8] sm:$0xff] %v1455_v57  ;;  %v1459_v59 = vld [vmem:[%s5623_s28 + $0x1170] sm:$0xff] }
  0xd1   : > { %1458 = vst [vmem:[%s5628_s10 + $0x8b0] sm:$0xff] %v1457_v58  ;;  %v1461_v60 = vld [vmem:[%s5623_s28 + $0x1180] sm:$0xff]  ;;  %v1463_v61 = vld [vmem:[%s5623_s28 + $0x1190] sm:$0xff]  ;;  %1460 = vst [vmem:[%s5628_s10 + $0x8b8] sm:$0xff] %v1459_v59 }
  0xd2   : > { %1462 = vst [vmem:[%s5628_s10 + $0x8c0] sm:$0xff] %v1461_v60  ;;  %1464 = vst [vmem:[%s5628_s10 + $0x8c8] sm:$0xff] %v1463_v61  ;;  %v1465_v62 = vld [vmem:[%s5623_s28 + $0x11a0] sm:$0xff]  ;;  %v1467_v63 = vld [vmem:[%s5623_s28 + $0x11b0] sm:$0xff] }
  0xd3   : > { %v1469_v0 = vld [vmem:[%s5623_s28 + $0x11c0] sm:$0xff]  ;;  %1466 = vst [vmem:[%s5628_s10 + $0x8d0] sm:$0xff] %v1465_v62  ;;  %1468 = vst [vmem:[%s5628_s10 + $0x8d8] sm:$0xff] %v1467_v63  ;;  %v1471_v1 = vld [vmem:[%s5623_s28 + $0x11d0] sm:$0xff] }
  0xd4   : > { %1470 = vst [vmem:[%s5628_s10 + $0x8e0] sm:$0xff] %v1469_v0  ;;  %v1473_v2 = vld [vmem:[%s5623_s28 + $0x11e0] sm:$0xff]  ;;  %v1475_v3 = vld [vmem:[%s5623_s28 + $0x11f0] sm:$0xff]  ;;  %1472 = vst [vmem:[%s5628_s10 + $0x8e8] sm:$0xff] %v1471_v1 }
  0xd5   : > { %1474 = vst [vmem:[%s5628_s10 + $0x8f0] sm:$0xff] %v1473_v2  ;;  %1476 = vst [vmem:[%s5628_s10 + $0x8f8] sm:$0xff] %v1475_v3 }
  0xd6 PF: > { %1490 = sbr.rel (!%p5523_p11) target bundleno = 220 (0xdc), region = 85  ;;  %s1492_s0 = sand.u32 (%p5523_p11), 1, %s5359_s16  }
  0xd7   : > { %s4692_s27 = sshll.u32 (%p5523_p11), %s5391_s24, 3  ;;  %s4348_s26 = sshll.u32 (%p5523_p11), %s1492_s0, 5 }
  0xd8   : > { %s1500_s6 = scalar_lea.vmem (%p5523_p11), %s6627_s3, %s4692_s27  ;;  %s1494_s8 = scalar_lea.vmem (%p5523_p11), [#allocation5], %s4348_s26 }
  0xd9   : > { %v1535_v4 = vld [vmem:[%s1500_s6] sm:$0xff] (%p5523_p11)  ;;  %v1537_v5 = vld [vmem:[%s1500_s6 + $0x10] sm:$0xff] (%p5523_p11) }
  0xda   : > { %v1539_v6 = vld [vmem:[%s1500_s6 + $0x20] sm:$0xff] (%p5523_p11)  ;;  %1536 = vst [vmem:[%s1494_s8] sm:$0xff] (%p5523_p11), %v1535_v4  ;;  %1538 = vst [vmem:[%s1494_s8 + $0x8] sm:$0xff] (%p5523_p11), %v1537_v5  ;;  %v1541_v7 = vld [vmem:[%s1500_s6 + $0x30] sm:$0xff] (%p5523_p11) }
  0xdb   : > { %1540 = vst [vmem:[%s1494_s8 + $0x10] sm:$0xff] %v1539_v6  ;;  %1542 = vst [vmem:[%s1494_s8 + $0x18] sm:$0xff] %v1541_v7 }
  0xdc PF: > { %p4351_p1 = scmp.ge.s32.totalorder %s5395_s25, 1  ;;  %p1547_p2 = scmp.lt.s32.totalorder %s5395_s25, 5 }
  0xde   : > { %p1548_p3 = pnand %p4351_p1, %p1547_p2 }
  0xe0   : > { %1551 = sbr.rel (%p1548_p3) target bundleno = 797 (0x31d), region = 123 }
  0xe5   : > { %s1554_s14 = sand.u32 1, %s5371_s19   ;;  %s1561_s9 = sand.u32 1, %s5363_s17  }
  0xe6   : > { %s4732_s11 = smul.u32 288, %s1554_s14  ;;  %s1568_s28 = sand.u32 1, %s5355_s15  }
  0xe7   : > { %s4733_s10 = smul.u32 2304, %s1561_s9  ;;  %s4352_s0 = sshll.u32 %s1568_s28, 5 }
  0xe8   : > { %s4354_s27 = sshll.u32 %s5383_s22, 1  ;;  %s6222_s6 = scalar_lea.vmem [#allocation3], %s4732_s11 }
  0xe9   : > { %p1609_p4 = scmp.lt.s32.totalorder %s4354_s27, 3  ;;  %s6224_s8 = scalar_lea.vmem [#allocation4], %s4733_s10 }
  0xea   : > { %s6226_s1 = scalar_lea.vmem [#allocation5], %s4352_s0  ;;  %s6228_s17 = scalar_lea.vmem [#allocation6], %s4352_s0 }
  0xeb   : > { %s6668_s27 = smov (!%p1609_p4, %s4354_s27), 3  ;;  %p4355_p5 = scmp.ne.s32.totalorder %s5379_s21, 0 }
  0xec   : > { %s1611_s30 = scalar_lea.vmem %s6626_s2, %s6668_s27 }
  0xed   : > { %1620 = sbr.rel (%p4355_p5) target bundleno = 247 (0xf7), region = 139 }
  0xf2   : > { %v5397_v8 = vmov 0.0  }
  0xf3   : > { %1621 = vst [vmem:[#allocation2 + $0x30] sm:$0xff] %v5397_v8  ;;  %1622 = vst [vmem:[#allocation2] sm:$0xff] %v5397_v8 }
  0xf4   : > { %1623 = vst [vmem:[#allocation2 + $0x18] sm:$0xff] %v5397_v8  ;;  %1624 = vst [vmem:[#allocation2 + $0x10] sm:$0xff] %v5397_v8 }
  0xf5   : > { %1625 = vst [vmem:[#allocation2 + $0x8] sm:$0xff] %v5397_v8  ;;  %1626 = vst [vmem:[#allocation2 + $0x20] sm:$0xff] %v5397_v8 }
  0xf6   : > { %1627 = vst [vmem:[#allocation2 + $0x28] sm:$0xff] %v5397_v8  ;;  %1628 = vst [vmem:[#allocation2 + $0x38] sm:$0xff] %v5397_v8 }
  0xf7 PF: > { %v4823_v9 = vld [vmem:[%s6224_s8 + $0x74] ss:$8 sps:$4 sm:$0xff]   ;;  %v4827_v11 = vld [vmem:[%s6224_s8 + $0x70] ss:$8 sps:$4 sm:$0xff]   ;;  %v4829_v13 = vld [vmem:[%s6224_s8 + $0x64] ss:$8 sps:$4 sm:$0xff]  }
  0xf8   : > { %v4825_v10 = vld [vmem:[%s6224_s8 + $0x174] ss:$8 sps:$4 sm:$0xff]   ;;  %3581 = vmatprep.subr.bf16.mxu0 %v4823_v9  ;;  %v4828_v12 = vld [vmem:[%s6224_s8 + $0x170] ss:$8 sps:$4 sm:$0xff]   ;;  %v4831_v14 = vld [vmem:[%s6224_s8 + $0x164] ss:$8 sps:$4 sm:$0xff]  }
  0xf9   : > { %3634 = vmatprep.subr.bf16.mxu1 %v4825_v10  ;;  %3582 = vmatpush1.bf16.msra.mxu0 %v4827_v11  ;;  %v4833_v15 = vld [vmem:[%s6224_s8 + $0x60] ss:$8 sps:$4 sm:$0xff]   ;;  %v4835_v17 = vld [vmem:[%s6224_s8 + $0x54] ss:$8 sps:$4 sm:$0xff]   ;;  %v4839_v19 = vld [vmem:[%s6224_s8 + $0x50] ss:$8 sps:$4 sm:$0xff]  }
  0xfa   : > { %3635 = vmatpush1.bf16.msra.mxu1 %v4828_v12  ;;  %3583 = vmatprep.subr.bf16.mxu0 %v4829_v13  ;;  %v4834_v16 = vld [vmem:[%s6224_s8 + $0x160] ss:$8 sps:$4 sm:$0xff]   ;;  %v4837_v18 = vld [vmem:[%s6224_s8 + $0x154] ss:$8 sps:$4 sm:$0xff]   ;;  %v4840_v20 = vld [vmem:[%s6224_s8 + $0x150] ss:$8 sps:$4 sm:$0xff]  }
  0xfb   : > { %3636 = vmatprep.subr.bf16.mxu1 %v4831_v14  ;;  %v4841_v21 = vld [vmem:[%s6224_s8 + $0x44] ss:$8 sps:$4 sm:$0xff]   ;;  %v4845_v23 = vld [vmem:[%s6224_s8 + $0x40] ss:$8 sps:$4 sm:$0xff]   ;;  %v4847_v25 = vld [vmem:[%s6224_s8 + $0x34] ss:$8 sps:$4 sm:$0xff]  }
  0xfc   : > { %v4843_v22 = vld [vmem:[%s6224_s8 + $0x144] ss:$8 sps:$4 sm:$0xff]   ;;  %v4846_v24 = vld [vmem:[%s6224_s8 + $0x140] ss:$8 sps:$4 sm:$0xff]   ;;  %v4849_v26 = vld [vmem:[%s6224_s8 + $0x134] ss:$8 sps:$4 sm:$0xff]  }
  0xfd   : > { %3584 = vmatpush1.bf16.msra.mxu0 %v4833_v15  ;;  %v4851_v27 = vld [vmem:[%s6224_s8 + $0x30] ss:$8 sps:$4 sm:$0xff]   ;;  %v4853_v29 = vld [vmem:[%s6224_s8 + $0x24] ss:$8 sps:$4 sm:$0xff]   ;;  %v4857_v31 = vld [vmem:[%s6224_s8 + $0x20] ss:$8 sps:$4 sm:$0xff]  }
  0xfe   : > { %3637 = vmatpush1.bf16.msra.mxu1 %v4834_v16  ;;  %3585 = vmatprep.subr.bf16.mxu0 %v4835_v17  ;;  %v4852_v28 = vld [vmem:[%s6224_s8 + $0x130] ss:$8 sps:$4 sm:$0xff]   ;;  %v4855_v30 = vld [vmem:[%s6224_s8 + $0x124] ss:$8 sps:$4 sm:$0xff]   ;;  %v4858_v32 = vld [vmem:[%s6224_s8 + $0x120] ss:$8 sps:$4 sm:$0xff]  }
  0xff   : > { %3638 = vmatprep.subr.bf16.mxu1 %v4837_v18  ;;  %v4859_v33 = vld [vmem:[%s6224_s8 + $0x14] ss:$8 sps:$4 sm:$0xff]   ;;  %v4863_v35 = vld [vmem:[%s6224_s8 + $0x10] ss:$8 sps:$4 sm:$0xff]   ;;  %v4865_v37 = vld [vmem:[%s6224_s8 + $0x4] ss:$8 sps:$4 sm:$0xff]  }
 0x100   : > { %v4861_v34 = vld [vmem:[%s6224_s8 + $0x114] ss:$8 sps:$4 sm:$0xff]   ;;  %v4864_v36 = vld [vmem:[%s6224_s8 + $0x110] ss:$8 sps:$4 sm:$0xff]   ;;  %v4867_v38 = vld [vmem:[%s6224_s8 + $0x104] ss:$8 sps:$4 sm:$0xff]  }
 0x101   : > { %3586 = vmatpush1.bf16.msra.mxu0 %v4839_v19  ;;  %v4869_v39 = vld [vmem:[%s6224_s8] ss:$8 sps:$4 sm:$0xff]   ;;  %v4871_v41 = vld [vmem:[%s6224_s8 + $0xf4] ss:$8 sps:$4 sm:$0xff]   ;;  %v4875_v43 = vld [vmem:[%s6224_s8 + $0xf0] ss:$8 sps:$4 sm:$0xff]  }
 0x102   : > { %3639 = vmatpush1.bf16.msra.mxu1 %v4840_v20  ;;  %3587 = vmatprep.subr.bf16.mxu0 %v4841_v21  ;;  %v4870_v40 = vld [vmem:[%s6224_s8 + $0x100] ss:$8 sps:$4 sm:$0xff]   ;;  %v4873_v42 = vld [vmem:[%s6224_s8 + $0x1f4] ss:$8 sps:$4 sm:$0xff]   ;;  %v4876_v44 = vld [vmem:[%s6224_s8 + $0x1f0] ss:$8 sps:$4 sm:$0xff]  }
 0x103   : > { %3640 = vmatprep.subr.bf16.mxu1 %v4843_v22  ;;  %v4877_v45 = vld [vmem:[%s6224_s8 + $0xe4] ss:$8 sps:$4 sm:$0xff]   ;;  %v4881_v47 = vld [vmem:[%s6224_s8 + $0xe0] ss:$8 sps:$4 sm:$0xff]   ;;  %v4883_v49 = vld [vmem:[%s6224_s8 + $0xd4] ss:$8 sps:$4 sm:$0xff]  }
 0x104   : > { %v4879_v46 = vld [vmem:[%s6224_s8 + $0x1e4] ss:$8 sps:$4 sm:$0xff]   ;;  %v4882_v48 = vld [vmem:[%s6224_s8 + $0x1e0] ss:$8 sps:$4 sm:$0xff]   ;;  %v4885_v50 = vld [vmem:[%s6224_s8 + $0x1d4] ss:$8 sps:$4 sm:$0xff]  }
 0x105   : > { %3588 = vmatpush1.bf16.msra.mxu0 %v4845_v23  ;;  %v4887_v51 = vld [vmem:[%s6224_s8 + $0xd0] ss:$8 sps:$4 sm:$0xff]   ;;  %v4889_v53 = vld [vmem:[%s6224_s8 + $0xc4] ss:$8 sps:$4 sm:$0xff]   ;;  %v4893_v55 = vld [vmem:[%s6224_s8 + $0xc0] ss:$8 sps:$4 sm:$0xff]  }
 0x106   : > { %3641 = vmatpush1.bf16.msra.mxu1 %v4846_v24  ;;  %3589 = vmatprep.subr.bf16.mxu0 %v4847_v25  ;;  %v4888_v52 = vld [vmem:[%s6224_s8 + $0x1d0] ss:$8 sps:$4 sm:$0xff]   ;;  %v4891_v54 = vld [vmem:[%s6224_s8 + $0x1c4] ss:$8 sps:$4 sm:$0xff]   ;;  %v4894_v56 = vld [vmem:[%s6224_s8 + $0x1c0] ss:$8 sps:$4 sm:$0xff]  }
 0x107   : > { %3642 = vmatprep.subr.bf16.mxu1 %v4849_v26  ;;  %v4895_v57 = vld [vmem:[%s6224_s8 + $0xb4] ss:$8 sps:$4 sm:$0xff]   ;;  %v4921_v58 = vld [vmem:[%s6222_s6 + $0x4] ss:$72 sps:$4 sm:$0xff]   ;;  %v4899_v61 = vld [vmem:[%s6224_s8 + $0xb0] ss:$8 sps:$4 sm:$0xff]  }
 0x108   : > { %v4897_v59 = vld [vmem:[%s6224_s8 + $0x1b4] ss:$8 sps:$4 sm:$0xff]   ;;  %3613 = vmatprep.mubr.bf16.mxu0 %v4921_v58  ;;  %v4900_v62 = vld [vmem:[%s6224_s8 + $0x1b0] ss:$8 sps:$4 sm:$0xff]   ;;  %v4901_v63 = vld [vmem:[%s6224_s8 + $0xa4] ss:$8 sps:$4 sm:$0xff]  }
 0x109   : > { %3590 = vmatpush1.bf16.msra.mxu0 %v4851_v27  ;;  %v4924_v60 = vld [vmem:[%s6222_s6 + $0xc] ss:$72 sps:$4 sm:$0xff]   ;;  %v4905_v1 = vld [vmem:[%s6224_s8 + $0xa0] ss:$8 sps:$4 sm:$0xff]   ;;  %v4911_v5 = vld [vmem:[%s6224_s8 + $0x90] ss:$8 sps:$4 sm:$0xff]  }
 0x10a   : > { %3643 = vmatpush1.bf16.msra.mxu1 %v4852_v28  ;;  %3591 = vmatprep.subr.bf16.mxu0 %v4853_v29  ;;  %v4903_v0 = vld [vmem:[%s6224_s8 + $0x1a4] ss:$8 sps:$4 sm:$0xff]   ;;  %v4906_v2 = vld [vmem:[%s6224_s8 + $0x1a0] ss:$8 sps:$4 sm:$0xff]   ;;  %v4907_v3 = vld [vmem:[%s6224_s8 + $0x94] ss:$8 sps:$4 sm:$0xff]  }
 0x10b   : > { %3644 = vmatprep.subr.bf16.mxu1 %v4855_v30  ;;  %3666 = vmatprep.mubr.bf16.mxu1 %v4924_v60  ;;  %v4909_v4 = vld [vmem:[%s6224_s8 + $0x194] ss:$8 sps:$4 sm:$0xff]   ;;  %v4912_v6 = vld [vmem:[%s6224_s8 + $0x190] ss:$8 sps:$4 sm:$0xff]   ;;  %v4913_v7 = vld [vmem:[%s6224_s8 + $0x84] ss:$8 sps:$4 sm:$0xff]  }
 0x10c   : > { %v4915_v8 = vld [vmem:[%s6224_s8 + $0x184] ss:$8 sps:$4 sm:$0xff]   ;;  %v4917_v9 = vld [vmem:[%s6224_s8 + $0x80] ss:$8 sps:$4 sm:$0xff]   ;;  %v4927_v11 = vld [vmem:[%s6224_s8 + $0x274] ss:$8 sps:$4 sm:$0xff]  }
 0x10d   : > { %3592 = vmatpush1.bf16.msra.mxu0 %v4857_v31  ;;  %v4918_v10 = vld [vmem:[%s6224_s8 + $0x180] ss:$8 sps:$4 sm:$0xff]   ;;  %v4930_v12 = vld [vmem:[%s6224_s8 + $0x374] ss:$8 sps:$4 sm:$0xff]   ;;  %v4925_v15 = vld [vmem:[%s6224_s8 + $0x270] ss:$8 sps:$4 sm:$0xff]  }
 0x10e   : > { %3645 = vmatpush1.bf16.msra.mxu1 %v4858_v32  ;;  %3593 = vmatprep.subr.bf16.mxu0 %v4859_v33  ;;  %v4919_v13 = vld [vmem:[%s6222_s6] ss:$72 sps:$4 sm:$0xff]   ;;  %v4928_v16 = vld [vmem:[%s6224_s8 + $0x370] ss:$8 sps:$4 sm:$0xff]   ;;  %v4933_v17 = vld [vmem:[%s6224_s8 + $0x264] ss:$8 sps:$4 sm:$0xff]  }
 0x10f   : > { %3646 = vmatprep.subr.bf16.mxu1 %v4861_v34  ;;  %v4922_v14 = vld [vmem:[%s6222_s6 + $0x8] ss:$72 sps:$4 sm:$0xff]   ;;  %v4936_v18 = vld [vmem:[%s6224_s8 + $0x364] ss:$8 sps:$4 sm:$0xff]   ;;  %v4939_v21 = vld [vmem:[%s6224_s8 + $0x254] ss:$8 sps:$4 sm:$0xff]  }
 0x110   : > { %v4931_v19 = vld [vmem:[%s6224_s8 + $0x260] ss:$8 sps:$4 sm:$0xff]   ;;  %v4942_v22 = vld [vmem:[%s6224_s8 + $0x354] ss:$8 sps:$4 sm:$0xff]   ;;  %v4937_v23 = vld [vmem:[%s6224_s8 + $0x250] ss:$8 sps:$4 sm:$0xff]  }
 0x111   : > { %3594 = vmatpush1.bf16.msra.mxu0 %v4863_v35  ;;  %v4934_v20 = vld [vmem:[%s6224_s8 + $0x360] ss:$8 sps:$4 sm:$0xff]   ;;  %v4940_v24 = vld [vmem:[%s6224_s8 + $0x350] ss:$8 sps:$4 sm:$0xff]   ;;  %v4945_v25 = vld [vmem:[%s6224_s8 + $0x244] ss:$8 sps:$4 sm:$0xff]  }
 0x112   : > { %3647 = vmatpush1.bf16.msra.mxu1 %v4864_v36  ;;  %3595 = vmatprep.subr.bf16.mxu0 %v4865_v37  ;;  %v4948_v26 = vld [vmem:[%s6224_s8 + $0x344] ss:$8 sps:$4 sm:$0xff]   ;;  %v4943_v27 = vld [vmem:[%s6224_s8 + $0x240] ss:$8 sps:$4 sm:$0xff]   ;;  %v4951_v29 = vld [vmem:[%s6224_s8 + $0x234] ss:$8 sps:$4 sm:$0xff]  }
 0x113   : > { %3648 = vmatprep.subr.bf16.mxu1 %v4867_v38  ;;  %v4946_v28 = vld [vmem:[%s6224_s8 + $0x340] ss:$8 sps:$4 sm:$0xff]   ;;  %v4954_v30 = vld [vmem:[%s6224_s8 + $0x334] ss:$8 sps:$4 sm:$0xff]   ;;  %v4949_v31 = vld [vmem:[%s6224_s8 + $0x230] ss:$8 sps:$4 sm:$0xff]  }
 0x114   : > { %v4952_v32 = vld [vmem:[%s6224_s8 + $0x330] ss:$8 sps:$4 sm:$0xff]   ;;  %v4957_v33 = vld [vmem:[%s6224_s8 + $0x224] ss:$8 sps:$4 sm:$0xff]   ;;  %v5003_v35 = vld [vmem:[%s6222_s6 + $0x94] ss:$72 sps:$4 sm:$0xff]  }
 0x115   : > { %3596 = vmatpush1.bf16.msra.mxu0 %v4869_v39  ;;  %v4960_v34 = vld [vmem:[%s6224_s8 + $0x324] ss:$8 sps:$4 sm:$0xff]   ;;  %v5007_v37 = vld [vmem:[%s6222_s6 + $0x90] ss:$72 sps:$4 sm:$0xff]   ;;  %v4955_v39 = vld [vmem:[%s6224_s8 + $0x220] ss:$8 sps:$4 sm:$0xff]  }
 0x116   : > { %3649 = vmatpush1.bf16.msra.mxu1 %v4870_v40  ;;  %3597 = vmatprep.subr.bf16.mxu0 %v4871_v41  ;;  %v5005_v36 = vld [vmem:[%s6222_s6 + $0x9c] ss:$72 sps:$4 sm:$0xff]   ;;  %v5008_v38 = vld [vmem:[%s6222_s6 + $0x98] ss:$72 sps:$4 sm:$0xff]   ;;  %p4680_p6 = scmp.ne.s32.totalorder %s5379_s21, 1 }
 0x117   : > { %3650 = vmatprep.subr.bf16.mxu1 %v4873_v42  ;;  %v4958_v40 = vld [vmem:[%s6224_s8 + $0x320] ss:$8 sps:$4 sm:$0xff]   ;;  %v4963_v41 = vld [vmem:[%s6224_s8 + $0x214] ss:$8 sps:$4 sm:$0xff]  }
 0x118   : > { %v4966_v42 = vld [vmem:[%s6224_s8 + $0x314] ss:$8 sps:$4 sm:$0xff]   ;;  %v4982_v58 = vld [vmem:[%s6224_s8 + $0x3e0] ss:$8 sps:$4 sm:$0xff]  }
 0x119   : > { %3598 = vmatpush2.bf16.msra.mxu0 %v4875_v43  ;;  %v4961_v43 = vld [vmem:[%s6224_s8 + $0x210] ss:$8 sps:$4 sm:$0xff]   ;;  %v4990_v60 = vld [vmem:[%s6224_s8 + $0x3d4] ss:$8 sps:$4 sm:$0xff]  }
 0x11a   : > { %3651 = vmatpush2.bf16.msra.mxu1 %v4876_v44  ;;  %3599 = vmatprep.subr.bf16.mxu0 %v4877_v45  ;;  %v4964_v44 = vld [vmem:[%s6224_s8 + $0x310] ss:$8 sps:$4 sm:$0xff]   ;;  %v4969_v45 = vld [vmem:[%s6224_s8 + $0x204] ss:$8 sps:$4 sm:$0xff]  }
 0x11b   : > { %3652 = vmatprep.subr.bf16.mxu1 %v4879_v46  ;;  %v4972_v46 = vld [vmem:[%s6224_s8 + $0x304] ss:$8 sps:$4 sm:$0xff]  }
 0x11d   : > { %3600 = vmatpush2.bf16.msra.mxu0 %v4881_v47  ;;  %v4967_v47 = vld [vmem:[%s6224_s8 + $0x200] ss:$8 sps:$4 sm:$0xff]  }
 0x11e   : > { %3653 = vmatpush2.bf16.msra.mxu1 %v4882_v48  ;;  %3601 = vmatprep.subr.bf16.mxu0 %v4883_v49  ;;  %v4970_v48 = vld [vmem:[%s6224_s8 + $0x300] ss:$8 sps:$4 sm:$0xff]   ;;  %v4975_v49 = vld [vmem:[%s6224_s8 + $0x2f4] ss:$8 sps:$4 sm:$0xff]  }
 0x11f   : > { %3654 = vmatprep.subr.bf16.mxu1 %v4885_v50  ;;  %v5029_v50 = vld [vmem:[%s6222_s6 + $0x14] ss:$72 sps:$4 sm:$0xff]  }
 0x121   : > { %3602 = vmatpush2.bf16.msra.mxu0 %v4887_v51  ;;  %v4978_v51 = vld [vmem:[%s6224_s8 + $0x3f4] ss:$8 sps:$4 sm:$0xff]  }
 0x122   : > { %3655 = vmatpush2.bf16.msra.mxu1 %v4888_v52  ;;  %3603 = vmatprep.subr.bf16.mxu0 %v4889_v53  ;;  %v5032_v52 = vld [vmem:[%s6222_s6 + $0x1c] ss:$72 sps:$4 sm:$0xff]   ;;  %v4973_v53 = vld [vmem:[%s6224_s8 + $0x2f0] ss:$8 sps:$4 sm:$0xff]  }
 0x123   : > { %3656 = vmatprep.subr.bf16.mxu1 %v4891_v54  ;;  %v4976_v54 = vld [vmem:[%s6224_s8 + $0x3f0] ss:$8 sps:$4 sm:$0xff]  }
 0x125   : > { %3604 = vmatpush2.bf16.msra.mxu0 %v4893_v55  ;;  %v4981_v55 = vld [vmem:[%s6224_s8 + $0x2e4] ss:$8 sps:$4 sm:$0xff]  }
 0x126   : > { %3657 = vmatpush2.bf16.msra.mxu1 %v4894_v56  ;;  %3605 = vmatprep.subr.bf16.mxu0 %v4895_v57  ;;  %v4984_v56 = vld [vmem:[%s6224_s8 + $0x3e4] ss:$8 sps:$4 sm:$0xff]   ;;  %v4979_v57 = vld [vmem:[%s6224_s8 + $0x2e0] ss:$8 sps:$4 sm:$0xff]  }
 0x127   : > { %3658 = vmatprep.subr.bf16.mxu1 %v4897_v59  ;;  %v4987_v59 = vld [vmem:[%s6224_s8 + $0x2d4] ss:$8 sps:$4 sm:$0xff]  }
 0x129   : > { %3606 = vmatpush2.bf16.msra.mxu0 %v4899_v61  ;;  %v4985_v61 = vld [vmem:[%s6224_s8 + $0x2d0] ss:$8 sps:$4 sm:$0xff]  }
 0x12a   : > { %3659 = vmatpush2.bf16.msra.mxu1 %v4900_v62  ;;  %3607 = vmatprep.subr.bf16.mxu0 %v4901_v63  ;;  %v4988_v62 = vld [vmem:[%s6224_s8 + $0x3d0] ss:$8 sps:$4 sm:$0xff]   ;;  %v4993_v63 = vld [vmem:[%s6224_s8 + $0x2c4] ss:$8 sps:$4 sm:$0xff]  }
 0x12b   : > { %3660 = vmatprep.subr.bf16.mxu1 %v4903_v0  ;;  %v4996_v0 = vld [vmem:[%s6224_s8 + $0x3c4] ss:$8 sps:$4 sm:$0xff]  }
 0x12d   : > { %3608 = vmatpush2.bf16.msra.mxu0 %v4905_v1  ;;  %v4991_v1 = vld [vmem:[%s6224_s8 + $0x2c0] ss:$8 sps:$4 sm:$0xff]  }
 0x12e   : > { %3661 = vmatpush2.bf16.msra.mxu1 %v4906_v2  ;;  %3609 = vmatprep.subr.bf16.mxu0 %v4907_v3  ;;  %v4994_v2 = vld [vmem:[%s6224_s8 + $0x3c0] ss:$8 sps:$4 sm:$0xff]   ;;  %v4999_v3 = vld [vmem:[%s6224_s8 + $0x2b4] ss:$8 sps:$4 sm:$0xff]  }
 0x12f   : > { %3662 = vmatprep.subr.bf16.mxu1 %v4909_v4  ;;  %v5002_v4 = vld [vmem:[%s6224_s8 + $0x3b4] ss:$8 sps:$4 sm:$0xff]  }
 0x131   : > { %3610 = vmatpush2.bf16.msra.mxu0 %v4911_v5  ;;  %v4997_v5 = vld [vmem:[%s6224_s8 + $0x2b0] ss:$8 sps:$4 sm:$0xff]  }
 0x132   : > { %3663 = vmatpush2.bf16.msra.mxu1 %v4912_v6  ;;  %3611 = vmatprep.subr.bf16.mxu0 %v4913_v7  ;;  %v5000_v6 = vld [vmem:[%s6224_s8 + $0x3b0] ss:$8 sps:$4 sm:$0xff]   ;;  %v5011_v7 = vld [vmem:[%s6224_s8 + $0x2a4] ss:$8 sps:$4 sm:$0xff]  }
 0x133   : > { %3664 = vmatprep.subr.bf16.mxu1 %v4915_v8  ;;  %v5014_v8 = vld [vmem:[%s6224_s8 + $0x3a4] ss:$8 sps:$4 sm:$0xff]  }
 0x135   : > { %3612 = vmatpush2.bf16.msra.mxu0 %v4917_v9  ;;  %v5009_v9 = vld [vmem:[%s6224_s8 + $0x2a0] ss:$8 sps:$4 sm:$0xff]  }
 0x136   : > { %3665 = vmatpush2.bf16.msra.mxu1 %v4918_v10  ;;  %3687 = vmatprep.subr.bf16.mxu0 %v4927_v11  ;;  %v5012_v10 = vld [vmem:[%s6224_s8 + $0x3a0] ss:$8 sps:$4 sm:$0xff]   ;;  %v5017_v11 = vld [vmem:[%s6224_s8 + $0x294] ss:$8 sps:$4 sm:$0xff]  }
 0x137   : > { %3740 = vmatprep.subr.bf16.mxu1 %v4930_v12  ;;  %v5020_v12 = vld [vmem:[%s6224_s8 + $0x394] ss:$8 sps:$4 sm:$0xff]  }
 0x138   : > { %3614 = vmatmul.mubr.bf16.vlgmr.msra.gmra.mxu0 %v4919_v13  ;;  %v5015_v13 = vld [vmem:[%s6224_s8 + $0x290] ss:$8 sps:$4 sm:$0xff]  }
 0x139   : > { %3667 = vmatmul.mubr.bf16.vlgmr.msra.gmra.mxu1 %v4922_v14  ;;  %3688 = vmatpush1.bf16.msra.mxu0 %v4925_v15  ;;  %v5018_v14 = vld [vmem:[%s6224_s8 + $0x390] ss:$8 sps:$4 sm:$0xff]   ;;  %v5023_v15 = vld [vmem:[%s6224_s8 + $0x284] ss:$8 sps:$4 sm:$0xff]  }
 0x13a   : > { %3741 = vmatpush1.bf16.msra.mxu1 %v4928_v16  ;;  %3689 = vmatprep.subr.bf16.mxu0 %v4933_v17  ;;  %v5026_v16 = vld [vmem:[%s6224_s8 + $0x384] ss:$8 sps:$4 sm:$0xff]   ;;  %v5021_v17 = vld [vmem:[%s6224_s8 + $0x280] ss:$8 sps:$4 sm:$0xff]  }
 0x13b   : > { %3742 = vmatprep.subr.bf16.mxu1 %v4936_v18  ;;  %3623 = vmatprep.mubr.bf16.mxu0 %v5003_v35  ;;  %v5024_v18 = vld [vmem:[%s6224_s8 + $0x380] ss:$8 sps:$4 sm:$0xff]   ;;  %v5051_v35 = vld [vmem:[%s6224_s8 + $0x550] ss:$8 sps:$4 sm:$0xff]  }
 0x13c   : > { %3676 = vmatprep.mubr.bf16.mxu1 %v5005_v36  ;;  %v5056_v36 = vld [vmem:[%s6222_s6 + $0xa8] ss:$72 sps:$4 sm:$0xff]  }
 0x13d   : > { %3690 = vmatpush1.bf16.msra.mxu0 %v4931_v19  ;;  %v5035_v19 = vld [vmem:[%s6224_s8 + $0x474] ss:$8 sps:$4 sm:$0xff]  }
 0x13e   : > { %3743 = vmatpush1.bf16.msra.mxu1 %v4934_v20  ;;  %3691 = vmatprep.subr.bf16.mxu0 %v4939_v21  ;;  %v5038_v20 = vld [vmem:[%s6224_s8 + $0x574] ss:$8 sps:$4 sm:$0xff]   ;;  %v5027_v21 = vld [vmem:[%s6222_s6 + $0x10] ss:$72 sps:$4 sm:$0xff]  }
 0x13f   : > { %3744 = vmatprep.subr.bf16.mxu1 %v4942_v22  ;;  %v5030_v22 = vld [vmem:[%s6222_s6 + $0x18] ss:$72 sps:$4 sm:$0xff]  }
 0x140   : > { %3624 = vmatmul.mubr.bf16.gmra.mxu0 %v5007_v37  ;;  %v5059_v37 = vld [vmem:[%s6224_s8 + $0x444] ss:$8 sps:$4 sm:$0xff]  }
 0x141   : > { %3692 = vmatpush1.bf16.msra.mxu0 %v4937_v23  ;;  %3677 = vmatmul.mubr.bf16.gmra.mxu1 %v5008_v38  ;;  %v5033_v23 = vld [vmem:[%s6224_s8 + $0x470] ss:$8 sps:$4 sm:$0xff]   ;;  %v5062_v38 = vld [vmem:[%s6224_s8 + $0x544] ss:$8 sps:$4 sm:$0xff]  }
 0x142   : > { %3745 = vmatpush1.bf16.msra.mxu1 %v4940_v24  ;;  %3693 = vmatprep.subr.bf16.mxu0 %v4945_v25  ;;  %v5036_v24 = vld [vmem:[%s6224_s8 + $0x570] ss:$8 sps:$4 sm:$0xff]   ;;  %v5041_v25 = vld [vmem:[%s6224_s8 + $0x464] ss:$8 sps:$4 sm:$0xff]  }
 0x143   : > { %3746 = vmatprep.subr.bf16.mxu1 %v4948_v26  ;;  %3719 = vmatprep.mubr.bf16.mxu0 %v5029_v50  ;;  %v5044_v26 = vld [vmem:[%s6224_s8 + $0x564] ss:$8 sps:$4 sm:$0xff]   ;;  %v5072_v50 = vld [vmem:[%s6224_s8 + $0x520] ss:$8 sps:$4 sm:$0xff]  }
 0x144   : > { %3772 = vmatprep.mubr.bf16.mxu1 %v5032_v52  ;;  %v5080_v52 = vld [vmem:[%s6224_s8 + $0x514] ss:$8 sps:$4 sm:$0xff]  }
 0x145   : > { %3694 = vmatpush1.bf16.msra.mxu0 %v4943_v27  ;;  %v5045_v27 = vld [vmem:[%s6222_s6 + $0xa4] ss:$72 sps:$4 sm:$0xff]  }
 0x146   : > { %3747 = vmatpush1.bf16.msra.mxu1 %v4946_v28  ;;  %3695 = vmatprep.subr.bf16.mxu0 %v4951_v29  ;;  %v5054_v28 = vld [vmem:[%s6222_s6 + $0xac] ss:$72 sps:$4 sm:$0xff]   ;;  %v5039_v29 = vld [vmem:[%s6224_s8 + $0x460] ss:$8 sps:$4 sm:$0xff]  }
 0x147   : > { %3748 = vmatprep.subr.bf16.mxu1 %v4954_v30  ;;  %v5042_v30 = vld [vmem:[%s6224_s8 + $0x560] ss:$8 sps:$4 sm:$0xff]  }
 0x149   : > { %3696 = vmatpush1.bf16.msra.mxu0 %v4949_v31  ;;  %v5050_v31 = vld [vmem:[%s6224_s8 + $0x454] ss:$8 sps:$4 sm:$0xff]  }
 0x14a   : > { %3749 = vmatpush1.bf16.msra.mxu1 %v4952_v32  ;;  %3697 = vmatprep.subr.bf16.mxu0 %v4957_v33  ;;  %v5053_v32 = vld [vmem:[%s6224_s8 + $0x554] ss:$8 sps:$4 sm:$0xff]   ;;  %v5047_v33 = vld [vmem:[%s6222_s6 + $0xa0] ss:$72 sps:$4 sm:$0xff]  }
 0x14b   : > { %3750 = vmatprep.subr.bf16.mxu1 %v4960_v34  ;;  %v5048_v34 = vld [vmem:[%s6224_s8 + $0x450] ss:$8 sps:$4 sm:$0xff]  }
 0x14d   : > { %3698 = vmatpush1.bf16.msra.mxu0 %v4955_v39  ;;  %v5057_v39 = vld [vmem:[%s6224_s8 + $0x440] ss:$8 sps:$4 sm:$0xff]  }
 0x14e   : > { %3751 = vmatpush1.bf16.msra.mxu1 %v4958_v40  ;;  %3699 = vmatprep.subr.bf16.mxu0 %v4963_v41  ;;  %v5060_v40 = vld [vmem:[%s6224_s8 + $0x540] ss:$8 sps:$4 sm:$0xff]   ;;  %v5065_v41 = vld [vmem:[%s6224_s8 + $0x434] ss:$8 sps:$4 sm:$0xff]  }
 0x14f   : > { %3752 = vmatprep.subr.bf16.mxu1 %v4966_v42  ;;  %v5137_v42 = vld [vmem:[%s6222_s6 + $0x24] ss:$72 sps:$4 sm:$0xff]  }
 0x151   : > { %3700 = vmatpush1.bf16.msra.mxu0 %v4961_v43  ;;  %v5068_v43 = vld [vmem:[%s6224_s8 + $0x534] ss:$8 sps:$4 sm:$0xff]  }
 0x152   : > { %3753 = vmatpush1.bf16.msra.mxu1 %v4964_v44  ;;  %3701 = vmatprep.subr.bf16.mxu0 %v4969_v45  ;;  %v5140_v44 = vld [vmem:[%s6222_s6 + $0x2c] ss:$72 sps:$4 sm:$0xff]   ;;  %v5063_v45 = vld [vmem:[%s6224_s8 + $0x430] ss:$8 sps:$4 sm:$0xff]  }
 0x153   : > { %3754 = vmatprep.subr.bf16.mxu1 %v4972_v46  ;;  %v5066_v46 = vld [vmem:[%s6224_s8 + $0x530] ss:$8 sps:$4 sm:$0xff]  }
 0x155   : > { %3702 = vmatpush1.bf16.msra.mxu0 %v4967_v47  ;;  %v5071_v47 = vld [vmem:[%s6224_s8 + $0x424] ss:$8 sps:$4 sm:$0xff]  }
 0x156   : > { %3755 = vmatpush1.bf16.msra.mxu1 %v4970_v48  ;;  %3703 = vmatprep.subr.bf16.mxu0 %v4975_v49  ;;  %v5074_v48 = vld [vmem:[%s6224_s8 + $0x524] ss:$8 sps:$4 sm:$0xff]   ;;  %v5069_v49 = vld [vmem:[%s6224_s8 + $0x420] ss:$8 sps:$4 sm:$0xff]  }
 0x157   : > { %3756 = vmatprep.subr.bf16.mxu1 %v4978_v51  ;;  %v5077_v51 = vld [vmem:[%s6224_s8 + $0x414] ss:$8 sps:$4 sm:$0xff]  }
 0x159   : > { %3704 = vmatpush2.bf16.msra.mxu0 %v4973_v53  ;;  %v5075_v53 = vld [vmem:[%s6224_s8 + $0x410] ss:$8 sps:$4 sm:$0xff]  }
 0x15a   : > { %3757 = vmatpush2.bf16.msra.mxu1 %v4976_v54  ;;  %3705 = vmatprep.subr.bf16.mxu0 %v4981_v55  ;;  %v5078_v54 = vld [vmem:[%s6224_s8 + $0x510] ss:$8 sps:$4 sm:$0xff]   ;;  %v5083_v55 = vld [vmem:[%s6224_s8 + $0x404] ss:$8 sps:$4 sm:$0xff]  }
 0x15b   : > { %3758 = vmatprep.subr.bf16.mxu1 %v4984_v56  ;;  %v5086_v56 = vld [vmem:[%s6224_s8 + $0x504] ss:$8 sps:$4 sm:$0xff]  }
 0x15d   : > { %3706 = vmatpush2.bf16.msra.mxu0 %v4979_v57  ;;  %v5081_v57 = vld [vmem:[%s6224_s8 + $0x400] ss:$8 sps:$4 sm:$0xff]  }
 0x15e   : > { %3759 = vmatpush2.bf16.msra.mxu1 %v4982_v58  ;;  %3707 = vmatprep.subr.bf16.mxu0 %v4987_v59  ;;  %v5084_v58 = vld [vmem:[%s6224_s8 + $0x500] ss:$8 sps:$4 sm:$0xff]   ;;  %v5089_v59 = vld [vmem:[%s6224_s8 + $0x4f4] ss:$8 sps:$4 sm:$0xff]  }
 0x15f   : > { %3760 = vmatprep.subr.bf16.mxu1 %v4990_v60  ;;  %v5092_v60 = vld [vmem:[%s6224_s8 + $0x5f4] ss:$8 sps:$4 sm:$0xff]  }
 0x161   : > { %3708 = vmatpush2.bf16.msra.mxu0 %v4985_v61  ;;  %v5087_v61 = vld [vmem:[%s6224_s8 + $0x4f0] ss:$8 sps:$4 sm:$0xff]  }
 0x162   : > { %3761 = vmatpush2.bf16.msra.mxu1 %v4988_v62  ;;  %3709 = vmatprep.subr.bf16.mxu0 %v4993_v63  ;;  %v5090_v62 = vld [vmem:[%s6224_s8 + $0x5f0] ss:$8 sps:$4 sm:$0xff]   ;;  %v5095_v63 = vld [vmem:[%s6224_s8 + $0x4e4] ss:$8 sps:$4 sm:$0xff]  }
 0x163   : > { %3762 = vmatprep.subr.bf16.mxu1 %v4996_v0  ;;  %v5098_v0 = vld [vmem:[%s6224_s8 + $0x5e4] ss:$8 sps:$4 sm:$0xff]  }
 0x165   : > { %3710 = vmatpush2.bf16.msra.mxu0 %v4991_v1  ;;  %v5093_v1 = vld [vmem:[%s6224_s8 + $0x4e0] ss:$8 sps:$4 sm:$0xff]  }
 0x166   : > { %3763 = vmatpush2.bf16.msra.mxu1 %v4994_v2  ;;  %3711 = vmatprep.subr.bf16.mxu0 %v4999_v3  ;;  %v5096_v2 = vld [vmem:[%s6224_s8 + $0x5e0] ss:$8 sps:$4 sm:$0xff]   ;;  %v5101_v3 = vld [vmem:[%s6224_s8 + $0x4d4] ss:$8 sps:$4 sm:$0xff]  }
 0x167   : > { %3764 = vmatprep.subr.bf16.mxu1 %v5002_v4  ;;  %v5104_v4 = vld [vmem:[%s6224_s8 + $0x5d4] ss:$8 sps:$4 sm:$0xff]  }
 0x169   : > { %3712 = vmatpush2.bf16.msra.mxu0 %v4997_v5  ;;  %v5099_v5 = vld [vmem:[%s6224_s8 + $0x4d0] ss:$8 sps:$4 sm:$0xff]  }
 0x16a   : > { %3765 = vmatpush2.bf16.msra.mxu1 %v5000_v6  ;;  %3713 = vmatprep.subr.bf16.mxu0 %v5011_v7  ;;  %v5102_v6 = vld [vmem:[%s6224_s8 + $0x5d0] ss:$8 sps:$4 sm:$0xff]   ;;  %v5107_v7 = vld [vmem:[%s6224_s8 + $0x4c4] ss:$8 sps:$4 sm:$0xff]  }
 0x16b   : > { %3766 = vmatprep.subr.bf16.mxu1 %v5014_v8  ;;  %v5110_v8 = vld [vmem:[%s6224_s8 + $0x5c4] ss:$8 sps:$4 sm:$0xff]  }
 0x16d   : > { %3714 = vmatpush2.bf16.msra.mxu0 %v5009_v9  ;;  %v5105_v9 = vld [vmem:[%s6224_s8 + $0x4c0] ss:$8 sps:$4 sm:$0xff]  }
 0x16e   : > { %3767 = vmatpush2.bf16.msra.mxu1 %v5012_v10  ;;  %3715 = vmatprep.subr.bf16.mxu0 %v5017_v11  ;;  %v5108_v10 = vld [vmem:[%s6224_s8 + $0x5c0] ss:$8 sps:$4 sm:$0xff]   ;;  %v5113_v11 = vld [vmem:[%s6224_s8 + $0x4b4] ss:$8 sps:$4 sm:$0xff]  }
 0x16f   : > { %3768 = vmatprep.subr.bf16.mxu1 %v5020_v12  ;;  %v5116_v12 = vld [vmem:[%s6224_s8 + $0x5b4] ss:$8 sps:$4 sm:$0xff]  }
 0x171   : > { %3716 = vmatpush2.bf16.msra.mxu0 %v5015_v13  ;;  %v5111_v13 = vld [vmem:[%s6224_s8 + $0x4b0] ss:$8 sps:$4 sm:$0xff]  }
 0x172   : > { %3769 = vmatpush2.bf16.msra.mxu1 %v5018_v14  ;;  %3717 = vmatprep.subr.bf16.mxu0 %v5023_v15  ;;  %v5114_v14 = vld [vmem:[%s6224_s8 + $0x5b0] ss:$8 sps:$4 sm:$0xff]   ;;  %v5119_v15 = vld [vmem:[%s6224_s8 + $0x4a4] ss:$8 sps:$4 sm:$0xff]  }
 0x173   : > { %3770 = vmatprep.subr.bf16.mxu1 %v5026_v16  ;;  %v5122_v16 = vld [vmem:[%s6224_s8 + $0x5a4] ss:$8 sps:$4 sm:$0xff]  }
 0x175   : > { %3718 = vmatpush2.bf16.msra.mxu0 %v5021_v17  ;;  %v5117_v17 = vld [vmem:[%s6224_s8 + $0x4a0] ss:$8 sps:$4 sm:$0xff]  }
 0x176   : > { %3771 = vmatpush2.bf16.msra.mxu1 %v5024_v18  ;;  %3793 = vmatprep.subr.bf16.mxu0 %v5035_v19  ;;  %v5120_v18 = vld [vmem:[%s6224_s8 + $0x5a0] ss:$8 sps:$4 sm:$0xff]   ;;  %v5125_v19 = vld [vmem:[%s6224_s8 + $0x494] ss:$8 sps:$4 sm:$0xff]  }
 0x177   : > { %3846 = vmatprep.subr.bf16.mxu1 %v5038_v20  ;;  %v5128_v20 = vld [vmem:[%s6224_s8 + $0x594] ss:$8 sps:$4 sm:$0xff]  }
 0x178   : > { %3720 = vmatmul.mubr.bf16.vlgmr.msra.gmra.mxu0 %v5027_v21  ;;  %v5123_v21 = vld [vmem:[%s6224_s8 + $0x490] ss:$8 sps:$4 sm:$0xff]  }
 0x179   : > { %3773 = vmatmul.mubr.bf16.vlgmr.msra.gmra.mxu1 %v5030_v22  ;;  %3794 = vmatpush1.bf16.msra.mxu0 %v5033_v23  ;;  %v5126_v22 = vld [vmem:[%s6224_s8 + $0x590] ss:$8 sps:$4 sm:$0xff]   ;;  %v5131_v23 = vld [vmem:[%s6224_s8 + $0x484] ss:$8 sps:$4 sm:$0xff]  }
 0x17a   : > { %3847 = vmatpush1.bf16.msra.mxu1 %v5036_v24  ;;  %3795 = vmatprep.subr.bf16.mxu0 %v5041_v25  ;;  %v5134_v24 = vld [vmem:[%s6224_s8 + $0x584] ss:$8 sps:$4 sm:$0xff]   ;;  %v5129_v25 = vld [vmem:[%s6224_s8 + $0x480] ss:$8 sps:$4 sm:$0xff]  }
 0x17b   : > { %3848 = vmatprep.subr.bf16.mxu1 %v5044_v26  ;;  %3729 = vmatprep.mubr.bf16.mxu0 %v5045_v27  ;;  %v5132_v26 = vld [vmem:[%s6224_s8 + $0x580] ss:$8 sps:$4 sm:$0xff]   ;;  %v5143_v27 = vld [vmem:[%s6224_s8 + $0x674] ss:$8 sps:$4 sm:$0xff]  }
 0x17c   : > { %3782 = vmatprep.mubr.bf16.mxu1 %v5054_v28  ;;  %v5146_v28 = vld [vmem:[%s6224_s8 + $0x774] ss:$8 sps:$4 sm:$0xff]  }
 0x17d   : > { %3796 = vmatpush1.bf16.msra.mxu0 %v5039_v29  ;;  %v5135_v29 = vld [vmem:[%s6222_s6 + $0x20] ss:$72 sps:$4 sm:$0xff]  }
 0x17e   : > { %3849 = vmatpush1.bf16.msra.mxu1 %v5042_v30  ;;  %3797 = vmatprep.subr.bf16.mxu0 %v5050_v31  ;;  %v5138_v30 = vld [vmem:[%s6222_s6 + $0x28] ss:$72 sps:$4 sm:$0xff]  }
 0x17f   : > { %3850 = vmatprep.subr.bf16.mxu1 %v5053_v32  ;;  %v5141_v31 = vld [vmem:[%s6224_s8 + $0x670] ss:$8 sps:$4 sm:$0xff]  }
 0x180   : > { %3730 = vmatmul.mubr.bf16.gmra.mxu0 %v5047_v33  ;;  %v5144_v32 = vld [vmem:[%s6224_s8 + $0x770] ss:$8 sps:$4 sm:$0xff]   ;;  %v5149_v33 = vld [vmem:[%s6224_s8 + $0x664] ss:$8 sps:$4 sm:$0xff]  }
 0x181   : > { %3783 = vmatmul.mubr.bf16.gmra.mxu1 %v5056_v36  ;;  %3798 = vmatpush1.bf16.msra.mxu0 %v5048_v34  ;;  %v5152_v34 = vld [vmem:[%s6224_s8 + $0x764] ss:$8 sps:$4 sm:$0xff]  }
 0x182   : > { %3851 = vmatpush1.bf16.msra.mxu1 %v5051_v35  ;;  %3799 = vmatprep.subr.bf16.mxu0 %v5059_v37  ;;  %v5153_v35 = vld [vmem:[%s6222_s6 + $0xb4] ss:$72 sps:$4 sm:$0xff]   ;;  %v5147_v37 = vld [vmem:[%s6224_s8 + $0x660] ss:$8 sps:$4 sm:$0xff]  }
 0x183   : > { %3852 = vmatprep.subr.bf16.mxu1 %v5062_v38  ;;  %3825 = vmatprep.mubr.bf16.mxu0 %v5137_v42  ;;  %v5162_v36 = vld [vmem:[%s6222_s6 + $0xbc] ss:$72 sps:$4 sm:$0xff]   ;;  %v5150_v38 = vld [vmem:[%s6224_s8 + $0x760] ss:$8 sps:$4 sm:$0xff]   ;;  %v5156_v42 = vld [vmem:[%s6224_s8 + $0x650] ss:$8 sps:$4 sm:$0xff]  }
 0x184   : > { %3878 = vmatprep.mubr.bf16.mxu1 %v5140_v44  ;;  %v5164_v44 = vld [vmem:[%s6222_s6 + $0xb8] ss:$72 sps:$4 sm:$0xff]  }
 0x185   : > { %3800 = vmatpush1.bf16.msra.mxu0 %v5057_v39  ;;  %v5158_v39 = vld [vmem:[%s6224_s8 + $0x654] ss:$8 sps:$4 sm:$0xff]  }
 0x186   : > { %3853 = vmatpush1.bf16.msra.mxu1 %v5060_v40  ;;  %3801 = vmatprep.subr.bf16.mxu0 %v5065_v41  ;;  %v5161_v40 = vld [vmem:[%s6224_s8 + $0x754] ss:$8 sps:$4 sm:$0xff]   ;;  %v5155_v41 = vld [vmem:[%s6222_s6 + $0xb0] ss:$72 sps:$4 sm:$0xff]  }
 0x187   : > { %3854 = vmatprep.subr.bf16.mxu1 %v5068_v43  ;;  %v5159_v43 = vld [vmem:[%s6224_s8 + $0x750] ss:$8 sps:$4 sm:$0xff]  }
 0x189   : > { %3802 = vmatpush1.bf16.msra.mxu0 %v5063_v45  ;;  %v5167_v45 = vld [vmem:[%s6224_s8 + $0x644] ss:$8 sps:$4 sm:$0xff]  }
 0x18a   : > { %3855 = vmatpush1.bf16.msra.mxu1 %v5066_v46  ;;  %3803 = vmatprep.subr.bf16.mxu0 %v5071_v47  ;;  %v5170_v46 = vld [vmem:[%s6224_s8 + $0x744] ss:$8 sps:$4 sm:$0xff]   ;;  %v5245_v47 = vld [vmem:[%s6222_s6 + $0x34] ss:$72 sps:$4 sm:$0xff]  }
 0x18b   : > { %3856 = vmatprep.subr.bf16.mxu1 %v5074_v48  ;;  %v5248_v48 = vld [vmem:[%s6222_s6 + $0x3c] ss:$72 sps:$4 sm:$0xff]  }
 0x18d   : > { %3804 = vmatpush1.bf16.msra.mxu0 %v5069_v49  ;;  %v5165_v49 = vld [vmem:[%s6224_s8 + $0x640] ss:$8 sps:$4 sm:$0xff]  }
 0x18e   : > { %3857 = vmatpush1.bf16.msra.mxu1 %v5072_v50  ;;  %3805 = vmatprep.subr.bf16.mxu0 %v5077_v51  ;;  %v5168_v50 = vld [vmem:[%s6224_s8 + $0x740] ss:$8 sps:$4 sm:$0xff]   ;;  %v5173_v51 = vld [vmem:[%s6224_s8 + $0x634] ss:$8 sps:$4 sm:$0xff]  }
 0x18f   : > { %3858 = vmatprep.subr.bf16.mxu1 %v5080_v52  ;;  %v5176_v52 = vld [vmem:[%s6224_s8 + $0x734] ss:$8 sps:$4 sm:$0xff]  }
 0x191   : > { %3806 = vmatpush1.bf16.msra.mxu0 %v5075_v53  ;;  %v5171_v53 = vld [vmem:[%s6224_s8 + $0x630] ss:$8 sps:$4 sm:$0xff]  }
 0x192   : > { %3859 = vmatpush1.bf16.msra.mxu1 %v5078_v54  ;;  %3807 = vmatprep.subr.bf16.mxu0 %v5083_v55  ;;  %v5174_v54 = vld [vmem:[%s6224_s8 + $0x730] ss:$8 sps:$4 sm:$0xff]   ;;  %v5179_v55 = vld [vmem:[%s6224_s8 + $0x624] ss:$8 sps:$4 sm:$0xff]  }
 0x193   : > { %3860 = vmatprep.subr.bf16.mxu1 %v5086_v56  ;;  %v5182_v56 = vld [vmem:[%s6224_s8 + $0x724] ss:$8 sps:$4 sm:$0xff]  }
 0x195   : > { %3808 = vmatpush1.bf16.msra.mxu0 %v5081_v57  ;;  %v5177_v57 = vld [vmem:[%s6224_s8 + $0x620] ss:$8 sps:$4 sm:$0xff]  }
 0x196   : > { %3861 = vmatpush1.bf16.msra.mxu1 %v5084_v58  ;;  %3809 = vmatprep.subr.bf16.mxu0 %v5089_v59  ;;  %v5180_v58 = vld [vmem:[%s6224_s8 + $0x720] ss:$8 sps:$4 sm:$0xff]   ;;  %v5185_v59 = vld [vmem:[%s6224_s8 + $0x614] ss:$8 sps:$4 sm:$0xff]  }
 0x197   : > { %3862 = vmatprep.subr.bf16.mxu1 %v5092_v60  ;;  %v5188_v60 = vld [vmem:[%s6224_s8 + $0x714] ss:$8 sps:$4 sm:$0xff]  }
 0x199   : > { %3810 = vmatpush2.bf16.msra.mxu0 %v5087_v61  ;;  %v5183_v61 = vld [vmem:[%s6224_s8 + $0x610] ss:$8 sps:$4 sm:$0xff]  }
 0x19a   : > { %3863 = vmatpush2.bf16.msra.mxu1 %v5090_v62  ;;  %3811 = vmatprep.subr.bf16.mxu0 %v5095_v63  ;;  %v5186_v62 = vld [vmem:[%s6224_s8 + $0x710] ss:$8 sps:$4 sm:$0xff]   ;;  %v5191_v63 = vld [vmem:[%s6224_s8 + $0x604] ss:$8 sps:$4 sm:$0xff]  }
 0x19b   : > { %3864 = vmatprep.subr.bf16.mxu1 %v5098_v0  ;;  %v5194_v0 = vld [vmem:[%s6224_s8 + $0x704] ss:$8 sps:$4 sm:$0xff]  }
 0x19d   : > { %3812 = vmatpush2.bf16.msra.mxu0 %v5093_v1  ;;  %v5189_v1 = vld [vmem:[%s6224_s8 + $0x600] ss:$8 sps:$4 sm:$0xff]  }
 0x19e   : > { %3865 = vmatpush2.bf16.msra.mxu1 %v5096_v2  ;;  %3813 = vmatprep.subr.bf16.mxu0 %v5101_v3  ;;  %v5192_v2 = vld [vmem:[%s6224_s8 + $0x700] ss:$8 sps:$4 sm:$0xff]   ;;  %v5197_v3 = vld [vmem:[%s6224_s8 + $0x6f4] ss:$8 sps:$4 sm:$0xff]  }
 0x19f   : > { %3866 = vmatprep.subr.bf16.mxu1 %v5104_v4  ;;  %v5200_v4 = vld [vmem:[%s6224_s8 + $0x7f4] ss:$8 sps:$4 sm:$0xff]  }
 0x1a1   : > { %3814 = vmatpush2.bf16.msra.mxu0 %v5099_v5  ;;  %v5195_v5 = vld [vmem:[%s6224_s8 + $0x6f0] ss:$8 sps:$4 sm:$0xff]  }
 0x1a2   : > { %3867 = vmatpush2.bf16.msra.mxu1 %v5102_v6  ;;  %3815 = vmatprep.subr.bf16.mxu0 %v5107_v7  ;;  %v5198_v6 = vld [vmem:[%s6224_s8 + $0x7f0] ss:$8 sps:$4 sm:$0xff]   ;;  %v5203_v7 = vld [vmem:[%s6224_s8 + $0x6e4] ss:$8 sps:$4 sm:$0xff]  }
 0x1a3   : > { %3868 = vmatprep.subr.bf16.mxu1 %v5110_v8  ;;  %v5206_v8 = vld [vmem:[%s6224_s8 + $0x7e4] ss:$8 sps:$4 sm:$0xff]  }
 0x1a5   : > { %3816 = vmatpush2.bf16.msra.mxu0 %v5105_v9  ;;  %v5201_v9 = vld [vmem:[%s6224_s8 + $0x6e0] ss:$8 sps:$4 sm:$0xff]  }
 0x1a6   : > { %3869 = vmatpush2.bf16.msra.mxu1 %v5108_v10  ;;  %3817 = vmatprep.subr.bf16.mxu0 %v5113_v11  ;;  %v5204_v10 = vld [vmem:[%s6224_s8 + $0x7e0] ss:$8 sps:$4 sm:$0xff]   ;;  %v5209_v11 = vld [vmem:[%s6224_s8 + $0x6d4] ss:$8 sps:$4 sm:$0xff]  }
 0x1a7   : > { %3870 = vmatprep.subr.bf16.mxu1 %v5116_v12  ;;  %v5212_v12 = vld [vmem:[%s6224_s8 + $0x7d4] ss:$8 sps:$4 sm:$0xff]  }
 0x1a9   : > { %3818 = vmatpush2.bf16.msra.mxu0 %v5111_v13  ;;  %v5207_v13 = vld [vmem:[%s6224_s8 + $0x6d0] ss:$8 sps:$4 sm:$0xff]  }
 0x1aa   : > { %3871 = vmatpush2.bf16.msra.mxu1 %v5114_v14  ;;  %3819 = vmatprep.subr.bf16.mxu0 %v5119_v15  ;;  %v5210_v14 = vld [vmem:[%s6224_s8 + $0x7d0] ss:$8 sps:$4 sm:$0xff]   ;;  %v5215_v15 = vld [vmem:[%s6224_s8 + $0x6c4] ss:$8 sps:$4 sm:$0xff]  }
 0x1ab   : > { %3872 = vmatprep.subr.bf16.mxu1 %v5122_v16  ;;  %v5218_v16 = vld [vmem:[%s6224_s8 + $0x7c4] ss:$8 sps:$4 sm:$0xff]  }
 0x1ad   : > { %3820 = vmatpush2.bf16.msra.mxu0 %v5117_v17  ;;  %v5213_v17 = vld [vmem:[%s6224_s8 + $0x6c0] ss:$8 sps:$4 sm:$0xff]  }
 0x1ae   : > { %3873 = vmatpush2.bf16.msra.mxu1 %v5120_v18  ;;  %3821 = vmatprep.subr.bf16.mxu0 %v5125_v19  ;;  %v5216_v18 = vld [vmem:[%s6224_s8 + $0x7c0] ss:$8 sps:$4 sm:$0xff]   ;;  %v5221_v19 = vld [vmem:[%s6224_s8 + $0x6b4] ss:$8 sps:$4 sm:$0xff]  }
 0x1af   : > { %3874 = vmatprep.subr.bf16.mxu1 %v5128_v20  ;;  %v5224_v20 = vld [vmem:[%s6224_s8 + $0x7b4] ss:$8 sps:$4 sm:$0xff]  }
 0x1b1   : > { %3822 = vmatpush2.bf16.msra.mxu0 %v5123_v21  ;;  %v5219_v21 = vld [vmem:[%s6224_s8 + $0x6b0] ss:$8 sps:$4 sm:$0xff]  }
 0x1b2   : > { %3875 = vmatpush2.bf16.msra.mxu1 %v5126_v22  ;;  %3823 = vmatprep.subr.bf16.mxu0 %v5131_v23  ;;  %v5222_v22 = vld [vmem:[%s6224_s8 + $0x7b0] ss:$8 sps:$4 sm:$0xff]   ;;  %v5227_v23 = vld [vmem:[%s6224_s8 + $0x6a4] ss:$8 sps:$4 sm:$0xff]  }
 0x1b3   : > { %3876 = vmatprep.subr.bf16.mxu1 %v5134_v24  ;;  %v5230_v24 = vld [vmem:[%s6224_s8 + $0x7a4] ss:$8 sps:$4 sm:$0xff]  }
 0x1b5   : > { %3824 = vmatpush2.bf16.msra.mxu0 %v5129_v25  ;;  %v5225_v25 = vld [vmem:[%s6224_s8 + $0x6a0] ss:$8 sps:$4 sm:$0xff]  }
 0x1b6   : > { %3877 = vmatpush2.bf16.msra.mxu1 %v5132_v26  ;;  %3899 = vmatprep.subr.bf16.mxu0 %v5143_v27  ;;  %v5228_v26 = vld [vmem:[%s6224_s8 + $0x7a0] ss:$8 sps:$4 sm:$0xff]   ;;  %v5233_v27 = vld [vmem:[%s6224_s8 + $0x694] ss:$8 sps:$4 sm:$0xff]  }
 0x1b7   : > { %3952 = vmatprep.subr.bf16.mxu1 %v5146_v28  ;;  %v5236_v28 = vld [vmem:[%s6224_s8 + $0x794] ss:$8 sps:$4 sm:$0xff]  }
 0x1b8   : > { %3826 = vmatmul.mubr.bf16.vlgmr.msra.gmra.mxu0 %v5135_v29  ;;  %v5231_v29 = vld [vmem:[%s6224_s8 + $0x690] ss:$8 sps:$4 sm:$0xff]  }
 0x1b9   : > { %3879 = vmatmul.mubr.bf16.vlgmr.msra.gmra.mxu1 %v5138_v30  ;;  %3900 = vmatpush1.bf16.msra.mxu0 %v5141_v31  ;;  %v5234_v30 = vld [vmem:[%s6224_s8 + $0x790] ss:$8 sps:$4 sm:$0xff]   ;;  %v5239_v31 = vld [vmem:[%s6224_s8 + $0x684] ss:$8 sps:$4 sm:$0xff]  }
 0x1ba   : > { %3953 = vmatpush1.bf16.msra.mxu1 %v5144_v32  ;;  %3901 = vmatprep.subr.bf16.mxu0 %v5149_v33  ;;  %v5242_v32 = vld [vmem:[%s6224_s8 + $0x784] ss:$8 sps:$4 sm:$0xff]   ;;  %v5237_v33 = vld [vmem:[%s6224_s8 + $0x680] ss:$8 sps:$4 sm:$0xff]  }
 0x1bb   : > { %3954 = vmatprep.subr.bf16.mxu1 %v5152_v34  ;;  %3835 = vmatprep.mubr.bf16.mxu0 %v5153_v35  ;;  %v5240_v34 = vld [vmem:[%s6224_s8 + $0x780] ss:$8 sps:$4 sm:$0xff]   ;;  %v5251_v35 = vld [vmem:[%s6224_s8 + $0x874] ss:$8 sps:$4 sm:$0xff]  }
 0x1bc   : > { %3888 = vmatprep.mubr.bf16.mxu1 %v5162_v36  ;;  %v5243_v36 = vld [vmem:[%s6222_s6 + $0x30] ss:$72 sps:$4 sm:$0xff]  }
 0x1bd   : > { %3902 = vmatpush1.bf16.msra.mxu0 %v5147_v37  ;;  %v5246_v37 = vld [vmem:[%s6222_s6 + $0x38] ss:$72 sps:$4 sm:$0xff]  }
 0x1be   : > { %3955 = vmatpush1.bf16.msra.mxu1 %v5150_v38  ;;  %3903 = vmatprep.subr.bf16.mxu0 %v5158_v39  ;;  %v5249_v38 = vld [vmem:[%s6224_s8 + $0x870] ss:$8 sps:$4 sm:$0xff]   ;;  %v5254_v39 = vld [vmem:[%s6224_s8 + $0x864] ss:$8 sps:$4 sm:$0xff]  }
 0x1bf   : > { %3956 = vmatprep.subr.bf16.mxu1 %v5161_v40  ;;  %v5255_v40 = vld [vmem:[%s6222_s6 + $0xc4] ss:$72 sps:$4 sm:$0xff]  }
 0x1c0   : > { %3836 = vmatmul.mubr.bf16.gmra.mxu0 %v5155_v41  ;;  %v5261_v41 = vld [vmem:[%s6222_s6 + $0xcc] ss:$72 sps:$4 sm:$0xff]  }
 0x1c1   : > { %3889 = vmatmul.mubr.bf16.gmra.mxu1 %v5164_v44  ;;  %3904 = vmatpush1.bf16.msra.mxu0 %v5156_v42  ;;  %v5252_v42 = vld [vmem:[%s6224_s8 + $0x860] ss:$8 sps:$4 sm:$0xff]  }
 0x1c2   : > { %3957 = vmatpush1.bf16.msra.mxu1 %v5159_v43  ;;  %3905 = vmatprep.subr.bf16.mxu0 %v5167_v45  ;;  %v5260_v43 = vld [vmem:[%s6224_s8 + $0x854] ss:$8 sps:$4 sm:$0xff]   ;;  %v5257_v44 = vld [vmem:[%s6222_s6 + $0xc0] ss:$72 sps:$4 sm:$0xff]  }
 0x1c3   : > { %3958 = vmatprep.subr.bf16.mxu1 %v5170_v46  ;;  %3931 = vmatprep.mubr.bf16.mxu0 %v5245_v47  ;;  %v5263_v45 = vld [vmem:[%s6222_s6 + $0xc8] ss:$72 sps:$4 sm:$0xff]   ;;  %v5266_v47 = vld [vmem:[%s6224_s8 + $0x844] ss:$8 sps:$4 sm:$0xff]  }
 0x1c4   : > { %3984 = vmatprep.mubr.bf16.mxu1 %v5248_v48  ;;  %v5258_v46 = vld [vmem:[%s6224_s8 + $0x850] ss:$8 sps:$4 sm:$0xff]   ;;  %v5305_v48 = vld [vmem:[%s6222_s6 + $0x44] ss:$72 sps:$4 sm:$0xff]  }
 0x1c5   : > { %3906 = vmatpush1.bf16.msra.mxu0 %v5165_v49  ;;  %v5308_v49 = vld [vmem:[%s6222_s6 + $0xd4] ss:$72 sps:$4 sm:$0xff]  }
 0x1c6   : > { %3959 = vmatpush1.bf16.msra.mxu1 %v5168_v50  ;;  %3907 = vmatprep.subr.bf16.mxu0 %v5173_v51  ;;  %v5264_v50 = vld [vmem:[%s6224_s8 + $0x840] ss:$8 sps:$4 sm:$0xff]   ;;  %v5269_v51 = vld [vmem:[%s6224_s8 + $0x834] ss:$8 sps:$4 sm:$0xff]  }
 0x1c7   : > { %3960 = vmatprep.subr.bf16.mxu1 %v5176_v52  ;;  %v5267_v52 = vld [vmem:[%s6224_s8 + $0x830] ss:$8 sps:$4 sm:$0xff]  }
 0x1c9   : > { %3908 = vmatpush1.bf16.msra.mxu0 %v5171_v53  ;;  %v5272_v53 = vld [vmem:[%s6224_s8 + $0x824] ss:$8 sps:$4 sm:$0xff]  }
 0x1ca   : > { %3961 = vmatpush1.bf16.msra.mxu1 %v5174_v54  ;;  %3909 = vmatprep.subr.bf16.mxu0 %v5179_v55  ;;  %v5270_v54 = vld [vmem:[%s6224_s8 + $0x820] ss:$8 sps:$4 sm:$0xff]   ;;  %v5275_v55 = vld [vmem:[%s6224_s8 + $0x814] ss:$8 sps:$4 sm:$0xff]  }
 0x1cb   : > { %3962 = vmatprep.subr.bf16.mxu1 %v5182_v56  ;;  %v5273_v56 = vld [vmem:[%s6224_s8 + $0x810] ss:$8 sps:$4 sm:$0xff]  }
 0x1cd   : > { %3910 = vmatpush1.bf16.msra.mxu0 %v5177_v57  ;;  %v5278_v57 = vld [vmem:[%s6224_s8 + $0x804] ss:$8 sps:$4 sm:$0xff]  }
 0x1ce   : > { %3963 = vmatpush1.bf16.msra.mxu1 %v5180_v58  ;;  %3911 = vmatprep.subr.bf16.mxu0 %v5185_v59  ;;  %v5276_v58 = vld [vmem:[%s6224_s8 + $0x800] ss:$8 sps:$4 sm:$0xff]   ;;  %v5281_v59 = vld [vmem:[%s6224_s8 + $0x8f4] ss:$8 sps:$4 sm:$0xff]  }
 0x1cf   : > { %3964 = vmatprep.subr.bf16.mxu1 %v5188_v60  ;;  %v5279_v60 = vld [vmem:[%s6224_s8 + $0x8f0] ss:$8 sps:$4 sm:$0xff]  }
 0x1d1   : > { %3912 = vmatpush1.bf16.msra.mxu0 %v5183_v61  ;;  %v5284_v61 = vld [vmem:[%s6224_s8 + $0x8e4] ss:$8 sps:$4 sm:$0xff]  }
 0x1d2   : > { %3965 = vmatpush1.bf16.msra.mxu1 %v5186_v62  ;;  %3913 = vmatprep.subr.bf16.mxu0 %v5191_v63  ;;  %v5282_v62 = vld [vmem:[%s6224_s8 + $0x8e0] ss:$8 sps:$4 sm:$0xff]   ;;  %v5287_v63 = vld [vmem:[%s6224_s8 + $0x8d4] ss:$8 sps:$4 sm:$0xff]  }
 0x1d3   : > { %3966 = vmatprep.subr.bf16.mxu1 %v5194_v0  ;;  %v5285_v0 = vld [vmem:[%s6224_s8 + $0x8d0] ss:$8 sps:$4 sm:$0xff]  }
 0x1d5   : > { %3914 = vmatpush1.bf16.msra.mxu0 %v5189_v1  ;;  %v5290_v1 = vld [vmem:[%s6224_s8 + $0x8c4] ss:$8 sps:$4 sm:$0xff]  }
 0x1d6   : > { %3967 = vmatpush1.bf16.msra.mxu1 %v5192_v2  ;;  %3915 = vmatprep.subr.bf16.mxu0 %v5197_v3  ;;  %v5288_v2 = vld [vmem:[%s6224_s8 + $0x8c0] ss:$8 sps:$4 sm:$0xff]   ;;  %v5293_v3 = vld [vmem:[%s6224_s8 + $0x8b4] ss:$8 sps:$4 sm:$0xff]  }
 0x1d7   : > { %3968 = vmatprep.subr.bf16.mxu1 %v5200_v4  ;;  %v5291_v4 = vld [vmem:[%s6224_s8 + $0x8b0] ss:$8 sps:$4 sm:$0xff]  }
 0x1d9   : > { %3916 = vmatpush2.bf16.msra.mxu0 %v5195_v5  ;;  %v5296_v5 = vld [vmem:[%s6224_s8 + $0x8a4] ss:$8 sps:$4 sm:$0xff]  }
 0x1da   : > { %3969 = vmatpush2.bf16.msra.mxu1 %v5198_v6  ;;  %3917 = vmatprep.subr.bf16.mxu0 %v5203_v7  ;;  %v5294_v6 = vld [vmem:[%s6224_s8 + $0x8a0] ss:$8 sps:$4 sm:$0xff]   ;;  %v5299_v7 = vld [vmem:[%s6224_s8 + $0x894] ss:$8 sps:$4 sm:$0xff]  }
 0x1db   : > { %3970 = vmatprep.subr.bf16.mxu1 %v5206_v8  ;;  %v5297_v8 = vld [vmem:[%s6224_s8 + $0x890] ss:$8 sps:$4 sm:$0xff]  }
 0x1dd   : > { %3918 = vmatpush2.bf16.msra.mxu0 %v5201_v9  ;;  %v5302_v9 = vld [vmem:[%s6224_s8 + $0x884] ss:$8 sps:$4 sm:$0xff]  }
 0x1de   : > { %3971 = vmatpush2.bf16.msra.mxu1 %v5204_v10  ;;  %3919 = vmatprep.subr.bf16.mxu0 %v5209_v11  ;;  %v5300_v10 = vld [vmem:[%s6224_s8 + $0x880] ss:$8 sps:$4 sm:$0xff]  }
 0x1df   : > { %3972 = vmatprep.subr.bf16.mxu1 %v5212_v12  ;;  %v5303_v11 = vld [vmem:[%s6222_s6 + $0x40] ss:$72 sps:$4 sm:$0xff]   ;;  %v5306_v12 = vld [vmem:[%s6222_s6 + $0xd0] ss:$72 sps:$4 sm:$0xff]  }
 0x1e1   : > { %3920 = vmatpush2.bf16.msra.mxu0 %v5207_v13 }
 0x1e2   : > { %3973 = vmatpush2.bf16.msra.mxu1 %v5210_v14  ;;  %3921 = vmatprep.subr.bf16.mxu0 %v5215_v15 }
 0x1e3   : > { %3974 = vmatprep.subr.bf16.mxu1 %v5218_v16 }
 0x1e5   : > { %3922 = vmatpush2.bf16.msra.mxu0 %v5213_v17 }
 0x1e6   : > { %3975 = vmatpush2.bf16.msra.mxu1 %v5216_v18  ;;  %3923 = vmatprep.subr.bf16.mxu0 %v5221_v19 }
 0x1e7   : > { %3976 = vmatprep.subr.bf16.mxu1 %v5224_v20 }
 0x1e9   : > { %3924 = vmatpush2.bf16.msra.mxu0 %v5219_v21 }
 0x1ea   : > { %3977 = vmatpush2.bf16.msra.mxu1 %v5222_v22  ;;  %3925 = vmatprep.subr.bf16.mxu0 %v5227_v23 }
 0x1eb   : > { %3978 = vmatprep.subr.bf16.mxu1 %v5230_v24 }
 0x1ed   : > { %3926 = vmatpush2.bf16.msra.mxu0 %v5225_v25 }
 0x1ee   : > { %3979 = vmatpush2.bf16.msra.mxu1 %v5228_v26  ;;  %3927 = vmatprep.subr.bf16.mxu0 %v5233_v27 }
 0x1ef   : > { %3980 = vmatprep.subr.bf16.mxu1 %v5236_v28 }
 0x1f1   : > { %3928 = vmatpush2.bf16.msra.mxu0 %v5231_v29 }
 0x1f2   : > { %3981 = vmatpush2.bf16.msra.mxu1 %v5234_v30  ;;  %3929 = vmatprep.subr.bf16.mxu0 %v5239_v31 }
 0x1f3   : > { %3982 = vmatprep.subr.bf16.mxu1 %v5242_v32 }
 0x1f5   : > { %3930 = vmatpush2.bf16.msra.mxu0 %v5237_v33 }
 0x1f6   : > { %3983 = vmatpush2.bf16.msra.mxu1 %v5240_v34  ;;  %4005 = vmatprep.subr.bf16.mxu0 %v5251_v35 }
 0x1f7   : > { %4698 = vmatprep.subr.bf16.mxu1 %v5251_v35 }
 0x1f8   : > { %3932 = vmatmul.mubr.bf16.vlgmr.msra.gmra.mxu0 %v5243_v36  ;;  %v3615_v13 = vpop.f32.mrf.mxu0 }
 0x1f9   : > { %3985 = vmatmul.mubr.bf16.vlgmr.msra.gmra.mxu1 %v5246_v37  ;;  %4006 = vmatpush1.bf16.msra.mxu0 %v5249_v38  ;;  %v3668_v15 = vpop.f32.mrf.mxu1 }
 0x1fa   : > { %4714 = vmatpush1.bf16.msra.mxu1 %v5249_v38  ;;  %4007 = vmatprep.subr.bf16.mxu0 %v5254_v39  ;;  %v3617_v14 = vpop.f32.mrf.mxu0 }
 0x1fb   : > { %4699 = vmatprep.subr.bf16.mxu1 %v5254_v39  ;;  %3941 = vmatprep.mubr.bf16.mxu0 %v5255_v40  ;;  %v3670_v17 = vpop.f32.mrf.mxu1 }
 0x1fc   : > { %3994 = vmatprep.mubr.bf16.mxu1 %v5261_v41  ;;  %v3619_v16 = vpop.f32.mrf.mxu0 }
 0x1fd   : > { %4008 = vmatpush1.bf16.msra.mxu0 %v5252_v42  ;;  %v3672_v20 = vpop.f32.mrf.mxu1 }
 0x1fe   : > { %4715 = vmatpush1.bf16.msra.mxu1 %v5252_v42  ;;  %4009 = vmatprep.subr.bf16.mxu0 %v5260_v43  ;;  %v3621_v18 = vpop.f32.mrf.mxu0 }
 0x1ff   : > { %4700 = vmatprep.subr.bf16.mxu1 %v5260_v43  ;;  %v3674_v22 = vpop.f32.mrf.mxu1 }
 0x200   : > { %3942 = vmatmul.mubr.bf16.gmra.mxu0 %v5257_v44  ;;  %v3625_v19 = vpop.f32.mrf.mxu0 }
 0x201   : > { %3995 = vmatmul.mubr.bf16.gmra.mxu1 %v5263_v45  ;;  %4010 = vmatpush1.bf16.msra.mxu0 %v5258_v46  ;;  %v3678_v23 = vpop.f32.mrf.mxu1 }
 0x202   : > { %4716 = vmatpush1.bf16.msra.mxu1 %v5258_v46  ;;  %4011 = vmatprep.subr.bf16.mxu0 %v5266_v47  ;;  %v3627_v21 = vpop.f32.mrf.mxu0 }
 0x203   : > { %4701 = vmatprep.subr.bf16.mxu1 %v5266_v47  ;;  %4037 = vmatprep.mubr.bf16.mxu0 %v5305_v48  ;;  %v3680_v25 = vpop.f32.mrf.mxu1 }
 0x204   : > { %4047 = vmatprep.mubr.bf16.mxu1 %v5308_v49  ;;  %v3629_v24 = vpop.f32.mrf.mxu0 }
 0x205   : > { %4012 = vmatpush1.bf16.msra.mxu0 %v5264_v50  ;;  %v3682_v28 = vpop.f32.mrf.mxu1 }
 0x206   : > { %4717 = vmatpush1.bf16.msra.mxu1 %v5264_v50  ;;  %4013 = vmatprep.subr.bf16.mxu0 %v5269_v51  ;;  %v3631_v26 = vpop.f32.mrf.mxu0 }
 0x207   : > { %4702 = vmatprep.subr.bf16.mxu1 %v5269_v51  ;;  %v3684_v30 = vpop.f32.mrf.mxu1 }
 0x209   : > { %4014 = vmatpush1.bf16.msra.mxu0 %v5267_v52 }
 0x20a   : > { %4718 = vmatpush1.bf16.msra.mxu1 %v5267_v52  ;;  %4015 = vmatprep.subr.bf16.mxu0 %v5272_v53 }
 0x20b   : > { %4703 = vmatprep.subr.bf16.mxu1 %v5272_v53 }
 0x20d   : > { %4016 = vmatpush1.bf16.msra.mxu0 %v5270_v54 }
 0x20e   : > { %4719 = vmatpush1.bf16.msra.mxu1 %v5270_v54  ;;  %4017 = vmatprep.subr.bf16.mxu0 %v5275_v55 }
 0x20f   : > { %4704 = vmatprep.subr.bf16.mxu1 %v5275_v55 }
 0x211   : > { %4018 = vmatpush1.bf16.msra.mxu0 %v5273_v56 }
 0x212   : > { %4720 = vmatpush1.bf16.msra.mxu1 %v5273_v56  ;;  %4019 = vmatprep.subr.bf16.mxu0 %v5278_v57 }
 0x213   : > { %4705 = vmatprep.subr.bf16.mxu1 %v5278_v57 }
 0x215   : > { %4020 = vmatpush1.bf16.msra.mxu0 %v5276_v58 }
 0x216   : > { %4721 = vmatpush1.bf16.msra.mxu1 %v5276_v58  ;;  %4021 = vmatprep.subr.bf16.mxu0 %v5281_v59 }
 0x217   : > { %4706 = vmatprep.subr.bf16.mxu1 %v5281_v59 }
 0x219   : > { %4022 = vmatpush2.bf16.msra.mxu0 %v5279_v60 }
 0x21a   : > { %4722 = vmatpush2.bf16.msra.mxu1 %v5279_v60  ;;  %4023 = vmatprep.subr.bf16.mxu0 %v5284_v61 }
 0x21b   : > { %4707 = vmatprep.subr.bf16.mxu1 %v5284_v61 }
 0x21d   : > { %4024 = vmatpush2.bf16.msra.mxu0 %v5282_v62 }
 0x21e   : > { %4723 = vmatpush2.bf16.msra.mxu1 %v5282_v62  ;;  %4025 = vmatprep.subr.bf16.mxu0 %v5287_v63 }
 0x21f   : > { %4708 = vmatprep.subr.bf16.mxu1 %v5287_v63 }
 0x221   : > { %4026 = vmatpush2.bf16.msra.mxu0 %v5285_v0 }
 0x222   : > { %4724 = vmatpush2.bf16.msra.mxu1 %v5285_v0  ;;  %4027 = vmatprep.subr.bf16.mxu0 %v5290_v1 }
 0x223   : > { %4709 = vmatprep.subr.bf16.mxu1 %v5290_v1 }
 0x225   : > { %4028 = vmatpush2.bf16.msra.mxu0 %v5288_v2 }
 0x226   : > { %4725 = vmatpush2.bf16.msra.mxu1 %v5288_v2  ;;  %4029 = vmatprep.subr.bf16.mxu0 %v5293_v3 }
 0x227   : > { %4710 = vmatprep.subr.bf16.mxu1 %v5293_v3  ;;  %v3669_v3 = vadd.f32 %v3668_v15, %v3615_v13  ;;  %v3675_v13 = vadd.f32 %v3674_v22, %v3621_v18  ;;  %v3685_v15 = vadd.f32 %v3684_v30, %v3631_v26 }
 0x229   : > { %4030 = vmatpush2.bf16.msra.mxu0 %v5291_v4 }
 0x22a   : > { %4726 = vmatpush2.bf16.msra.mxu1 %v5291_v4  ;;  %4031 = vmatprep.subr.bf16.mxu0 %v5296_v5  ;;  %v3679_v4 = vadd.f32 %v3678_v23, %v3625_v19 }
 0x22b   : > { %4711 = vmatprep.subr.bf16.mxu1 %v5296_v5 }
 0x22d   : > { %4032 = vmatpush2.bf16.msra.mxu0 %v5294_v6 }
 0x22e   : > { %4727 = vmatpush2.bf16.msra.mxu1 %v5294_v6  ;;  %4033 = vmatprep.subr.bf16.mxu0 %v5299_v7  ;;  %v3671_v6 = vadd.f32 %v3670_v17, %v3617_v14 }
 0x22f   : > { %4712 = vmatprep.subr.bf16.mxu1 %v5299_v7  ;;  %v3681_v7 = vadd.f32 %v3680_v25, %v3627_v21 }
 0x231   : > { %4034 = vmatpush2.bf16.msra.mxu0 %v5297_v8 }
 0x232   : > { %4728 = vmatpush2.bf16.msra.mxu1 %v5297_v8  ;;  %4035 = vmatprep.subr.bf16.mxu0 %v5302_v9 }
 0x233   : > { %4713 = vmatprep.subr.bf16.mxu1 %v5302_v9 }
 0x235   : > { %4036 = vmatpush2.bf16.msra.mxu0 %v5300_v10 }
 0x236   : > { %4729 = vmatpush2.bf16.msra.mxu1 %v5300_v10  ;;  %v3673_v10 = vadd.f32 %v3672_v20, %v3619_v16 }
 0x238   : > { %4038 = vmatmul.mubr.bf16.vlgmr.msra.gmra.mxu0 %v5303_v11  ;;  %v3721_v27 = vpop.f32.mrf.mxu0  ;;  %v3683_v11 = vadd.f32 %v3682_v28, %v3629_v24 }
 0x239   : > { %4048 = vmatmul.mubr.bf16.vlgmr.msra.gmra.mxu1 %v5306_v12  ;;  %v3774_v31 = vpop.f32.mrf.mxu1  ;;  %v3722_v8 = vadd.f32 %v3721_v27, %v3669_v3 }
 0x23a   : > { %v3723_v29 = vpop.f32.mrf.mxu0 }
 0x23b   : > { %v3776_v33 = vpop.f32.mrf.mxu1  ;;  %v3775_v17 = vadd.f32 %v3774_v31, %v3722_v8 }
 0x23c   : > { %v3725_v32 = vpop.f32.mrf.mxu0 }
 0x23d   : > { %v3778_v35 = vpop.f32.mrf.mxu1  ;;  %v3726_v19 = vadd.f32 %v3725_v32, %v3673_v10 }
 0x23e   : > { %v3727_v34 = vpop.f32.mrf.mxu0 }
 0x23f   : > { %v3780_v37 = vpop.f32.mrf.mxu1  ;;  %v3728_v25 = vadd.f32 %v3727_v34, %v3675_v13  ;;  %v3779_v24 = vadd.f32 %v3778_v35, %v3726_v19  ;;  %v1634_v13 = vld [vmem:[#allocation2 + $0x20] sm:$0xff] }
 0x240   : > { %v3731_v36 = vpop.f32.mrf.mxu0 }
 0x241   : > { %v3784_v39 = vpop.f32.mrf.mxu1  ;;  %v3732_v9 = vadd.f32 %v3731_v36, %v3679_v4 }
 0x242   : > { %v3733_v38 = vpop.f32.mrf.mxu0 }
 0x243   : > { %v3786_v41 = vpop.f32.mrf.mxu1  ;;  %v3785_v21 = vadd.f32 %v3784_v39, %v3732_v9 }
 0x244   : > { %v3735_v40 = vpop.f32.mrf.mxu0 }
 0x245   : > { %v3788_v43 = vpop.f32.mrf.mxu1  ;;  %v3736_v23 = vadd.f32 %v3735_v40, %v3683_v11 }
 0x246   : > { %v3737_v42 = vpop.f32.mrf.mxu0 }
 0x247   : > { %v3790_v45 = vpop.f32.mrf.mxu1  ;;  %v3738_v3 = vadd.f32 %v3737_v42, %v3685_v15  ;;  %v3789_v28 = vadd.f32 %v3788_v43, %v3736_v23 }
 0x249   : > { %v3791_v18 = vadd.f32 %v3790_v45, %v3738_v3 }
 0x278   : > { %v3827_v44 = vpop.f32.mrf.mxu0 }
 0x279   : > { %v3880_v47 = vpop.f32.mrf.mxu1  ;;  %v3828_v36 = vadd.f32 %v3827_v44, %v3775_v17 }
 0x27a   : > { %v3829_v46 = vpop.f32.mrf.mxu0 }
 0x27b   : > { %v3882_v49 = vpop.f32.mrf.mxu1  ;;  %v3881_v30 = vadd.f32 %v3880_v47, %v3828_v36 }
 0x27c   : > { %v3831_v48 = vpop.f32.mrf.mxu0 }
 0x27d   : > { %v3884_v51 = vpop.f32.mrf.mxu1  ;;  %v3832_v22 = vadd.f32 %v3831_v48, %v3779_v24  ;;  %v1632_v24 = vld [vmem:[#allocation2 + $0x10] sm:$0xff] }
 0x27e   : > { %v3833_v50 = vpop.f32.mrf.mxu0 }
 0x27f   : > { %v6555_v53 = vpop.f32.mrf.mxu1 }
 0x280   : > { %v3837_v52 = vpop.f32.mrf.mxu0  ;;  %6641 = vst [vmem:[#allocation9_spill] sm:$0xff] %v6555_v53  ;;  %v3724_v53 = vadd.f32 %v3723_v29, %v3671_v6  ;;  %v3781_v6 = vadd.f32 %v3780_v37, %v3728_v25  ;;  %v1631_v25 = vld [vmem:[#allocation2 + $0x18] sm:$0xff] }
 0x281   : > { %v3890_v54 = vpop.f32.mrf.mxu1  ;;  %v3838_v16 = vadd.f32 %v3837_v52, %v3785_v21  ;;  %v3885_v52 = vadd.f32 %v3884_v51, %v3832_v22 }
 0x282   : > { %v3839_v55 = vpop.f32.mrf.mxu0  ;;  %v3777_v27 = vadd.f32 %v3776_v33, %v3724_v53  ;;  %v3834_v39 = vadd.f32 %v3833_v50, %v3781_v6 }
 0x283   : > { %v3892_v56 = vpop.f32.mrf.mxu1  ;;  %v3891_v32 = vadd.f32 %v3890_v54, %v3838_v16 }
 0x284   : > { %v3841_v57 = vpop.f32.mrf.mxu0  ;;  %v3830_v29 = vadd.f32 %v3829_v46, %v3777_v27  ;;  %v1635_v27 = vld [vmem:[#allocation2 + $0x28] sm:$0xff] }
 0x285   : > { %v3894_v58 = vpop.f32.mrf.mxu1  ;;  %v3842_v26 = vadd.f32 %v3841_v57, %v3789_v28 }
 0x286   : > { %v3843_v59 = vpop.f32.mrf.mxu0  ;;  %v3883_v33 = vadd.f32 %v3882_v49, %v3830_v29  ;;  %v1636_v29 = vld [vmem:[#allocation2 + $0x38] sm:$0xff] }
 0x287   : > { %v3896_v61 = vpop.f32.mrf.mxu1  ;;  %v3844_v34 = vadd.f32 %v3843_v59, %v3791_v18  ;;  %v3895_v35 = vadd.f32 %v3894_v58, %v3842_v26 }
 0x289   : > { %v3897_v45 = vadd.f32 %v3896_v61, %v3844_v34  ;;  %v1630_v61 = vld [vmem:[#allocation2] sm:$0xff] }
 0x2b8   : > { %v3933_v60 = vpop.f32.mrf.mxu0 }
 0x2b9   : > { %v3986_v62 = vpop.f32.mrf.mxu1  ;;  %v3934_v42 = vadd.f32 %v3933_v60, %v3881_v30 }
 0x2ba   : > { %v3935_v63 = vpop.f32.mrf.mxu0 }
 0x2bb   : > { %v6557_v0 = vpop.f32.mrf.mxu1  ;;  %v3936_v43 = vadd.f32 %v3935_v63, %v3883_v33  ;;  %v3987_v54 = vadd.f32 %v3986_v62, %v3934_v42 }
 0x2bc   : > { %6642 = vst [vmem:[#allocation10_spill] sm:$0xff] %v6557_v0  ;;  %v3937_v1 = vpop.f32.mrf.mxu0  ;;  %v3734_v0 = vadd.f32 %v3733_v38, %v3681_v7  ;;  %v1629_v7 = vld [vmem:[#allocation2 + $0x30] sm:$0xff] }
 0x2bd   : > { %v6559_v2 = vpop.f32.mrf.mxu1  ;;  %v3938_v48 = vadd.f32 %v3937_v1, %v3885_v52 }
 0x2be   : > { %6643 = vst [vmem:[#allocation11_spill] sm:$0xff] %v6559_v2  ;;  %v3939_v5 = vpop.f32.mrf.mxu0  ;;  %v3787_v4 = vadd.f32 %v3786_v41, %v3734_v0 }
 0x2bf   : > { %v6561_v12 = vpop.f32.mrf.mxu1 }
 0x2c0   : > { %6644 = vst [vmem:[#allocation12_spill] sm:$0xff] %v6561_v12  ;;  %v3943_v2 = vpop.f32.mrf.mxu0  ;;  %v3840_v38 = vadd.f32 %v3839_v55, %v3787_v4  ;;  %v6645_v55 = vld [vmem:[#allocation9_spill] sm:$0xff] }
 0x2c1   : > { %v3996_v14 = vpop.f32.mrf.mxu1  ;;  %v3944_v44 = vadd.f32 %v3943_v2, %v3891_v32  ;;  %v3887_v37 = vadd.f32 %v6645_v55, %v3834_v39 }
 0x2c2   : > { %v3945_v20 = vpop.f32.mrf.mxu0  ;;  %v3893_v41 = vadd.f32 %v3892_v56, %v3840_v38  ;;  %v1633_v56 = vld [vmem:[#allocation2 + $0x8] sm:$0xff] }
 0x2c3   : > { %v3998_v12 = vpop.f32.mrf.mxu1  ;;  %v3997_v0 = vadd.f32 %v3996_v14, %v3944_v44  ;;  %v3940_v50 = vadd.f32 %v3939_v5, %v3887_v37  ;;  %v6646_v2 = vld [vmem:[#allocation10_spill] sm:$0xff] }
 0x2c4   : > { %v3947_v31 = vpop.f32.mrf.mxu0  ;;  %v3946_v53 = vadd.f32 %v3945_v20, %v3893_v41  ;;  %v3989_v51 = vadd.f32 %v6646_v2, %v3936_v43 }
 0x2c5   : > { %v4000_v40 = vpop.f32.mrf.mxu1  ;;  %v3948_v57 = vadd.f32 %v3947_v31, %v3895_v35  ;;  %v6647_v9 = vld [vmem:[#allocation11_spill] sm:$0xff] }
 0x2c6   : > { %v3949_v46 = vpop.f32.mrf.mxu0  ;;  %v3999_v58 = vadd.f32 %v3998_v12, %v3946_v53  ;;  %v3991_v10 = vadd.f32 %v6647_v9, %v3938_v48 }
 0x2c7   : > { %v4002_v47 = vpop.f32.mrf.mxu1  ;;  %v3950_v59 = vadd.f32 %v3949_v46, %v3897_v45  ;;  %v4001_v11 = vadd.f32 %v4000_v40, %v3948_v57  ;;  %v6648_v14 = vld [vmem:[#allocation12_spill] sm:$0xff] }
 0x2c8   : > { %v3993_v17 = vadd.f32 %v6648_v14, %v3940_v50 }
 0x2c9   : > { %v4003_v21 = vadd.f32 %v4002_v47, %v3950_v59 }
 0x2f8   : > { %v4039_v49 = vpop.f32.mrf.mxu0 }
 0x2f9   : > { %v4049_v60 = vpop.f32.mrf.mxu1  ;;  %v4040_v63 = vadd.f32 %v4039_v49, %v3987_v54 }
 0x2fa   : > { %v4050_v8 = vadd.f32 %v4049_v60, %v3997_v0  ;;  %v4041_v1 = vpop.f32.mrf.mxu0 }
 0x2fb   : > { %v4051_v15 = vpop.f32.mrf.mxu1  ;;  %v4058_v62 = vadd.f32 %v4040_v63, %v1629_v7  ;;  %v4042_v5 = vadd.f32 %v4041_v1, %v3989_v51 }
 0x2fc   : > { %v4062_v19 = vadd.f32 %v4050_v8, %v1633_v56  ;;  %v4052_v23 = vadd.f32 %v4051_v15, %v3999_v58  ;;  %v4043_v3 = vpop.f32.mrf.mxu0 }
 0x2fd   : > { %v4053_v12 = vpop.f32.mrf.mxu1  ;;  %4066 = vst [vmem:[#allocation2 + $0x30] sm:$0xff] %v4058_v62  ;;  %v4059_v4 = vadd.f32 %v4042_v5, %v1630_v61  ;;  %v4044_v16 = vadd.f32 %v4043_v3, %v3991_v10 }
 0x2fe   : > { %4070 = vst [vmem:[#allocation2 + $0x8] sm:$0xff] %v4062_v19  ;;  %v4063_v36 = vadd.f32 %v4052_v23, %v1634_v13  ;;  %v4054_v20 = vadd.f32 %v4053_v12, %v4001_v11  ;;  %v4045_v28 = vpop.f32.mrf.mxu0 }
 0x2ff   : > { %v4055_v38 = vpop.f32.mrf.mxu1  ;;  %4067 = vst [vmem:[#allocation2] sm:$0xff] %v4059_v4  ;;  %v4060_v6 = vadd.f32 %v4044_v16, %v1631_v25  ;;  %v4046_v22 = vadd.f32 %v4045_v28, %v3993_v17 }
 0x300   : > { %4071 = vst [vmem:[#allocation2 + $0x20] sm:$0xff] %v4063_v36  ;;  %v4064_v18 = vadd.f32 %v4054_v20, %v1635_v27  ;;  %v4056_v26 = vadd.f32 %v4055_v38, %v4003_v21  ;;  %4077 = sbr.rel (%p4680_p6) target bundleno = 789 (0x315), region = 143 }
 0x301   : > { %4068 = vst [vmem:[#allocation2 + $0x18] sm:$0xff] %v4060_v6  ;;  %v4061_v30 = vadd.f32 %v4046_v22, %v1632_v24 }
 0x302   : > { %4072 = vst [vmem:[#allocation2 + $0x28] sm:$0xff] %v4064_v18  ;;  %v4065_v32 = vadd.f32 %v4056_v26, %v1636_v29 }
 0x303   : > { %4069 = vst [vmem:[#allocation2 + $0x10] sm:$0xff] %v4061_v30 }
 0x304   : > { %4073 = vst [vmem:[#allocation2 + $0x38] sm:$0xff] %v4065_v32 }
 0x305   : > { %v4088_v31 = vlaneseq  ;;  %v4106_v34 = vld [vmem:[%s6226_s1] sm:$0xff]  ;;  %v4078_v40 = vld [vmem:[#allocation2 + $0x30] sm:$0xff]  ;;  %v4107_v41 = vld [vmem:[%s6226_s1 + $0x8] sm:$0xff] }
 0x306   : > { %v4086_v33 = vld [vmem:[%s1611_s30] sm:$0x3]  ;;  %v4108_v35 = vld [vmem:[%s6226_s1 + $0x10] sm:$0xff]  ;;  %v4109_v43 = vld [vmem:[%s6226_s1 + $0x18] sm:$0xff]  ;;  %v4110_v53 = vunpack.c.l.bf16 %v4106_v34  ;;  %v4111_v46 = vunpack.c.h.bf16 %v4106_v34  ;;  %v4112_v47 = vunpack.c.l.bf16 %v4107_v41  ;;  %v4113_v54 = vunpack.c.h.bf16 %v4107_v41 }
 0x307   : > { %v4089_v39 = vshrl.u32 %v4088_v31, 7  ;;  %v4079_v42 = vld [vmem:[#allocation2] sm:$0xff]  ;;  %v4082_v45 = vld [vmem:[#allocation2 + $0x8] sm:$0xff]  ;;  %v4114_v7 = vunpack.c.l.bf16 %v4108_v35  ;;  %v4115_v49 = vunpack.c.h.bf16 %v4108_v35  ;;  %v4116_v56 = vunpack.c.l.bf16 %v4109_v43 }
 0x308   : > { %v4080_v55 = vld [vmem:[#allocation2 + $0x18] sm:$0xff]  ;;  %v4083_v0 = vld [vmem:[#allocation2 + $0x20] sm:$0xff]  ;;  %v4117_v60 = vunpack.c.h.bf16 %v4109_v43 }
 0x309   : > { %v4090_v44 = vsub.s32 0, %v4089_v39  ;;  %v4094_v52 = vsub.s32 1, %v4089_v39  ;;  %v4084_v50 = vld [vmem:[#allocation2 + $0x28] sm:$0xff] }
 0x30a   : > { %v4081_v37 = vld [vmem:[#allocation2 + $0x10] sm:$0xff] }
 0x30b   : > { %v4091_v48 = vrot.slane %v4086_v33, %v4090_v44  ;;  %v4095_v57 = vrot.slane %v4086_v33, %v4094_v52  ;;  %v4085_v59 = vld [vmem:[#allocation2 + $0x38] sm:$0xff] }
 0x30d   : > { %v4098_v2 = vadd.f32 %v4091_v48, %v4078_v40  ;;  %v4099_v51 = vadd.f32 %v4095_v57, %v4079_v42  ;;  %v4100_v58 = vadd.f32 %v4091_v48, %v4080_v55  ;;  %v4101_v63 = vadd.f32 %v4095_v57, %v4081_v37 }
 0x30e   : > { %v4102_v8 = vadd.f32 %v4091_v48, %v4082_v45  ;;  %v4103_v9 = vadd.f32 %v4095_v57, %v4083_v0  ;;  %v4104_v10 = vadd.f32 %v4091_v48, %v4084_v50  ;;  %v4105_v11 = vadd.f32 %v4095_v57, %v4085_v59 }
 0x30f   : > { %v4118_v61 = vadd.f32 %v4110_v53, %v4098_v2  ;;  %v4119_v1 = vadd.f32 %v4111_v46, %v4099_v51  ;;  %v4120_v13 = vadd.f32 %v4112_v47, %v4100_v58  ;;  %v4121_v15 = vadd.f32 %v4113_v54, %v4101_v63 }
 0x310   : > { %v4122_v62 = vadd.f32 %v4114_v7, %v4102_v8  ;;  %v4123_v19 = vadd.f32 %v4115_v49, %v4103_v9  ;;  %v4124_v5 = vadd.f32 %v4116_v56, %v4104_v10  ;;  %v4125_v23 = vadd.f32 %v4117_v60, %v4105_v11 }
 0x311   : > { %v4693_v14 = vpack.c.bf16 %v4119_v1, %v4118_v61  ;;  %v4694_v17 = vpack.c.bf16 %v4121_v15, %v4120_v13 }
 0x312   : > { %v4695_v21 = vpack.c.bf16 %v4123_v19, %v4122_v62  ;;  %v4696_v25 = vpack.c.bf16 %v4125_v23, %v4124_v5 }
 0x313   : > { %4150 = vst [vmem:[%s6228_s17] sm:$0xff] %v4693_v14  ;;  %4151 = vst [vmem:[%s6228_s17 + $0x8] sm:$0xff] %v4694_v17 }
 0x314   : > { %4152 = vst [vmem:[%s6228_s17 + $0x10] sm:$0xff] %v4695_v21  ;;  %4153 = vst [vmem:[%s6228_s17 + $0x18] sm:$0xff] %v4696_v25 }
 0x315 PF: > { %4160 = sbr.rel (!%p5527_p13) target bundleno = 797 (0x31d), region = 147  ;;  %s4697_s1 = sshll.u32 (%p5527_p13), %s5383_s22, 3 }
 0x316   : > { %s4166_s9 = scalar_lea.vmem (%p5527_p13), %s6628_s4, %s4697_s1 }
 0x31a   : > { %v4201_v3 = vld [vmem:[%s6228_s17] sm:$0xff]  ;;  %v4203_v27 = vld [vmem:[%s6228_s17 + $0x8] sm:$0xff] }
 0x31b   : > { %v4205_v12 = vld [vmem:[%s6228_s17 + $0x10] sm:$0xff]  ;;  %v4207_v4 = vld [vmem:[%s6228_s17 + $0x18] sm:$0xff]  ;;  %4202 = vst [vmem:[%s4166_s9] sm:$0xff] %v4201_v3  ;;  %4204 = vst [vmem:[%s4166_s9 + $0x10] sm:$0xff] %v4203_v27 }
 0x31c   : > { %4206 = vst [vmem:[%s4166_s9 + $0x20] sm:$0xff] %v4205_v12  ;;  %4208 = vst [vmem:[%s4166_s9 + $0x30] sm:$0xff] %v4207_v4 }
 0x31d PF: > { %s14_s25 = sadd.s32 1, %s5395_s25   ;;  %s6649_s29 = sld [smem:[#allocation7_spill]] }
 0x31e   : > { %p11_p7 = scmp.ge.s32.totalorder %s14_s25, 6   ;;  %s6650_s11 = sld [smem:[#allocation8_spill]] }
 0x31f   : > { %s6651_s15 = smov %s5359_s16  ;;  %s6652_s16 = smov %s5519_s13 }
 0x320   : > { %s6653_s17 = smov %s5367_s18  ;;  %s6654_s18 = smov %s5516_s12 }
 0x321   : > { %s6655_s19 = smov %s5375_s20  ;;  %s6656_s20 = smov %s5500_s7 }
 0x322   : > { %s6657_s21 = smov %s5387_s23  ;;  %s6658_s22 = smov %s5391_s24 }
 0x323   : > { %s6659_s23 = smov %s6649_s29  ;;  %13 = sbr.rel (!%p11_p7) target bundleno = 9 (0x9), region = 235 }
 0x324   : > { %s6660_s24 = smov %s6650_s11 }

</bundles_post_ra>
